<compile_context>
chip_gen: v5e
topology: v5e:2x2
jax: 0.10.0
libtpu: 0.0.40
codegen_flags: <defaults>
</compile_context>

<pallas_src>
import functools

import jax
import jax.numpy as jnp
from jax import lax
from jax.experimental import pallas as pl
from jax.experimental.pallas import tpu as pltpu


def _round_up(n, m):
    return ((n + m - 1) // m) * m


def _attn_kernel(x_ref, wq_ref, wkv_ref, o_ref, *, scale, d, tb, n_valid):
    """One grid step produces the outputs for `tb` query rows.

    x_ref   : (Bp, D)  bf16  full (padded) input, resident across the grid
    wq_ref  : (D, D)   bf16  pre-transposed query weight
    wkv_ref : (D, 2D)  bf16  pre-transposed packed [Wk^T | Wm^T]
    o_ref   : (tb, D)  f32   output tile for this step's query rows
    """
    i = pl.program_id(0)
    row0 = pl.multiple_of(i * tb, tb)

    x_full = x_ref[...]                       # (Bp, D) bf16
    x_rows = x_ref[pl.ds(row0, tb), :]        # (tb, D) bf16 — this step's q rows

    # Projections: bf16 MXU operands, f32 accumulation.
    kv = jnp.dot(x_full, wkv_ref[...],
                 preferred_element_type=jnp.float32)           # (Bp, 2D) f32
    q = jnp.dot(x_rows, wq_ref[...],
                preferred_element_type=jnp.float32)            # (tb, D)  f32

    # Cast to bf16 at the slice so the logits / output matmuls run at native
    # bf16 MXU throughput (and no extra f32 slice copies are kept around).
    qb = q.astype(jnp.bfloat16)
    kb = kv[:, :d].astype(jnp.bfloat16)                        # (Bp, D) bf16
    vb = kv[:, d:].astype(jnp.bfloat16)                        # (Bp, D) bf16

    # attn = (q @ k^T) * sqrt(dim)   (== .div(dim ** -0.5) of the original).
    # Contract last dims of both operands -> no explicit transpose of k.
    logits = lax.dot_general(qb, kb, (((1,), (1,)), ((), ())),
                             preferred_element_type=jnp.float32) * scale

    if n_valid is not None:
        # Rows were zero-padded up to a sublane multiple: exclude the padded
        # keys from the softmax.
        col = lax.broadcasted_iota(jnp.int32, logits.shape, 1)
        logits = jnp.where(col < n_valid, logits, -1e30)

    # Numerically-stable softmax over the last axis, all in f32.
    logits = logits - jnp.max(logits, axis=-1, keepdims=True)
    p = jnp.exp(logits)
    inv_l = pl.reciprocal(jnp.sum(p, axis=-1, keepdims=True), approx=True)
    p = (p * inv_l).astype(jnp.bfloat16)

    # TODO(synk): Dropout(p=0.5) is treated as eval-mode identity; a training
    # variant would use pltpu.prng_seed + pltpu.prng_random_bits masking with
    # a 1/(1-p) rescale.

    o_ref[...] = jnp.dot(p, vb,
                         preferred_element_type=jnp.float32).astype(o_ref.dtype)


def pack_weights(wq, wk, wm):
    """One-time (load-time) packing, OUTSIDE the per-call hot path:
    pre-transpose PyTorch (out,in) weights, cast to bf16, pack [Wk^T | Wm^T]."""
    wq_t = jnp.asarray(wq).T.astype(jnp.bfloat16)
    wkv_t = jnp.concatenate([jnp.asarray(wk).T, jnp.asarray(wm).T],
                            axis=1).astype(jnp.bfloat16)
    return wq_t, wkv_t


@functools.partial(jax.jit, static_argnames=("dim", "row_block"))
def model_forward(x, wq_t, wkv_t, dim, row_block=256):
    """x: (B, D) f32; wq_t: (D, D) bf16; wkv_t: (D, 2D) bf16 (pre-packed)."""
    B, D = x.shape
    scale = float(dim) ** 0.5  # divisor is dim ** (-0.5) -> multiply by sqrt(dim)

    tb = min(row_block, _round_up(B, 8))     # query-row tile (sublane multiple)
    Bp = _round_up(B, tb)                    # padded row count
    grid = (Bp // tb,)
    n_valid = B if Bp != B else None         # static: mask only when padded

    x_pad = x if Bp == B else jnp.pad(x, ((0, Bp - B), (0, 0)))
    x_bf = x_pad.astype(jnp.bfloat16)

    # Rough VMEM footprint (resident bf16 inputs, possibly double-buffered;
    # double-buffered f32 out tile; f32 intermediates) with 2x margin.
    est_vmem = (x_bf.size * 2 + wq_t.size * 2 + wkv_t.size * 2
                + 2 * tb * D * 4
                + Bp * 3 * D * 4
                + 2 * tb * Bp * 4)
    vmem_limit = int(min(max(2 * est_vmem, 16 * 1024 * 1024), 64 * 1024 * 1024))

    g = Bp // tb
    cost = pl.CostEstimate(
        flops=int(2 * g * Bp * D * (2 * D)      # kv projection (per tile)
                  + 2 * Bp * D * D              # q projection
                  + 2 * Bp * Bp * D             # q @ k^T
                  + 2 * Bp * Bp * D),           # p @ v
        transcendentals=int(Bp * Bp),
        bytes_accessed=int(x_bf.size * 2 + wq_t.size * 2 + wkv_t.size * 2
                           + Bp * D * 4),
    )

    out_pad = pl.pallas_call(
        functools.partial(_attn_kernel, scale=scale, d=D, tb=tb, n_valid=n_valid),
        out_shape=jax.ShapeDtypeStruct((Bp, D), x.dtype),
        grid=grid,
        in_specs=[
            pl.BlockSpec((Bp, D), lambda i: (0, 0)),        # x, resident
            pl.BlockSpec((D, D), lambda i: (0, 0)),         # Wq^T, resident
            pl.BlockSpec((D, 2 * D), lambda i: (0, 0)),     # [Wk^T|Wm^T], resident
        ],
        out_specs=pl.BlockSpec((tb, D), lambda i: (i, 0)),  # row-tiled output
        compiler_params=pltpu.CompilerParams(
            dimension_semantics=("parallel",),
            vmem_limit_bytes=vmem_limit),
        cost_estimate=cost,
    )(x_bf, wq_t, wkv_t)

    return out_pad[:B]


def reference_forward(x, wq, wk, wm, dim):
    """Pure-JAX reference using the same bf16-operand / f32-accumulate matmul
    precision as the kernel so the comparison is apples-to-apples."""
    xb = x.astype(jnp.bfloat16)
    q = jnp.dot(xb, wq.T.astype(jnp.bfloat16), preferred_element_type=jnp.float32)
    k = jnp.dot(xb, wk.T.astype(jnp.bfloat16), preferred_element_type=jnp.float32)
    v = jnp.dot(xb, wm.T.astype(jnp.bfloat16), preferred_element_type=jnp.float32)
    attn = jnp.dot(q.astype(jnp.bfloat16), k.astype(jnp.bfloat16).T,
                   preferred_element_type=jnp.float32) / (float(dim) ** -0.5)
    attn = jax.nn.softmax(attn, axis=-1)
    return jnp.dot(attn.astype(jnp.bfloat16), v.astype(jnp.bfloat16),
                   preferred_element_type=jnp.float32)


if __name__ == "__main__":
    # Shapes implied by the module: x = torch.randn(2, 768), Linear(768, 768).
    B, DIM = 2, 768
    key = jax.random.PRNGKey(0)
    kx, kq, kk, km = jax.random.split(key, 4)

    x = jax.random.normal(kx, (B, DIM), dtype=jnp.float32)
    # Deterministic Linear weight init (uniform in +-1/sqrt(dim), PyTorch-like).
    bound = 1.0 / (DIM ** 0.5)
    wq = jax.random.uniform(kq, (DIM, DIM), jnp.float32, -bound, bound)
    wk = jax.random.uniform(kk, (DIM, DIM), jnp.float32, -bound, bound)
    wm = jax.random.uniform(km, (DIM, DIM), jnp.float32, -bound, bound)

    # One-time weight packing (load time), outside the jitted hot path.
    wq_t, wkv_t = pack_weights(wq, wk, wm)

    out = jax.block_until_ready(model_forward(x, wq_t, wkv_t, DIM))

    ref = reference_forward(x, wq, wk, wm, DIM)
    assert out.shape == (B, DIM)
    assert jnp.allclose(out, ref, atol=2e-2, rtol=2e-2), "mismatch vs reference"

    print("KERNEL_OK")
</pallas_src>

<mosaic_0001>
module attributes {stable_mosaic.version = 11 : i64} {
  func.func @_attn_kernel(%arg0: i32, %arg1: memref<8x768xbf16, #tpu.memory_space<vmem>>, %arg2: memref<768x768xbf16, #tpu.memory_space<vmem>>, %arg3: memref<768x1536xbf16, #tpu.memory_space<vmem>>, %arg4: memref<8x768xf32, #tpu.memory_space<vmem>>) attributes {dimension_semantics = [#tpu.dimension_semantics<parallel>], iteration_bounds = array<i64: 1>, scalar_prefetch = 0 : i64, scratch_operands = 0 : i64, tpu.core_type = #tpu.core_type<tc>, window_params = [{pipeline_mode = #tpu.pipeline_mode<synchronous>, transform_indices = @transform_0, window_bounds = array<i64: 8, 768>}, {pipeline_mode = #tpu.pipeline_mode<synchronous>, transform_indices = @transform_1, window_bounds = array<i64: 768, 768>}, {pipeline_mode = #tpu.pipeline_mode<synchronous>, transform_indices = @transform_2, window_bounds = array<i64: 768, 1536>}, {transform_indices = @transform_3, window_bounds = array<i64: 8, 768>}]} {
    %c8_i32 = arith.constant 8 : i32
    %0 = arith.muli %arg0, %c8_i32 : i32
    %1 = tpu.assume_multiple %0, 8 : i32
    %c0 = arith.constant 0 : index
    %c0_0 = arith.constant 0 : index
    %2 = vector.load %arg1[%c0, %c0_0] : memref<8x768xbf16, #tpu.memory_space<vmem>>, vector<8x768xbf16>
    %3 = arith.index_cast %1 : i32 to index
    %c0_1 = arith.constant 0 : index
    %4 = vector.load %arg1[%3, %c0_1] : memref<8x768xbf16, #tpu.memory_space<vmem>>, vector<8x768xbf16>
    %c0_2 = arith.constant 0 : index
    %c0_3 = arith.constant 0 : index
    %5 = vector.load %arg3[%c0_2, %c0_3] : memref<768x1536xbf16, #tpu.memory_space<vmem>>, vector<768x1536xbf16>
    %cst = arith.constant dense<0.000000e+00> : vector<8x1536xf32>
    %6 = tpu.matmul %2, %5, %cst {dimension_numbers = #tpu.dot_dimension_numbers<[1], [0], [0], [1], [0, 0, 1, 1], [], []>} : vector<8x768xbf16>, vector<768x1536xbf16>, vector<8x1536xf32> -> vector<8x1536xf32>
    %c0_4 = arith.constant 0 : index
    %c0_5 = arith.constant 0 : index
    %7 = vector.load %arg2[%c0_4, %c0_5] : memref<768x768xbf16, #tpu.memory_space<vmem>>, vector<768x768xbf16>
    %cst_6 = arith.constant dense<0.000000e+00> : vector<8x768xf32>
    %8 = tpu.matmul %4, %7, %cst_6 {dimension_numbers = #tpu.dot_dimension_numbers<[1], [0], [0], [1], [0, 0, 1, 1], [], []>} : vector<8x768xbf16>, vector<768x768xbf16>, vector<8x768xf32> -> vector<8x768xf32>
    %9 = arith.truncf %8 : vector<8x768xf32> to vector<8x768xbf16>
    %10 = vector.extract_strided_slice %6 {offsets = [0, 0], sizes = [8, 768], strides = [1, 1]} : vector<8x1536xf32> to vector<8x768xf32>
    %11 = arith.truncf %10 : vector<8x768xf32> to vector<8x768xbf16>
    %12 = vector.extract_strided_slice %6 {offsets = [0, 768], sizes = [8, 768], strides = [1, 1]} : vector<8x1536xf32> to vector<8x768xf32>
    %13 = arith.truncf %12 : vector<8x768xf32> to vector<8x768xbf16>
    %cst_7 = arith.constant dense<0.000000e+00> : vector<8x8xf32>
    %14 = tpu.matmul %9, %11, %cst_7 {dimension_numbers = #tpu.dot_dimension_numbers<[1], [1], [0], [0], [0, 0, 1, 0], [], []>} : vector<8x768xbf16>, vector<8x768xbf16>, vector<8x8xf32> -> vector<8x8xf32>
    %cst_8 = arith.constant 27.7128124 : f32
    %15 = vector.broadcast %cst_8 : f32 to vector<8x8xf32>
    %16 = arith.mulf %14, %15 : vector<8x8xf32>
    %17 = tpu.iota {dimensions = array<i32: 1>} : vector<8x8xi32>
    %c2_i32 = arith.constant 2 : i32
    %18 = vector.broadcast %c2_i32 : i32 to vector<8x8xi32>
    %19 = arith.cmpi slt, %17, %18 : vector<8x8xi32>
    %cst_9 = arith.constant -1.000000e+30 : f32
    %20 = vector.broadcast %cst_9 : f32 to vector<8x8xf32>
    %21 = arith.select %19, %16, %20 : vector<8x8xi1>, vector<8x8xf32>
    %cst_10 = arith.constant dense<0xFF800000> : vector<8xf32>
    %22 = vector.multi_reduction <maximumf>, %21, %cst_10 [1] : vector<8x8xf32> to vector<8xf32>
    %23 = vector.shape_cast %22 : vector<8xf32> to vector<8x1xf32>
    %24 = vector.broadcast %23 : vector<8x1xf32> to vector<8x8xf32>
    %25 = arith.subf %21, %24 : vector<8x8xf32>
    %26 = math.exp %25 : vector<8x8xf32>
    %cst_11 = arith.constant dense<0.000000e+00> : vector<8xf32>
    %27 = vector.multi_reduction <add>, %26, %cst_11 [1] : vector<8x8xf32> to vector<8xf32>
    %28 = vector.shape_cast %27 : vector<8xf32> to vector<8x1xf32>
    %29 = tpu.reciprocal %28 {approx = true} : vector<8x1xf32> -> vector<8x1xf32>
    %30 = vector.broadcast %29 : vector<8x1xf32> to vector<8x8xf32>
    %31 = arith.mulf %26, %30 : vector<8x8xf32>
    %32 = arith.truncf %31 : vector<8x8xf32> to vector<8x8xbf16>
    %cst_12 = arith.constant dense<0.000000e+00> : vector<8x768xf32>
    %33 = tpu.matmul %32, %13, %cst_12 {dimension_numbers = #tpu.dot_dimension_numbers<[1], [0], [0], [1], [0, 0, 1, 1], [], []>} : vector<8x8xbf16>, vector<8x768xbf16>, vector<8x768xf32> -> vector<8x768xf32>
    %c0_13 = arith.constant 0 : index
    %c0_14 = arith.constant 0 : index
    %34 = vector.load %arg4[%c0_13, %c0_14] : memref<8x768xf32, #tpu.memory_space<vmem>>, vector<8x768xf32>
    tpu.vector_store %arg4[%c0_13, %c0_14], %33 {strides = array<i32>} : memref<8x768xf32, #tpu.memory_space<vmem>>, vector<8x768xf32>,
    return
  }
  func.func @transform_0(%arg0: i32) -> (i32, i32) {
    %c0_i32 = arith.constant 0 : i32
    %c0_i32_0 = arith.constant 0 : i32
    %c0_i32_1 = arith.constant 0 : i32
    return %c0_i32, %c0_i32_0 : i32, i32
  }
  func.func @transform_1(%arg0: i32) -> (i32, i32) {
    %c0_i32 = arith.constant 0 : i32
    %c0_i32_0 = arith.constant 0 : i32
    %c0_i32_1 = arith.constant 0 : i32
    return %c0_i32, %c0_i32_0 : i32, i32
  }
  func.func @transform_2(%arg0: i32) -> (i32, i32) {
    %c0_i32 = arith.constant 0 : i32
    %c0_i32_0 = arith.constant 0 : i32
    %c0_i32_1 = arith.constant 0 : i32
    return %c0_i32, %c0_i32_0 : i32, i32
  }
  func.func @transform_3(%arg0: i32) -> (i32, i32) {
    %c0_i32 = arith.constant 0 : i32
    %c0_i32_0 = arith.constant 0 : i32
    return %arg0, %c0_i32 : i32, i32
  }
}

</mosaic_0001>

<bundles_post_ra>
// kernel: model_forward.1
= control target key start
LH: loop header
LB: loop body
LE: loop exit
PB: predicated region body
PF: predicated region fallthrough
CT: control target
= control target key end

     0   :  { %8 = vsyncpa [#allocation3], 0  ;;  %s11631_s0 = inlined_call_operand.vmem [shape: bf16[8,768], index: 0, kind: input, shape index: {}]   ;;  %s11632_s1 = inlined_call_operand.hbm [shape: bf16[768,768], index: 1, kind: input, shape index: {}]   ;;  %s11633_s2 = inlined_call_operand.hbm [shape: bf16[768,1536], index: 2, kind: input, shape index: {}]   ;;  %s11634_s3 = inlined_call_operand.vmem [shape: f32[8,768], index: 3, kind: output, shape index: {}]  }
   0x1   :  { %s16_s14 = sshll.u32 %s11632_s1, 4  ;;  %s17_s14 = int_to_ptr.hbm [resolvable:$true] %s16_s14 }
   0x2   :  { %9 = vsyncpa [#allocation5], 0  ;;  %s11305_s15 = smov [#allocation2]   ;;  %s29_s19 = sshll.u32 %s11633_s2, 4  ;;  %s30_s19 = int_to_ptr.hbm [resolvable:$true] %s29_s19 }
   0x3   :  { %s18_s16 = sshll.u32 %s11305_s15, 4  ;;  %s11306_s20 = smov 384   ;;  %s19_s16 = int_to_ptr.vmem [resolvable:$true] %s18_s16 }
   0x4   :  { %s11307_s21 = smov 24   ;;  %s11308_s22 = smov [#allocation4]  }
   0x5   :  { %24 = dma.hbm_to_vmem [thread:$0]  %s17_s14, 36864, %s19_s16, [#allocation3], %s11306_s20, %s11306_s20, %s11307_s21  }
   0x6   :  { %s31_s23 = sshll.u32 %s11308_s22, 4  ;;  %s11309_s24 = smov 768   ;;  %s32_s23 = int_to_ptr.vmem [resolvable:$true] %s31_s23 }
   0x7   :  { %s11310_s25 = smov 48  }
   0x8   :  { %37 = dma.hbm_to_vmem [thread:$0]  %s30_s19, 73728, %s32_s23, [#allocation5], %s11309_s24, %s11309_s24, %s11310_s25  }
   0x9   :  { %11301 = dma.done.wait [#allocation3], 36864  }
   0xa   :  { %11302 = vsyncadd [#allocation3], 4294930432 }
   0xb   :  { %11303 = dma.done.wait [#allocation5], 73728  }
   0xc   :  { %11304 = vsyncadd [#allocation5], 4294893568  ;;  %v7255_v0 = vld [vmem:[#allocation4 + $0x2a0] sm:$0xf]  ;;  %v10469_v1 = vld [vmem:[#allocation4 + $0x2cc] sm:$0xf0] }
   0xd   :  { %v7639_v2 = vld [vmem:[#allocation4 + $0x5a0] sm:$0xf]  ;;  %v7256_v3 = vor.u32 %v10469_v1, %v7255_v0  ;;  %v10565_v4 = vld [vmem:[#allocation4 + $0x5cc] sm:$0xf0]  ;;  %vm6806_vm0 = vcmask 1043456   ;;  %vm6790_vm2 = vcmask 64512  }
   0xe   :  { %v8023_v5 = vld [vmem:[#allocation4 + $0x8a0] sm:$0xf]  ;;  %v10661_v6 = vld [vmem:[#allocation4 + $0x8cc] sm:$0xf0]  ;;  %v7640_v7 = vor.u32 %v10565_v4, %v7639_v2 }
   0xf   :  { %v8024_v8 = vor.u32 %v10661_v6, %v8023_v5  ;;  %v8407_v9 = vld [vmem:[#allocation4 + $0xba0] sm:$0xf]  ;;  %v10757_v10 = vld [vmem:[#allocation4 + $0xbcc] sm:$0xf0]  ;;  %3536 = vmatpush.bf16.msra.mxu0 %v7256_v3 }
  0x10   :  { %v7207_v11 = vld [vmem:[#allocation4 + $0x240] sm:$0xf]  ;;  %v8408_v12 = vor.u32 %v10757_v10, %v8407_v9  ;;  %v10457_v13 = vld [vmem:[#allocation4 + $0x26c] sm:$0xf0]  ;;  %3549 = vmatpush.bf16.msra.mxu1 %v7640_v7 }
  0x11   :  { %v7591_v14 = vld [vmem:[#allocation4 + $0x540] sm:$0xf]  ;;  %v10553_v15 = vld [vmem:[#allocation4 + $0x56c] sm:$0xf0]  ;;  %3562 = vmatpush.bf16.msra.mxu2 %v8024_v8  ;;  %v7208_v16 = vor.u32 %v10457_v13, %v7207_v11 }
  0x12   :  { %v7592_v17 = vor.u32 %v10553_v15, %v7591_v14  ;;  %v7975_v18 = vld [vmem:[#allocation4 + $0x840] sm:$0xf]  ;;  %v10649_v19 = vld [vmem:[#allocation4 + $0x86c] sm:$0xf0]  ;;  %3575 = vmatpush.bf16.msra.mxu3 %v8408_v12 }
  0x13   :  { %v8359_v20 = vld [vmem:[#allocation4 + $0xb40] sm:$0xf]  ;;  %v7976_v21 = vor.u32 %v10649_v19, %v7975_v18  ;;  %v10745_v22 = vld [vmem:[#allocation4 + $0xb6c] sm:$0xf0]  ;;  %3537 = vmatpush.bf16.msra.mxu0 %v7208_v16 }
  0x14   :  { %v7159_v23 = vld [vmem:[#allocation4 + $0x1e0] sm:$0xf]  ;;  %v10445_v24 = vld [vmem:[#allocation4 + $0x20c] sm:$0xf0]  ;;  %v8360_v25 = vor.u32 %v10745_v22, %v8359_v20  ;;  %3550 = vmatpush.bf16.msra.mxu1 %v7592_v17 }
  0x15   :  { %v7543_v26 = vld [vmem:[#allocation4 + $0x4e0] sm:$0xf]  ;;  %v10541_v27 = vld [vmem:[#allocation4 + $0x50c] sm:$0xf0]  ;;  %v7160_v29 = vor.u32 %v10445_v24, %v7159_v23  ;;  %3563 = vmatpush.bf16.msra.mxu2 %v7976_v21 }
  0x16   :  { %v7927_v28 = vld [vmem:[#allocation4 + $0x7e0] sm:$0xf]  ;;  %v10637_v30 = vld [vmem:[#allocation4 + $0x80c] sm:$0xf0]  ;;  %v7544_v33 = vor.u32 %v10541_v27, %v7543_v26  ;;  %3576 = vmatpush.bf16.msra.mxu3 %v8360_v25 }
  0x17   :  { %v8311_v31 = vld [vmem:[#allocation4 + $0xae0] sm:$0xf]  ;;  %v10733_v32 = vld [vmem:[#allocation4 + $0xb0c] sm:$0xf0]  ;;  %v7928_v34 = vor.u32 %v10637_v30, %v7927_v28  ;;  %3538 = vmatpush.bf16.msra.mxu0 %v7160_v29 }
  0x18   :  { %v7111_v35 = vld [vmem:[#allocation4 + $0x180] sm:$0xf]  ;;  %v10433_v36 = vld [vmem:[#allocation4 + $0x1ac] sm:$0xf0]  ;;  %v8312_v38 = vor.u32 %v10733_v32, %v8311_v31  ;;  %3551 = vmatpush.bf16.msra.mxu1 %v7544_v33  ;;  %v10463_v33 = vld [vmem:[#allocation4 + $0x2a4] sm:$0xf] }
  0x19   :  { %v7495_v37 = vld [vmem:[#allocation4 + $0x480] sm:$0xf]  ;;  %v10529_v39 = vld [vmem:[#allocation4 + $0x4ac] sm:$0xf0]  ;;  %v7112_v44 = vor.u32 %v10433_v36, %v7111_v35  ;;  %3564 = vmatpush.bf16.msra.mxu2 %v7928_v34  ;;  %v7257_v34 = vld [vmem:[#allocation4 + $0x2d0] sm:$0xf0] }
  0x1a   :  { %v7879_v40 = vld [vmem:[#allocation4 + $0x780] sm:$0xf]  ;;  %v10625_v41 = vld [vmem:[#allocation4 + $0x7ac] sm:$0xf0]  ;;  %v7496_v45 = vor.u32 %v10529_v39, %v7495_v37  ;;  %3577 = vmatpush.bf16.msra.mxu3 %v8312_v38  ;;  %v10559_v37 = vld [vmem:[#allocation4 + $0x5a4] sm:$0xf] }
  0x1b   :  { %v8263_v42 = vld [vmem:[#allocation4 + $0xa80] sm:$0xf]  ;;  %v10721_v43 = vld [vmem:[#allocation4 + $0xaac] sm:$0xf0]  ;;  %v7880_v46 = vor.u32 %v10625_v41, %v7879_v40  ;;  %3539 = vmatpush.bf16.msra.mxu0 %v7112_v44  ;;  %v7641_v38 = vld [vmem:[#allocation4 + $0x5d0] sm:$0xf0] }
  0x1c   :  { %v7063_v47 = vld [vmem:[#allocation4 + $0x120] sm:$0xf]  ;;  %v10421_v48 = vld [vmem:[#allocation4 + $0x14c] sm:$0xf0]  ;;  %v8264_v50 = vor.u32 %v10721_v43, %v8263_v42  ;;  %3552 = vmatpush.bf16.msra.mxu1 %v7496_v45  ;;  %v7260_v42 = vor.u32 %v10463_v33, %v7257_v34  ;;  %v7449_v33 = vld [vmem:[#allocation4 + $0x450] sm:$0xf0] }
  0x1d   :  { %v7447_v49 = vld [vmem:[#allocation4 + $0x420] sm:$0xf]  ;;  %v10517_v51 = vld [vmem:[#allocation4 + $0x44c] sm:$0xf0]  ;;  %v7064_v56 = vor.u32 %v10421_v48, %v7063_v47  ;;  %3565 = vmatpush.bf16.msra.mxu2 %v7880_v46  ;;  %v7644_v46 = vor.u32 %v10559_v37, %v7641_v38  ;;  %v10451_v48 = vld [vmem:[#allocation4 + $0x244] sm:$0xf] }
  0x1e   :  { %v7831_v52 = vld [vmem:[#allocation4 + $0x720] sm:$0xf]  ;;  %v10613_v53 = vld [vmem:[#allocation4 + $0x74c] sm:$0xf0]  ;;  %v7448_v57 = vor.u32 %v10517_v51, %v7447_v49  ;;  %3578 = vmatpush.bf16.msra.mxu3 %v8264_v50  ;;  %v7209_v49 = vld [vmem:[#allocation4 + $0x270] sm:$0xf0] }
  0x1f   :  { %v8215_v54 = vld [vmem:[#allocation4 + $0xa20] sm:$0xf]  ;;  %v10709_v55 = vld [vmem:[#allocation4 + $0xa4c] sm:$0xf0]  ;;  %v7832_v58 = vor.u32 %v10613_v53, %v7831_v52  ;;  %3540 = vmatpush.bf16.msra.mxu0 %v7064_v56  ;;  %v10547_v50 = vld [vmem:[#allocation4 + $0x544] sm:$0xf] }
  0x20   :  { %v7015_v59 = vld [vmem:[#allocation4 + $0xc0] sm:$0xf]  ;;  %v10409_v60 = vld [vmem:[#allocation4 + $0xec] sm:$0xf0]  ;;  %v8216_v62 = vor.u32 %v10709_v55, %v8215_v54  ;;  %3553 = vmatpush.bf16.msra.mxu1 %v7448_v57  ;;  %v7593_v51 = vld [vmem:[#allocation4 + $0x570] sm:$0xf0]  ;;  %v7212_v55 = vor.u32 %v10451_v48, %v7209_v49 }
  0x21   :  { %v7399_v61 = vld [vmem:[#allocation4 + $0x3c0] sm:$0xf]  ;;  %v10505_v63 = vld [vmem:[#allocation4 + $0x3ec] sm:$0xf0]  ;;  %v7016_v4 = vor.u32 %v10409_v60, %v7015_v59  ;;  %3566 = vmatpush.bf16.msra.mxu2 %v7832_v58  ;;  %v7596_v59 = vor.u32 %v10547_v50, %v7593_v51  ;;  %v10439_v60 = vld [vmem:[#allocation4 + $0x1e4] sm:$0xf] }
  0x22   :  { %v7783_v0 = vld [vmem:[#allocation4 + $0x6c0] sm:$0xf]  ;;  %v10601_v1 = vld [vmem:[#allocation4 + $0x6ec] sm:$0xf0]  ;;  %v7400_v5 = vor.u32 %v10505_v63, %v7399_v61  ;;  %3579 = vmatpush.bf16.msra.mxu3 %v8216_v62  ;;  %v7161_v61 = vld [vmem:[#allocation4 + $0x210] sm:$0xf0] }
  0x23   :  { %v8167_v2 = vld [vmem:[#allocation4 + $0x9c0] sm:$0xf]  ;;  %v10697_v3 = vld [vmem:[#allocation4 + $0x9ec] sm:$0xf0]  ;;  %v7784_v6 = vor.u32 %v10601_v1, %v7783_v0  ;;  %3541 = vmatpush.bf16.msra.mxu0 %v7016_v4  ;;  %v10535_v62 = vld [vmem:[#allocation4 + $0x4e4] sm:$0xf]  ;;  %v7164_v4 = vor.u32 %v10439_v60, %v7161_v61 }
  0x24   :  { %v6967_v7 = vld [vmem:[#allocation4 + $0x60] sm:$0xf]  ;;  %v10397_v8 = vld [vmem:[#allocation4 + $0x8c] sm:$0xf0]  ;;  %v8168_v10 = vor.u32 %v10697_v3, %v8167_v2  ;;  %3554 = vmatpush.bf16.msra.mxu1 %v7400_v5  ;;  %v7545_v63 = vld [vmem:[#allocation4 + $0x510] sm:$0xf0] }
  0x25   :  { %v7351_v9 = vld [vmem:[#allocation4 + $0x360] sm:$0xf]  ;;  %v10493_v11 = vld [vmem:[#allocation4 + $0x38c] sm:$0xf0]  ;;  %v6968_v16 = vor.u32 %v10397_v8, %v6967_v7  ;;  %3567 = vmatpush.bf16.msra.mxu2 %v7784_v6  ;;  %v49_v3 = vld [vmem:[%s11631_s0 + $0x8] sm:$0xff] }
  0x26   :  { %v7735_v12 = vld [vmem:[#allocation4 + $0x660] sm:$0xf]  ;;  %v10589_v13 = vld [vmem:[#allocation4 + $0x68c] sm:$0xf0]  ;;  %v7352_v19 = vor.u32 %v10493_v11, %v7351_v9  ;;  %3580 = vmatpush.bf16.msra.mxu3 %v8168_v10  ;;  %v640_v9 = vunpack.c.l.b16 %v49_v3  ;;  %v7548_v11 = vor.u32 %v10535_v62, %v7545_v63 }
  0x27   :  { %v8119_v14 = vld [vmem:[#allocation4 + $0x960] sm:$0xf]  ;;  %v10685_v15 = vld [vmem:[#allocation4 + $0x98c] sm:$0xf0]  ;;  %v7736_v20 = vor.u32 %v10589_v13, %v7735_v12  ;;  %3542 = vmatpush.bf16.msra.mxu0 %v6968_v16  ;;  %v10427_v13 = vld [vmem:[#allocation4 + $0x184] sm:$0xf] }
  0x28   :  { %v6919_v17 = vld [vmem:[#allocation4] sm:$0xf]  ;;  %v10385_v18 = vld [vmem:[#allocation4 + $0x2c] sm:$0xf0]  ;;  %v8120_v24 = vor.u32 %v10685_v15, %v8119_v14  ;;  %3555 = vmatpush.bf16.msra.mxu1 %v7352_v19  ;;  %v7113_v14 = vld [vmem:[#allocation4 + $0x1b0] sm:$0xf0]  ;;  %v641_v15 = vunpack.c.h.b16 %v49_v3  ;;  %v11345_v19 = vpack.c.b16 %v640_v9, %v640_v9 }
  0x29   :  { %v7303_v21 = vld [vmem:[#allocation4 + $0x300] sm:$0xf]  ;;  %v10481_v22 = vld [vmem:[#allocation4 + $0x32c] sm:$0xf0]  ;;  %v6920_v31 = vor.u32 %v10385_v18, %v6919_v17  ;;  %3568 = vmatpush.bf16.msra.mxu2 %v7736_v20  ;;  %v10523_v16 = vld [vmem:[#allocation4 + $0x484] sm:$0xf] }
  0x2a   :  { %v7687_v23 = vld [vmem:[#allocation4 + $0x600] sm:$0xf]  ;;  %v10577_v25 = vld [vmem:[#allocation4 + $0x62c] sm:$0xf0]  ;;  %v7304_v35 = vor.u32 %v10481_v22, %v7303_v21  ;;  %3581 = vmatpush.bf16.msra.mxu3 %v8120_v24  ;;  %v7497_v17 = vld [vmem:[#allocation4 + $0x4b0] sm:$0xf0]  ;;  %v11349_v22 = vpack.c.b16 %v641_v15, %v641_v15  ;;  %v7116_v24 = vor.u32 %v10427_v13, %v7113_v14 }
  0x2b   :  { %v8071_v26 = vld [vmem:[#allocation4 + $0x900] sm:$0xf]  ;;  %v10673_v27 = vld [vmem:[#allocation4 + $0x92c] sm:$0xf0]  ;;  %v7688_v36 = vor.u32 %v10577_v25, %v7687_v23  ;;  %3543 = vmatpush.bf16.msra.mxu0 %v6920_v31  ;;  %v7065_v31 = vld [vmem:[#allocation4 + $0x150] sm:$0xf0] }
  0x2c   :  { %v8791_v28 = vld [vmem:[#allocation4 + $0xea0] sm:$0xf]  ;;  %v10853_v29 = vld [vmem:[#allocation4 + $0xecc] sm:$0xf0]  ;;  %v8072_v39 = vor.u32 %v10673_v27, %v8071_v26  ;;  %3556 = vmatpush.bf16.msra.mxu1 %v7304_v35  ;;  %v10751_v9 = vld [vmem:[#allocation4 + $0xba4] sm:$0xf] }
  0x2d   :  { %v9175_v30 = vld [vmem:[#allocation4 + $0x11a0] sm:$0xf]  ;;  %v10949_v32 = vld [vmem:[#allocation4 + $0x11cc] sm:$0xf0]  ;;  %v8792_v40 = vor.u32 %v10853_v29, %v8791_v28  ;;  %3569 = vmatpush.bf16.msra.mxu2 %v7688_v36  ;;  %v7500_v28 = vor.u32 %v10523_v16, %v7497_v17  ;;  %v8793_v13 = vld [vmem:[#allocation4 + $0xed0] sm:$0xf0] }
  0x2e   :  { %v9176_v41 = vor.u32 %v10949_v32, %v9175_v30  ;;  %v8743_v43 = vld [vmem:[#allocation4 + $0xe40] sm:$0xf]  ;;  %v10841_v44 = vld [vmem:[#allocation4 + $0xe6c] sm:$0xf0]  ;;  %3582 = vmatpush.bf16.msra.mxu3 %v8072_v39  ;;  %v10415_v30 = vld [vmem:[#allocation4 + $0x124] sm:$0xf] }
  0x2f   :  { %v9127_v45 = vld [vmem:[#allocation4 + $0x1140] sm:$0xf]  ;;  %v10937_v47 = vld [vmem:[#allocation4 + $0x116c] sm:$0xf0]  ;;  %3588 = vmatpush.bf16.msrb.mxu0 %v8792_v40  ;;  %v8744_v52 = vor.u32 %v10841_v44, %v8743_v43  ;;  %v10511_v32 = vld [vmem:[#allocation4 + $0x424] sm:$0xf]  ;;  %v7068_v36 = vor.u32 %v10415_v30, %v7065_v31 }
  0x30   :  { %v8695_v53 = vld [vmem:[#allocation4 + $0xde0] sm:$0xf]  ;;  %3601 = vmatpush.bf16.msrb.mxu1 %v9176_v41  ;;  %v9128_v54 = vor.u32 %v10937_v47, %v9127_v45  ;;  %v10829_v56 = vld [vmem:[#allocation4 + $0xe0c] sm:$0xf0]  ;;  %3570 = vmatmul.bf16.vlgmr.msra.gmra.mxu2 %v11345_v19  ;;  %v7452_v40 = vor.u32 %v10511_v32, %v7449_v33  ;;  %v7017_v43 = vld [vmem:[#allocation4 + $0xf0] sm:$0xf0] }
  0x31   :  { %3614 = vmatpush.bf16.msrb.mxu2 %v7260_v42  ;;  %v9079_v57 = vld [vmem:[#allocation4 + $0x10e0] sm:$0xf]  ;;  %v10925_v58 = vld [vmem:[#allocation4 + $0x110c] sm:$0xf0]  ;;  %v8696_v0 = vor.u32 %v10829_v56, %v8695_v53  ;;  %3583 = vmatmul.bf16.vlgmr.msra.gmra.mxu3 %v11349_v22  ;;  %v10403_v42 = vld [vmem:[#allocation4 + $0xc4] sm:$0xf] }
  0x32   :  { %3627 = vmatpush.bf16.msrb.mxu3 %v7644_v46  ;;  %v9080_v1 = vor.u32 %v10925_v58, %v9079_v57  ;;  %v48_v2 = vld [vmem:[%s11631_s0] sm:$0xff]  ;;  %v10817_v6 = vld [vmem:[#allocation4 + $0xdac] sm:$0xf0]  ;;  %v7401_v45 = vld [vmem:[#allocation4 + $0x3f0] sm:$0xf0]  ;;  %v7020_v48 = vor.u32 %v10403_v42, %v7017_v43 }
  0x33   :  { %3589 = vmatpush.bf16.msrb.mxu0 %v8744_v52  ;;  %v8647_v5 = vld [vmem:[#allocation4 + $0xd80] sm:$0xf]  ;;  %v638_v8 = vunpack.c.l.b16 %v48_v2  ;;  %v639_v10 = vunpack.c.h.b16 %v48_v2  ;;  %v10913_v12 = vld [vmem:[#allocation4 + $0x10ac] sm:$0xf0]  ;;  %v10499_v44 = vld [vmem:[#allocation4 + $0x3c4] sm:$0xf] }
  0x34   :  { %3602 = vmatpush.bf16.msrb.mxu1 %v9128_v54  ;;  %v9031_v7 = vld [vmem:[#allocation4 + $0x1080] sm:$0xf]  ;;  %v8648_v21 = vor.u32 %v10817_v6, %v8647_v5  ;;  %v10805_v26 = vld [vmem:[#allocation4 + $0xd4c] sm:$0xf0]  ;;  %v7404_v52 = vor.u32 %v10499_v44, %v7401_v45  ;;  %v10391_v54 = vld [vmem:[#allocation4 + $0x64] sm:$0xf] }
  0x35   :  { %3615 = vmatpush.bf16.msrb.mxu2 %v7212_v55  ;;  %v11343_v18 = vpack.c.b16 %v638_v8, %v638_v8  ;;  %v11347_v20 = vpack.c.b16 %v639_v10, %v639_v10  ;;  %v9032_v23 = vor.u32 %v10913_v12, %v9031_v7  ;;  %v8599_v25 = vld [vmem:[#allocation4 + $0xd20] sm:$0xf]  ;;  %v10901_v29 = vld [vmem:[#allocation4 + $0x104c] sm:$0xf0]  ;;  %v6969_v55 = vld [vmem:[#allocation4 + $0x90] sm:$0xf0] }
  0x36   :  { %3628 = vmatpush.bf16.msrb.mxu3 %v7596_v59  ;;  %v8983_v27 = vld [vmem:[#allocation4 + $0x1020] sm:$0xf]  ;;  %v8600_v34 = vor.u32 %v10805_v26, %v8599_v25  ;;  %v10793_v38 = vld [vmem:[#allocation4 + $0xcec] sm:$0xf0]  ;;  %v10487_v56 = vld [vmem:[#allocation4 + $0x364] sm:$0xf]  ;;  %v6972_v63 = vor.u32 %v10391_v54, %v6969_v55 }
  0x37   :  { %3590 = vmatpush.bf16.msrb.mxu0 %v8696_v0  ;;  %3557 = vmatmul.bf16.vlgmr.msra.gmra.mxu1 %v11347_v20  ;;  %v8984_v35 = vor.u32 %v10901_v29, %v8983_v27  ;;  %v8551_v37 = vld [vmem:[#allocation4 + $0xcc0] sm:$0xf]  ;;  %v10889_v41 = vld [vmem:[#allocation4 + $0xfec] sm:$0xf0]  ;;  %v7353_v57 = vld [vmem:[#allocation4 + $0x390] sm:$0xf0] }
  0x38   :  { %3603 = vmatpush.bf16.msrb.mxu1 %v9080_v1  ;;  %3544 = vmatmul.bf16.vlgmr.msra.gmra.mxu0 %v11343_v18  ;;  %v8935_v39 = vld [vmem:[#allocation4 + $0xfc0] sm:$0xf]  ;;  %v8552_v46 = vor.u32 %v10793_v38, %v8551_v37  ;;  %v10781_v50 = vld [vmem:[#allocation4 + $0xc8c] sm:$0xf0]  ;;  %v10379_v1 = vld [vmem:[#allocation4 + $0x4] sm:$0xf]  ;;  %v7356_v3 = vor.u32 %v10487_v56, %v7353_v57 }
  0x39   :  { %3616 = vmatpush.bf16.msrb.mxu2 %v7164_v4  ;;  %v8936_v47 = vor.u32 %v10889_v41, %v8935_v39  ;;  %v8503_v49 = vld [vmem:[#allocation4 + $0xc60] sm:$0xf]  ;;  %v10877_v53 = vld [vmem:[#allocation4 + $0xf8c] sm:$0xf0]  ;;  %v6921_v4 = vld [vmem:[#allocation4 + $0x30] sm:$0xf0] }
  0x3a   :  { %3629 = vmatpush.bf16.msrb.mxu3 %v7548_v11  ;;  %v8887_v51 = vld [vmem:[#allocation4 + $0xf60] sm:$0xf]  ;;  %v8504_v58 = vor.u32 %v10781_v50, %v8503_v49  ;;  %v10769_v60 = vld [vmem:[#allocation4 + $0xc2c] sm:$0xf0]  ;;  %v10475_v5 = vld [vmem:[#allocation4 + $0x304] sm:$0xf]  ;;  %v6924_v16 = vor.u32 %v10379_v1, %v6921_v4 }
  0x3b   :  { %3591 = vmatpush.bf16.msrb.mxu0 %v8648_v21  ;;  %v8455_v59 = vld [vmem:[#allocation4 + $0xc00] sm:$0xf]  ;;  %v8888_v62 = vor.u32 %v10877_v53, %v8887_v51  ;;  %v10865_v0 = vld [vmem:[#allocation4 + $0xf2c] sm:$0xf0]  ;;  %v7305_v6 = vld [vmem:[#allocation4 + $0x330] sm:$0xf0] }
  0x3c   :  { %3604 = vmatpush.bf16.msrb.mxu1 %v9032_v23  ;;  %v8839_v61 = vld [vmem:[#allocation4 + $0xf00] sm:$0xf]  ;;  %v50_v2 = vld [vmem:[%s11631_s0 + $0x10] sm:$0xff]  ;;  %v10655_v7 = vld [vmem:[#allocation4 + $0x8a4] sm:$0xf]  ;;  %v8456_v10 = vor.u32 %v10769_v60, %v8455_v59 }
  0x3d   :  { %3617 = vmatpush.bf16.msrb.mxu2 %v7116_v24  ;;  %v8025_v8 = vld [vmem:[#allocation4 + $0x8d0] sm:$0xf0]  ;;  %v10847_v12 = vld [vmem:[#allocation4 + $0xea4] sm:$0xf]  ;;  %v642_v14 = vunpack.c.l.b16 %v50_v2  ;;  %v8840_v15 = vor.u32 %v10865_v0, %v8839_v61  ;;  %v643_v23 = vunpack.c.h.b16 %v50_v2  ;;  %v7308_v24 = vor.u32 %v10475_v5, %v7305_v6 }
  0x3e   :  { %3630 = vmatpush.bf16.msrb.mxu3 %v7500_v28  ;;  %v8409_v11 = vld [vmem:[#allocation4 + $0xbd0] sm:$0xf0]  ;;  %v10943_v17 = vld [vmem:[#allocation4 + $0x11a4] sm:$0xf]  ;;  %v8028_v25 = vor.u32 %v10655_v7, %v8025_v8  ;;  %v8796_v27 = vor.u32 %v10847_v12, %v8793_v13 }
  0x3f   :  { %3592 = vmatpush.bf16.msrb.mxu0 %v8600_v34  ;;  %v9177_v21 = vld [vmem:[#allocation4 + $0x11d0] sm:$0xf0]  ;;  %v8412_v26 = vor.u32 %v10751_v9, %v8409_v11  ;;  %v10643_v28 = vld [vmem:[#allocation4 + $0x844] sm:$0xf]  ;;  %v11360_v38 = vpack.c.b16 %v643_v23, %v643_v23 }
  0x40   :  { %3605 = vmatpush.bf16.msrb.mxu1 %v8984_v35  ;;  %v7977_v29 = vld [vmem:[#allocation4 + $0x870] sm:$0xf0]  ;;  %v10739_v30 = vld [vmem:[#allocation4 + $0xb44] sm:$0xf]  ;;  %v9180_v31 = vor.u32 %v10943_v17, %v9177_v21  ;;  %v11358_v35 = vpack.c.b16 %v642_v14, %v642_v14 }
  0x41   :  { %3618 = vmatpush.bf16.msrb.mxu2 %v7068_v36  ;;  %v8361_v32 = vld [vmem:[#allocation4 + $0xb70] sm:$0xf0]  ;;  %v10835_v33 = vld [vmem:[#allocation4 + $0xe44] sm:$0xf]  ;;  %v7980_v39 = vor.u32 %v10643_v28, %v7977_v29 }
  0x42   :  { %3631 = vmatpush.bf16.msrb.mxu3 %v7452_v40  ;;  %v8745_v34 = vld [vmem:[#allocation4 + $0xe70] sm:$0xf0]  ;;  %v10931_v36 = vld [vmem:[#allocation4 + $0x1144] sm:$0xf]  ;;  %v8364_v40 = vor.u32 %v10739_v30, %v8361_v32 }
  0x43   :  { %3593 = vmatpush.bf16.msrb.mxu0 %v8552_v46  ;;  %v9129_v37 = vld [vmem:[#allocation4 + $0x1170] sm:$0xf0]  ;;  %v8748_v41 = vor.u32 %v10835_v33, %v8745_v34  ;;  %v10631_v42 = vld [vmem:[#allocation4 + $0x7e4] sm:$0xf] }
  0x44   :  { %3606 = vmatpush.bf16.msrb.mxu1 %v8936_v47  ;;  %v7929_v43 = vld [vmem:[#allocation4 + $0x810] sm:$0xf0]  ;;  %v10727_v44 = vld [vmem:[#allocation4 + $0xae4] sm:$0xf]  ;;  %v9132_v45 = vor.u32 %v10931_v36, %v9129_v37 }
  0x45   :  { %3619 = vmatpush.bf16.msrb.mxu2 %v7020_v48  ;;  %v8313_v46 = vld [vmem:[#allocation4 + $0xb10] sm:$0xf0]  ;;  %v10823_v47 = vld [vmem:[#allocation4 + $0xde4] sm:$0xf]  ;;  %v7932_v51 = vor.u32 %v10631_v42, %v7929_v43 }
  0x46   :  { %3632 = vmatpush.bf16.msrb.mxu3 %v7404_v52  ;;  %v8697_v48 = vld [vmem:[#allocation4 + $0xe10] sm:$0xf0]  ;;  %v10919_v49 = vld [vmem:[#allocation4 + $0x10e4] sm:$0xf]  ;;  %v8316_v52 = vor.u32 %v10727_v44, %v8313_v46 }
  0x47   :  { %3594 = vmatpush.bf16.msrb.mxu0 %v8504_v58  ;;  %v9081_v50 = vld [vmem:[#allocation4 + $0x1110] sm:$0xf0]  ;;  %v8700_v53 = vor.u32 %v10823_v47, %v8697_v48  ;;  %v10619_v54 = vld [vmem:[#allocation4 + $0x784] sm:$0xf] }
  0x48   :  { %3607 = vmatpush.bf16.msrb.mxu1 %v8888_v62  ;;  %v7881_v55 = vld [vmem:[#allocation4 + $0x7b0] sm:$0xf0]  ;;  %v10715_v56 = vld [vmem:[#allocation4 + $0xa84] sm:$0xf]  ;;  %v9084_v57 = vor.u32 %v10919_v49, %v9081_v50 }
  0x49   :  { %3620 = vmatpush.bf16.msrb.mxu2 %v6972_v63  ;;  %v8265_v58 = vld [vmem:[#allocation4 + $0xab0] sm:$0xf0]  ;;  %v10811_v59 = vld [vmem:[#allocation4 + $0xd84] sm:$0xf]  ;;  %v7884_v63 = vor.u32 %v10619_v54, %v7881_v55  ;;  %v10470_v54 = vld [vmem:[#allocation4 + $0x2d4] sm:$0xf0] }
  0x4a   :  { %3633 = vmatpush.bf16.msrb.mxu3 %v7356_v3  ;;  %v8649_v60 = vld [vmem:[#allocation4 + $0xdb0] sm:$0xf0]  ;;  %v10907_v61 = vld [vmem:[#allocation4 + $0x1084] sm:$0xf]  ;;  %v8268_v0 = vor.u32 %v10715_v56, %v8265_v58  ;;  %v7647_v55 = vld [vmem:[#allocation4 + $0x5a8] sm:$0xf] }
  0x4b   :  { %3595 = vmatpush.bf16.msrb.mxu0 %v8456_v10  ;;  %v9033_v62 = vld [vmem:[#allocation4 + $0x10b0] sm:$0xf0]  ;;  %v8652_v1 = vor.u32 %v10811_v59, %v8649_v60  ;;  %v10607_v2 = vld [vmem:[#allocation4 + $0x724] sm:$0xf]  ;;  %v8031_v58 = vld [vmem:[#allocation4 + $0x8a8] sm:$0xf] }
  0x4c   :  { %3608 = vmatpush.bf16.msrb.mxu1 %v8840_v15  ;;  %v7833_v3 = vld [vmem:[#allocation4 + $0x750] sm:$0xf0]  ;;  %v10703_v4 = vld [vmem:[#allocation4 + $0xa24] sm:$0xf]  ;;  %v9036_v5 = vor.u32 %v10907_v61, %v9033_v62  ;;  %v10662_v59 = vld [vmem:[#allocation4 + $0x8d4] sm:$0xf0] }
  0x4d   :  { %3621 = vmatpush.bf16.msrb.mxu2 %v6924_v16  ;;  %v8217_v6 = vld [vmem:[#allocation4 + $0xa50] sm:$0xf0]  ;;  %v10799_v7 = vld [vmem:[#allocation4 + $0xd24] sm:$0xf]  ;;  %v7836_v11 = vor.u32 %v10607_v2, %v7833_v3  ;;  %v8415_v62 = vld [vmem:[#allocation4 + $0xba8] sm:$0xf]  ;;  %v8032_v3 = vor.u32 %v10662_v59, %v8031_v58 }
  0x4e   :  { %3634 = vmatpush.bf16.msrb.mxu3 %v7308_v24  ;;  %3596 = vmatmul.bf16.vlgmr.msrb.gmra.mxu0 %v11358_v35  ;;  %v8601_v8 = vld [vmem:[#allocation4 + $0xd50] sm:$0xf0]  ;;  %v10895_v9 = vld [vmem:[#allocation4 + $0x1024] sm:$0xf]  ;;  %v8220_v12 = vor.u32 %v10703_v4, %v8217_v6  ;;  %v7215_v4 = vld [vmem:[#allocation4 + $0x248] sm:$0xf] }
  0x4f   :  { %3640 = vmatpush.bf16.msra.mxu0 %v8028_v25  ;;  %3609 = vmatmul.bf16.vlgmr.msrb.gmra.mxu1 %v11360_v38  ;;  %v8985_v10 = vld [vmem:[#allocation4 + $0x1050] sm:$0xf0]  ;;  %v8604_v13 = vor.u32 %v10799_v7, %v8601_v8  ;;  %v10595_v14 = vld [vmem:[#allocation4 + $0x6c4] sm:$0xf]  ;;  %v7599_v6 = vld [vmem:[#allocation4 + $0x548] sm:$0xf] }
  0x50   :  { %3653 = vmatpush.bf16.msra.mxu1 %v8412_v26  ;;  %3622 = vmatmul.bf16.vlgmr.msrb.gmra.mxu2 %v11343_v18  ;;  %v7785_v15 = vld [vmem:[#allocation4 + $0x6f0] sm:$0xf0]  ;;  %v10691_v16 = vld [vmem:[#allocation4 + $0x9c4] sm:$0xf]  ;;  %v8988_v17 = vor.u32 %v10895_v9, %v8985_v10  ;;  %v10554_v8 = vld [vmem:[#allocation4 + $0x574] sm:$0xf0] }
  0x51   :  { %3666 = vmatpush.bf16.msra.mxu2 %v8796_v27  ;;  %3635 = vmatmul.bf16.vlgmr.msrb.gmra.mxu3 %v11347_v20  ;;  %v8169_v21 = vld [vmem:[#allocation4 + $0x9f0] sm:$0xf0]  ;;  %v10787_v23 = vld [vmem:[#allocation4 + $0xcc4] sm:$0xf]  ;;  %v7788_v27 = vor.u32 %v10595_v14, %v7785_v15  ;;  %v7983_v9 = vld [vmem:[#allocation4 + $0x848] sm:$0xf]  ;;  %v7600_v14 = vor.u32 %v10554_v8, %v7599_v6 }
  0x52   :  { %3679 = vmatpush.bf16.msra.mxu3 %v9180_v31  ;;  %v8553_v24 = vld [vmem:[#allocation4 + $0xcf0] sm:$0xf0]  ;;  %v10883_v25 = vld [vmem:[#allocation4 + $0xfc4] sm:$0xf]  ;;  %v8172_v28 = vor.u32 %v10691_v16, %v8169_v21  ;;  %v10650_v10 = vld [vmem:[#allocation4 + $0x874] sm:$0xf0] }
  0x53   :  { %3641 = vmatpush.bf16.msra.mxu0 %v7980_v39  ;;  %v8937_v26 = vld [vmem:[#allocation4 + $0xff0] sm:$0xf0]  ;;  %v8556_v29 = vor.u32 %v10787_v23, %v8553_v24  ;;  %v10583_v30 = vld [vmem:[#allocation4 + $0x664] sm:$0xf]  ;;  %v7984_v15 = vor.u32 %v10650_v10, %v7983_v9  ;;  %v7167_v16 = vld [vmem:[#allocation4 + $0x1e8] sm:$0xf] }
  0x54   :  { %3654 = vmatpush.bf16.msra.mxu1 %v8364_v40  ;;  %v7737_v31 = vld [vmem:[#allocation4 + $0x690] sm:$0xf0]  ;;  %v10679_v32 = vld [vmem:[#allocation4 + $0x964] sm:$0xf]  ;;  %v8940_v33 = vor.u32 %v10883_v25, %v8937_v26  ;;  %v7551_v21 = vld [vmem:[#allocation4 + $0x4e8] sm:$0xf] }
  0x55   :  { %3667 = vmatpush.bf16.msra.mxu2 %v8748_v41  ;;  %v8121_v34 = vld [vmem:[#allocation4 + $0x990] sm:$0xf0]  ;;  %v10775_v36 = vld [vmem:[#allocation4 + $0xc64] sm:$0xf]  ;;  %v7740_v41 = vor.u32 %v10583_v30, %v7737_v31  ;;  %v10542_v24 = vld [vmem:[#allocation4 + $0x514] sm:$0xf0] }
  0x56   :  { %3680 = vmatpush.bf16.msra.mxu3 %v9132_v45  ;;  %v8505_v37 = vld [vmem:[#allocation4 + $0xc90] sm:$0xf0]  ;;  %v10871_v39 = vld [vmem:[#allocation4 + $0xf64] sm:$0xf]  ;;  %v8124_v44 = vor.u32 %v10679_v32, %v8121_v34  ;;  %v7935_v25 = vld [vmem:[#allocation4 + $0x7e8] sm:$0xf]  ;;  %v7552_v30 = vor.u32 %v10542_v24, %v7551_v21 }
  0x57   :  { %3642 = vmatpush.bf16.msra.mxu0 %v7932_v51  ;;  %v8889_v40 = vld [vmem:[#allocation4 + $0xf90] sm:$0xf0]  ;;  %v10571_v42 = vld [vmem:[#allocation4 + $0x604] sm:$0xf]  ;;  %v8508_v45 = vor.u32 %v10775_v36, %v8505_v37  ;;  %v10638_v26 = vld [vmem:[#allocation4 + $0x814] sm:$0xf0] }
  0x58   :  { %3655 = vmatpush.bf16.msra.mxu1 %v8316_v52  ;;  %v7689_v43 = vld [vmem:[#allocation4 + $0x630] sm:$0xf0]  ;;  %v10667_v46 = vld [vmem:[#allocation4 + $0x904] sm:$0xf]  ;;  %v8892_v49 = vor.u32 %v10871_v39, %v8889_v40  ;;  %v7936_v31 = vor.u32 %v10638_v26, %v7935_v25  ;;  %v7119_v32 = vld [vmem:[#allocation4 + $0x188] sm:$0xf] }
  0x59   :  { %3668 = vmatpush.bf16.msra.mxu2 %v8700_v53  ;;  %v8073_v47 = vld [vmem:[#allocation4 + $0x930] sm:$0xf0]  ;;  %v10763_v48 = vld [vmem:[#allocation4 + $0xc04] sm:$0xf]  ;;  %v7263_v53 = vld [vmem:[#allocation4 + $0x2a8] sm:$0xf]  ;;  %v7692_v56 = vor.u32 %v10571_v42, %v7689_v43 }
  0x5a   :  { %3681 = vmatpush.bf16.msra.mxu3 %v9084_v57  ;;  %v8457_v50 = vld [vmem:[#allocation4 + $0xc30] sm:$0xf0]  ;;  %v10859_v51 = vld [vmem:[#allocation4 + $0xf04] sm:$0xf]  ;;  %v10566_v57 = vld [vmem:[#allocation4 + $0x5d4] sm:$0xf0]  ;;  %v8076_v60 = vor.u32 %v10667_v46, %v8073_v47 }
  0x5b   :  { %3643 = vmatpush.bf16.msra.mxu0 %v7884_v63  ;;  %v8841_v52 = vld [vmem:[#allocation4 + $0xf30] sm:$0xf0]  ;;  %v8460_v61 = vor.u32 %v10763_v48, %v8457_v50  ;;  %v10758_v63 = vld [vmem:[#allocation4 + $0xbd4] sm:$0xf0]  ;;  %v7648_v2 = vor.u32 %v10566_v57, %v7647_v55  ;;  %v7503_v34 = vld [vmem:[#allocation4 + $0x488] sm:$0xf] }
  0x5c   :  { %3656 = vmatpush.bf16.msra.mxu1 %v8268_v0  ;;  %v8844_v0 = vor.u32 %v10859_v51, %v8841_v52  ;;  %v8416_v7 = vor.u32 %v10758_v63, %v8415_v62  ;;  %v10530_v37 = vld [vmem:[#allocation4 + $0x4b4] sm:$0xf0]  ;;  %v7887_v39 = vld [vmem:[#allocation4 + $0x788] sm:$0xf] }
  0x5d   :  { %3669 = vmatpush.bf16.msra.mxu2 %v8652_v1  ;;  %v7264_v1 = vor.u32 %v10470_v54, %v7263_v53  ;;  %v10626_v40 = vld [vmem:[#allocation4 + $0x7b4] sm:$0xf0]  ;;  %v7071_v46 = vld [vmem:[#allocation4 + $0x128] sm:$0xf] }
  0x5e   :  { %3682 = vmatpush.bf16.msra.mxu3 %v9036_v5  ;;  %v10458_v5 = vld [vmem:[#allocation4 + $0x274] sm:$0xf0]  ;;  %v7455_v48 = vld [vmem:[#allocation4 + $0x428] sm:$0xf] }
  0x5f   :  { %3644 = vmatpush.bf16.msra.mxu0 %v7836_v11  ;;  %v8367_v11 = vld [vmem:[#allocation4 + $0xb48] sm:$0xf]  ;;  %v10722_v42 = vld [vmem:[#allocation4 + $0xab4] sm:$0xf0] }
  0x60   :  { %3657 = vmatpush.bf16.msra.mxu1 %v8220_v12  ;;  %v10746_v12 = vld [vmem:[#allocation4 + $0xb74] sm:$0xf0]  ;;  %v7839_v51 = vld [vmem:[#allocation4 + $0x728] sm:$0xf] }
  0x61   :  { %3670 = vmatpush.bf16.msra.mxu2 %v8604_v13  ;;  %v7216_v13 = vor.u32 %v10458_v5, %v7215_v4  ;;  %v8368_v23 = vor.u32 %v10746_v12, %v8367_v11  ;;  %v10422_v47 = vld [vmem:[#allocation4 + $0x154] sm:$0xf0]  ;;  %v8223_v53 = vld [vmem:[#allocation4 + $0xa28] sm:$0xf] }
  0x62   :  { %3683 = vmatpush.bf16.msra.mxu3 %v8988_v17  ;;  %v10446_v17 = vld [vmem:[#allocation4 + $0x214] sm:$0xf0]  ;;  %v7072_v55 = vor.u32 %v10422_v47, %v7071_v46  ;;  %v7023_v58 = vld [vmem:[#allocation4 + $0xc8] sm:$0xf] }
  0x63   :  { %3645 = vmatpush.bf16.msra.mxu0 %v7788_v27  ;;  %v8319_v27 = vld [vmem:[#allocation4 + $0xae8] sm:$0xf]  ;;  %v10518_v50 = vld [vmem:[#allocation4 + $0x454] sm:$0xf0] }
  0x64   :  { %3658 = vmatpush.bf16.msra.mxu1 %v8172_v28  ;;  %v10734_v28 = vld [vmem:[#allocation4 + $0xb14] sm:$0xf0]  ;;  %v7791_v63 = vld [vmem:[#allocation4 + $0x6c8] sm:$0xf] }
  0x65   :  { %3671 = vmatpush.bf16.msra.mxu2 %v8556_v29  ;;  %v7168_v29 = vor.u32 %v10446_v17, %v7167_v16  ;;  %v8320_v36 = vor.u32 %v10734_v28, %v8319_v27  ;;  %v10614_v52 = vld [vmem:[#allocation4 + $0x754] sm:$0xf0]  ;;  %v6975_v6 = vld [vmem:[#allocation4 + $0x68] sm:$0xf] }
  0x66   :  { %3684 = vmatpush.bf16.msra.mxu3 %v8940_v33  ;;  %v10434_v33 = vld [vmem:[#allocation4 + $0x1b4] sm:$0xf0]  ;;  %v7840_v57 = vor.u32 %v10614_v52, %v7839_v51  ;;  %v7359_v8 = vld [vmem:[#allocation4 + $0x368] sm:$0xf] }
  0x67   :  { %3646 = vmatpush.bf16.msra.mxu0 %v7740_v41  ;;  %v8271_v41 = vld [vmem:[#allocation4 + $0xa88] sm:$0xf]  ;;  %v7120_v43 = vor.u32 %v10434_v33, %v7119_v32  ;;  %v10710_v54 = vld [vmem:[#allocation4 + $0xa54] sm:$0xf0] }
  0x68   :  { %3659 = vmatpush.bf16.msra.mxu1 %v8124_v44  ;;  %v7504_v44 = vor.u32 %v10530_v37, %v7503_v34  ;;  %v10410_v59 = vld [vmem:[#allocation4 + $0xf4] sm:$0xf0]  ;;  %v7743_v11 = vld [vmem:[#allocation4 + $0x668] sm:$0xf]  ;;  %v10464_v37 = vld [vmem:[#allocation4 + $0x2ac] sm:$0xf] }
  0x69   :  { %3672 = vmatpush.bf16.msra.mxu2 %v8508_v45  ;;  %v7888_v45 = vor.u32 %v10626_v40, %v7887_v39  ;;  %v10506_v62 = vld [vmem:[#allocation4 + $0x3f4] sm:$0xf0]  ;;  %v6927_v16 = vld [vmem:[#allocation4 + $0x8] sm:$0xf]  ;;  %v7265_v39 = vld [vmem:[#allocation4 + $0x2d8] sm:$0xf0] }
  0x6a   :  { %3685 = vmatpush.bf16.msra.mxu3 %v8892_v49  ;;  %v8272_v49 = vor.u32 %v10722_v42, %v8271_v41  ;;  %v10494_v10 = vld [vmem:[#allocation4 + $0x394] sm:$0xf0]  ;;  %v7311_v24 = vld [vmem:[#allocation4 + $0x308] sm:$0xf]  ;;  %v10560_v42 = vld [vmem:[#allocation4 + $0x5ac] sm:$0xf]  ;;  %v7268_v47 = vor.u32 %v10464_v37, %v7265_v39 }
  0x6b   :  { %3647 = vmatpush.bf16.msra.mxu0 %v7692_v56  ;;  %v7456_v56 = vor.u32 %v10518_v50, %v7455_v48  ;;  %v10590_v12 = vld [vmem:[#allocation4 + $0x694] sm:$0xf0]  ;;  %v7360_v21 = vor.u32 %v10494_v10, %v7359_v8  ;;  %v7695_v26 = vld [vmem:[#allocation4 + $0x608] sm:$0xf] }
  0x6c   :  { %3660 = vmatpush.bf16.msra.mxu1 %v8076_v60  ;;  %v7407_v60 = vld [vmem:[#allocation4 + $0x3c8] sm:$0xf]  ;;  %v10386_v17 = vld [vmem:[#allocation4 + $0x34] sm:$0xf0] }
  0x6d   :  { %3673 = vmatpush.bf16.msra.mxu2 %v8460_v61  ;;  %v8224_v61 = vor.u32 %v10710_v54, %v8223_v53  ;;  %v7408_v4 = vor.u32 %v10506_v62, %v7407_v60  ;;  %v10482_v25 = vld [vmem:[#allocation4 + $0x334] sm:$0xf0]  ;;  %v9183_v33 = vld [vmem:[#allocation4 + $0x11a8] sm:$0xf]  ;;  %v6928_v34 = vor.u32 %v10386_v17, %v6927_v16  ;;  %v10452_v53 = vld [vmem:[#allocation4 + $0x24c] sm:$0xf] }
  0x6e   :  { %3686 = vmatpush.bf16.msra.mxu3 %v8844_v0  ;;  %3648 = vmatmul.bf16.vlgmr.msra.gmra.mxu0 %v11345_v19  ;;  %v10602_v0 = vld [vmem:[#allocation4 + $0x6f4] sm:$0xf0]  ;;  %v7312_v40 = vor.u32 %v10482_v25, %v7311_v24  ;;  %v8751_v48 = vld [vmem:[#allocation4 + $0xe48] sm:$0xf]  ;;  %v7217_v54 = vld [vmem:[#allocation4 + $0x278] sm:$0xf0] }
  0x6f   :  { %3692 = vmatpush.bf16.msrb.mxu0 %v7264_v1  ;;  %3661 = vmatmul.bf16.vlgmr.msra.gmra.mxu1 %v11349_v22  ;;  %v8175_v1 = vld [vmem:[#allocation4 + $0x9c8] sm:$0xf]  ;;  %v7792_v5 = vor.u32 %v10602_v0, %v7791_v63  ;;  %v10578_v28 = vld [vmem:[#allocation4 + $0x634] sm:$0xf0]  ;;  %v7505_v16 = vld [vmem:[#allocation4 + $0x4b8] sm:$0xf0] }
  0x70   :  { %3705 = vmatpush.bf16.msrb.mxu1 %v7648_v2  ;;  %3674 = vmatmul.bf16.vlgmr.msra.gmra.mxu2 %v11358_v35  ;;  %v10698_v2 = vld [vmem:[#allocation4 + $0x9f4] sm:$0xf0]  ;;  %v7696_v41 = vor.u32 %v10578_v28, %v7695_v26  ;;  %v9135_v50 = vld [vmem:[#allocation4 + $0x1148] sm:$0xf] }
  0x71   :  { %3718 = vmatpush.bf16.msrb.mxu2 %v8032_v3  ;;  %3687 = vmatmul.bf16.vlgmr.msra.gmra.mxu3 %v11360_v38  ;;  %v7024_v3 = vor.u32 %v10410_v59, %v7023_v58  ;;  %v8176_v9 = vor.u32 %v10698_v2, %v8175_v1  ;;  %v10854_v32 = vld [vmem:[#allocation4 + $0xed4] sm:$0xf0]  ;;  %v7220_v59 = vor.u32 %v10452_v53, %v7217_v54  ;;  %v8703_v60 = vld [vmem:[#allocation4 + $0xde8] sm:$0xf]  ;;  %v10440_v1 = vld [vmem:[#allocation4 + $0x1ec] sm:$0xf] }
  0x72   :  { %3731 = vmatpush.bf16.msrb.mxu3 %v8416_v7  ;;  %v10398_v7 = vld [vmem:[#allocation4 + $0x94] sm:$0xf0]  ;;  %v9087_v62 = vld [vmem:[#allocation4 + $0x10e8] sm:$0xf]  ;;  %v7169_v2 = vld [vmem:[#allocation4 + $0x218] sm:$0xf0] }
  0x73   :  { %3693 = vmatpush.bf16.msrb.mxu0 %v7216_v13  ;;  %v8127_v13 = vld [vmem:[#allocation4 + $0x968] sm:$0xf]  ;;  %v10938_v52 = vld [vmem:[#allocation4 + $0x1174] sm:$0xf0] }
  0x74   :  { %3706 = vmatpush.bf16.msrb.mxu1 %v7600_v14  ;;  %v10686_v14 = vld [vmem:[#allocation4 + $0x994] sm:$0xf0]  ;;  %v9136_v58 = vor.u32 %v10938_v52, %v9135_v50  ;;  %v8655_v8 = vld [vmem:[#allocation4 + $0xd88] sm:$0xf] }
  0x75   :  { %3719 = vmatpush.bf16.msrb.mxu2 %v7984_v15  ;;  %v6976_v15 = vor.u32 %v10398_v7, %v6975_v6  ;;  %v8128_v27 = vor.u32 %v10686_v14, %v8127_v13  ;;  %v10926_v0 = vld [vmem:[#allocation4 + $0x1114] sm:$0xf0]  ;;  %v7172_v7 = vor.u32 %v10440_v1, %v7169_v2  ;;  %v9039_v10 = vld [vmem:[#allocation4 + $0x1088] sm:$0xf]  ;;  %v10428_v13 = vld [vmem:[#allocation4 + $0x18c] sm:$0xf] }
  0x76   :  { %3732 = vmatpush.bf16.msrb.mxu3 %v8368_v23  ;;  %v7744_v23 = vor.u32 %v10590_v12, %v7743_v11  ;;  %v9088_v6 = vor.u32 %v10926_v0, %v9087_v62  ;;  %v10914_v12 = vld [vmem:[#allocation4 + $0x10b4] sm:$0xf0]  ;;  %v7121_v14 = vld [vmem:[#allocation4 + $0x1b8] sm:$0xf0]  ;;  %v8607_v24 = vld [vmem:[#allocation4 + $0xd28] sm:$0xf] }
  0x77   :  { %3694 = vmatpush.bf16.msrb.mxu0 %v7168_v29  ;;  %v8079_v29 = vld [vmem:[#allocation4 + $0x908] sm:$0xf]  ;;  %v10806_v25 = vld [vmem:[#allocation4 + $0xd54] sm:$0xf0]  ;;  %v10380_v2 = vld [vmem:[#allocation4 + $0xc] sm:$0xf] }
  0x78   :  { %3707 = vmatpush.bf16.msrb.mxu1 %v7552_v30  ;;  %v10674_v30 = vld [vmem:[#allocation4 + $0x934] sm:$0xf0]  ;;  %v8991_v26 = vld [vmem:[#allocation4 + $0x1028] sm:$0xf] }
  0x79   :  { %3720 = vmatpush.bf16.msrb.mxu2 %v7936_v31  ;;  %v8799_v31 = vld [vmem:[#allocation4 + $0xea8] sm:$0xf]  ;;  %v10902_v28 = vld [vmem:[#allocation4 + $0x1054] sm:$0xf0] }
  0x7a   :  { %3733 = vmatpush.bf16.msrb.mxu3 %v8320_v36  ;;  %v10950_v36 = vld [vmem:[#allocation4 + $0x11d4] sm:$0xf0]  ;;  %v8559_v37 = vld [vmem:[#allocation4 + $0xcc8] sm:$0xf] }
  0x7b   :  { %3695 = vmatpush.bf16.msrb.mxu0 %v7120_v43  ;;  %v7649_v43 = vld [vmem:[#allocation4 + $0x5d8] sm:$0xf0]  ;;  %v9184_v46 = vor.u32 %v10950_v36, %v9183_v33  ;;  %v8608_v33 = vor.u32 %v10806_v25, %v8607_v24  ;;  %v10794_v39 = vld [vmem:[#allocation4 + $0xcf4] sm:$0xf0]  ;;  %v8511_v50 = vld [vmem:[#allocation4 + $0xc68] sm:$0xf] }
  0x7c   :  { %3708 = vmatpush.bf16.msrb.mxu1 %v7504_v44  ;;  %v8080_v44 = vor.u32 %v10674_v30, %v8079_v29  ;;  %v7652_v51 = vor.u32 %v10560_v42, %v7649_v43  ;;  %v10416_v29 = vld [vmem:[#allocation4 + $0x12c] sm:$0xf]  ;;  %v7073_v30 = vld [vmem:[#allocation4 + $0x158] sm:$0xf0]  ;;  %v10890_v42 = vld [vmem:[#allocation4 + $0xff4] sm:$0xf0] }
  0x7d   :  { %3721 = vmatpush.bf16.msrb.mxu2 %v7888_v45  ;;  %v8800_v45 = vor.u32 %v10854_v32, %v8799_v31  ;;  %v10512_v31 = vld [vmem:[#allocation4 + $0x42c] sm:$0xf]  ;;  %v7457_v32 = vld [vmem:[#allocation4 + $0x458] sm:$0xf0]  ;;  %v7076_v36 = vor.u32 %v10416_v29, %v7073_v30  ;;  %v8895_v52 = vld [vmem:[#allocation4 + $0xf68] sm:$0xf] }
  0x7e   :  { %3734 = vmatpush.bf16.msrb.mxu3 %v8272_v49  ;;  %v10842_v49 = vld [vmem:[#allocation4 + $0xe74] sm:$0xf0]  ;;  %v10404_v43 = vld [vmem:[#allocation4 + $0xcc] sm:$0xf]  ;;  %v8847_v0 = vld [vmem:[#allocation4 + $0xf08] sm:$0xf] }
  0x7f   :  { %3696 = vmatpush.bf16.msrb.mxu0 %v7072_v55  ;;  %v10548_v55 = vld [vmem:[#allocation4 + $0x54c] sm:$0xf]  ;;  %v10878_v54 = vld [vmem:[#allocation4 + $0xf94] sm:$0xf0]  ;;  %v8369_v30 = vld [vmem:[#allocation4 + $0xb78] sm:$0xf0] }
  0x80   :  { %3709 = vmatpush.bf16.msrb.mxu1 %v7456_v56  ;;  %v7601_v56 = vld [vmem:[#allocation4 + $0x578] sm:$0xf0]  ;;  %v8896_v62 = vor.u32 %v10878_v54, %v8895_v52  ;;  %v10866_v1 = vld [vmem:[#allocation4 + $0xf34] sm:$0xf0]  ;;  %v10620_v52 = vld [vmem:[#allocation4 + $0x78c] sm:$0xf] }
  0x81   :  { %3722 = vmatpush.bf16.msrb.mxu2 %v7840_v57  ;;  %v8752_v57 = vor.u32 %v10842_v49, %v8751_v48  ;;  %v7604_v63 = vor.u32 %v10548_v55, %v7601_v56  ;;  %v10392_v55 = vld [vmem:[#allocation4 + $0x6c] sm:$0xf]  ;;  %v6977_v56 = vld [vmem:[#allocation4 + $0x98] sm:$0xf0] }
  0x82   :  { %3735 = vmatpush.bf16.msrb.mxu3 %v8224_v61  ;;  %v10830_v61 = vld [vmem:[#allocation4 + $0xe14] sm:$0xf0]  ;;  %v10716_v54 = vld [vmem:[#allocation4 + $0xa8c] sm:$0xf] }
  0x83   :  { %3697 = vmatpush.bf16.msrb.mxu0 %v7024_v3  ;;  %v10536_v3 = vld [vmem:[#allocation4 + $0x4ec] sm:$0xf] }
  0x84   :  { %3710 = vmatpush.bf16.msrb.mxu1 %v7408_v4  ;;  %v7553_v4 = vld [vmem:[#allocation4 + $0x518] sm:$0xf0] }
  0x85   :  { %3723 = vmatpush.bf16.msrb.mxu2 %v7792_v5  ;;  %v8704_v5 = vor.u32 %v10830_v61, %v8703_v60  ;;  %v7556_v11 = vor.u32 %v10536_v3, %v7553_v4  ;;  %v8463_v60 = vld [vmem:[#allocation4 + $0xc08] sm:$0xf]  ;;  %v10770_v61 = vld [vmem:[#allocation4 + $0xc34] sm:$0xf0]  ;;  %v6929_v4 = vld [vmem:[#allocation4 + $0x38] sm:$0xf0] }
  0x86   :  { %3736 = vmatpush.bf16.msrb.mxu3 %v8176_v9  ;;  %v10818_v9 = vld [vmem:[#allocation4 + $0xdb4] sm:$0xf0] }
  0x87   :  { %3698 = vmatpush.bf16.msrb.mxu0 %v6976_v15  ;;  %v10524_v15 = vld [vmem:[#allocation4 + $0x48c] sm:$0xf]  ;;  %v8656_v17 = vor.u32 %v10818_v9, %v8655_v8  ;;  %v8033_v8 = vld [vmem:[#allocation4 + $0x8d8] sm:$0xf0] }
  0x88   :  { %3711 = vmatpush.bf16.msrb.mxu1 %v7360_v21  ;;  %v9040_v21 = vor.u32 %v10914_v12, %v9039_v10  ;;  %v10752_v9 = vld [vmem:[#allocation4 + $0xbac] sm:$0xf]  ;;  %v8464_v10 = vor.u32 %v10770_v61, %v8463_v60  ;;  %v9041_v60 = vld [vmem:[#allocation4 + $0x10b8] sm:$0xf0] }
  0x89   :  { %3724 = vmatpush.bf16.msrb.mxu2 %v7744_v23  ;;  %v7124_v23 = vor.u32 %v10428_v13, %v7121_v14  ;;  %v10848_v12 = vld [vmem:[#allocation4 + $0xeac] sm:$0xf]  ;;  %v8801_v13 = vld [vmem:[#allocation4 + $0xed8] sm:$0xf0]  ;;  %v8848_v14 = vor.u32 %v10866_v1, %v8847_v0 }
  0x8a   :  { %3737 = vmatpush.bf16.msrb.mxu3 %v8128_v27  ;;  %v7508_v27 = vor.u32 %v10524_v15, %v7505_v16  ;;  %v6932_v15 = vor.u32 %v10380_v2, %v6929_v4  ;;  %v10944_v16 = vld [vmem:[#allocation4 + $0x11ac] sm:$0xf]  ;;  %v8804_v25 = vor.u32 %v10848_v12, %v8801_v13  ;;  %v7841_v1 = vld [vmem:[#allocation4 + $0x758] sm:$0xf0] }
  0x8b   :  { %3699 = vmatpush.bf16.msrb.mxu0 %v6928_v34  ;;  %v8992_v34 = vor.u32 %v10902_v28, %v8991_v26  ;;  %v10644_v26 = vld [vmem:[#allocation4 + $0x84c] sm:$0xf]  ;;  %v8225_v4 = vld [vmem:[#allocation4 + $0xa58] sm:$0xf0] }
  0x8c   :  { %3712 = vmatpush.bf16.msrb.mxu1 %v7312_v40  ;;  %v8943_v40 = vld [vmem:[#allocation4 + $0xfc8] sm:$0xf]  ;;  %v10740_v28 = vld [vmem:[#allocation4 + $0xb4c] sm:$0xf]  ;;  %v7793_v13 = vld [vmem:[#allocation4 + $0x6f8] sm:$0xf0] }
  0x8d   :  { %3725 = vmatpush.bf16.msrb.mxu2 %v7696_v41  ;;  %v7460_v41 = vor.u32 %v10512_v31, %v7457_v32  ;;  %v8944_v48 = vor.u32 %v10890_v42, %v8943_v40  ;;  %v10836_v31 = vld [vmem:[#allocation4 + $0xe4c] sm:$0xf]  ;;  %v8753_v32 = vld [vmem:[#allocation4 + $0xe78] sm:$0xf0] }
  0x8e   :  { %3738 = vmatpush.bf16.msrb.mxu3 %v8080_v44  ;;  %3700 = vmatmul.bf16.vlgmr.msrb.gmra.mxu0 %v11343_v18  ;;  %v7025_v44 = vld [vmem:[#allocation4 + $0xf8] sm:$0xf0]  ;;  %v10632_v40 = vld [vmem:[#allocation4 + $0x7ec] sm:$0xf] }
  0x8f   :  { %3744 = vmatpush.bf16.msra.mxu0 %v8800_v45  ;;  %3713 = vmatmul.bf16.vlgmr.msrb.gmra.mxu1 %v11347_v20  ;;  %v10500_v45 = vld [vmem:[#allocation4 + $0x3cc] sm:$0xf]  ;;  %v7028_v49 = vor.u32 %v10404_v43, %v7025_v44  ;;  %v8321_v44 = vld [vmem:[#allocation4 + $0xb18] sm:$0xf0] }
  0x90   :  { %3757 = vmatpush.bf16.msra.mxu1 %v9184_v46  ;;  %3726 = vmatmul.bf16.vlgmr.msrb.gmra.mxu2 %v11345_v19  ;;  %v7409_v46 = vld [vmem:[#allocation4 + $0x3f8] sm:$0xf0]  ;;  %v10728_v42 = vld [vmem:[#allocation4 + $0xaec] sm:$0xf] }
  0x91   :  { %3770 = vmatpush.bf16.msra.mxu2 %v7268_v47  ;;  %3739 = vmatmul.bf16.vlgmr.msrb.gmra.mxu3 %v11349_v22  ;;  %v8560_v47 = vor.u32 %v10794_v39, %v8559_v37  ;;  %v7412_v53 = vor.u32 %v10500_v45, %v7409_v46  ;;  %v8372_v37 = vor.u32 %v10740_v28, %v8369_v30  ;;  %v10824_v45 = vld [vmem:[#allocation4 + $0xdec] sm:$0xf]  ;;  %v8705_v46 = vld [vmem:[#allocation4 + $0xe18] sm:$0xf0] }
  0x92   :  { %3783 = vmatpush.bf16.msra.mxu3 %v7652_v51  ;;  %v10782_v51 = vld [vmem:[#allocation4 + $0xc94] sm:$0xf0]  ;;  %v8756_v39 = vor.u32 %v10836_v31, %v8753_v32  ;;  %v10608_v0 = vld [vmem:[#allocation4 + $0x72c] sm:$0xf]  ;;  %v7745_v31 = vld [vmem:[#allocation4 + $0x698] sm:$0xf0] }
  0x93   :  { %3745 = vmatpush.bf16.msra.mxu0 %v8752_v57  ;;  %v10488_v57 = vld [vmem:[#allocation4 + $0x36c] sm:$0xf] }
  0x94   :  { %3758 = vmatpush.bf16.msra.mxu1 %v9136_v58  ;;  %v7361_v58 = vld [vmem:[#allocation4 + $0x398] sm:$0xf0]  ;;  %v10704_v2 = vld [vmem:[#allocation4 + $0xa2c] sm:$0xf] }
  0x95   :  { %3771 = vmatpush.bf16.msra.mxu2 %v7220_v59  ;;  %v8512_v59 = vor.u32 %v10782_v51, %v8511_v50  ;;  %v7364_v3 = vor.u32 %v10488_v57, %v7361_v58  ;;  %v8324_v50 = vor.u32 %v10728_v42, %v8321_v44  ;;  %v8708_v51 = vor.u32 %v10824_v45, %v8705_v46  ;;  %v10812_v57 = vld [vmem:[#allocation4 + $0xd8c] sm:$0xf]  ;;  %v8657_v58 = vld [vmem:[#allocation4 + $0xdb8] sm:$0xf0] }
  0x96   :  { %3784 = vmatpush.bf16.msra.mxu3 %v7604_v63  ;;  %v6980_v63 = vor.u32 %v10392_v55, %v6977_v56  ;;  %v8273_v56 = vld [vmem:[#allocation4 + $0xab8] sm:$0xf0]  ;;  %v10596_v12 = vld [vmem:[#allocation4 + $0x6cc] sm:$0xf] }
  0x97   :  { %3746 = vmatpush.bf16.msra.mxu0 %v8704_v5  ;;  %v10476_v5 = vld [vmem:[#allocation4 + $0x30c] sm:$0xf]  ;;  %v7697_v44 = vld [vmem:[#allocation4 + $0x638] sm:$0xf0] }
  0x98   :  { %3759 = vmatpush.bf16.msra.mxu1 %v9088_v6  ;;  %v7313_v6 = vld [vmem:[#allocation4 + $0x338] sm:$0xf0]  ;;  %v10584_v30 = vld [vmem:[#allocation4 + $0x66c] sm:$0xf] }
  0x99   :  { %3772 = vmatpush.bf16.msra.mxu2 %v7172_v7  ;;  %v10656_v7 = vld [vmem:[#allocation4 + $0x8ac] sm:$0xf]  ;;  %v7748_v42 = vor.u32 %v10584_v30, %v7745_v31  ;;  %v7559_v30 = vld [vmem:[#allocation4 + $0x4f0] sm:$0xf] }
  0x9a   :  { %3785 = vmatpush.bf16.msra.mxu3 %v7556_v11  ;;  %v8417_v11 = vld [vmem:[#allocation4 + $0xbd8] sm:$0xf0]  ;;  %v10680_v32 = vld [vmem:[#allocation4 + $0x96c] sm:$0xf] }
  0x9b   :  { %3747 = vmatpush.bf16.msra.mxu0 %v8656_v17  ;;  %v9185_v17 = vld [vmem:[#allocation4 + $0x11d8] sm:$0xf0]  ;;  %v8420_v24 = vor.u32 %v10752_v9, %v8417_v11  ;;  %v7844_v9 = vor.u32 %v10608_v0, %v7841_v1  ;;  %v10663_v0 = vld [vmem:[#allocation4 + $0x8dc] sm:$0xf0] }
  0x9c   :  { %3760 = vmatpush.bf16.msra.mxu1 %v9040_v21  ;;  %v7316_v21 = vor.u32 %v10476_v5, %v7313_v6  ;;  %v9188_v29 = vor.u32 %v10944_v16, %v9185_v17  ;;  %v10800_v5 = vld [vmem:[#allocation4 + $0xd2c] sm:$0xf]  ;;  %v8609_v6 = vld [vmem:[#allocation4 + $0xd58] sm:$0xf0] }
  0x9d   :  { %3773 = vmatpush.bf16.msra.mxu2 %v7124_v23  ;;  %v8036_v23 = vor.u32 %v10656_v7, %v8033_v8  ;;  %v10896_v7 = vld [vmem:[#allocation4 + $0x102c] sm:$0xf]  ;;  %v8993_v8 = vld [vmem:[#allocation4 + $0x1058] sm:$0xf0]  ;;  %v8612_v11 = vor.u32 %v10800_v5, %v8609_v6  ;;  %v10759_v5 = vld [vmem:[#allocation4 + $0xbdc] sm:$0xf0] }
  0x9e   :  { %3786 = vmatpush.bf16.msra.mxu3 %v7508_v27  ;;  %v7985_v27 = vld [vmem:[#allocation4 + $0x878] sm:$0xf0]  ;;  %v10788_v17 = vld [vmem:[#allocation4 + $0xccc] sm:$0xf] }
  0x9f   :  { %3748 = vmatpush.bf16.msra.mxu0 %v8608_v33  ;;  %v10932_v33 = vld [vmem:[#allocation4 + $0x114c] sm:$0xf]  ;;  %v8177_v16 = vld [vmem:[#allocation4 + $0x9f8] sm:$0xf0] }
  0xa0   :  { %3761 = vmatpush.bf16.msra.mxu1 %v8992_v34  ;;  %v9137_v34 = vld [vmem:[#allocation4 + $0x1178] sm:$0xf0] }
  0xa1   :  { %3774 = vmatpush.bf16.msra.mxu2 %v7076_v36  ;;  %v7988_v36 = vor.u32 %v10644_v26, %v7985_v27  ;;  %v9140_v43 = vor.u32 %v10932_v33, %v9137_v34  ;;  %v7796_v26 = vor.u32 %v10596_v12, %v7793_v13  ;;  %v10459_v12 = vld [vmem:[#allocation4 + $0x27c] sm:$0xf0]  ;;  %v7607_v13 = vld [vmem:[#allocation4 + $0x550] sm:$0xf] }
  0xa2   :  { %3787 = vmatpush.bf16.msra.mxu3 %v7460_v41  ;;  %v7937_v41 = vld [vmem:[#allocation4 + $0x818] sm:$0xf0] }
  0xa3   :  { %3749 = vmatpush.bf16.msra.mxu0 %v8560_v47  ;;  %v10920_v47 = vld [vmem:[#allocation4 + $0x10ec] sm:$0xf] }
  0xa4   :  { %3762 = vmatpush.bf16.msra.mxu1 %v8944_v48  ;;  %v9089_v48 = vld [vmem:[#allocation4 + $0x1118] sm:$0xf0] }
  0xa5   :  { %3775 = vmatpush.bf16.msra.mxu2 %v7028_v49  ;;  %v7940_v49 = vor.u32 %v10632_v40, %v7937_v41  ;;  %v9092_v55 = vor.u32 %v10920_v47, %v9089_v48  ;;  %v10872_v40 = vld [vmem:[#allocation4 + $0xf6c] sm:$0xf]  ;;  %v8897_v41 = vld [vmem:[#allocation4 + $0xf98] sm:$0xf0] }
  0xa6   :  { %3788 = vmatpush.bf16.msra.mxu3 %v7412_v53  ;;  %v7889_v53 = vld [vmem:[#allocation4 + $0x7b8] sm:$0xf0]  ;;  %v10668_v47 = vld [vmem:[#allocation4 + $0x90c] sm:$0xf] }
  0xa7   :  { %3750 = vmatpush.bf16.msra.mxu0 %v8512_v59  ;;  %v10908_v59 = vld [vmem:[#allocation4 + $0x108c] sm:$0xf]  ;;  %v7892_v61 = vor.u32 %v10620_v52, %v7889_v53  ;;  %v8081_v48 = vld [vmem:[#allocation4 + $0x938] sm:$0xf0] }
  0xa8   :  { %3763 = vmatpush.bf16.msra.mxu1 %v8896_v62  ;;  %v8276_v62 = vor.u32 %v10716_v54, %v8273_v56  ;;  %v10860_v52 = vld [vmem:[#allocation4 + $0xf0c] sm:$0xf]  ;;  %v8849_v53 = vld [vmem:[#allocation4 + $0xf38] sm:$0xf0]  ;;  %v10471_v56 = vld [vmem:[#allocation4 + $0x2dc] sm:$0xf0] }
  0xa9   :  { %3776 = vmatpush.bf16.msra.mxu2 %v6980_v63  ;;  %v8660_v63 = vor.u32 %v10812_v57, %v8657_v58  ;;  %v7655_v57 = vld [vmem:[#allocation4 + $0x5b0] sm:$0xf] }
  0xaa   :  { %3789 = vmatpush.bf16.msra.mxu3 %v7364_v3  ;;  %v9044_v3 = vor.u32 %v10908_v59, %v9041_v60 }
  0xab   :  { %3751 = vmatpush.bf16.msra.mxu0 %v8464_v10  ;;  %v8228_v10 = vor.u32 %v10704_v2, %v8225_v4  ;;  %v8084_v2 = vor.u32 %v10668_v47, %v8081_v48  ;;  %v8423_v4 = vld [vmem:[#allocation4 + $0xbb0] sm:$0xf]  ;;  %v10531_v47 = vld [vmem:[#allocation4 + $0x4bc] sm:$0xf0] }
  0xac   :  { %3764 = vmatpush.bf16.msra.mxu1 %v8848_v14  ;;  %v10692_v14 = vld [vmem:[#allocation4 + $0x9cc] sm:$0xf]  ;;  %v7895_v48 = vld [vmem:[#allocation4 + $0x790] sm:$0xf] }
  0xad   :  { %3777 = vmatpush.bf16.msra.mxu2 %v6932_v15  ;;  %v8996_v15 = vor.u32 %v10896_v7, %v8993_v8  ;;  %v8180_v28 = vor.u32 %v10692_v14, %v8177_v16  ;;  %v8852_v7 = vor.u32 %v10860_v52, %v8849_v53  ;;  %v8424_v14 = vor.u32 %v10759_v5, %v8423_v4  ;;  %v7991_v16 = vld [vmem:[#allocation4 + $0x850] sm:$0xf] }
  0xae   :  { %3790 = vmatpush.bf16.msra.mxu3 %v7316_v21  ;;  %3752 = vmatmul.bf16.vlgmr.msra.gmra.mxu0 %v11358_v35  ;;  %v8561_v21 = vld [vmem:[#allocation4 + $0xcf8] sm:$0xf0] }
  0xaf   :  { %3796 = vmatpush.bf16.msrb.mxu0 %v8036_v23  ;;  %3765 = vmatmul.bf16.vlgmr.msra.gmra.mxu1 %v11360_v38  ;;  %v10884_v23 = vld [vmem:[#allocation4 + $0xfcc] sm:$0xf] }
  0xb0   :  { %3809 = vmatpush.bf16.msrb.mxu1 %v8420_v24  ;;  %3778 = vmatmul.bf16.vlgmr.msra.gmra.mxu2 %v11343_v18  ;;  %v8945_v24 = vld [vmem:[#allocation4 + $0xff8] sm:$0xf0] }
  0xb1   :  { %3822 = vmatpush.bf16.msrb.mxu2 %v8804_v25  ;;  %3791 = vmatmul.bf16.vlgmr.msra.gmra.mxu3 %v11347_v20  ;;  %v8948_v34 = vor.u32 %v10884_v23, %v8945_v24  ;;  %v10747_v23 = vld [vmem:[#allocation4 + $0xb7c] sm:$0xf0] }
  0xb2   :  { %3835 = vmatpush.bf16.msrb.mxu3 %v9188_v29  ;;  %v8564_v29 = vor.u32 %v10788_v17, %v8561_v21  ;;  %v10651_v17 = vld [vmem:[#allocation4 + $0x87c] sm:$0xf0]  ;;  %v8375_v21 = vld [vmem:[#allocation4 + $0xb50] sm:$0xf] }
  0xb3   :  { %3797 = vmatpush.bf16.msrb.mxu0 %v7988_v36  ;;  %v8129_v36 = vld [vmem:[#allocation4 + $0x998] sm:$0xf0]  ;;  %v3571_v54 = vpop.f32.mrf.mxu2 }
  0xb4   :  { %3810 = vmatpush.bf16.msrb.mxu1 %v8372_v37  ;;  %v3558_v27 = vpop.f32.mrf.mxu1  ;;  %v10776_v37 = vld [vmem:[#allocation4 + $0xc6c] sm:$0xf]  ;;  %v8132_v45 = vor.u32 %v10680_v32, %v8129_v36  ;;  %v3584_v60 = vpop.f32.mrf.mxu3  ;;  %v8376_v32 = vor.u32 %v10747_v23, %v8375_v21  ;;  %v10639_v36 = vld [vmem:[#allocation4 + $0x81c] sm:$0xf0] }
  0xb5   :  { %3823 = vmatpush.bf16.msrb.mxu2 %v8756_v39  ;;  %v3545_v25 = vpop.f32.mrf.mxu0  ;;  %v8513_v39 = vld [vmem:[#allocation4 + $0xc98] sm:$0xf0] }
  0xb6   :  { %3836 = vmatpush.bf16.msrb.mxu3 %v9140_v43  ;;  %v3559_v33 = vadd.f32 %v3558_v27, %v3545_v25  ;;  %v10572_v43 = vld [vmem:[#allocation4 + $0x60c] sm:$0xf]  ;;  %v8516_v46 = vor.u32 %v10776_v37, %v8513_v39  ;;  %v7992_v27 = vor.u32 %v10651_v17, %v7991_v16  ;;  %v8327_v37 = vld [vmem:[#allocation4 + $0xaf0] sm:$0xf]  ;;  %v10735_v39 = vld [vmem:[#allocation4 + $0xb1c] sm:$0xf0] }
  0xb7   :  { %3798 = vmatpush.bf16.msrb.mxu0 %v7940_v49  ;;  %v10764_v49 = vld [vmem:[#allocation4 + $0xc0c] sm:$0xf]  ;;  %v10699_v16 = vld [vmem:[#allocation4 + $0x9fc] sm:$0xf0] }
  0xb8   :  { %3811 = vmatpush.bf16.msrb.mxu1 %v8324_v50  ;;  %v8900_v50 = vor.u32 %v10872_v40, %v8897_v41  ;;  %v3572_v58 = vadd.f32 %v3571_v54, %v3559_v33  ;;  %v10543_v33 = vld [vmem:[#allocation4 + $0x51c] sm:$0xf0] }
  0xb9   :  { %3824 = vmatpush.bf16.msrb.mxu2 %v8708_v51  ;;  %v8465_v51 = vld [vmem:[#allocation4 + $0xc38] sm:$0xf0]  ;;  %v7560_v41 = vor.u32 %v10543_v33, %v7559_v30  ;;  %v7367_v30 = vld [vmem:[#allocation4 + $0x370] sm:$0xf] }
  0xba   :  { %3837 = vmatpush.bf16.msrb.mxu3 %v9092_v55  ;;  %v7271_v55 = vld [vmem:[#allocation4 + $0x2b0] sm:$0xf]  ;;  %v3585_v6 = vadd.f32 %v3584_v60, %v3572_v58 }
  0xbb   :  { %3799 = vmatpush.bf16.msrb.mxu0 %v7892_v61  ;;  %v7700_v61 = vor.u32 %v10572_v43, %v7697_v44  ;;  %v7272_v8 = vor.u32 %v10471_v56, %v7271_v55  ;;  %v3573_v25 = vpop.f32.mrf.mxu2  ;;  %v7127_v43 = vld [vmem:[#allocation4 + $0x190] sm:$0xf]  ;;  %v10435_v44 = vld [vmem:[#allocation4 + $0x1bc] sm:$0xf0] }
  0xbc   :  { %3812 = vmatpush.bf16.msrb.mxu1 %v8276_v62  ;;  %v10567_v62 = vld [vmem:[#allocation4 + $0x5dc] sm:$0xf0]  ;;  %v3560_v1 = vpop.f32.mrf.mxu1  ;;  %v3586_v31 = vpop.f32.mrf.mxu3  ;;  %v7128_v53 = vor.u32 %v10435_v44, %v7127_v43  ;;  %v7079_v58 = vld [vmem:[#allocation4 + $0x130] sm:$0xf] }
  0xbd   :  { %3825 = vmatpush.bf16.msrb.mxu2 %v8660_v63  ;;  %v3547_v59 = vpop.f32.mrf.mxu0  ;;  %v8039_v63 = vld [vmem:[#allocation4 + $0x8b0] sm:$0xf] }
  0xbe   :  { %3838 = vmatpush.bf16.msrb.mxu3 %v9044_v3  ;;  %v8468_v3 = vor.u32 %v10764_v49, %v8465_v51  ;;  %v10627_v49 = vld [vmem:[#allocation4 + $0x7bc] sm:$0xf0]  ;;  %v7463_v60 = vld [vmem:[#allocation4 + $0x430] sm:$0xf] }
  0xbf   :  { %3800 = vmatpush.bf16.msrb.mxu0 %v7844_v9  ;;  %v7656_v9 = vor.u32 %v10567_v62, %v7655_v57  ;;  %v10723_v51 = vld [vmem:[#allocation4 + $0xabc] sm:$0xf0]  ;;  %v7896_v57 = vor.u32 %v10627_v49, %v7895_v48  ;;  %v7751_v33 = vld [vmem:[#allocation4 + $0x670] sm:$0xf] }
  0xc0   :  { %3813 = vmatpush.bf16.msrb.mxu1 %v8228_v10  ;;  %v8040_v10 = vor.u32 %v10663_v0, %v8039_v63  ;;  %v10423_v59 = vld [vmem:[#allocation4 + $0x15c] sm:$0xf0]  ;;  %v7847_v63 = vld [vmem:[#allocation4 + $0x730] sm:$0xf] }
  0xc1   :  { %3826 = vmatpush.bf16.msrb.mxu2 %v8612_v11  ;;  %v7223_v11 = vld [vmem:[#allocation4 + $0x250] sm:$0xf]  ;;  %v10519_v62 = vld [vmem:[#allocation4 + $0x45c] sm:$0xf0]  ;;  %v7080_v4 = vor.u32 %v10423_v59, %v7079_v58  ;;  %v10465_v58 = vld [vmem:[#allocation4 + $0x2b4] sm:$0xf] }
  0xc2   :  { %3839 = vmatpush.bf16.msrb.mxu3 %v8996_v15  ;;  %v10555_v15 = vld [vmem:[#allocation4 + $0x57c] sm:$0xf0]  ;;  %v7224_v24 = vor.u32 %v10459_v12, %v7223_v11  ;;  %v7464_v5 = vor.u32 %v10519_v62, %v7463_v60  ;;  %v7799_v12 = vld [vmem:[#allocation4 + $0x6d0] sm:$0xf]  ;;  %v7273_v59 = vld [vmem:[#allocation4 + $0x2e0] sm:$0xf0] }
  0xc3   :  { %3801 = vmatpush.bf16.msrb.mxu0 %v7796_v26  ;;  %v7608_v26 = vor.u32 %v10555_v15, %v7607_v13  ;;  %v10615_v0 = vld [vmem:[#allocation4 + $0x75c] sm:$0xf0]  ;;  %v8183_v15 = vld [vmem:[#allocation4 + $0x9d0] sm:$0xf]  ;;  %v10561_v62 = vld [vmem:[#allocation4 + $0x5b4] sm:$0xf] }
  0xc4   :  { %3814 = vmatpush.bf16.msrb.mxu1 %v8180_v28  ;;  %v7175_v28 = vld [vmem:[#allocation4 + $0x1f0] sm:$0xf]  ;;  %v10507_v11 = vld [vmem:[#allocation4 + $0x3fc] sm:$0xf0]  ;;  %v8184_v31 = vor.u32 %v10699_v16, %v8183_v15 }
  0xc5   :  { %3827 = vmatpush.bf16.msrb.mxu2 %v8564_v29  ;;  %v10447_v29 = vld [vmem:[#allocation4 + $0x21c] sm:$0xf0]  ;;  %v7319_v44 = vld [vmem:[#allocation4 + $0x310] sm:$0xf] }
  0xc6   :  { %3840 = vmatpush.bf16.msrb.mxu3 %v8948_v34  ;;  %v7943_v34 = vld [vmem:[#allocation4 + $0x7f0] sm:$0xf]  ;;  %v7176_v40 = vor.u32 %v10447_v29, %v7175_v28  ;;  %v10603_v13 = vld [vmem:[#allocation4 + $0x6fc] sm:$0xf0] }
  0xc7   :  { %3802 = vmatpush.bf16.msrb.mxu0 %v7748_v42  ;;  %v7944_v42 = vor.u32 %v10639_v36, %v7943_v34  ;;  %v6983_v28 = vld [vmem:[#allocation4 + $0x70] sm:$0xf]  ;;  %v10399_v29 = vld [vmem:[#allocation4 + $0x9c] sm:$0xf0] }
  0xc8   :  { %3815 = vmatpush.bf16.msrb.mxu1 %v8132_v45  ;;  %v7511_v45 = vld [vmem:[#allocation4 + $0x490] sm:$0xf]  ;;  %v10591_v34 = vld [vmem:[#allocation4 + $0x69c] sm:$0xf0] }
  0xc9   :  { %3828 = vmatpush.bf16.msrb.mxu2 %v8516_v46  ;;  %v8328_v46 = vor.u32 %v10735_v39, %v8327_v37  ;;  %v7512_v56 = vor.u32 %v10531_v47, %v7511_v45  ;;  %v8135_v36 = vld [vmem:[#allocation4 + $0x970] sm:$0xf]  ;;  %v10687_v37 = vld [vmem:[#allocation4 + $0x99c] sm:$0xf0]  ;;  %v6984_v39 = vor.u32 %v10399_v29, %v6983_v28  ;;  %v7752_v43 = vor.u32 %v10591_v34, %v7751_v33  ;;  %v7177_v28 = vld [vmem:[#allocation4 + $0x220] sm:$0xf0] }
  0xca   :  { %3841 = vmatpush.bf16.msrb.mxu3 %v8900_v50  ;;  %v8279_v50 = vld [vmem:[#allocation4 + $0xa90] sm:$0xf]  ;;  %v10483_v45 = vld [vmem:[#allocation4 + $0x33c] sm:$0xf0]  ;;  %v8136_v47 = vor.u32 %v10687_v37, %v8135_v36  ;;  %v10537_v29 = vld [vmem:[#allocation4 + $0x4f4] sm:$0xf] }
  0xcb   :  { %3803 = vmatpush.bf16.msrb.mxu0 %v7700_v61  ;;  %v3597_v52 = vpop.f32.mrf.mxu0  ;;  %v8280_v61 = vor.u32 %v10723_v51, %v8279_v50  ;;  %v10579_v48 = vld [vmem:[#allocation4 + $0x63c] sm:$0xf0]  ;;  %v8087_v49 = vld [vmem:[#allocation4 + $0x910] sm:$0xf]  ;;  %v7320_v60 = vor.u32 %v10483_v45, %v7319_v44  ;;  %v7513_v44 = vld [vmem:[#allocation4 + $0x4c0] sm:$0xf0] }
  0xcc   :  { %3816 = vmatpush.bf16.msrb.mxu1 %v8084_v2  ;;  %v3598_v54 = vadd.f32 %v3597_v52, %v3585_v6  ;;  %v3610_v55 = vpop.f32.mrf.mxu1  ;;  %v8231_v2 = vld [vmem:[#allocation4 + $0xa30] sm:$0xf]  ;;  %v7848_v6 = vor.u32 %v10615_v0, %v7847_v63  ;;  %v10675_v50 = vld [vmem:[#allocation4 + $0x93c] sm:$0xf0]  ;;  %v7657_v63 = vld [vmem:[#allocation4 + $0x5e0] sm:$0xf0] }
  0xcd   :  { %3829 = vmatpush.bf16.msrb.mxu2 %v8468_v3  ;;  %v10711_v3 = vld [vmem:[#allocation4 + $0xa5c] sm:$0xf0]  ;;  %v8807_v52 = vld [vmem:[#allocation4 + $0xeb0] sm:$0xf]  ;;  %v8088_v0 = vor.u32 %v10675_v50, %v8087_v49 }
  0xce   :  { %3842 = vmatpush.bf16.msrb.mxu3 %v8852_v7  ;;  %3804 = vmatmul.bf16.vlgmr.msrb.gmra.mxu0 %v11345_v19  ;;  %v11382_v1 = vadd.f32 %v3610_v55, %v3598_v54  ;;  %v7031_v7 = vld [vmem:[#allocation4 + $0xd0] sm:$0xf]  ;;  %v10819_v36 = vld [vmem:[#allocation4 + $0xdbc] sm:$0xf0] }
  0xcf   :  { %3848 = vmatpush.bf16.msra.mxu0 %v7272_v8  ;;  %3817 = vmatmul.bf16.vlgmr.msrb.gmra.mxu1 %v11349_v22  ;;  %v10411_v8 = vld [vmem:[#allocation4 + $0xfc] sm:$0xf0]  ;;  %v9191_v54 = vld [vmem:[#allocation4 + $0x11b0] sm:$0xf] }
  0xd0   :  { %3861 = vmatpush.bf16.msra.mxu1 %v7656_v9  ;;  %3830 = vmatmul.bf16.vlgmr.msrb.gmra.mxu2 %v11358_v35  ;;  %v7415_v9 = vld [vmem:[#allocation4 + $0x3d0] sm:$0xf]  ;;  %v7032_v23 = vor.u32 %v10411_v8, %v7031_v7  ;;  %v7660_v8 = vor.u32 %v10561_v62, %v7657_v63  ;;  %v10807_v50 = vld [vmem:[#allocation4 + $0xd5c] sm:$0xf0] }
  0xd1   :  { %3874 = vmatpush.bf16.msra.mxu2 %v8040_v10  ;;  %3843 = vmatmul.bf16.vlgmr.msrb.gmra.mxu3 %v11360_v38  ;;  %v8232_v10 = vor.u32 %v10711_v3, %v8231_v2  ;;  %v9143_v7 = vld [vmem:[#allocation4 + $0x1150] sm:$0xf] }
  0xd2   :  { %3887 = vmatpush.bf16.msra.mxu3 %v8424_v14  ;;  %v8663_v34 = vld [vmem:[#allocation4 + $0xd90] sm:$0xf] }
  0xd3   :  { %3849 = vmatpush.bf16.msra.mxu0 %v7224_v24  ;;  %v3623_v14 = vpop.f32.mrf.mxu2  ;;  %v3599_v21 = vpop.f32.mrf.mxu0  ;;  %v9047_v37 = vld [vmem:[#allocation4 + $0x1090] sm:$0xf]  ;;  %v8664_v45 = vor.u32 %v10819_v36, %v8663_v34  ;;  %v10771_v34 = vld [vmem:[#allocation4 + $0xc3c] sm:$0xf0] }
  0xd4   :  { %3862 = vmatpush.bf16.msra.mxu1 %v7608_v26  ;;  %v3636_v17 = vpop.f32.mrf.mxu3  ;;  %v3612_v25 = vpop.f32.mrf.mxu1  ;;  %v7416_v26 = vor.u32 %v10507_v11, %v7415_v9  ;;  %v10939_v9 = vld [vmem:[#allocation4 + $0x117c] sm:$0xf0]  ;;  %v7225_v11 = vld [vmem:[#allocation4 + $0x280] sm:$0xf0]  ;;  %v8615_v49 = vld [vmem:[#allocation4 + $0xd30] sm:$0xf] }
  0xd5   :  { %3875 = vmatpush.bf16.msra.mxu2 %v7992_v27  ;;  %v11384_v24 = vadd.f32 %v3636_v17, %v3623_v14  ;;  %v7800_v27 = vor.u32 %v10603_v13, %v7799_v12  ;;  %v10549_v12 = vld [vmem:[#allocation4 + $0x554] sm:$0xf]  ;;  %v7609_v13 = vld [vmem:[#allocation4 + $0x580] sm:$0xf0]  ;;  %v9144_v15 = vor.u32 %v10939_v9, %v9143_v7  ;;  %v8711_v17 = vld [vmem:[#allocation4 + $0xdf0] sm:$0xf] }
  0xd6   :  { %3888 = vmatpush.bf16.msra.mxu3 %v8376_v32  ;;  %v10495_v32 = vld [vmem:[#allocation4 + $0x39c] sm:$0xf0]  ;;  %v7612_v25 = vor.u32 %v10549_v12, %v7609_v13  ;;  %v7033_v7 = vld [vmem:[#allocation4 + $0x100] sm:$0xf0] }
  0xd7   :  { %3850 = vmatpush.bf16.msra.mxu0 %v7176_v40  ;;  %v6935_v40 = vld [vmem:[#allocation4 + $0x10] sm:$0xf]  ;;  %v10831_v21 = vld [vmem:[#allocation4 + $0xe1c] sm:$0xf0] }
  0xd8   :  { %3863 = vmatpush.bf16.msra.mxu1 %v7560_v41  ;;  %v10387_v41 = vld [vmem:[#allocation4 + $0x3c] sm:$0xf0] }
  0xd9   :  { %3876 = vmatpush.bf16.msra.mxu2 %v7944_v42  ;;  %v7368_v42 = vor.u32 %v10495_v32, %v7367_v30  ;;  %v7561_v30 = vld [vmem:[#allocation4 + $0x520] sm:$0xf0] }
  0xda   :  { %3889 = vmatpush.bf16.msra.mxu3 %v8328_v46  ;;  %v7703_v46 = vld [vmem:[#allocation4 + $0x610] sm:$0xf] }
  0xdb   :  { %3851 = vmatpush.bf16.msra.mxu0 %v7128_v53  ;;  %v3625_v51 = vpop.f32.mrf.mxu2  ;;  %v10855_v53 = vld [vmem:[#allocation4 + $0xedc] sm:$0xf0] }
  0xdc   :  { %3864 = vmatpush.bf16.msra.mxu1 %v7512_v56  ;;  %v3638_v55 = vpop.f32.mrf.mxu3  ;;  %v6936_v56 = vor.u32 %v10387_v41, %v6935_v40  ;;  %v8808_v2 = vor.u32 %v10855_v53, %v8807_v52  ;;  %v10915_v40 = vld [vmem:[#allocation4 + $0x10bc] sm:$0xf0]  ;;  %v10429_v41 = vld [vmem:[#allocation4 + $0x194] sm:$0xf]  ;;  %v8999_v51 = vld [vmem:[#allocation4 + $0x1030] sm:$0xf] }
  0xdd   :  { %3877 = vmatpush.bf16.msra.mxu2 %v7896_v57  ;;  %v10951_v57 = vld [vmem:[#allocation4 + $0x11dc] sm:$0xf0] }
  0xde   :  { %3890 = vmatpush.bf16.msra.mxu3 %v8280_v61  ;;  %v7704_v61 = vor.u32 %v10579_v48, %v7703_v46  ;;  %v9192_v3 = vor.u32 %v10951_v57, %v9191_v54  ;;  %v10903_v55 = vld [vmem:[#allocation4 + $0x105c] sm:$0xf0]  ;;  %v7081_v57 = vld [vmem:[#allocation4 + $0x160] sm:$0xf0] }
  0xdf   :  { %3852 = vmatpush.bf16.msra.mxu0 %v7080_v4  ;;  %v7276_v4 = vor.u32 %v10465_v58, %v7273_v59  ;;  %v10513_v58 = vld [vmem:[#allocation4 + $0x434] sm:$0xf]  ;;  %v7465_v59 = vld [vmem:[#allocation4 + $0x460] sm:$0xf0]  ;;  %v9000_v62 = vor.u32 %v10903_v55, %v8999_v51 }
  0xe0   :  { %3865 = vmatpush.bf16.msra.mxu1 %v7464_v5  ;;  %v8759_v5 = vld [vmem:[#allocation4 + $0xe50] sm:$0xf] }
  0xe1   :  { %3878 = vmatpush.bf16.msra.mxu2 %v7848_v6  ;;  %v10843_v6 = vld [vmem:[#allocation4 + $0xe7c] sm:$0xf0] }
  0xe2   :  { %3891 = vmatpush.bf16.msra.mxu3 %v8232_v10  ;;  %v10453_v10 = vld [vmem:[#allocation4 + $0x254] sm:$0xf]  ;;  %v8760_v14 = vor.u32 %v10843_v6, %v8759_v5  ;;  %v10891_v5 = vld [vmem:[#allocation4 + $0xffc] sm:$0xf0] }
  0xe3   :  { %3853 = vmatpush.bf16.msra.mxu0 %v7032_v23  ;;  %v7228_v16 = vor.u32 %v10453_v10, %v7225_v11  ;;  %v9095_v23 = vld [vmem:[#allocation4 + $0x10f0] sm:$0xf]  ;;  %v10405_v6 = vld [vmem:[#allocation4 + $0xd4] sm:$0xf]  ;;  %v7417_v11 = vld [vmem:[#allocation4 + $0x400] sm:$0xf0] }
  0xe4   :  { %3866 = vmatpush.bf16.msra.mxu1 %v7416_v26  ;;  %v10927_v26 = vld [vmem:[#allocation4 + $0x111c] sm:$0xf0]  ;;  %v10501_v10 = vld [vmem:[#allocation4 + $0x3d4] sm:$0xf] }
  0xe5   :  { %3879 = vmatpush.bf16.msra.mxu2 %v7800_v27  ;;  %v10441_v27 = vld [vmem:[#allocation4 + $0x1f4] sm:$0xf]  ;;  %v9096_v32 = vor.u32 %v10927_v26, %v9095_v23  ;;  %v8903_v23 = vld [vmem:[#allocation4 + $0xf70] sm:$0xf]  ;;  %v7420_v26 = vor.u32 %v10501_v10, %v7417_v11 }
  0xe6   :  { %3892 = vmatpush.bf16.msra.mxu3 %v8184_v31  ;;  %v8712_v31 = vor.u32 %v10831_v21, %v8711_v17  ;;  %v7180_v33 = vor.u32 %v10441_v27, %v7177_v28  ;;  %v8519_v17 = vld [vmem:[#allocation4 + $0xc70] sm:$0xf]  ;;  %v10783_v21 = vld [vmem:[#allocation4 + $0xc9c] sm:$0xf0]  ;;  %v10393_v28 = vld [vmem:[#allocation4 + $0x74] sm:$0xf] }
  0xe7   :  { %3854 = vmatpush.bf16.msra.mxu0 %v6984_v39  ;;  %v7564_v39 = vor.u32 %v10537_v29, %v7561_v30  ;;  %v10879_v27 = vld [vmem:[#allocation4 + $0xf9c] sm:$0xf0]  ;;  %v6985_v29 = vld [vmem:[#allocation4 + $0xa0] sm:$0xf0]  ;;  %v10489_v30 = vld [vmem:[#allocation4 + $0x374] sm:$0xf] }
  0xe8   :  { %3867 = vmatpush.bf16.msra.mxu1 %v7368_v42  ;;  %v7129_v42 = vld [vmem:[#allocation4 + $0x1c0] sm:$0xf0]  ;;  %v8904_v36 = vor.u32 %v10879_v27, %v8903_v23  ;;  %v10633_v11 = vld [vmem:[#allocation4 + $0x7f4] sm:$0xf] }
  0xe9   :  { %3880 = vmatpush.bf16.msra.mxu2 %v7752_v43  ;;  %v10525_v43 = vld [vmem:[#allocation4 + $0x494] sm:$0xf]  ;;  %v7132_v48 = vor.u32 %v10429_v41, %v7129_v42 }
  0xea   :  { %3893 = vmatpush.bf16.msra.mxu3 %v8136_v47  ;;  %v9048_v47 = vor.u32 %v10915_v40, %v9047_v37  ;;  %v7516_v54 = vor.u32 %v10525_v43, %v7513_v44  ;;  %v6988_v37 = vor.u32 %v10393_v28, %v6985_v29  ;;  %v10867_v40 = vld [vmem:[#allocation4 + $0xf3c] sm:$0xf0]  ;;  %v10381_v41 = vld [vmem:[#allocation4 + $0x14] sm:$0xf]  ;;  %v6937_v44 = vld [vmem:[#allocation4 + $0x40] sm:$0xf0] }
  0xeb   :  { %3855 = vmatpush.bf16.msra.mxu0 %v6936_v56  ;;  %v3649_v46 = vpop.f32.mrf.mxu0  ;;  %v10417_v56 = vld [vmem:[#allocation4 + $0x134] sm:$0xf] }
  0xec   :  { %3868 = vmatpush.bf16.msra.mxu1 %v7320_v60  ;;  %v3650_v52 = vadd.f32 %v3649_v46, %v11384_v24  ;;  %v3662_v53 = vpop.f32.mrf.mxu1  ;;  %v7084_v63 = vor.u32 %v10417_v56, %v7081_v57  ;;  %v7468_v24 = vor.u32 %v10513_v58, %v7465_v59  ;;  %v7321_v46 = vld [vmem:[#allocation4 + $0x340] sm:$0xf0]  ;;  %v6940_v56 = vor.u32 %v10381_v41, %v6937_v44  ;;  %v10945_v57 = vld [vmem:[#allocation4 + $0x11b4] sm:$0xf] }
  0xed   :  { %3881 = vmatpush.bf16.msra.mxu2 %v7704_v61  ;;  %v8616_v61 = vor.u32 %v10807_v50, %v8615_v49  ;;  %v8041_v49 = vld [vmem:[#allocation4 + $0x8e0] sm:$0xf0]  ;;  %v10753_v50 = vld [vmem:[#allocation4 + $0xbb4] sm:$0xf] }
  0xee   :  { %3894 = vmatpush.bf16.msra.mxu3 %v8088_v0  ;;  %3856 = vmatmul.bf16.vlgmr.msra.gmra.mxu0 %v11343_v18  ;;  %v3663_v60 = vadd.f32 %v3662_v53, %v3650_v52  ;;  %v8567_v0 = vld [vmem:[#allocation4 + $0xcd0] sm:$0xf]  ;;  %v8425_v52 = vld [vmem:[#allocation4 + $0xbe0] sm:$0xf0]  ;;  %v10849_v53 = vld [vmem:[#allocation4 + $0xeb4] sm:$0xf] }
  0xef   :  { %3900 = vmatpush.bf16.msrb.mxu0 %v8808_v2  ;;  %3869 = vmatmul.bf16.vlgmr.msra.gmra.mxu1 %v11347_v20  ;;  %v10795_v2 = vld [vmem:[#allocation4 + $0xcfc] sm:$0xf0]  ;;  %v9193_v58 = vld [vmem:[#allocation4 + $0x11e0] sm:$0xf0]  ;;  %v10921_v23 = vld [vmem:[#allocation4 + $0x10f4] sm:$0xf] }
  0xf0   :  { %3913 = vmatpush.bf16.msrb.mxu1 %v9192_v3  ;;  %3882 = vmatmul.bf16.vlgmr.msra.gmra.mxu2 %v11345_v19  ;;  %v8951_v3 = vld [vmem:[#allocation4 + $0xfd0] sm:$0xf]  ;;  %v8568_v12 = vor.u32 %v10795_v2, %v8567_v0  ;;  %v7993_v0 = vld [vmem:[#allocation4 + $0x880] sm:$0xf0]  ;;  %v10741_v2 = vld [vmem:[#allocation4 + $0xb54] sm:$0xf] }
  0xf1   :  { %3926 = vmatpush.bf16.msrb.mxu2 %v7276_v4  ;;  %3895 = vmatmul.bf16.vlgmr.msra.gmra.mxu3 %v11349_v22  ;;  %v10621_v29 = vld [vmem:[#allocation4 + $0x794] sm:$0xf] }
  0xf2   :  { %3939 = vmatpush.bf16.msrb.mxu3 %v7660_v8 }
  0xf3   :  { %3901 = vmatpush.bf16.msrb.mxu0 %v8760_v14  ;;  %v3675_v4 = vpop.f32.mrf.mxu2  ;;  %v3651_v14 = vpop.f32.mrf.mxu0 }
  0xf4   :  { %3914 = vmatpush.bf16.msrb.mxu1 %v9144_v15  ;;  %v3676_v8 = vadd.f32 %v3675_v4, %v3663_v60  ;;  %v3688_v9 = vpop.f32.mrf.mxu3  ;;  %v8952_v15 = vor.u32 %v10891_v5, %v8951_v3  ;;  %v9196_v3 = vor.u32 %v10945_v57, %v9193_v58  ;;  %v8377_v4 = vld [vmem:[#allocation4 + $0xb80] sm:$0xf0]  ;;  %v10729_v14 = vld [vmem:[#allocation4 + $0xaf4] sm:$0xf] }
  0xf5   :  { %3927 = vmatpush.bf16.msrb.mxu2 %v7228_v16  ;;  %v7036_v16 = vor.u32 %v10405_v6, %v7033_v7  ;;  %v8761_v5 = vld [vmem:[#allocation4 + $0xe80] sm:$0xf0]  ;;  %v10933_v6 = vld [vmem:[#allocation4 + $0x1154] sm:$0xf] }
  0xf6   :  { %3940 = vmatpush.bf16.msrb.mxu3 %v7612_v25  ;;  %v11391_v13 = vadd.f32 %v3688_v9, %v3676_v8  ;;  %v3664_v25 = vpop.f32.mrf.mxu1  ;;  %v9145_v7 = vld [vmem:[#allocation4 + $0x1180] sm:$0xf0]  ;;  %v8380_v9 = vor.u32 %v10741_v2, %v8377_v4  ;;  %v10597_v58 = vld [vmem:[#allocation4 + $0x6d4] sm:$0xf] }
  0xf7   :  { %3902 = vmatpush.bf16.msrb.mxu0 %v8712_v31  ;;  %v7369_v31 = vld [vmem:[#allocation4 + $0x3a0] sm:$0xf0] }
  0xf8   :  { %3915 = vmatpush.bf16.msrb.mxu1 %v9096_v32  ;;  %v8520_v32 = vor.u32 %v10783_v21, %v8519_v17  ;;  %v7372_v43 = vor.u32 %v10489_v30, %v7369_v31  ;;  %v10825_v17 = vld [vmem:[#allocation4 + $0xdf4] sm:$0xf]  ;;  %v8713_v21 = vld [vmem:[#allocation4 + $0xe20] sm:$0xf0] }
  0xf9   :  { %3928 = vmatpush.bf16.msrb.mxu2 %v7180_v33  ;;  %v8471_v33 = vld [vmem:[#allocation4 + $0xc10] sm:$0xf]  ;;  %v9097_v25 = vld [vmem:[#allocation4 + $0x1120] sm:$0xf0]  ;;  %v8716_v28 = vor.u32 %v10825_v17, %v8713_v21  ;;  %v10717_v31 = vld [vmem:[#allocation4 + $0xa94] sm:$0xf] }
  0xfa   :  { %3941 = vmatpush.bf16.msrb.mxu3 %v7564_v39  ;;  %v8855_v39 = vld [vmem:[#allocation4 + $0xf10] sm:$0xf]  ;;  %v8472_v51 = vor.u32 %v10771_v34, %v8471_v33  ;;  %v7897_v30 = vld [vmem:[#allocation4 + $0x7c0] sm:$0xf0]  ;;  %v10813_v34 = vld [vmem:[#allocation4 + $0xd94] sm:$0xf] }
  0xfb   :  { %3903 = vmatpush.bf16.msrb.mxu0 %v8664_v45  ;;  %v3677_v42 = vpop.f32.mrf.mxu2  ;;  %v10477_v45 = vld [vmem:[#allocation4 + $0x314] sm:$0xf]  ;;  %v8856_v55 = vor.u32 %v10867_v40, %v8855_v39  ;;  %v8281_v33 = vld [vmem:[#allocation4 + $0xac0] sm:$0xf0]  ;;  %v7900_v41 = vor.u32 %v10621_v29, %v7897_v30 }
  0xfc   :  { %3916 = vmatpush.bf16.msrb.mxu1 %v9048_v47  ;;  %v3690_v47 = vpop.f32.mrf.mxu3  ;;  %v7324_v59 = vor.u32 %v10477_v45, %v7321_v46  ;;  %v9049_v39 = vld [vmem:[#allocation4 + $0x10c0] sm:$0xf0]  ;;  %v10609_v45 = vld [vmem:[#allocation4 + $0x734] sm:$0xf] }
  0xfd   :  { %3929 = vmatpush.bf16.msrb.mxu2 %v7132_v48  ;;  %v10657_v48 = vld [vmem:[#allocation4 + $0x8b4] sm:$0xf]  ;;  %v7849_v46 = vld [vmem:[#allocation4 + $0x760] sm:$0xf0] }
  0xfe   :  { %3942 = vmatpush.bf16.msrb.mxu3 %v7516_v54  ;;  %v8809_v54 = vld [vmem:[#allocation4 + $0xee0] sm:$0xf0]  ;;  %v8044_v60 = vor.u32 %v10657_v48, %v8041_v49  ;;  %v10705_v47 = vld [vmem:[#allocation4 + $0xa34] sm:$0xf] }
  0xff   :  { %3904 = vmatpush.bf16.msrb.mxu0 %v8616_v61  ;;  %v8428_v61 = vor.u32 %v10753_v50, %v8425_v52  ;;  %v8233_v50 = vld [vmem:[#allocation4 + $0xa60] sm:$0xf0]  ;;  %v10777_v21 = vld [vmem:[#allocation4 + $0xc74] sm:$0xf] }
 0x100   :  { %3917 = vmatpush.bf16.msrb.mxu1 %v9000_v62  ;;  %v8812_v62 = vor.u32 %v10849_v53, %v8809_v54  ;;  %v8617_v52 = vld [vmem:[#allocation4 + $0xd60] sm:$0xf0]  ;;  %v10897_v53 = vld [vmem:[#allocation4 + $0x1034] sm:$0xf] }
 0x101   :  { %3930 = vmatpush.bf16.msrb.mxu2 %v7084_v63  ;;  %v10645_v63 = vld [vmem:[#allocation4 + $0x854] sm:$0xf]  ;;  %v9001_v54 = vld [vmem:[#allocation4 + $0x1060] sm:$0xf0] }
 0x102   :  { %3943 = vmatpush.bf16.msrb.mxu3 %v7468_v24  ;;  %v10837_v24 = vld [vmem:[#allocation4 + $0xe54] sm:$0xf]  ;;  %v7996_v8 = vor.u32 %v10645_v63, %v7993_v0  ;;  %v8569_v0 = vld [vmem:[#allocation4 + $0xd00] sm:$0xf0] }
 0x103   :  { %3905 = vmatpush.bf16.msrb.mxu0 %v8568_v12  ;;  %v8764_v10 = vor.u32 %v10837_v24, %v8761_v5  ;;  %v7945_v12 = vld [vmem:[#allocation4 + $0x820] sm:$0xf0]  ;;  %v10789_v63 = vld [vmem:[#allocation4 + $0xcd4] sm:$0xf] }
 0x104   :  { %3918 = vmatpush.bf16.msrb.mxu1 %v8952_v15  ;;  %v9148_v15 = vor.u32 %v10933_v6, %v9145_v7  ;;  %v8953_v4 = vld [vmem:[#allocation4 + $0x1000] sm:$0xf0] }
 0x105   :  { %3931 = vmatpush.bf16.msrb.mxu2 %v7036_v16  ;;  %v8329_v16 = vld [vmem:[#allocation4 + $0xb20] sm:$0xf0] }
 0x106   :  { %3944 = vmatpush.bf16.msrb.mxu3 %v7420_v26  ;;  %v7948_v26 = vor.u32 %v10633_v11, %v7945_v12  ;;  %v8332_v27 = vor.u32 %v10729_v14, %v8329_v16  ;;  %v10585_v11 = vld [vmem:[#allocation4 + $0x674] sm:$0xf]  ;;  %v7753_v12 = vld [vmem:[#allocation4 + $0x6a0] sm:$0xf0] }
 0x107   :  { %3906 = vmatpush.bf16.msrb.mxu0 %v8520_v32  ;;  %v9100_v32 = vor.u32 %v10921_v23, %v9097_v25  ;;  %v10681_v14 = vld [vmem:[#allocation4 + $0x974] sm:$0xf]  ;;  %v8137_v17 = vld [vmem:[#allocation4 + $0x9a0] sm:$0xf0] }
 0x108   :  { %3919 = vmatpush.bf16.msrb.mxu1 %v8904_v36  ;;  %v8665_v36 = vld [vmem:[#allocation4 + $0xdc0] sm:$0xf0]  ;;  %v10873_v25 = vld [vmem:[#allocation4 + $0xf74] sm:$0xf]  ;;  %v8140_v30 = vor.u32 %v10681_v14, %v8137_v17  ;;  %v8335_v14 = vld [vmem:[#allocation4 + $0xaf8] sm:$0xf] }
 0x109   :  { %3932 = vmatpush.bf16.msrb.mxu2 %v6988_v37  ;;  %v10909_v37 = vld [vmem:[#allocation4 + $0x1094] sm:$0xf]  ;;  %v8668_v44 = vor.u32 %v10813_v34, %v8665_v36  ;;  %v8521_v23 = vld [vmem:[#allocation4 + $0xca0] sm:$0xf0] }
 0x10a   :  { %3945 = vmatpush.bf16.msrb.mxu3 %v7372_v43  ;;  %v8284_v43 = vor.u32 %v10717_v31, %v8281_v33  ;;  %v9052_v49 = vor.u32 %v10909_v37, %v9049_v39  ;;  %v7705_v29 = vld [vmem:[#allocation4 + $0x640] sm:$0xf0]  ;;  %v8524_v31 = vor.u32 %v10777_v21, %v8521_v23  ;;  %v10765_v34 = vld [vmem:[#allocation4 + $0xc14] sm:$0xf] }
 0x10b   :  { %3907 = vmatpush.bf16.msrb.mxu0 %v8472_v51  ;;  %v3701_v40 = vpop.f32.mrf.mxu0  ;;  %v10801_v51 = vld [vmem:[#allocation4 + $0xd34] sm:$0xf]  ;;  %v8089_v33 = vld [vmem:[#allocation4 + $0x940] sm:$0xf0] }
 0x10c   :  { %3920 = vmatpush.bf16.msrb.mxu1 %v8856_v55  ;;  %v3714_v42 = vpop.f32.mrf.mxu1  ;;  %v7852_v55 = vor.u32 %v10609_v45, %v7849_v46  ;;  %v8620_v57 = vor.u32 %v10801_v51, %v8617_v52  ;;  %v8473_v37 = vld [vmem:[#allocation4 + $0xc40] sm:$0xf0]  ;;  %v10861_v39 = vld [vmem:[#allocation4 + $0xf14] sm:$0xf]  ;;  %v8431_v52 = vld [vmem:[#allocation4 + $0xbb8] sm:$0xf] }
 0x10d   :  { %3933 = vmatpush.bf16.msrb.mxu2 %v6940_v56  ;;  %v3715_v48 = vadd.f32 %v3714_v42, %v3701_v40  ;;  %v8236_v56 = vor.u32 %v10705_v47, %v8233_v50  ;;  %v8857_v40 = vld [vmem:[#allocation4 + $0xf40] sm:$0xf0]  ;;  %v7279_v42 = vld [vmem:[#allocation4 + $0x2b8] sm:$0xf]  ;;  %v10568_v47 = vld [vmem:[#allocation4 + $0x5e4] sm:$0xf0]  ;;  %v8476_v51 = vor.u32 %v10765_v34, %v8473_v37 }
 0x10e   :  { %3946 = vmatpush.bf16.msrb.mxu3 %v7324_v59  ;;  %3908 = vmatmul.bf16.vlgmr.msrb.gmra.mxu0 %v11358_v35  ;;  %v7801_v59 = vld [vmem:[#allocation4 + $0x700] sm:$0xf0] }
 0x10f   :  { %3952 = vmatpush.bf16.msra.mxu0 %v8044_v60  ;;  %3921 = vmatmul.bf16.vlgmr.msrb.gmra.mxu1 %v11360_v38  ;;  %v10693_v60 = vld [vmem:[#allocation4 + $0x9d4] sm:$0xf]  ;;  %v7804_v7 = vor.u32 %v10597_v58, %v7801_v59  ;;  %v7231_v58 = vld [vmem:[#allocation4 + $0x258] sm:$0xf]  ;;  %v10460_v59 = vld [vmem:[#allocation4 + $0x284] sm:$0xf0] }
 0x110   :  { %3965 = vmatpush.bf16.msra.mxu1 %v8428_v61  ;;  %3934 = vmatmul.bf16.vlgmr.msrb.gmra.mxu2 %v11343_v18  ;;  %v9004_v61 = vor.u32 %v10897_v53, %v9001_v54  ;;  %v10760_v53 = vld [vmem:[#allocation4 + $0xbe4] sm:$0xf0]  ;;  %v8860_v54 = vor.u32 %v10861_v39, %v8857_v40 }
 0x111   :  { %3978 = vmatpush.bf16.msra.mxu2 %v8812_v62  ;;  %3947 = vmatmul.bf16.vlgmr.msrb.gmra.mxu3 %v11347_v20  ;;  %v8185_v62 = vld [vmem:[#allocation4 + $0xa00] sm:$0xf0] }
 0x112   :  { %3991 = vmatpush.bf16.msra.mxu3 %v9196_v3  ;;  %v10885_v3 = vld [vmem:[#allocation4 + $0xfd4] sm:$0xf] }
 0x113   :  { %3953 = vmatpush.bf16.msra.mxu0 %v7996_v8  ;;  %v3727_v2 = vpop.f32.mrf.mxu2  ;;  %v3703_v5 = vpop.f32.mrf.mxu0  ;;  %v8956_v16 = vor.u32 %v10885_v3, %v8953_v4  ;;  %v10748_v3 = vld [vmem:[#allocation4 + $0xb84] sm:$0xf0]  ;;  %v7232_v4 = vor.u32 %v10460_v59, %v7231_v58  ;;  %v7807_v59 = vld [vmem:[#allocation4 + $0x6d8] sm:$0xf] }
 0x114   :  { %3966 = vmatpush.bf16.msra.mxu1 %v8380_v9  ;;  %v3728_v24 = vadd.f32 %v3727_v2, %v3715_v48  ;;  %v3740_v6 = vpop.f32.mrf.mxu3  ;;  %v3716_v8 = vpop.f32.mrf.mxu1  ;;  %v8188_v9 = vor.u32 %v10693_v60, %v8185_v62  ;;  %v8047_v48 = vld [vmem:[#allocation4 + $0x8b8] sm:$0xf]  ;;  %v10556_v62 = vld [vmem:[#allocation4 + $0x584] sm:$0xf0] }
 0x115   :  { %3979 = vmatpush.bf16.msra.mxu2 %v8764_v10  ;;  %v8572_v10 = vor.u32 %v10789_v63, %v8569_v0  ;;  %v7615_v60 = vld [vmem:[#allocation4 + $0x558] sm:$0xf]  ;;  %v10652_v0 = vld [vmem:[#allocation4 + $0x884] sm:$0xf0] }
 0x116   :  { %3992 = vmatpush.bf16.msra.mxu3 %v9148_v15  ;;  %v11397_v15 = vadd.f32 %v3740_v6, %v3728_v24  ;;  %v7999_v63 = vld [vmem:[#allocation4 + $0x858] sm:$0xf]  ;;  %v7616_v24 = vor.u32 %v10556_v62, %v7615_v60  ;;  %v10508_v58 = vld [vmem:[#allocation4 + $0x404] sm:$0xf0] }
 0x117   :  { %3954 = vmatpush.bf16.msra.mxu0 %v7948_v26  ;;  %v8905_v26 = vld [vmem:[#allocation4 + $0xfa0] sm:$0xf0]  ;;  %v8383_v2 = vld [vmem:[#allocation4 + $0xb58] sm:$0xf]  ;;  %v8000_v5 = vor.u32 %v10652_v0, %v7999_v63  ;;  %v10604_v60 = vld [vmem:[#allocation4 + $0x704] sm:$0xf0] }
 0x118   :  { %3967 = vmatpush.bf16.msra.mxu1 %v8332_v27  ;;  %v7756_v27 = vor.u32 %v10585_v11, %v7753_v12  ;;  %v8908_v36 = vor.u32 %v10873_v25, %v8905_v26  ;;  %v7183_v6 = vld [vmem:[#allocation4 + $0x1f8] sm:$0xf]  ;;  %v10640_v12 = vld [vmem:[#allocation4 + $0x824] sm:$0xf0] }
 0x119   :  { %3980 = vmatpush.bf16.msra.mxu2 %v8716_v28  ;;  %v10573_v28 = vld [vmem:[#allocation4 + $0x614] sm:$0xf]  ;;  %v7567_v8 = vld [vmem:[#allocation4 + $0x4f8] sm:$0xf]  ;;  %v10436_v26 = vld [vmem:[#allocation4 + $0x1c4] sm:$0xf0] }
 0x11a   :  { %3993 = vmatpush.bf16.msra.mxu3 %v9100_v32  ;;  %v10669_v32 = vld [vmem:[#allocation4 + $0x914] sm:$0xf]  ;;  %v7708_v46 = vor.u32 %v10573_v28, %v7705_v29  ;;  %v7951_v11 = vld [vmem:[#allocation4 + $0x7f8] sm:$0xf]  ;;  %v10532_v29 = vld [vmem:[#allocation4 + $0x4c4] sm:$0xf0] }
 0x11b   :  { %3955 = vmatpush.bf16.msra.mxu0 %v7900_v41  ;;  %v3729_v41 = vpop.f32.mrf.mxu2  ;;  %v8092_v50 = vor.u32 %v10669_v32, %v8089_v33  ;;  %v7952_v23 = vor.u32 %v10640_v12, %v7951_v11  ;;  %v7135_v25 = vld [vmem:[#allocation4 + $0x198] sm:$0xf]  ;;  %v10724_v33 = vld [vmem:[#allocation4 + $0xac4] sm:$0xf0] }
 0x11c   :  { %3968 = vmatpush.bf16.msra.mxu1 %v8284_v43  ;;  %v10472_v43 = vld [vmem:[#allocation4 + $0x2e4] sm:$0xf0]  ;;  %v3742_v45 = vpop.f32.mrf.mxu3  ;;  %v8287_v32 = vld [vmem:[#allocation4 + $0xa98] sm:$0xf] }
 0x11d   :  { %3981 = vmatpush.bf16.msra.mxu2 %v8668_v44  ;;  %v7663_v44 = vld [vmem:[#allocation4 + $0x5b8] sm:$0xf]  ;;  %v8288_v45 = vor.u32 %v10724_v33, %v8287_v32  ;;  %v10700_v63 = vld [vmem:[#allocation4 + $0xa04] sm:$0xf0] }
 0x11e   :  { %3994 = vmatpush.bf16.msra.mxu3 %v9052_v49  ;;  %v10664_v49 = vld [vmem:[#allocation4 + $0x8e4] sm:$0xf0]  ;;  %v8191_v62 = vld [vmem:[#allocation4 + $0x9d8] sm:$0xf] }
 0x11f   :  { %3956 = vmatpush.bf16.msra.mxu0 %v7852_v55  ;;  %v7280_v55 = vor.u32 %v10472_v43, %v7279_v42  ;;  %v7087_v42 = vld [vmem:[#allocation4 + $0x138] sm:$0xf]  ;;  %v10424_v43 = vld [vmem:[#allocation4 + $0x164] sm:$0xf0] }
 0x120   :  { %3969 = vmatpush.bf16.msra.mxu1 %v8236_v56  ;;  %v7664_v56 = vor.u32 %v10568_v47, %v7663_v44  ;;  %v7471_v44 = vld [vmem:[#allocation4 + $0x438] sm:$0xf]  ;;  %v10496_v11 = vld [vmem:[#allocation4 + $0x3a4] sm:$0xf0] }
 0x121   :  { %3982 = vmatpush.bf16.msra.mxu2 %v8620_v57  ;;  %v8048_v57 = vor.u32 %v10664_v49, %v8047_v48  ;;  %v7855_v47 = vld [vmem:[#allocation4 + $0x738] sm:$0xf]  ;;  %v10616_v48 = vld [vmem:[#allocation4 + $0x764] sm:$0xf0] }
 0x122   :  { %3995 = vmatpush.bf16.msra.mxu3 %v9004_v61  ;;  %v8432_v61 = vor.u32 %v10760_v53, %v8431_v52  ;;  %v7088_v52 = vor.u32 %v10424_v43, %v7087_v42  ;;  %v7856_v53 = vor.u32 %v10616_v48, %v7855_v47  ;;  %v7759_v12 = vld [vmem:[#allocation4 + $0x678] sm:$0xf]  ;;  %v10580_v32 = vld [vmem:[#allocation4 + $0x644] sm:$0xf0]  ;;  %v10562_v48 = vld [vmem:[#allocation4 + $0x5bc] sm:$0xf] }
 0x123   :  { %3957 = vmatpush.bf16.msra.mxu0 %v7804_v7  ;;  %v10448_v7 = vld [vmem:[#allocation4 + $0x224] sm:$0xf0]  ;;  %v8095_v33 = vld [vmem:[#allocation4 + $0x918] sm:$0xf] }
 0x124   :  { %3970 = vmatpush.bf16.msra.mxu1 %v8188_v9  ;;  %v8384_v9 = vor.u32 %v10748_v3, %v8383_v2  ;;  %v7184_v17 = vor.u32 %v10448_v7, %v7183_v6  ;;  %v7808_v6 = vor.u32 %v10604_v60, %v7807_v59  ;;  %v6991_v7 = vld [vmem:[#allocation4 + $0x78] sm:$0xf]  ;;  %v10952_v43 = vld [vmem:[#allocation4 + $0x11e4] sm:$0xf0]  ;;  %v10454_v59 = vld [vmem:[#allocation4 + $0x25c] sm:$0xf] }
 0x125   :  { %3983 = vmatpush.bf16.msra.mxu2 %v8572_v10  ;;  %v10544_v10 = vld [vmem:[#allocation4 + $0x524] sm:$0xf0]  ;;  %v7233_v60 = vld [vmem:[#allocation4 + $0x288] sm:$0xf0] }
 0x126   :  { %3996 = vmatpush.bf16.msra.mxu3 %v8956_v16  ;;  %v10736_v16 = vld [vmem:[#allocation4 + $0xb24] sm:$0xf0]  ;;  %v7568_v21 = vor.u32 %v10544_v10, %v7567_v8  ;;  %v8192_v10 = vor.u32 %v10700_v63, %v8191_v62  ;;  %v7617_v62 = vld [vmem:[#allocation4 + $0x588] sm:$0xf0] }
 0x127   :  { %3958 = vmatpush.bf16.msra.mxu0 %v7756_v27  ;;  %v7519_v27 = vld [vmem:[#allocation4 + $0x498] sm:$0xf]  ;;  %v8336_v28 = vor.u32 %v10736_v16, %v8335_v14  ;;  %v10400_v8 = vld [vmem:[#allocation4 + $0xa4] sm:$0xf0] }
 0x128   :  { %3971 = vmatpush.bf16.msra.mxu1 %v8140_v30  ;;  %v7903_v30 = vld [vmem:[#allocation4 + $0x798] sm:$0xf]  ;;  %v7520_v40 = vor.u32 %v10532_v29, %v7519_v27  ;;  %v10592_v14 = vld [vmem:[#allocation4 + $0x6a4] sm:$0xf0] }
 0x129   :  { %3984 = vmatpush.bf16.msra.mxu2 %v8524_v31  ;;  %v10628_v31 = vld [vmem:[#allocation4 + $0x7c4] sm:$0xf0]  ;;  %v8143_v16 = vld [vmem:[#allocation4 + $0x978] sm:$0xf]  ;;  %v7760_v27 = vor.u32 %v10592_v14, %v7759_v12 }
 0x12a   :  { %3997 = vmatpush.bf16.msra.mxu3 %v8908_v36  ;;  %v7136_v36 = vor.u32 %v10436_v26, %v7135_v25  ;;  %v7904_v41 = vor.u32 %v10628_v31, %v7903_v30  ;;  %v10388_v25 = vld [vmem:[#allocation4 + $0x44] sm:$0xf0]  ;;  %v7711_v30 = vld [vmem:[#allocation4 + $0x618] sm:$0xf] }
 0x12b   :  { %3959 = vmatpush.bf16.msra.mxu0 %v7708_v46  ;;  %v3753_v34 = vpop.f32.mrf.mxu0  ;;  %v10520_v46 = vld [vmem:[#allocation4 + $0x464] sm:$0xf0]  ;;  %v7712_v47 = vor.u32 %v10580_v32, %v7711_v30  ;;  %v7521_v30 = vld [vmem:[#allocation4 + $0x4c8] sm:$0xf0] }
 0x12c   :  { %3972 = vmatpush.bf16.msra.mxu1 %v8092_v50  ;;  %v3754_v37 = vadd.f32 %v3753_v34, %v11397_v15  ;;  %v3766_v39 = vpop.f32.mrf.mxu1  ;;  %v8239_v50 = vld [vmem:[#allocation4 + $0xa38] sm:$0xf]  ;;  %v7472_v15 = vor.u32 %v10520_v46, %v7471_v44  ;;  %v10484_v29 = vld [vmem:[#allocation4 + $0x344] sm:$0xf0]  ;;  %v10466_v44 = vld [vmem:[#allocation4 + $0x2bc] sm:$0xf] }
 0x12d   :  { %3985 = vmatpush.bf16.msra.mxu2 %v8476_v51  ;;  %v10712_v51 = vld [vmem:[#allocation4 + $0xa64] sm:$0xf0] }
 0x12e   :  { %3998 = vmatpush.bf16.msra.mxu3 %v8860_v54  ;;  %3960 = vmatmul.bf16.vlgmr.msra.gmra.mxu0 %v11345_v19  ;;  %v11404_v49 = vadd.f32 %v3766_v39, %v3754_v37  ;;  %v7039_v54 = vld [vmem:[#allocation4 + $0xd8] sm:$0xf]  ;;  %v10676_v34 = vld [vmem:[#allocation4 + $0x944] sm:$0xf0] }
 0x12f   :  { %4004 = vmatpush.bf16.msrb.mxu0 %v7280_v55  ;;  %3973 = vmatmul.bf16.vlgmr.msra.gmra.mxu1 %v11349_v22  ;;  %v10412_v55 = vld [vmem:[#allocation4 + $0x104] sm:$0xf0]  ;;  %v8815_v37 = vld [vmem:[#allocation4 + $0xeb8] sm:$0xf] }
 0x130   :  { %4017 = vmatpush.bf16.msrb.mxu1 %v7664_v56  ;;  %3986 = vmatmul.bf16.vlgmr.msra.gmra.mxu2 %v11358_v35  ;;  %v7423_v56 = vld [vmem:[#allocation4 + $0x3d8] sm:$0xf]  ;;  %v7040_v3 = vor.u32 %v10412_v55, %v7039_v54  ;;  %v10856_v39 = vld [vmem:[#allocation4 + $0xee4] sm:$0xf0] }
 0x131   :  { %4030 = vmatpush.bf16.msrb.mxu2 %v8048_v57  ;;  %3999 = vmatmul.bf16.vlgmr.msra.gmra.mxu3 %v11360_v38  ;;  %v8240_v57 = vor.u32 %v10712_v51, %v8239_v50  ;;  %v7665_v50 = vld [vmem:[#allocation4 + $0x5e8] sm:$0xf0]  ;;  %v8096_v51 = vor.u32 %v10676_v34, %v8095_v33  ;;  %v8767_v54 = vld [vmem:[#allocation4 + $0xe58] sm:$0xf]  ;;  %v10844_v55 = vld [vmem:[#allocation4 + $0xe84] sm:$0xf0] }
 0x132   :  { %4043 = vmatpush.bf16.msrb.mxu3 %v8432_v61  ;;  %v8768_v63 = vor.u32 %v10844_v55, %v8767_v54  ;;  %v8959_v54 = vld [vmem:[#allocation4 + $0xfd8] sm:$0xf] }
 0x133   :  { %4005 = vmatpush.bf16.msrb.mxu0 %v7232_v4  ;;  %v3779_v61 = vpop.f32.mrf.mxu2  ;;  %v3755_v2 = vpop.f32.mrf.mxu0 }
 0x134   :  { %4018 = vmatpush.bf16.msrb.mxu1 %v7616_v24  ;;  %v3792_v0 = vpop.f32.mrf.mxu3  ;;  %v3768_v24 = vpop.f32.mrf.mxu1  ;;  %v7236_v2 = vor.u32 %v10454_v59, %v7233_v60 }
 0x135   :  { %4031 = vmatpush.bf16.msrb.mxu2 %v8000_v5  ;;  %v11406_v4 = vadd.f32 %v3792_v0, %v3779_v61  ;;  %v7424_v5 = vor.u32 %v10508_v58, %v7423_v56  ;;  %v9151_v56 = vld [vmem:[#allocation4 + $0x1158] sm:$0xf]  ;;  %v10940_v58 = vld [vmem:[#allocation4 + $0x1184] sm:$0xf0]  ;;  %v10550_v61 = vld [vmem:[#allocation4 + $0x55c] sm:$0xf] }
 0x136   :  { %4044 = vmatpush.bf16.msrb.mxu3 %v8384_v9  ;;  %v7375_v9 = vld [vmem:[#allocation4 + $0x378] sm:$0xf]  ;;  %v9152_v0 = vor.u32 %v10940_v58, %v9151_v56  ;;  %v10832_v24 = vld [vmem:[#allocation4 + $0xe24] sm:$0xf0]  ;;  %v7041_v58 = vld [vmem:[#allocation4 + $0x108] sm:$0xf0] }
 0x137   :  { %4006 = vmatpush.bf16.msrb.mxu0 %v7184_v17  ;;  %v10688_v17 = vld [vmem:[#allocation4 + $0x9a4] sm:$0xf0]  ;;  %v7376_v26 = vor.u32 %v10496_v11, %v7375_v9  ;;  %v7185_v9 = vld [vmem:[#allocation4 + $0x228] sm:$0xf0] }
 0x138   :  { %4019 = vmatpush.bf16.msrb.mxu1 %v7568_v21  ;;  %v6992_v21 = vor.u32 %v10400_v8, %v6991_v7  ;;  %v8144_v31 = vor.u32 %v10688_v17, %v8143_v16  ;;  %v10928_v7 = vld [vmem:[#allocation4 + $0x1124] sm:$0xf0]  ;;  %v10442_v8 = vld [vmem:[#allocation4 + $0x1fc] sm:$0xf]  ;;  %v7569_v11 = vld [vmem:[#allocation4 + $0x528] sm:$0xf0] }
 0x139   :  { %4032 = vmatpush.bf16.msrb.mxu2 %v7952_v23  ;;  %v6943_v23 = vld [vmem:[#allocation4 + $0x18] sm:$0xf]  ;;  %v7188_v16 = vor.u32 %v10442_v8, %v7185_v9  ;;  %v10892_v56 = vld [vmem:[#allocation4 + $0x1004] sm:$0xf0] }
 0x13a   :  { %4045 = vmatpush.bf16.msrb.mxu3 %v8336_v28  ;;  %v7327_v28 = vld [vmem:[#allocation4 + $0x318] sm:$0xf]  ;;  %v6944_v42 = vor.u32 %v10388_v25, %v6943_v23 }
 0x13b   :  { %4007 = vmatpush.bf16.msrb.mxu0 %v7136_v36  ;;  %v3781_v36 = vpop.f32.mrf.mxu2  ;;  %v7328_v46 = vor.u32 %v10484_v29, %v7327_v28  ;;  %v8671_v17 = vld [vmem:[#allocation4 + $0xd98] sm:$0xf]  ;;  %v7137_v28 = vld [vmem:[#allocation4 + $0x1c8] sm:$0xf0]  ;;  %v10526_v29 = vld [vmem:[#allocation4 + $0x49c] sm:$0xf] }
 0x13c   :  { %4020 = vmatpush.bf16.msrb.mxu1 %v7520_v40  ;;  %v9199_v40 = vld [vmem:[#allocation4 + $0x11b8] sm:$0xf] }
 0x13d   :  { %4033 = vmatpush.bf16.msrb.mxu2 %v7904_v41  ;;  %v3794_v41 = vpop.f32.mrf.mxu3  ;;  %v9055_v23 = vld [vmem:[#allocation4 + $0x1098] sm:$0xf] }
 0x13e   :  { %4046 = vmatpush.bf16.msrb.mxu3 %v8288_v45  ;;  %v7281_v45 = vld [vmem:[#allocation4 + $0x2e8] sm:$0xf0]  ;;  %v8623_v36 = vld [vmem:[#allocation4 + $0xd38] sm:$0xf] }
 0x13f   :  { %4008 = vmatpush.bf16.msrb.mxu0 %v7088_v52  ;;  %v8816_v52 = vor.u32 %v10856_v39, %v8815_v37  ;;  %v10808_v37 = vld [vmem:[#allocation4 + $0xd64] sm:$0xf0]  ;;  %v9007_v39 = vld [vmem:[#allocation4 + $0x1038] sm:$0xf] }
 0x140   :  { %4021 = vmatpush.bf16.msrb.mxu1 %v7472_v15  ;;  %v9200_v15 = vor.u32 %v10952_v43, %v9199_v40  ;;  %v10904_v43 = vld [vmem:[#allocation4 + $0x1064] sm:$0xf0] }
 0x141   :  { %4034 = vmatpush.bf16.msrb.mxu2 %v7856_v53  ;;  %v7284_v53 = vor.u32 %v10466_v44, %v7281_v45  ;;  %v10418_v44 = vld [vmem:[#allocation4 + $0x13c] sm:$0xf]  ;;  %v7089_v45 = vld [vmem:[#allocation4 + $0x168] sm:$0xf0] }
 0x142   :  { %4047 = vmatpush.bf16.msrb.mxu3 %v8240_v57  ;;  %v7668_v57 = vor.u32 %v10562_v48, %v7665_v50  ;;  %v8624_v50 = vor.u32 %v10808_v37, %v8623_v36  ;;  %v10658_v37 = vld [vmem:[#allocation4 + $0x8bc] sm:$0xf] }
 0x143   :  { %4009 = vmatpush.bf16.msrb.mxu0 %v7040_v3  ;;  %v8719_v3 = vld [vmem:[#allocation4 + $0xdf8] sm:$0xf] }
 0x144   :  { %4022 = vmatpush.bf16.msrb.mxu1 %v7424_v5  ;;  %v9103_v5 = vld [vmem:[#allocation4 + $0x10f8] sm:$0xf]  ;;  %v8720_v12 = vor.u32 %v10832_v24, %v8719_v3  ;;  %v8960_v3 = vor.u32 %v10892_v56, %v8959_v54  ;;  %v8001_v54 = vld [vmem:[#allocation4 + $0x888] sm:$0xf0] }
 0x145   :  { %4035 = vmatpush.bf16.msrb.mxu2 %v7808_v6  ;;  %v7620_v6 = vor.u32 %v10550_v61, %v7617_v62  ;;  %v9104_v14 = vor.u32 %v10928_v7, %v9103_v5  ;;  %v10502_v61 = vld [vmem:[#allocation4 + $0x3dc] sm:$0xf]  ;;  %v7425_v62 = vld [vmem:[#allocation4 + $0x408] sm:$0xf0]  ;;  %v8527_v5 = vld [vmem:[#allocation4 + $0xc78] sm:$0xf] }
 0x146   :  { %4048 = vmatpush.bf16.msrb.mxu3 %v8192_v10  ;;  %v10538_v10 = vld [vmem:[#allocation4 + $0x4fc] sm:$0xf]  ;;  %v8911_v7 = vld [vmem:[#allocation4 + $0xf78] sm:$0xf]  ;;  %v7428_v9 = vor.u32 %v10502_v61, %v7425_v62  ;;  %v8385_v56 = vld [vmem:[#allocation4 + $0xb88] sm:$0xf0] }
 0x147   :  { %4010 = vmatpush.bf16.msrb.mxu0 %v6992_v21  ;;  %v10820_v21 = vld [vmem:[#allocation4 + $0xdc4] sm:$0xf0]  ;;  %v7572_v25 = vor.u32 %v10538_v10, %v7569_v11  ;;  %v10394_v11 = vld [vmem:[#allocation4 + $0x7c] sm:$0xf] }
 0x148   :  { %4023 = vmatpush.bf16.msrb.mxu1 %v7376_v26  ;;  %v10916_v26 = vld [vmem:[#allocation4 + $0x10c4] sm:$0xf0] }
 0x149   :  { %4036 = vmatpush.bf16.msrb.mxu2 %v7760_v27  ;;  %v10430_v27 = vld [vmem:[#allocation4 + $0x19c] sm:$0xf]  ;;  %v9056_v33 = vor.u32 %v10916_v26, %v9055_v23  ;;  %v10880_v10 = vld [vmem:[#allocation4 + $0xfa4] sm:$0xf0] }
 0x14a   :  { %4049 = vmatpush.bf16.msrb.mxu3 %v8144_v31  ;;  %v8672_v31 = vor.u32 %v10820_v21, %v8671_v17  ;;  %v7140_v34 = vor.u32 %v10430_v27, %v7137_v28  ;;  %v8479_v21 = vld [vmem:[#allocation4 + $0xc18] sm:$0xf]  ;;  %v10772_v23 = vld [vmem:[#allocation4 + $0xc44] sm:$0xf0] }
 0x14b   :  { %4011 = vmatpush.bf16.msrb.mxu0 %v6944_v42  ;;  %v3805_v32 = vpop.f32.mrf.mxu0  ;;  %v7524_v42 = vor.u32 %v10526_v29, %v7521_v30  ;;  %v8863_v27 = vld [vmem:[#allocation4 + $0xf18] sm:$0xf]  ;;  %v10868_v28 = vld [vmem:[#allocation4 + $0xf44] sm:$0xf0]  ;;  %v10382_v29 = vld [vmem:[#allocation4 + $0x1c] sm:$0xf] }
 0x14c   :  { %4024 = vmatpush.bf16.msrb.mxu1 %v7328_v46  ;;  %v3806_v40 = vadd.f32 %v3805_v32, %v11406_v4  ;;  %v3818_v41 = vpop.f32.mrf.mxu1  ;;  %v10514_v46 = vld [vmem:[#allocation4 + $0x43c] sm:$0xf]  ;;  %v6945_v32 = vld [vmem:[#allocation4 + $0x48] sm:$0xf0] }
 0x14d   :  { %4037 = vmatpush.bf16.msrb.mxu2 %v7712_v47  ;;  %v7473_v47 = vld [vmem:[#allocation4 + $0x468] sm:$0xf0] }
 0x14e   :  { %4050 = vmatpush.bf16.msrb.mxu3 %v8096_v51  ;;  %4012 = vmatmul.bf16.vlgmr.msrb.gmra.mxu0 %v11343_v18  ;;  %v3819_v48 = vadd.f32 %v3818_v41, %v3806_v40  ;;  %v9008_v51 = vor.u32 %v10904_v43, %v9007_v39  ;;  %v7476_v4 = vor.u32 %v10514_v46, %v7473_v47  ;;  %v8049_v39 = vld [vmem:[#allocation4 + $0x8e8] sm:$0xf0]  ;;  %v10754_v40 = vld [vmem:[#allocation4 + $0xbbc] sm:$0xf] }
 0x14f   :  { %4056 = vmatpush.bf16.msra.mxu0 %v8816_v52  ;;  %4025 = vmatmul.bf16.vlgmr.msrb.gmra.mxu1 %v11347_v20  ;;  %v7092_v52 = vor.u32 %v10418_v44, %v7089_v45  ;;  %v8480_v41 = vor.u32 %v10772_v23, %v8479_v21  ;;  %v10850_v43 = vld [vmem:[#allocation4 + $0xebc] sm:$0xf]  ;;  %v8817_v44 = vld [vmem:[#allocation4 + $0xee8] sm:$0xf0]  ;;  %v8864_v45 = vor.u32 %v10868_v28, %v8863_v27 }
 0x150   :  { %4069 = vmatpush.bf16.msra.mxu1 %v9200_v15  ;;  %4038 = vmatmul.bf16.vlgmr.msrb.gmra.mxu2 %v11345_v19  ;;  %v8575_v15 = vld [vmem:[#allocation4 + $0xcd8] sm:$0xf]  ;;  %v6948_v46 = vor.u32 %v10382_v29, %v6945_v32  ;;  %v10946_v47 = vld [vmem:[#allocation4 + $0x11bc] sm:$0xf]  ;;  %v8673_v27 = vld [vmem:[#allocation4 + $0xdc8] sm:$0xf0] }
 0x151   :  { %4082 = vmatpush.bf16.msra.mxu2 %v7284_v53  ;;  %4051 = vmatmul.bf16.vlgmr.msrb.gmra.mxu3 %v11349_v22  ;;  %v10796_v53 = vld [vmem:[#allocation4 + $0xd04] sm:$0xf0]  ;;  %v10718_v21 = vld [vmem:[#allocation4 + $0xa9c] sm:$0xf]  ;;  %v9057_v29 = vld [vmem:[#allocation4 + $0x10c8] sm:$0xf0] }
 0x152   :  { %4095 = vmatpush.bf16.msra.mxu3 %v7668_v57  ;;  %v10406_v57 = vld [vmem:[#allocation4 + $0xdc] sm:$0xf] }
 0x153   :  { %4057 = vmatpush.bf16.msra.mxu0 %v8768_v63  ;;  %v3831_v55 = vpop.f32.mrf.mxu2  ;;  %v8576_v63 = vor.u32 %v10796_v53, %v8575_v15  ;;  %v7044_v24 = vor.u32 %v10406_v57, %v7041_v58  ;;  %v8820_v15 = vor.u32 %v10850_v43, %v8817_v44  ;;  %v10646_v53 = vld [vmem:[#allocation4 + $0x85c] sm:$0xf]  ;;  %v8769_v58 = vld [vmem:[#allocation4 + $0xe88] sm:$0xf0] }
 0x154   :  { %4070 = vmatpush.bf16.msra.mxu1 %v9152_v0  ;;  %v3832_v59 = vadd.f32 %v3831_v55, %v3819_v48  ;;  %v3844_v60 = vpop.f32.mrf.mxu3  ;;  %v3820_v8 = vpop.f32.mrf.mxu1  ;;  %v9201_v48 = vld [vmem:[#allocation4 + $0x11e8] sm:$0xf0]  ;;  %v10742_v55 = vld [vmem:[#allocation4 + $0xb5c] sm:$0xf]  ;;  %v8004_v61 = vor.u32 %v10646_v53, %v8001_v54 }
 0x155   :  { %4083 = vmatpush.bf16.msra.mxu2 %v7236_v2  ;;  %v3807_v2 = vpop.f32.mrf.mxu0  ;;  %v10838_v57 = vld [vmem:[#allocation4 + $0xe5c] sm:$0xf]  ;;  %v8388_v62 = vor.u32 %v10742_v55, %v8385_v56  ;;  %v8721_v8 = vld [vmem:[#allocation4 + $0xe28] sm:$0xf0] }
 0x156   :  { %4096 = vmatpush.bf16.msra.mxu3 %v7620_v6  ;;  %v11413_v0 = vadd.f32 %v3844_v60, %v3832_v59  ;;  %v10784_v6 = vld [vmem:[#allocation4 + $0xca4] sm:$0xf0]  ;;  %v10934_v59 = vld [vmem:[#allocation4 + $0x115c] sm:$0xf]  ;;  %v9153_v60 = vld [vmem:[#allocation4 + $0x1188] sm:$0xf0] }
 0x157   :  { %4058 = vmatpush.bf16.msra.mxu0 %v8720_v12  ;;  %v6993_v12 = vld [vmem:[#allocation4 + $0xa8] sm:$0xf0]  ;;  %v8528_v17 = vor.u32 %v10784_v6, %v8527_v5  ;;  %v10634_v2 = vld [vmem:[#allocation4 + $0x7fc] sm:$0xf]  ;;  %v9156_v5 = vor.u32 %v10934_v59, %v9153_v60 }
 0x158   :  { %4071 = vmatpush.bf16.msra.mxu1 %v9104_v14  ;;  %v10490_v14 = vld [vmem:[#allocation4 + $0x37c] sm:$0xf]  ;;  %v6996_v26 = vor.u32 %v10394_v11, %v6993_v12  ;;  %v8337_v6 = vld [vmem:[#allocation4 + $0xb28] sm:$0xf0] }
 0x159   :  { %4084 = vmatpush.bf16.msra.mxu2 %v7188_v16  ;;  %v7377_v16 = vld [vmem:[#allocation4 + $0x3a8] sm:$0xf0]  ;;  %v10910_v28 = vld [vmem:[#allocation4 + $0x109c] sm:$0xf] }
 0x15a   :  { %4097 = vmatpush.bf16.msra.mxu3 %v7572_v25  ;;  %v8912_v25 = vor.u32 %v10880_v10, %v8911_v7  ;;  %v10826_v7 = vld [vmem:[#allocation4 + $0xdfc] sm:$0xf]  ;;  %v9105_v10 = vld [vmem:[#allocation4 + $0x1128] sm:$0xf0] }
 0x15b   :  { %4059 = vmatpush.bf16.msra.mxu0 %v8672_v31  ;;  %v3833_v30 = vpop.f32.mrf.mxu2  ;;  %v7380_v31 = vor.u32 %v10490_v14, %v7377_v16  ;;  %v8724_v14 = vor.u32 %v10826_v7, %v8721_v8  ;;  %v10622_v16 = vld [vmem:[#allocation4 + $0x79c] sm:$0xf]  ;;  %v8625_v44 = vld [vmem:[#allocation4 + $0xd68] sm:$0xf0] }
 0x15c   :  { %4072 = vmatpush.bf16.msra.mxu1 %v9056_v33  ;;  %v10478_v33 = vld [vmem:[#allocation4 + $0x31c] sm:$0xf]  ;;  %v3846_v36 = vpop.f32.mrf.mxu3  ;;  %v8193_v54 = vld [vmem:[#allocation4 + $0xa08] sm:$0xf0] }
 0x15d   :  { %4085 = vmatpush.bf16.msra.mxu2 %v7140_v34  ;;  %v7329_v34 = vld [vmem:[#allocation4 + $0x348] sm:$0xf0]  ;;  %v10610_v36 = vld [vmem:[#allocation4 + $0x73c] sm:$0xf] }
 0x15e   :  { %4098 = vmatpush.bf16.msra.mxu3 %v7524_v42  ;;  %v8433_v42 = vld [vmem:[#allocation4 + $0xbe8] sm:$0xf0]  ;;  %v10802_v43 = vld [vmem:[#allocation4 + $0xd3c] sm:$0xf] }
 0x15f   :  { %4060 = vmatpush.bf16.msra.mxu0 %v8624_v50  ;;  %v7332_v50 = vor.u32 %v10478_v33, %v7329_v34  ;;  %v10790_v55 = vld [vmem:[#allocation4 + $0xcdc] sm:$0xf] }
 0x160   :  { %4073 = vmatpush.bf16.msra.mxu1 %v9008_v51  ;;  %v8052_v51 = vor.u32 %v10658_v37, %v8049_v39  ;;  %v7857_v37 = vld [vmem:[#allocation4 + $0x768] sm:$0xf0]  ;;  %v10706_v39 = vld [vmem:[#allocation4 + $0xa3c] sm:$0xf] }
 0x161   :  { %4086 = vmatpush.bf16.msra.mxu2 %v7092_v52  ;;  %v8436_v52 = vor.u32 %v10754_v40, %v8433_v42  ;;  %v8241_v42 = vld [vmem:[#allocation4 + $0xa68] sm:$0xf0] }
 0x162   :  { %4099 = vmatpush.bf16.msra.mxu3 %v7476_v4  ;;  %v9204_v4 = vor.u32 %v10946_v47, %v9201_v48  ;;  %v7860_v47 = vor.u32 %v10610_v36, %v7857_v37  ;;  %v8244_v48 = vor.u32 %v10706_v39, %v8241_v42  ;;  %v10473_v36 = vld [vmem:[#allocation4 + $0x2ec] sm:$0xf0]  ;;  %v7671_v37 = vld [vmem:[#allocation4 + $0x5c0] sm:$0xf] }
 0x163   :  { %4061 = vmatpush.bf16.msra.mxu0 %v8576_v63  ;;  %v8772_v63 = vor.u32 %v10838_v57, %v8769_v58  ;;  %v10886_v57 = vld [vmem:[#allocation4 + $0xfdc] sm:$0xf]  ;;  %v8961_v58 = vld [vmem:[#allocation4 + $0x1008] sm:$0xf0]  ;;  %v8055_v42 = vld [vmem:[#allocation4 + $0x8c0] sm:$0xf] }
 0x164   :  { %4074 = vmatpush.bf16.msra.mxu1 %v8960_v3  ;;  %v7953_v3 = vld [vmem:[#allocation4 + $0x828] sm:$0xf0]  ;;  %v8964_v8 = vor.u32 %v10886_v57, %v8961_v58  ;;  %v10653_v57 = vld [vmem:[#allocation4 + $0x88c] sm:$0xf0]  ;;  %v8391_v58 = vld [vmem:[#allocation4 + $0xb60] sm:$0xf] }
 0x165   :  { %4087 = vmatpush.bf16.msra.mxu2 %v7044_v24  ;;  %v10730_v24 = vld [vmem:[#allocation4 + $0xafc] sm:$0xf]  ;;  %v7956_v11 = vor.u32 %v10634_v2, %v7953_v3 }
 0x166   :  { %4100 = vmatpush.bf16.msra.mxu3 %v7428_v9  ;;  %v10922_v9 = vld [vmem:[#allocation4 + $0x10fc] sm:$0xf]  ;;  %v8340_v12 = vor.u32 %v10730_v24, %v8337_v6 }
 0x167   :  { %4062 = vmatpush.bf16.msra.mxu0 %v8528_v17  ;;  %v7905_v17 = vld [vmem:[#allocation4 + $0x7c8] sm:$0xf0]  ;;  %v9108_v23 = vor.u32 %v10922_v9, %v9105_v10  ;;  %v10586_v24 = vld [vmem:[#allocation4 + $0x67c] sm:$0xf] }
 0x168   :  { %4075 = vmatpush.bf16.msra.mxu1 %v8912_v25  ;;  %v8289_v25 = vld [vmem:[#allocation4 + $0xac8] sm:$0xf0]  ;;  %v10682_v6 = vld [vmem:[#allocation4 + $0x97c] sm:$0xf] }
 0x169   :  { %4088 = vmatpush.bf16.msra.mxu2 %v6996_v26  ;;  %v10814_v26 = vld [vmem:[#allocation4 + $0xd9c] sm:$0xf]  ;;  %v8292_v33 = vor.u32 %v10718_v21, %v8289_v25  ;;  %v8145_v9 = vld [vmem:[#allocation4 + $0x9a8] sm:$0xf0] }
 0x16a   :  { %4101 = vmatpush.bf16.msra.mxu3 %v7380_v31  ;;  %v7908_v31 = vor.u32 %v10622_v16, %v7905_v17  ;;  %v8676_v34 = vor.u32 %v10814_v26, %v8673_v27  ;;  %v10778_v10 = vld [vmem:[#allocation4 + $0xc7c] sm:$0xf]  ;;  %v7713_v21 = vld [vmem:[#allocation4 + $0x648] sm:$0xf0] }
 0x16b   :  { %4063 = vmatpush.bf16.msra.mxu0 %v8480_v41  ;;  %v3857_v30 = vpop.f32.mrf.mxu0  ;;  %v9060_v41 = vor.u32 %v10910_v28, %v9057_v29  ;;  %v10574_v17 = vld [vmem:[#allocation4 + $0x61c] sm:$0xf]  ;;  %v8097_v27 = vld [vmem:[#allocation4 + $0x948] sm:$0xf0] }
 0x16c   :  { %4076 = vmatpush.bf16.msra.mxu1 %v8864_v45  ;;  %v3870_v32 = vpop.f32.mrf.mxu1  ;;  %v10898_v45 = vld [vmem:[#allocation4 + $0x103c] sm:$0xf] }
 0x16d   :  { %4089 = vmatpush.bf16.msra.mxu2 %v6948_v46  ;;  %v3871_v40 = vadd.f32 %v3870_v32, %v3857_v30  ;;  %v9009_v46 = vld [vmem:[#allocation4 + $0x1068] sm:$0xf0]  ;;  %v10670_v26 = vld [vmem:[#allocation4 + $0x91c] sm:$0xf] }
 0x16e   :  { %4102 = vmatpush.bf16.msra.mxu3 %v7332_v50  ;;  %4064 = vmatmul.bf16.vlgmr.msra.gmra.mxu0 %v11358_v35  ;;  %v8628_v50 = vor.u32 %v10802_v43, %v8625_v44  ;;  %v9012_v53 = vor.u32 %v10898_v45, %v9009_v46  ;;  %v10766_v28 = vld [vmem:[#allocation4 + $0xc1c] sm:$0xf]  ;;  %v8481_v30 = vld [vmem:[#allocation4 + $0xc48] sm:$0xf0]  ;;  %v10665_v43 = vld [vmem:[#allocation4 + $0x8ec] sm:$0xf0]  ;;  %v8100_v44 = vor.u32 %v10670_v26, %v8097_v27 }
 0x16f   :  { %4108 = vmatpush.bf16.msrb.mxu0 %v8052_v51  ;;  %4077 = vmatmul.bf16.vlgmr.msra.gmra.mxu1 %v11360_v38  ;;  %v10598_v51 = vld [vmem:[#allocation4 + $0x6dc] sm:$0xf]  ;;  %v8865_v32 = vld [vmem:[#allocation4 + $0xf48] sm:$0xf0]  ;;  %v8484_v45 = vor.u32 %v10766_v28, %v8481_v30  ;;  %v8439_v46 = vld [vmem:[#allocation4 + $0xbc0] sm:$0xf] }
 0x170   :  { %4121 = vmatpush.bf16.msrb.mxu1 %v8436_v52  ;;  %4090 = vmatmul.bf16.vlgmr.msra.gmra.mxu2 %v11343_v18  ;;  %v7809_v52 = vld [vmem:[#allocation4 + $0x708] sm:$0xf0]  ;;  %v7911_v26 = vld [vmem:[#allocation4 + $0x7a0] sm:$0xf]  ;;  %v10629_v27 = vld [vmem:[#allocation4 + $0x7cc] sm:$0xf0] }
 0x171   :  { %4134 = vmatpush.bf16.msrb.mxu2 %v8820_v15  ;;  %4103 = vmatmul.bf16.vlgmr.msra.gmra.mxu3 %v11347_v20  ;;  %v10694_v15 = vld [vmem:[#allocation4 + $0x9dc] sm:$0xf]  ;;  %v8295_v28 = vld [vmem:[#allocation4 + $0xaa0] sm:$0xf] }
 0x172   :  { %4147 = vmatpush.bf16.msrb.mxu3 %v9204_v4  ;;  %v8577_v4 = vld [vmem:[#allocation4 + $0xd08] sm:$0xf0]  ;;  %v8196_v2 = vor.u32 %v10694_v15, %v8193_v54  ;;  %v7239_v15 = vld [vmem:[#allocation4 + $0x260] sm:$0xf] }
 0x173   :  { %4109 = vmatpush.bf16.msrb.mxu0 %v8004_v61  ;;  %v3883_v56 = vpop.f32.mrf.mxu2  ;;  %v3859_v60 = vpop.f32.mrf.mxu0  ;;  %v8580_v3 = vor.u32 %v10790_v55, %v8577_v4  ;;  %v7623_v54 = vld [vmem:[#allocation4 + $0x560] sm:$0xf]  ;;  %v10557_v4 = vld [vmem:[#allocation4 + $0x58c] sm:$0xf0] }
 0x174   :  { %4122 = vmatpush.bf16.msrb.mxu1 %v8388_v62  ;;  %v3884_v59 = vadd.f32 %v3883_v56, %v3871_v40  ;;  %v3896_v61 = vpop.f32.mrf.mxu3  ;;  %v7812_v62 = vor.u32 %v10598_v51, %v7809_v52  ;;  %v7716_v40 = vor.u32 %v10574_v17, %v7713_v21  ;;  %v8056_v52 = vor.u32 %v10665_v43, %v8055_v42  ;;  %v8007_v56 = vld [vmem:[#allocation4 + $0x860] sm:$0xf]  ;;  %v10437_v17 = vld [vmem:[#allocation4 + $0x1cc] sm:$0xf0] }
 0x175   :  { %4135 = vmatpush.bf16.msrb.mxu2 %v8772_v63  ;;  %v3872_v63 = vpop.f32.mrf.mxu1  ;;  %v7527_v21 = vld [vmem:[#allocation4 + $0x4a0] sm:$0xf]  ;;  %v10521_v42 = vld [vmem:[#allocation4 + $0x46c] sm:$0xf0] }
 0x176   :  { %4148 = vmatpush.bf16.msrb.mxu3 %v9156_v5  ;;  %v7761_v5 = vld [vmem:[#allocation4 + $0x6a8] sm:$0xf0]  ;;  %v11419_v7 = vadd.f32 %v3896_v61, %v3884_v59  ;;  %v10749_v59 = vld [vmem:[#allocation4 + $0xb8c] sm:$0xf0]  ;;  %v7624_v61 = vor.u32 %v10557_v4, %v7623_v54  ;;  %v7191_v63 = vld [vmem:[#allocation4 + $0x200] sm:$0xf] }
 0x177   :  { %4110 = vmatpush.bf16.msrb.mxu0 %v7956_v11  ;;  %v8529_v11 = vld [vmem:[#allocation4 + $0xca8] sm:$0xf0]  ;;  %v7764_v16 = vor.u32 %v10586_v24, %v7761_v5  ;;  %v8392_v24 = vor.u32 %v10749_v59, %v8391_v58  ;;  %v10545_v5 = vld [vmem:[#allocation4 + $0x52c] sm:$0xf0]  ;;  %v7863_v43 = vld [vmem:[#allocation4 + $0x740] sm:$0xf] }
 0x178   :  { %4123 = vmatpush.bf16.msrb.mxu1 %v8340_v12  ;;  %v10874_v12 = vld [vmem:[#allocation4 + $0xf7c] sm:$0xf]  ;;  %v8532_v25 = vor.u32 %v10778_v10, %v8529_v11  ;;  %v10737_v10 = vld [vmem:[#allocation4 + $0xb2c] sm:$0xf0] }
 0x179   :  { %4136 = vmatpush.bf16.msrb.mxu2 %v8724_v14  ;;  %v8913_v14 = vld [vmem:[#allocation4 + $0xfa8] sm:$0xf0]  ;;  %v10509_v54 = vld [vmem:[#allocation4 + $0x40c] sm:$0xf0] }
 0x17a   :  { %4149 = vmatpush.bf16.msrb.mxu3 %v9108_v23  ;;  %v8148_v23 = vor.u32 %v10682_v6, %v8145_v9  ;;  %v8916_v29 = vor.u32 %v10874_v12, %v8913_v14  ;;  %v7959_v6 = vld [vmem:[#allocation4 + $0x800] sm:$0xf]  ;;  %v10605_v4 = vld [vmem:[#allocation4 + $0x70c] sm:$0xf0] }
 0x17b   :  { %4111 = vmatpush.bf16.msrb.mxu0 %v7908_v31  ;;  %v10862_v31 = vld [vmem:[#allocation4 + $0xf1c] sm:$0xf]  ;;  %v8343_v9 = vld [vmem:[#allocation4 + $0xb00] sm:$0xf]  ;;  %v10701_v58 = vld [vmem:[#allocation4 + $0xa0c] sm:$0xf0] }
 0x17c   :  { %4124 = vmatpush.bf16.msrb.mxu1 %v8292_v33  ;;  %v3885_v33 = vpop.f32.mrf.mxu2  ;;  %v3898_v39 = vpop.f32.mrf.mxu3 }
 0x17d   :  { %4137 = vmatpush.bf16.msrb.mxu2 %v8676_v34  ;;  %v7287_v34 = vld [vmem:[#allocation4 + $0x2c0] sm:$0xf]  ;;  %v10425_v39 = vld [vmem:[#allocation4 + $0x16c] sm:$0xf0] }
 0x17e   :  { %4150 = vmatpush.bf16.msrb.mxu3 %v9060_v41  ;;  %v10569_v41 = vld [vmem:[#allocation4 + $0x5ec] sm:$0xf0] }
 0x17f   :  { %4112 = vmatpush.bf16.msrb.mxu0 %v7860_v47  ;;  %v10761_v47 = vld [vmem:[#allocation4 + $0xbec] sm:$0xf0]  ;;  %v7672_v51 = vor.u32 %v10569_v41, %v7671_v37  ;;  %v7095_v37 = vld [vmem:[#allocation4 + $0x140] sm:$0xf] }
 0x180   :  { %4125 = vmatpush.bf16.msrb.mxu1 %v8244_v48  ;;  %v8868_v48 = vor.u32 %v10862_v31, %v8865_v32  ;;  %v8440_v55 = vor.u32 %v10761_v47, %v8439_v46  ;;  %v8247_v46 = vld [vmem:[#allocation4 + $0xa40] sm:$0xf]  ;;  %v10713_v47 = vld [vmem:[#allocation4 + $0xa6c] sm:$0xf0] }
 0x181   :  { %4138 = vmatpush.bf16.msrb.mxu2 %v8628_v50  ;;  %v7288_v50 = vor.u32 %v10473_v36, %v7287_v34  ;;  %v7912_v36 = vor.u32 %v10629_v27, %v7911_v26  ;;  %v7335_v26 = vld [vmem:[#allocation4 + $0x320] sm:$0xf]  ;;  %v10485_v27 = vld [vmem:[#allocation4 + $0x34c] sm:$0xf0] }
 0x182   :  { %4151 = vmatpush.bf16.msrb.mxu3 %v9012_v53  ;;  %v10461_v53 = vld [vmem:[#allocation4 + $0x28c] sm:$0xf0] }
 0x183   :  { %4113 = vmatpush.bf16.msrb.mxu0 %v7812_v62  ;;  %v7240_v60 = vor.u32 %v10461_v53, %v7239_v15  ;;  %v8008_v62 = vor.u32 %v10653_v57, %v8007_v56  ;;  %v7431_v15 = vld [vmem:[#allocation4 + $0x3e0] sm:$0xf]  ;;  %v8248_v53 = vor.u32 %v10713_v47, %v8247_v46  ;;  %v10563_v47 = vld [vmem:[#allocation4 + $0x5c4] sm:$0xf] }
 0x184   :  { %4126 = vmatpush.bf16.msrb.mxu1 %v8196_v2  ;;  %v10449_v2 = vld [vmem:[#allocation4 + $0x22c] sm:$0xf0]  ;;  %v8199_v57 = vld [vmem:[#allocation4 + $0x9e0] sm:$0xf] }
 0x185   :  { %4139 = vmatpush.bf16.msrb.mxu2 %v8580_v3  ;;  %v7575_v3 = vld [vmem:[#allocation4 + $0x500] sm:$0xf]  ;;  %v7192_v11 = vor.u32 %v10449_v2, %v7191_v63  ;;  %v7432_v2 = vor.u32 %v10509_v54, %v7431_v15 }
 0x186   :  { %4152 = vmatpush.bf16.msrb.mxu3 %v8964_v8  ;;  %v10641_v8 = vld [vmem:[#allocation4 + $0x82c] sm:$0xf0]  ;;  %v7576_v12 = vor.u32 %v10545_v5, %v7575_v3  ;;  %v8775_v15 = vld [vmem:[#allocation4 + $0xe60] sm:$0xf] }
 0x187   :  { %4114 = vmatpush.bf16.msrb.mxu0 %v7764_v16  ;;  %v7960_v14 = vor.u32 %v10641_v8, %v7959_v6  ;;  %v7143_v16 = vld [vmem:[#allocation4 + $0x1a0] sm:$0xf]  ;;  %v10401_v5 = vld [vmem:[#allocation4 + $0xac] sm:$0xf0]  ;;  %v8200_v8 = vor.u32 %v10701_v58, %v8199_v57  ;;  %v7241_v57 = vld [vmem:[#allocation4 + $0x290] sm:$0xf0] }
 0x188   :  { %4127 = vmatpush.bf16.msrb.mxu1 %v8148_v23  ;;  %v8344_v23 = vor.u32 %v10737_v10, %v8343_v9  ;;  %v7144_v31 = vor.u32 %v10437_v17, %v7143_v16  ;;  %v7383_v6 = vld [vmem:[#allocation4 + $0x380] sm:$0xf]  ;;  %v10497_v9 = vld [vmem:[#allocation4 + $0x3ac] sm:$0xf0]  ;;  %v10551_v58 = vld [vmem:[#allocation4 + $0x564] sm:$0xf] }
 0x189   :  { %4140 = vmatpush.bf16.msrb.mxu2 %v8532_v25  ;;  %v10533_v25 = vld [vmem:[#allocation4 + $0x4cc] sm:$0xf0]  ;;  %v7767_v10 = vld [vmem:[#allocation4 + $0x680] sm:$0xf] }
 0x18a   :  { %4153 = vmatpush.bf16.msrb.mxu3 %v8916_v29  ;;  %v10725_v29 = vld [vmem:[#allocation4 + $0xacc] sm:$0xf0]  ;;  %v7528_v34 = vor.u32 %v10533_v25, %v7527_v21  ;;  %v6951_v17 = vld [vmem:[#allocation4 + $0x20] sm:$0xf] }
 0x18b   :  { %4115 = vmatpush.bf16.msrb.mxu0 %v7716_v40  ;;  %v3909_v30 = vpop.f32.mrf.mxu0  ;;  %v7479_v40 = vld [vmem:[#allocation4 + $0x440] sm:$0xf]  ;;  %v8296_v41 = vor.u32 %v10725_v29, %v8295_v28  ;;  %v10389_v21 = vld [vmem:[#allocation4 + $0x4c] sm:$0xf0] }
 0x18c   :  { %4128 = vmatpush.bf16.msrb.mxu1 %v8100_v44  ;;  %v3910_v32 = vadd.f32 %v3909_v30, %v11419_v7  ;;  %v3922_v33 = vpop.f32.mrf.mxu1  ;;  %v10617_v44 = vld [vmem:[#allocation4 + $0x76c] sm:$0xf0]  ;;  %v7480_v7 = vor.u32 %v10521_v42, %v7479_v40  ;;  %v7719_v28 = vld [vmem:[#allocation4 + $0x620] sm:$0xf]  ;;  %v6952_v40 = vor.u32 %v10389_v21, %v6951_v17  ;;  %v10467_v42 = vld [vmem:[#allocation4 + $0x2c4] sm:$0xf] }
 0x18d   :  { %4141 = vmatpush.bf16.msrb.mxu2 %v8484_v45  ;;  %v10581_v30 = vld [vmem:[#allocation4 + $0x64c] sm:$0xf0]  ;;  %v9159_v54 = vld [vmem:[#allocation4 + $0x1160] sm:$0xf] }
 0x18e   :  { %4154 = vmatpush.bf16.msrb.mxu3 %v8868_v48  ;;  %4116 = vmatmul.bf16.vlgmr.msrb.gmra.mxu0 %v11345_v19  ;;  %v11426_v45 = vadd.f32 %v3922_v33, %v3910_v32  ;;  %v7096_v48 = vor.u32 %v10425_v39, %v7095_v37  ;;  %v10677_v32 = vld [vmem:[#allocation4 + $0x94c] sm:$0xf0]  ;;  %v9207_v37 = vld [vmem:[#allocation4 + $0x11c0] sm:$0xf]  ;;  %v7720_v46 = vor.u32 %v10581_v30, %v7719_v28  ;;  %v7145_v28 = vld [vmem:[#allocation4 + $0x1d0] sm:$0xf0] }
 0x18f   :  { %4160 = vmatpush.bf16.msra.mxu0 %v7288_v50  ;;  %4129 = vmatmul.bf16.vlgmr.msrb.gmra.mxu1 %v11349_v22  ;;  %v7864_v50 = vor.u32 %v10617_v44, %v7863_v43  ;;  %v7289_v43 = vld [vmem:[#allocation4 + $0x2f0] sm:$0xf0]  ;;  %v7336_v44 = vor.u32 %v10485_v27, %v7335_v26  ;;  %v8679_v17 = vld [vmem:[#allocation4 + $0xda0] sm:$0xf]  ;;  %v10821_v21 = vld [vmem:[#allocation4 + $0xdcc] sm:$0xf0] }
 0x190   :  { %4173 = vmatpush.bf16.msra.mxu1 %v7672_v51  ;;  %4142 = vmatmul.bf16.vlgmr.msrb.gmra.mxu2 %v11358_v35  ;;  %v7047_v51 = vld [vmem:[#allocation4 + $0xe0] sm:$0xf]  ;;  %v10917_v26 = vld [vmem:[#allocation4 + $0x10cc] sm:$0xf0]  ;;  %v10431_v27 = vld [vmem:[#allocation4 + $0x1a4] sm:$0xf] }
 0x191   :  { %4186 = vmatpush.bf16.msra.mxu2 %v8056_v52  ;;  %4155 = vmatmul.bf16.vlgmr.msrb.gmra.mxu3 %v11360_v38  ;;  %v10413_v52 = vld [vmem:[#allocation4 + $0x10c] sm:$0xf0]  ;;  %v7529_v30 = vld [vmem:[#allocation4 + $0x4d0] sm:$0xf0] }
 0x192   :  { %4199 = vmatpush.bf16.msra.mxu3 %v8440_v55  ;;  %v7815_v55 = vld [vmem:[#allocation4 + $0x6e0] sm:$0xf] }
 0x193   :  { %4161 = vmatpush.bf16.msra.mxu0 %v7240_v60  ;;  %v3935_v56 = vpop.f32.mrf.mxu2  ;;  %v3911_v60 = vpop.f32.mrf.mxu0  ;;  %v7816_v3 = vor.u32 %v10605_v4, %v7815_v55  ;;  %v10941_v4 = vld [vmem:[#allocation4 + $0x118c] sm:$0xf0] }
 0x194   :  { %4174 = vmatpush.bf16.msra.mxu1 %v7624_v61  ;;  %v3948_v59 = vpop.f32.mrf.mxu3  ;;  %v7048_v61 = vor.u32 %v10413_v52, %v7047_v51  ;;  %v3924_v63 = vpop.f32.mrf.mxu1  ;;  %v7292_v52 = vor.u32 %v10467_v42, %v7289_v43  ;;  %v10905_v43 = vld [vmem:[#allocation4 + $0x106c] sm:$0xf0] }
 0x195   :  { %4187 = vmatpush.bf16.msra.mxu2 %v8008_v62  ;;  %v11428_v62 = vadd.f32 %v3948_v59, %v3935_v56  ;;  %v10455_v56 = vld [vmem:[#allocation4 + $0x264] sm:$0xf]  ;;  %v7625_v59 = vld [vmem:[#allocation4 + $0x590] sm:$0xf0] }
 0x196   :  { %4200 = vmatpush.bf16.msra.mxu3 %v8392_v24  ;;  %v6999_v24 = vld [vmem:[#allocation4 + $0x80] sm:$0xf]  ;;  %v7244_v63 = vor.u32 %v10455_v56, %v7241_v57  ;;  %v10407_v56 = vld [vmem:[#allocation4 + $0xe4] sm:$0xf]  ;;  %v7049_v57 = vld [vmem:[#allocation4 + $0x110] sm:$0xf0] }
 0x197   :  { %4162 = vmatpush.bf16.msra.mxu0 %v7192_v11  ;;  %v10593_v11 = vld [vmem:[#allocation4 + $0x6ac] sm:$0xf0]  ;;  %v7000_v16 = vor.u32 %v10401_v5, %v6999_v24  ;;  %v9111_v24 = vld [vmem:[#allocation4 + $0x1100] sm:$0xf]  ;;  %v7628_v5 = vor.u32 %v10551_v58, %v7625_v59 }
 0x198   :  { %4175 = vmatpush.bf16.msra.mxu1 %v7576_v12  ;;  %v8151_v12 = vld [vmem:[#allocation4 + $0x980] sm:$0xf]  ;;  %v7768_v25 = vor.u32 %v10593_v11, %v7767_v10  ;;  %v10539_v10 = vld [vmem:[#allocation4 + $0x504] sm:$0xf]  ;;  %v7577_v11 = vld [vmem:[#allocation4 + $0x530] sm:$0xf0] }
 0x199   :  { %4188 = vmatpush.bf16.msra.mxu2 %v7960_v14  ;;  %v10689_v14 = vld [vmem:[#allocation4 + $0x9ac] sm:$0xf0] }
 0x19a   :  { %4201 = vmatpush.bf16.msra.mxu3 %v8344_v23  ;;  %v7384_v23 = vor.u32 %v10497_v9, %v7383_v6  ;;  %v8152_v29 = vor.u32 %v10689_v14, %v8151_v12  ;;  %v10929_v6 = vld [vmem:[#allocation4 + $0x112c] sm:$0xf0]  ;;  %v7193_v9 = vld [vmem:[#allocation4 + $0x230] sm:$0xf0] }
 0x19b   :  { %4163 = vmatpush.bf16.msra.mxu0 %v7144_v31  ;;  %v8103_v31 = vld [vmem:[#allocation4 + $0x920] sm:$0xf]  ;;  %v3937_v33 = vpop.f32.mrf.mxu2  ;;  %v9112_v14 = vor.u32 %v10929_v6, %v9111_v24 }
 0x19c   :  { %4176 = vmatpush.bf16.msra.mxu1 %v7528_v34  ;;  %v8823_v34 = vld [vmem:[#allocation4 + $0xec0] sm:$0xf]  ;;  %v3950_v39 = vpop.f32.mrf.mxu3 }
 0x19d   :  { %4189 = vmatpush.bf16.msra.mxu2 %v7912_v36  ;;  %v10857_v36 = vld [vmem:[#allocation4 + $0xeec] sm:$0xf0]  ;;  %v9015_v39 = vld [vmem:[#allocation4 + $0x1040] sm:$0xf] }
 0x19e   :  { %4202 = vmatpush.bf16.msra.mxu3 %v8296_v41  ;;  %v10953_v41 = vld [vmem:[#allocation4 + $0x11ec] sm:$0xf0]  ;;  %v8535_v6 = vld [vmem:[#allocation4 + $0xc80] sm:$0xf] }
 0x19f   :  { %4164 = vmatpush.bf16.msra.mxu0 %v7096_v48  ;;  %v7673_v48 = vld [vmem:[#allocation4 + $0x5f0] sm:$0xf0]  ;;  %v9208_v51 = vor.u32 %v10953_v41, %v9207_v37  ;;  %v10809_v37 = vld [vmem:[#allocation4 + $0xd6c] sm:$0xf0] }
 0x1a0   :  { %4177 = vmatpush.bf16.msra.mxu1 %v7480_v7  ;;  %v8104_v7 = vor.u32 %v10677_v32, %v8103_v31  ;;  %v7676_v55 = vor.u32 %v10563_v47, %v7673_v48  ;;  %v8680_v31 = vor.u32 %v10821_v21, %v8679_v17  ;;  %v10515_v47 = vld [vmem:[#allocation4 + $0x444] sm:$0xf]  ;;  %v7481_v48 = vld [vmem:[#allocation4 + $0x470] sm:$0xf0] }
 0x1a1   :  { %4190 = vmatpush.bf16.msra.mxu2 %v7864_v50  ;;  %v8824_v50 = vor.u32 %v10857_v36, %v8823_v34  ;;  %v7148_v34 = vor.u32 %v10431_v27, %v7145_v28  ;;  %v8631_v36 = vld [vmem:[#allocation4 + $0xd40] sm:$0xf]  ;;  %v10491_v17 = vld [vmem:[#allocation4 + $0x384] sm:$0xf]  ;;  %v7385_v21 = vld [vmem:[#allocation4 + $0x3b0] sm:$0xf0] }
 0x1a2   :  { %4203 = vmatpush.bf16.msra.mxu3 %v8248_v53  ;;  %v10845_v53 = vld [vmem:[#allocation4 + $0xe8c] sm:$0xf0] }
 0x1a3   :  { %4165 = vmatpush.bf16.msra.mxu0 %v7048_v61  ;;  %v8776_v60 = vor.u32 %v10845_v53, %v8775_v15  ;;  %v9160_v61 = vor.u32 %v10941_v4, %v9159_v54  ;;  %v8583_v15 = vld [vmem:[#allocation4 + $0xce0] sm:$0xf]  ;;  %v10797_v53 = vld [vmem:[#allocation4 + $0xd0c] sm:$0xf0] }
 0x1a4   :  { %4178 = vmatpush.bf16.msra.mxu1 %v7432_v2  ;;  %v8727_v2 = vld [vmem:[#allocation4 + $0xe00] sm:$0xf]  ;;  %v10893_v4 = vld [vmem:[#allocation4 + $0x100c] sm:$0xf0] }
 0x1a5   :  { %4191 = vmatpush.bf16.msra.mxu2 %v7816_v3  ;;  %v10833_v3 = vld [vmem:[#allocation4 + $0xe2c] sm:$0xf0]  ;;  %v8967_v54 = vld [vmem:[#allocation4 + $0xfe0] sm:$0xf] }
 0x1a6   :  { %4204 = vmatpush.bf16.msra.mxu3 %v8200_v8  ;;  %v10443_v8 = vld [vmem:[#allocation4 + $0x204] sm:$0xf]  ;;  %v8728_v12 = vor.u32 %v10833_v3, %v8727_v2  ;;  %v8968_v24 = vor.u32 %v10893_v4, %v8967_v54 }
 0x1a7   :  { %4166 = vmatpush.bf16.msra.mxu0 %v7000_v16  ;;  %v7196_v16 = vor.u32 %v10443_v8, %v7193_v9  ;;  %v10785_v8 = vld [vmem:[#allocation4 + $0xcac] sm:$0xf0]  ;;  %v8919_v9 = vld [vmem:[#allocation4 + $0xf80] sm:$0xf]  ;;  %v10743_v4 = vld [vmem:[#allocation4 + $0xb64] sm:$0xf] }
 0x1a8   :  { %4179 = vmatpush.bf16.msra.mxu1 %v7384_v23  ;;  %v9063_v23 = vld [vmem:[#allocation4 + $0x10a0] sm:$0xf] }
 0x1a9   :  { %4192 = vmatpush.bf16.msra.mxu2 %v7768_v25  ;;  %v7580_v25 = vor.u32 %v10539_v10, %v7577_v11  ;;  %v9064_v33 = vor.u32 %v10917_v26, %v9063_v23  ;;  %v8536_v23 = vor.u32 %v10785_v8, %v8535_v6  ;;  %v10773_v26 = vld [vmem:[#allocation4 + $0xc4c] sm:$0xf0]  ;;  %v7961_v6 = vld [vmem:[#allocation4 + $0x830] sm:$0xf0]  ;;  %v10731_v8 = vld [vmem:[#allocation4 + $0xb04] sm:$0xf] }
 0x1aa   :  { %4205 = vmatpush.bf16.msra.mxu3 %v8152_v29  ;;  %v10527_v29 = vld [vmem:[#allocation4 + $0x4a4] sm:$0xf] }
 0x1ab   :  { %4167 = vmatpush.bf16.msra.mxu0 %v6952_v40  ;;  %v3961_v32 = vpop.f32.mrf.mxu0  ;;  %v7532_v42 = vor.u32 %v10527_v29, %v7529_v30  ;;  %v8871_v29 = vld [vmem:[#allocation4 + $0xf20] sm:$0xf]  ;;  %v10869_v30 = vld [vmem:[#allocation4 + $0xf4c] sm:$0xf0] }
 0x1ac   :  { %4180 = vmatpush.bf16.msra.mxu1 %v7336_v44  ;;  %v3962_v40 = vadd.f32 %v3961_v32, %v11428_v62  ;;  %v3974_v41 = vpop.f32.mrf.mxu1  ;;  %v10419_v44 = vld [vmem:[#allocation4 + $0x144] sm:$0xf]  ;;  %v7484_v62 = vor.u32 %v10515_v47, %v7481_v48  ;;  %v8825_v47 = vld [vmem:[#allocation4 + $0xef0] sm:$0xf0]  ;;  %v8872_v48 = vor.u32 %v10869_v30, %v8871_v29 }
 0x1ad   :  { %4193 = vmatpush.bf16.msra.mxu2 %v7720_v46  ;;  %v7097_v46 = vld [vmem:[#allocation4 + $0x170] sm:$0xf0]  ;;  %v10815_v30 = vld [vmem:[#allocation4 + $0xda4] sm:$0xf] }
 0x1ae   :  { %4206 = vmatpush.bf16.msra.mxu3 %v8104_v7  ;;  %4168 = vmatmul.bf16.vlgmr.msra.gmra.mxu0 %v11343_v18  ;;  %v3975_v7 = vadd.f32 %v3974_v41, %v3962_v40  ;;  %v10659_v40 = vld [vmem:[#allocation4 + $0x8c4] sm:$0xf]  ;;  %v8057_v41 = vld [vmem:[#allocation4 + $0x8f0] sm:$0xf0] }
 0x1af   :  { %4212 = vmatpush.bf16.msrb.mxu0 %v8824_v50  ;;  %4181 = vmatmul.bf16.vlgmr.msra.gmra.mxu1 %v11347_v20  ;;  %v8632_v50 = vor.u32 %v10809_v37, %v8631_v36  ;;  %v10479_v36 = vld [vmem:[#allocation4 + $0x324] sm:$0xf]  ;;  %v7337_v37 = vld [vmem:[#allocation4 + $0x350] sm:$0xf0] }
 0x1b0   :  { %4225 = vmatpush.bf16.msrb.mxu1 %v9208_v51  ;;  %4194 = vmatmul.bf16.vlgmr.msra.gmra.mxu2 %v11345_v19  ;;  %v9016_v51 = vor.u32 %v10905_v43, %v9015_v39  ;;  %v8297_v29 = vld [vmem:[#allocation4 + $0xad0] sm:$0xf0] }
 0x1b1   :  { %4238 = vmatpush.bf16.msrb.mxu2 %v7292_v52  ;;  %4207 = vmatmul.bf16.vlgmr.msra.gmra.mxu3 %v11349_v22  ;;  %v7100_v52 = vor.u32 %v10419_v44, %v7097_v46  ;;  %v8441_v44 = vld [vmem:[#allocation4 + $0xbf0] sm:$0xf0]  ;;  %v10851_v46 = vld [vmem:[#allocation4 + $0xec4] sm:$0xf] }
 0x1b2   :  { %4251 = vmatpush.bf16.msrb.mxu3 %v7676_v55  ;;  %v8828_v54 = vor.u32 %v10851_v46, %v8825_v47  ;;  %v8249_v47 = vld [vmem:[#allocation4 + $0xa70] sm:$0xf0] }
 0x1b3   :  { %4213 = vmatpush.bf16.msrb.mxu0 %v8776_v60  ;;  %v3987_v55 = vpop.f32.mrf.mxu2  ;;  %v10503_v60 = vld [vmem:[#allocation4 + $0x3e4] sm:$0xf]  ;;  %v3963_v3 = vpop.f32.mrf.mxu0 }
 0x1b4   :  { %4226 = vmatpush.bf16.msrb.mxu1 %v9160_v61  ;;  %v3988_v58 = vadd.f32 %v3987_v55, %v3975_v7  ;;  %v4000_v59 = vpop.f32.mrf.mxu3  ;;  %v7433_v61 = vld [vmem:[#allocation4 + $0x410] sm:$0xf0]  ;;  %v3976_v10 = vpop.f32.mrf.mxu1  ;;  %v10647_v55 = vld [vmem:[#allocation4 + $0x864] sm:$0xf] }
 0x1b5   :  { %4239 = vmatpush.bf16.msrb.mxu2 %v7244_v63  ;;  %v8584_v63 = vor.u32 %v10797_v53, %v8583_v15  ;;  %v7436_v11 = vor.u32 %v10503_v60, %v7433_v61  ;;  %v8060_v15 = vor.u32 %v10659_v40, %v8057_v41  ;;  %v10935_v60 = vld [vmem:[#allocation4 + $0x1164] sm:$0xf]  ;;  %v9161_v61 = vld [vmem:[#allocation4 + $0x1190] sm:$0xf0] }
 0x1b6   :  { %4252 = vmatpush.bf16.msrb.mxu3 %v7628_v5  ;;  %v11435_v2 = vadd.f32 %v4000_v59, %v3988_v58  ;;  %v7052_v5 = vor.u32 %v10407_v56, %v7049_v57  ;;  %v8393_v57 = vld [vmem:[#allocation4 + $0xb90] sm:$0xf0]  ;;  %v10839_v58 = vld [vmem:[#allocation4 + $0xe64] sm:$0xf] }
 0x1b7   :  { %4214 = vmatpush.bf16.msrb.mxu0 %v8728_v12  ;;  %v10881_v12 = vld [vmem:[#allocation4 + $0xfac] sm:$0xf0]  ;;  %v8777_v59 = vld [vmem:[#allocation4 + $0xe90] sm:$0xf0]  ;;  %v8396_v3 = vor.u32 %v10743_v4, %v8393_v57  ;;  %v10611_v41 = vld [vmem:[#allocation4 + $0x744] sm:$0xf] }
 0x1b8   :  { %4227 = vmatpush.bf16.msrb.mxu1 %v9112_v14  ;;  %v10395_v14 = vld [vmem:[#allocation4 + $0x84] sm:$0xf]  ;;  %v8920_v27 = vor.u32 %v10881_v12, %v8919_v9  ;;  %v9164_v9 = vor.u32 %v10935_v60, %v9161_v61  ;;  %v8345_v10 = vld [vmem:[#allocation4 + $0xb30] sm:$0xf0] }
 0x1b9   :  { %4240 = vmatpush.bf16.msrb.mxu2 %v7196_v16  ;;  %v7001_v16 = vld [vmem:[#allocation4 + $0xb0] sm:$0xf0]  ;;  %v10791_v57 = vld [vmem:[#allocation4 + $0xce4] sm:$0xf] }
 0x1ba   :  { %4253 = vmatpush.bf16.msrb.mxu3 %v7580_v25  ;;  %v8487_v25 = vld [vmem:[#allocation4 + $0xc20] sm:$0xf]  ;;  %v7004_v28 = vor.u32 %v10395_v14, %v7001_v16  ;;  %v8729_v12 = vld [vmem:[#allocation4 + $0xe30] sm:$0xf0]  ;;  %v10923_v14 = vld [vmem:[#allocation4 + $0x1104] sm:$0xf] }
 0x1bb   :  { %4215 = vmatpush.bf16.msrb.mxu0 %v8680_v31  ;;  %v10383_v31 = vld [vmem:[#allocation4 + $0x24] sm:$0xf]  ;;  %v3989_v32 = vpop.f32.mrf.mxu2  ;;  %v8488_v43 = vor.u32 %v10773_v26, %v8487_v25  ;;  %v9113_v16 = vld [vmem:[#allocation4 + $0x1130] sm:$0xf0] }
 0x1bc   :  { %4228 = vmatpush.bf16.msrb.mxu1 %v9064_v33  ;;  %v7388_v33 = vor.u32 %v10491_v17, %v7385_v21  ;;  %v4002_v39 = vpop.f32.mrf.mxu3  ;;  %v8348_v21 = vor.u32 %v10731_v8, %v8345_v10  ;;  %v10623_v25 = vld [vmem:[#allocation4 + $0x7a4] sm:$0xf]  ;;  %v7913_v26 = vld [vmem:[#allocation4 + $0x7d0] sm:$0xf0] }
 0x1bd   :  { %4241 = vmatpush.bf16.msrb.mxu2 %v7148_v34  ;;  %v6953_v34 = vld [vmem:[#allocation4 + $0x50] sm:$0xf0]  ;;  %v10911_v32 = vld [vmem:[#allocation4 + $0x10a4] sm:$0xf] }
 0x1be   :  { %4254 = vmatpush.bf16.msrb.mxu3 %v7532_v42  ;;  %v10755_v42 = vld [vmem:[#allocation4 + $0xbc4] sm:$0xf]  ;;  %v6956_v7 = vor.u32 %v10383_v31, %v6953_v34  ;;  %v8681_v31 = vld [vmem:[#allocation4 + $0xdd0] sm:$0xf0] }
 0x1bf   :  { %4216 = vmatpush.bf16.msrb.mxu0 %v8632_v50  ;;  %v10947_v50 = vld [vmem:[#allocation4 + $0x11c4] sm:$0xf]  ;;  %v8444_v53 = vor.u32 %v10755_v42, %v8441_v44  ;;  %v8684_v40 = vor.u32 %v10815_v30, %v8681_v31  ;;  %v7865_v42 = vld [vmem:[#allocation4 + $0x770] sm:$0xf0] }
 0x1c0   :  { %4229 = vmatpush.bf16.msrb.mxu1 %v9016_v51  ;;  %v9209_v51 = vld [vmem:[#allocation4 + $0x11f0] sm:$0xf0]  ;;  %v10887_v60 = vld [vmem:[#allocation4 + $0xfe4] sm:$0xf] }
 0x1c1   :  { %4242 = vmatpush.bf16.msrb.mxu2 %v7100_v52  ;;  %v7340_v52 = vor.u32 %v10479_v36, %v7337_v37  ;;  %v9212_v56 = vor.u32 %v10947_v50, %v9209_v51  ;;  %v7916_v36 = vor.u32 %v10623_v25, %v7913_v26  ;;  %v10899_v50 = vld [vmem:[#allocation4 + $0x1044] sm:$0xf]  ;;  %v9017_v51 = vld [vmem:[#allocation4 + $0x1070] sm:$0xf0] }
 0x1c2   :  { %4255 = vmatpush.bf16.msrb.mxu3 %v7484_v62  ;;  %v8009_v62 = vld [vmem:[#allocation4 + $0x890] sm:$0xf0]  ;;  %v9020_v4 = vor.u32 %v10899_v50, %v9017_v51  ;;  %v10587_v10 = vld [vmem:[#allocation4 + $0x684] sm:$0xf]  ;;  %v10666_v50 = vld [vmem:[#allocation4 + $0x8f4] sm:$0xf0] }
 0x1c3   :  { %4217 = vmatpush.bf16.msrb.mxu0 %v8584_v63  ;;  %v8012_v63 = vor.u32 %v10647_v55, %v8009_v62  ;;  %v7817_v55 = vld [vmem:[#allocation4 + $0x710] sm:$0xf0]  ;;  %v10695_v62 = vld [vmem:[#allocation4 + $0x9e4] sm:$0xf] }
 0x1c4   :  { %4230 = vmatpush.bf16.msrb.mxu1 %v8968_v24  ;;  %v8780_v24 = vor.u32 %v10839_v58, %v8777_v59  ;;  %v8585_v58 = vld [vmem:[#allocation4 + $0xd10] sm:$0xf0]  ;;  %v10875_v25 = vld [vmem:[#allocation4 + $0xf84] sm:$0xf] }
 0x1c5   :  { %4243 = vmatpush.bf16.msrb.mxu2 %v7052_v5  ;;  %v10635_v5 = vld [vmem:[#allocation4 + $0x804] sm:$0xf]  ;;  %v8969_v61 = vld [vmem:[#allocation4 + $0x1010] sm:$0xf0] }
 0x1c6   :  { %4256 = vmatpush.bf16.msrb.mxu3 %v7436_v11  ;;  %v10827_v11 = vld [vmem:[#allocation4 + $0xe04] sm:$0xf]  ;;  %v7964_v17 = vor.u32 %v10635_v5, %v7961_v6  ;;  %v8921_v26 = vld [vmem:[#allocation4 + $0xfb0] sm:$0xf0] }
 0x1c7   :  { %4218 = vmatpush.bf16.msrb.mxu0 %v8536_v23  ;;  %v8732_v23 = vor.u32 %v10827_v11, %v8729_v12  ;;  %v7769_v11 = vld [vmem:[#allocation4 + $0x6b0] sm:$0xf0]  ;;  %v10683_v12 = vld [vmem:[#allocation4 + $0x984] sm:$0xf] }
 0x1c8   :  { %4231 = vmatpush.bf16.msrb.mxu1 %v8920_v27  ;;  %v10719_v27 = vld [vmem:[#allocation4 + $0xaa4] sm:$0xf] }
 0x1c9   :  { %4244 = vmatpush.bf16.msrb.mxu2 %v7004_v28  ;;  %v9116_v28 = vor.u32 %v10923_v14, %v9113_v16  ;;  %v8300_v39 = vor.u32 %v10719_v27, %v8297_v29  ;;  %v8972_v16 = vor.u32 %v10887_v60, %v8969_v61  ;;  %v7772_v27 = vor.u32 %v10587_v10, %v7769_v11  ;;  %v7721_v29 = vld [vmem:[#allocation4 + $0x650] sm:$0xf0]  ;;  %v10558_v60 = vld [vmem:[#allocation4 + $0x594] sm:$0xf0]  ;;  %v8015_v61 = vld [vmem:[#allocation4 + $0x868] sm:$0xf] }
 0x1ca   :  { %4257 = vmatpush.bf16.msrb.mxu3 %v7388_v33  ;;  %v9065_v33 = vld [vmem:[#allocation4 + $0x10d0] sm:$0xf0]  ;;  %v10450_v10 = vld [vmem:[#allocation4 + $0x234] sm:$0xf0]  ;;  %v7583_v11 = vld [vmem:[#allocation4 + $0x508] sm:$0xf] }
 0x1cb   :  { %4219 = vmatpush.bf16.msrb.mxu0 %v8488_v43  ;;  %v4013_v34 = vpop.f32.mrf.mxu0  ;;  %v10707_v43 = vld [vmem:[#allocation4 + $0xa44] sm:$0xf]  ;;  %v9068_v46 = vor.u32 %v10911_v32, %v9065_v33  ;;  %v8105_v33 = vld [vmem:[#allocation4 + $0x950] sm:$0xf0] }
 0x1cc   :  { %4232 = vmatpush.bf16.msrb.mxu1 %v8872_v48  ;;  %v4026_v37 = vpop.f32.mrf.mxu1  ;;  %v10803_v48 = vld [vmem:[#allocation4 + $0xd44] sm:$0xf] }
 0x1cd   :  { %4245 = vmatpush.bf16.msrb.mxu2 %v6956_v7  ;;  %v4027_v44 = vadd.f32 %v4026_v37, %v4013_v34  ;;  %v8633_v7 = vld [vmem:[#allocation4 + $0xd70] sm:$0xf0]  ;;  %v10671_v32 = vld [vmem:[#allocation4 + $0x924] sm:$0xf] }
 0x1ce   :  { %4258 = vmatpush.bf16.msrb.mxu3 %v7340_v52  ;;  %4220 = vmatmul.bf16.vlgmr.msrb.gmra.mxu0 %v11358_v35  ;;  %v7868_v52 = vor.u32 %v10611_v41, %v7865_v42  ;;  %v10767_v34 = vld [vmem:[#allocation4 + $0xc24] sm:$0xf]  ;;  %v8489_v37 = vld [vmem:[#allocation4 + $0xc50] sm:$0xf0]  ;;  %v7295_v42 = vld [vmem:[#allocation4 + $0x2c8] sm:$0xf]  ;;  %v8108_v51 = vor.u32 %v10671_v32, %v8105_v33 }
 0x1cf   :  { %4264 = vmatpush.bf16.msra.mxu0 %v8060_v15  ;;  %4233 = vmatmul.bf16.vlgmr.msrb.gmra.mxu1 %v11360_v38  ;;  %v8252_v15 = vor.u32 %v10707_v43, %v8249_v47  ;;  %v10474_v43 = vld [vmem:[#allocation4 + $0x2f4] sm:$0xf0] }
 0x1d0   :  { %4277 = vmatpush.bf16.msra.mxu1 %v8444_v53  ;;  %4246 = vmatmul.bf16.vlgmr.msrb.gmra.mxu2 %v11343_v18  ;;  %v8636_v53 = vor.u32 %v10803_v48, %v8633_v7  ;;  %v10570_v48 = vld [vmem:[#allocation4 + $0x5f4] sm:$0xf0]  ;;  %v8063_v7 = vld [vmem:[#allocation4 + $0x8c8] sm:$0xf] }
 0x1d1   :  { %4290 = vmatpush.bf16.msra.mxu2 %v8828_v54  ;;  %4259 = vmatmul.bf16.vlgmr.msrb.gmra.mxu3 %v11347_v20  ;;  %v10599_v54 = vld [vmem:[#allocation4 + $0x6e4] sm:$0xf]  ;;  %v10534_v33 = vld [vmem:[#allocation4 + $0x4d4] sm:$0xf0] }
 0x1d2   :  { %4303 = vmatpush.bf16.msra.mxu3 %v9212_v56  ;;  %v8201_v56 = vld [vmem:[#allocation4 + $0xa10] sm:$0xf0]  ;;  %v7820_v5 = vor.u32 %v10599_v54, %v7817_v55  ;;  %v7296_v55 = vor.u32 %v10474_v43, %v7295_v42 }
 0x1d3   :  { %4265 = vmatpush.bf16.msra.mxu0 %v8012_v63  ;;  %v4039_v59 = vpop.f32.mrf.mxu2  ;;  %v8204_v8 = vor.u32 %v10695_v62, %v8201_v56  ;;  %v7247_v56 = vld [vmem:[#allocation4 + $0x268] sm:$0xf] }
 0x1d4   :  { %4278 = vmatpush.bf16.msra.mxu1 %v8396_v3  ;;  %v4040_v63 = vadd.f32 %v4039_v59, %v4027_v44  ;;  %v4015_v3 = vpop.f32.mrf.mxu0  ;;  %v4028_v6 = vpop.f32.mrf.mxu1  ;;  %v7679_v44 = vld [vmem:[#allocation4 + $0x5c8] sm:$0xf] }
 0x1d5   :  { %4291 = vmatpush.bf16.msra.mxu2 %v8780_v24  ;;  %v4052_v24 = vpop.f32.mrf.mxu3  ;;  %v7680_v62 = vor.u32 %v10570_v48, %v7679_v44  ;;  %v8399_v3 = vld [vmem:[#allocation4 + $0xb68] sm:$0xf]  ;;  %v10426_v48 = vld [vmem:[#allocation4 + $0x174] sm:$0xf0] }
 0x1d6   :  { %4304 = vmatpush.bf16.msra.mxu3 %v9164_v9  ;;  %v8588_v9 = vor.u32 %v10791_v57, %v8585_v58  ;;  %v11441_v14 = vadd.f32 %v4052_v24, %v4040_v63  ;;  %v10462_v57 = vld [vmem:[#allocation4 + $0x294] sm:$0xf0]  ;;  %v7631_v58 = vld [vmem:[#allocation4 + $0x568] sm:$0xf] }
 0x1d7   :  { %4266 = vmatpush.bf16.msra.mxu0 %v7964_v17  ;;  %v8153_v17 = vld [vmem:[#allocation4 + $0x9b0] sm:$0xf0]  ;;  %v10654_v63 = vld [vmem:[#allocation4 + $0x894] sm:$0xf0]  ;;  %v7632_v6 = vor.u32 %v10558_v60, %v7631_v58  ;;  %v7439_v58 = vld [vmem:[#allocation4 + $0x3e8] sm:$0xf] }
 0x1d8   :  { %4279 = vmatpush.bf16.msra.mxu1 %v8348_v21  ;;  %v10779_v21 = vld [vmem:[#allocation4 + $0xc84] sm:$0xf]  ;;  %v8156_v30 = vor.u32 %v10683_v12, %v8153_v17  ;;  %v10750_v24 = vld [vmem:[#allocation4 + $0xb94] sm:$0xf0]  ;;  %v7967_v17 = vld [vmem:[#allocation4 + $0x808] sm:$0xf] }
 0x1d9   :  { %4292 = vmatpush.bf16.msra.mxu2 %v8732_v23  ;;  %v8537_v23 = vld [vmem:[#allocation4 + $0xcb0] sm:$0xf0]  ;;  %v8400_v12 = vor.u32 %v10750_v24, %v8399_v3  ;;  %v10510_v60 = vld [vmem:[#allocation4 + $0x414] sm:$0xf0]  ;;  %v8207_v24 = vld [vmem:[#allocation4 + $0x9e8] sm:$0xf] }
 0x1da   :  { %4305 = vmatpush.bf16.msra.mxu3 %v9116_v28  ;;  %v10575_v28 = vld [vmem:[#allocation4 + $0x624] sm:$0xf]  ;;  %v8540_v31 = vor.u32 %v10779_v21, %v8537_v23  ;;  %v10642_v21 = vld [vmem:[#allocation4 + $0x834] sm:$0xf0]  ;;  %v8351_v23 = vld [vmem:[#allocation4 + $0xb08] sm:$0xf] }
 0x1db   :  { %4267 = vmatpush.bf16.msra.mxu0 %v7916_v36  ;;  %v8924_v36 = vor.u32 %v10875_v25, %v8921_v26  ;;  %v4041_v41 = vpop.f32.mrf.mxu2  ;;  %v7724_v47 = vor.u32 %v10575_v28, %v7721_v29  ;;  %v10738_v25 = vld [vmem:[#allocation4 + $0xb34] sm:$0xf0]  ;;  %v7968_v28 = vor.u32 %v10642_v21, %v7967_v17  ;;  %v7151_v29 = vld [vmem:[#allocation4 + $0x1a8] sm:$0xf] }
 0x1dc   :  { %4280 = vmatpush.bf16.msra.mxu1 %v8300_v39  ;;  %v10863_v39 = vld [vmem:[#allocation4 + $0xf24] sm:$0xf]  ;;  %v8352_v32 = vor.u32 %v10738_v25, %v8351_v23  ;;  %v7007_v17 = vld [vmem:[#allocation4 + $0x88] sm:$0xf]  ;;  %v10402_v21 = vld [vmem:[#allocation4 + $0xb4] sm:$0xf0] }
 0x1dd   :  { %4293 = vmatpush.bf16.msra.mxu2 %v8684_v40  ;;  %v8873_v40 = vld [vmem:[#allocation4 + $0xf50] sm:$0xf0]  ;;  %v7391_v23 = vld [vmem:[#allocation4 + $0x388] sm:$0xf] }
 0x1de   :  { %4306 = vmatpush.bf16.msra.mxu3 %v9068_v46  ;;  %v4054_v46 = vpop.f32.mrf.mxu3  ;;  %v8876_v54 = vor.u32 %v10863_v39, %v8873_v40  ;;  %v10726_v39 = vld [vmem:[#allocation4 + $0xad4] sm:$0xf0] }
 0x1df   :  { %4268 = vmatpush.bf16.msra.mxu0 %v7868_v52  ;;  %v8492_v52 = vor.u32 %v10767_v34, %v8489_v37  ;;  %v7919_v34 = vld [vmem:[#allocation4 + $0x7a8] sm:$0xf] }
 0x1e0   :  { %4281 = vmatpush.bf16.msra.mxu1 %v8252_v15  ;;  %v8447_v15 = vld [vmem:[#allocation4 + $0xbc8] sm:$0xf] }
 0x1e1   :  { %4294 = vmatpush.bf16.msra.mxu2 %v8636_v53  ;;  %v10762_v53 = vld [vmem:[#allocation4 + $0xbf4] sm:$0xf0]  ;;  %v8303_v37 = vld [vmem:[#allocation4 + $0xaa8] sm:$0xf] }
 0x1e2   :  { %4307 = vmatpush.bf16.msra.mxu3 %v9020_v4  ;;  %v8064_v4 = vor.u32 %v10666_v50, %v8063_v7  ;;  %v8448_v59 = vor.u32 %v10762_v53, %v8447_v15  ;;  %v7487_v7 = vld [vmem:[#allocation4 + $0x448] sm:$0xf]  ;;  %v8304_v50 = vor.u32 %v10726_v39, %v8303_v37  ;;  %v10618_v15 = vld [vmem:[#allocation4 + $0x774] sm:$0xf0] }
 0x1e3   :  { %4269 = vmatpush.bf16.msra.mxu0 %v7820_v5  ;;  %v7248_v5 = vor.u32 %v10462_v57, %v7247_v56  ;;  %v7055_v56 = vld [vmem:[#allocation4 + $0xe8] sm:$0xf]  ;;  %v10414_v57 = vld [vmem:[#allocation4 + $0x114] sm:$0xf0] }
 0x1e4   :  { %4282 = vmatpush.bf16.msra.mxu1 %v8204_v8  ;;  %v8016_v8 = vor.u32 %v10654_v63, %v8015_v61  ;;  %v7823_v61 = vld [vmem:[#allocation4 + $0x6e8] sm:$0xf]  ;;  %v10606_v63 = vld [vmem:[#allocation4 + $0x714] sm:$0xf0] }
 0x1e5   :  { %4295 = vmatpush.bf16.msra.mxu2 %v8588_v9  ;;  %v7199_v9 = vld [vmem:[#allocation4 + $0x208] sm:$0xf]  ;;  %v10486_v39 = vld [vmem:[#allocation4 + $0x354] sm:$0xf0] }
 0x1e6   :  { %4308 = vmatpush.bf16.msra.mxu3 %v8972_v16  ;;  %v10546_v16 = vld [vmem:[#allocation4 + $0x534] sm:$0xf0]  ;;  %v7200_v26 = vor.u32 %v10450_v10, %v7199_v9  ;;  %v7056_v9 = vor.u32 %v10414_v57, %v7055_v56  ;;  %v7343_v37 = vld [vmem:[#allocation4 + $0x328] sm:$0xf] }
 0x1e7   :  { %4270 = vmatpush.bf16.msra.mxu0 %v7772_v27  ;;  %v7584_v27 = vor.u32 %v10546_v16, %v7583_v11  ;;  %v7824_v16 = vor.u32 %v10606_v63, %v7823_v61  ;;  %v10846_v61 = vld [vmem:[#allocation4 + $0xe94] sm:$0xf0]  ;;  %v9167_v63 = vld [vmem:[#allocation4 + $0x1168] sm:$0xf] }
 0x1e8   :  { %4283 = vmatpush.bf16.msra.mxu1 %v8156_v30  ;;  %v10438_v30 = vld [vmem:[#allocation4 + $0x1d4] sm:$0xf0] }
 0x1e9   :  { %4296 = vmatpush.bf16.msra.mxu2 %v8540_v31  ;;  %v7535_v31 = vld [vmem:[#allocation4 + $0x4a8] sm:$0xf]  ;;  %v7152_v41 = vor.u32 %v10438_v30, %v7151_v29  ;;  %v10690_v30 = vld [vmem:[#allocation4 + $0x9b4] sm:$0xf0] }
 0x1ea   :  { %4309 = vmatpush.bf16.msra.mxu3 %v8924_v36  ;;  %v10630_v36 = vld [vmem:[#allocation4 + $0x7d4] sm:$0xf0]  ;;  %v7536_v44 = vor.u32 %v10534_v33, %v7535_v31  ;;  %v8159_v29 = vld [vmem:[#allocation4 + $0x988] sm:$0xf]  ;;  %v7008_v31 = vor.u32 %v10402_v21, %v7007_v17 }
 0x1eb   :  { %4271 = vmatpush.bf16.msra.mxu0 %v7724_v47  ;;  %v4065_v40 = vpop.f32.mrf.mxu0  ;;  %v7920_v46 = vor.u32 %v10630_v36, %v7919_v34  ;;  %v7103_v47 = vld [vmem:[#allocation4 + $0x148] sm:$0xf]  ;;  %v10390_v33 = vld [vmem:[#allocation4 + $0x54] sm:$0xf0] }
 0x1ec   :  { %4284 = vmatpush.bf16.msra.mxu1 %v8108_v51  ;;  %v4066_v42 = vadd.f32 %v4065_v40, %v11441_v14  ;;  %v4078_v43 = vpop.f32.mrf.mxu1  ;;  %v10522_v51 = vld [vmem:[#allocation4 + $0x474] sm:$0xf0]  ;;  %v7727_v40 = vld [vmem:[#allocation4 + $0x628] sm:$0xf] }
 0x1ed   :  { %4297 = vmatpush.bf16.msra.mxu2 %v8492_v52  ;;  %v7871_v52 = vld [vmem:[#allocation4 + $0x748] sm:$0xf]  ;;  %v7488_v14 = vor.u32 %v10522_v51, %v7487_v7  ;;  %v10834_v21 = vld [vmem:[#allocation4 + $0xe34] sm:$0xf0] }
 0x1ee   :  { %4310 = vmatpush.bf16.msra.mxu3 %v8876_v54  ;;  %4272 = vmatmul.bf16.vlgmr.msra.gmra.mxu0 %v11345_v19  ;;  %v11448_v53 = vadd.f32 %v4078_v43, %v4066_v42  ;;  %v8255_v54 = vld [vmem:[#allocation4 + $0xa48] sm:$0xf]  ;;  %v10582_v42 = vld [vmem:[#allocation4 + $0x654] sm:$0xf0] }
 0x1ef   :  { %4316 = vmatpush.bf16.msrb.mxu0 %v7296_v55  ;;  %4285 = vmatmul.bf16.vlgmr.msra.gmra.mxu1 %v11349_v22  ;;  %v10714_v55 = vld [vmem:[#allocation4 + $0xa74] sm:$0xf0]  ;;  %v8111_v43 = vld [vmem:[#allocation4 + $0x928] sm:$0xf] }
 0x1f0   :  { %4329 = vmatpush.bf16.msrb.mxu1 %v7680_v62  ;;  %4298 = vmatmul.bf16.vlgmr.msra.gmra.mxu2 %v11358_v35  ;;  %v7104_v62 = vor.u32 %v10426_v48, %v7103_v47  ;;  %v8831_v47 = vld [vmem:[#allocation4 + $0xec8] sm:$0xf]  ;;  %v10858_v48 = vld [vmem:[#allocation4 + $0xef4] sm:$0xf0] }
 0x1f1   :  { %4342 = vmatpush.bf16.msrb.mxu2 %v8064_v4  ;;  %4311 = vmatmul.bf16.vlgmr.msra.gmra.mxu3 %v11360_v38  ;;  %v7872_v4 = vor.u32 %v10618_v15, %v7871_v52  ;;  %v9215_v7 = vld [vmem:[#allocation4 + $0x11c8] sm:$0xf]  ;;  %v10954_v52 = vld [vmem:[#allocation4 + $0x11f4] sm:$0xf0]  ;;  %v10468_v15 = vld [vmem:[#allocation4 + $0x2cc] sm:$0xf]  ;;  %v8832_v57 = vor.u32 %v10858_v48, %v8831_v47 }
 0x1f2   :  { %4355 = vmatpush.bf16.msrb.mxu3 %v8448_v59  ;;  %v8256_v59 = vor.u32 %v10714_v55, %v8255_v54  ;;  %v7297_v54 = vld [vmem:[#allocation4 + $0x2f8] sm:$0xf0]  ;;  %v7344_v55 = vor.u32 %v10486_v39, %v7343_v37  ;;  %v8735_v17 = vld [vmem:[#allocation4 + $0xe08] sm:$0xf] }
 0x1f3   :  { %4317 = vmatpush.bf16.msrb.mxu0 %v7248_v5  ;;  %v4091_v3 = vpop.f32.mrf.mxu2  ;;  %v10702_v5 = vld [vmem:[#allocation4 + $0xa14] sm:$0xf0]  ;;  %v9071_v37 = vld [vmem:[#allocation4 + $0x10a8] sm:$0xf] }
 0x1f4   :  { %4330 = vmatpush.bf16.msrb.mxu1 %v7632_v6  ;;  %v4104_v6 = vpop.f32.mrf.mxu3  ;;  %v4080_v11 = vpop.f32.mrf.mxu1  ;;  %v8208_v25 = vor.u32 %v10702_v5, %v8207_v24  ;;  %v10942_v24 = vld [vmem:[#allocation4 + $0x1194] sm:$0xf0]  ;;  %v10456_v5 = vld [vmem:[#allocation4 + $0x26c] sm:$0xf] }
 0x1f5   :  { %4343 = vmatpush.bf16.msrb.mxu2 %v8016_v8  ;;  %v4067_v8 = vpop.f32.mrf.mxu0  ;;  %v11450_v10 = vadd.f32 %v4104_v6, %v4091_v3  ;;  %v7249_v6 = vld [vmem:[#allocation4 + $0x298] sm:$0xf0] }
 0x1f6   :  { %4356 = vmatpush.bf16.msrb.mxu3 %v8400_v12  ;;  %v7440_v12 = vor.u32 %v10510_v60, %v7439_v58  ;;  %v9216_v58 = vor.u32 %v10954_v52, %v9215_v7  ;;  %v8783_v60 = vld [vmem:[#allocation4 + $0xe68] sm:$0xf]  ;;  %v10552_v8 = vld [vmem:[#allocation4 + $0x56c] sm:$0xf] }
 0x1f7   :  { %4318 = vmatpush.bf16.msrb.mxu0 %v7200_v26  ;;  %v10498_v26 = vld [vmem:[#allocation4 + $0x3b4] sm:$0xf0]  ;;  %v8784_v11 = vor.u32 %v10846_v61, %v8783_v60  ;;  %v9023_v52 = vld [vmem:[#allocation4 + $0x1048] sm:$0xf] }
 0x1f8   :  { %4331 = vmatpush.bf16.msrb.mxu1 %v7584_v27  ;;  %v7775_v27 = vld [vmem:[#allocation4 + $0x688] sm:$0xf]  ;;  %v7392_v34 = vor.u32 %v10498_v26, %v7391_v23  ;;  %v10930_v26 = vld [vmem:[#allocation4 + $0x1134] sm:$0xf0] }
 0x1f9   :  { %4344 = vmatpush.bf16.msrb.mxu2 %v7968_v28  ;;  %v10594_v28 = vld [vmem:[#allocation4 + $0x6b4] sm:$0xf0]  ;;  %v9119_v23 = vld [vmem:[#allocation4 + $0x1108] sm:$0xf] }
 0x1fa   :  { %4357 = vmatpush.bf16.msrb.mxu3 %v8352_v32  ;;  %v6959_v32 = vld [vmem:[#allocation4 + $0x28] sm:$0xf]  ;;  %v7776_v36 = vor.u32 %v10594_v28, %v7775_v27  ;;  %v10444_v27 = vld [vmem:[#allocation4 + $0x20c] sm:$0xf]  ;;  %v7201_v28 = vld [vmem:[#allocation4 + $0x238] sm:$0xf0] }
 0x1fb   :  { %4319 = vmatpush.bf16.msrb.mxu0 %v7152_v41  ;;  %v8160_v41 = vor.u32 %v10690_v30, %v8159_v29  ;;  %v6960_v51 = vor.u32 %v10390_v33, %v6959_v32  ;;  %v10540_v29 = vld [vmem:[#allocation4 + $0x50c] sm:$0xf]  ;;  %v7585_v30 = vld [vmem:[#allocation4 + $0x538] sm:$0xf0]  ;;  %v9120_v32 = vor.u32 %v10930_v26, %v9119_v23  ;;  %v7204_v33 = vor.u32 %v10444_v27, %v7201_v28  ;;  %v8543_v28 = vld [vmem:[#allocation4 + $0xc88] sm:$0xf] }
 0x1fc   :  { %4332 = vmatpush.bf16.msrb.mxu1 %v7536_v44  ;;  %v10678_v44 = vld [vmem:[#allocation4 + $0x954] sm:$0xf0]  ;;  %v7588_v39 = vor.u32 %v10540_v29, %v7585_v30  ;;  %v8927_v30 = vld [vmem:[#allocation4 + $0xf88] sm:$0xf] }
 0x1fd   :  { %4345 = vmatpush.bf16.msrb.mxu2 %v7920_v46  ;;  %v4093_v46 = vpop.f32.mrf.mxu2  ;;  %v8112_v56 = vor.u32 %v10678_v44, %v8111_v43  ;;  %v10528_v43 = vld [vmem:[#allocation4 + $0x4ac] sm:$0xf]  ;;  %v7537_v44 = vld [vmem:[#allocation4 + $0x4d8] sm:$0xf0]  ;;  %v10786_v29 = vld [vmem:[#allocation4 + $0xcb4] sm:$0xf0] }
 0x1fe   :  { %4358 = vmatpush.bf16.msrb.mxu3 %v8304_v50  ;;  %v4106_v50 = vpop.f32.mrf.mxu3 }
 0x1ff   :  { %4320 = vmatpush.bf16.msrb.mxu0 %v7104_v62  ;;  %v7728_v62 = vor.u32 %v10582_v42, %v7727_v40  ;;  %v10918_v40 = vld [vmem:[#allocation4 + $0x10d4] sm:$0xf0]  ;;  %v7153_v42 = vld [vmem:[#allocation4 + $0x1d8] sm:$0xf0]  ;;  %v8639_v50 = vld [vmem:[#allocation4 + $0xd48] sm:$0xf] }
 0x200   :  { %4333 = vmatpush.bf16.msrb.mxu1 %v7488_v14  ;;  %v10564_v14 = vld [vmem:[#allocation4 + $0x5cc] sm:$0xf]  ;;  %v9072_v48 = vor.u32 %v10918_v40, %v9071_v37  ;;  %v8544_v40 = vor.u32 %v10786_v29, %v8543_v28 }
 0x201   :  { %4346 = vmatpush.bf16.msrb.mxu2 %v7872_v4  ;;  %v7681_v4 = vld [vmem:[#allocation4 + $0x5f8] sm:$0xf0]  ;;  %v10492_v37 = vld [vmem:[#allocation4 + $0x38c] sm:$0xf] }
 0x202   :  { %4359 = vmatpush.bf16.msrb.mxu3 %v8256_v59  ;;  %v7300_v59 = vor.u32 %v10468_v15, %v7297_v54  ;;  %v7684_v3 = vor.u32 %v10564_v14, %v7681_v4  ;;  %v10420_v14 = vld [vmem:[#allocation4 + $0x14c] sm:$0xf]  ;;  %v7105_v4 = vld [vmem:[#allocation4 + $0x178] sm:$0xf0] }
 0x203   :  { %4321 = vmatpush.bf16.msrb.mxu0 %v7056_v9  ;;  %v7633_v9 = vld [vmem:[#allocation4 + $0x598] sm:$0xf0]  ;;  %v7108_v61 = vor.u32 %v10420_v14, %v7105_v4  ;;  %v10756_v14 = vld [vmem:[#allocation4 + $0xbcc] sm:$0xf] }
 0x204   :  { %4334 = vmatpush.bf16.msrb.mxu1 %v7440_v12  ;;  %v9168_v12 = vor.u32 %v10942_v24, %v9167_v63  ;;  %v8591_v63 = vld [vmem:[#allocation4 + $0xce8] sm:$0xf]  ;;  %v10636_v29 = vld [vmem:[#allocation4 + $0x80c] sm:$0xf] }
 0x205   :  { %4347 = vmatpush.bf16.msrb.mxu2 %v7824_v16  ;;  %v7252_v16 = vor.u32 %v10456_v5, %v7249_v6  ;;  %v8975_v24 = vld [vmem:[#allocation4 + $0xfe8] sm:$0xf]  ;;  %v10894_v6 = vld [vmem:[#allocation4 + $0x1014] sm:$0xf0] }
 0x206   :  { %4360 = vmatpush.bf16.msrb.mxu3 %v8208_v25  ;;  %v7636_v25 = vor.u32 %v10552_v8, %v7633_v9  ;;  %v10408_v8 = vld [vmem:[#allocation4 + $0xec] sm:$0xf]  ;;  %v7057_v9 = vld [vmem:[#allocation4 + $0x118] sm:$0xf0]  ;;  %v8976_v26 = vor.u32 %v10894_v6, %v8975_v24 }
 0x207   :  { %4322 = vmatpush.bf16.msrb.mxu0 %v7008_v31  ;;  %v8736_v31 = vor.u32 %v10834_v21, %v8735_v17  ;;  %v7441_v17 = vld [vmem:[#allocation4 + $0x418] sm:$0xf0]  ;;  %v7060_v27 = vor.u32 %v10408_v8, %v7057_v9  ;;  %v10648_v6 = vld [vmem:[#allocation4 + $0x86c] sm:$0xf] }
 0x208   :  { %4335 = vmatpush.bf16.msrb.mxu1 %v7392_v34  ;;  %v8687_v34 = vld [vmem:[#allocation4 + $0xda8] sm:$0xf]  ;;  %v8017_v8 = vld [vmem:[#allocation4 + $0x898] sm:$0xf0]  ;;  %v10744_v9 = vld [vmem:[#allocation4 + $0xb6c] sm:$0xf] }
 0x209   :  { %4348 = vmatpush.bf16.msrb.mxu2 %v7776_v36  ;;  %v10822_v36 = vld [vmem:[#allocation4 + $0xdd4] sm:$0xf0] }
 0x20a   :  { %4361 = vmatpush.bf16.msrb.mxu3 %v8160_v41  ;;  %v10432_v41 = vld [vmem:[#allocation4 + $0x1ac] sm:$0xf]  ;;  %v8688_v46 = vor.u32 %v10822_v36, %v8687_v34  ;;  %v7009_v36 = vld [vmem:[#allocation4 + $0xb8] sm:$0xf0] }
 0x20b   :  { %4323 = vmatpush.bf16.msrb.mxu0 %v6960_v51  ;;  %v4117_v47 = vpop.f32.mrf.mxu0  ;;  %v7156_v7 = vor.u32 %v10432_v41, %v7153_v42  ;;  %v10810_v51 = vld [vmem:[#allocation4 + $0xd74] sm:$0xf0]  ;;  %v10396_v34 = vld [vmem:[#allocation4 + $0x8c] sm:$0xf]  ;;  %v8495_v41 = vld [vmem:[#allocation4 + $0xc28] sm:$0xf] }
 0x20c   :  { %4336 = vmatpush.bf16.msrb.mxu1 %v7344_v55  ;;  %v4118_v15 = vadd.f32 %v4117_v47, %v11450_v10  ;;  %v4130_v54 = vpop.f32.mrf.mxu1  ;;  %v7540_v55 = vor.u32 %v10528_v43, %v7537_v44  ;;  %v10774_v42 = vld [vmem:[#allocation4 + $0xc54] sm:$0xf0]  ;;  %v7012_v44 = vor.u32 %v10396_v34, %v7009_v36  ;;  %v10828_v34 = vld [vmem:[#allocation4 + $0xe0c] sm:$0xf]  ;;  %v8737_v36 = vld [vmem:[#allocation4 + $0xe38] sm:$0xf0] }
 0x20d   :  { %4349 = vmatpush.bf16.msrb.mxu2 %v7728_v62  ;;  %v10906_v62 = vld [vmem:[#allocation4 + $0x1074] sm:$0xf0]  ;;  %v8496_v4 = vor.u32 %v10774_v42, %v8495_v41  ;;  %v8740_v42 = vor.u32 %v10828_v34, %v8737_v36  ;;  %v7777_v34 = vld [vmem:[#allocation4 + $0x6b8] sm:$0xf0]  ;;  %v10684_v36 = vld [vmem:[#allocation4 + $0x98c] sm:$0xf] }
 0x20e   :  { %4362 = vmatpush.bf16.msrb.mxu3 %v8112_v56  ;;  %4324 = vmatmul.bf16.vlgmr.msrb.gmra.mxu0 %v11343_v18  ;;  %v10516_v56 = vld [vmem:[#allocation4 + $0x44c] sm:$0xf]  ;;  %v9024_v60 = vor.u32 %v10906_v62, %v9023_v52  ;;  %v10870_v47 = vld [vmem:[#allocation4 + $0xf54] sm:$0xf0]  ;;  %v8065_v62 = vld [vmem:[#allocation4 + $0x8f8] sm:$0xf0] }
 0x20f   :  { %4368 = vmatpush.bf16.msra.mxu0 %v8832_v57  ;;  %4337 = vmatmul.bf16.vlgmr.msrb.gmra.mxu1 %v11347_v20  ;;  %v7489_v57 = vld [vmem:[#allocation4 + $0x478] sm:$0xf0]  ;;  %v10480_v52 = vld [vmem:[#allocation4 + $0x32c] sm:$0xf] }
 0x210   :  { %4381 = vmatpush.bf16.msra.mxu1 %v9216_v58  ;;  %4350 = vmatmul.bf16.vlgmr.msrb.gmra.mxu2 %v11345_v19  ;;  %v4131_v58 = vadd.f32 %v4130_v54, %v4118_v15  ;;  %v7492_v10 = vor.u32 %v10516_v56, %v7489_v57  ;;  %v7345_v15 = vld [vmem:[#allocation4 + $0x358] sm:$0xf0]  ;;  %v10852_v57 = vld [vmem:[#allocation4 + $0xecc] sm:$0xf] }
 0x211   :  { %4394 = vmatpush.bf16.msra.mxu2 %v7300_v59  ;;  %4363 = vmatmul.bf16.vlgmr.msrb.gmra.mxu3 %v11349_v22  ;;  %v8640_v59 = vor.u32 %v10810_v51, %v8639_v50  ;;  %v6961_v51 = vld [vmem:[#allocation4 + $0x58] sm:$0xf0] }
 0x212   :  { %4407 = vmatpush.bf16.msra.mxu3 %v7684_v3  ;;  %v10798_v3 = vld [vmem:[#allocation4 + $0xd14] sm:$0xf0]  ;;  %v8449_v56 = vld [vmem:[#allocation4 + $0xbf8] sm:$0xf0] }
 0x213   :  { %4369 = vmatpush.bf16.msra.mxu0 %v8784_v11  ;;  %v4143_v5 = vpop.f32.mrf.mxu2  ;;  %v8592_v21 = vor.u32 %v10798_v3, %v8591_v63  ;;  %v9217_v63 = vld [vmem:[#allocation4 + $0x11f8] sm:$0xf0]  ;;  %v7348_v3 = vor.u32 %v10480_v52, %v7345_v15 }
 0x214   :  { %4382 = vmatpush.bf16.msra.mxu1 %v9168_v12  ;;  %v4144_v11 = vadd.f32 %v4143_v5, %v4131_v58  ;;  %v4156_v12 = vpop.f32.mrf.mxu3  ;;  %v8833_v58 = vld [vmem:[#allocation4 + $0xef8] sm:$0xf0]  ;;  %v8452_v5 = vor.u32 %v10756_v14, %v8449_v56 }
 0x215   :  { %4395 = vmatpush.bf16.msra.mxu2 %v7252_v16  ;;  %v10504_v16 = vld [vmem:[#allocation4 + $0x3ec] sm:$0xf]  ;;  %v9073_v52 = vld [vmem:[#allocation4 + $0x10d8] sm:$0xf0] }
 0x216   :  { %4408 = vmatpush.bf16.msra.mxu3 %v7636_v25  ;;  %v11457_v23 = vadd.f32 %v4156_v12, %v4144_v11  ;;  %v4119_v25 = vpop.f32.mrf.mxu0  ;;  %v8401_v12 = vld [vmem:[#allocation4 + $0xb98] sm:$0xf0] }
 0x217   :  { %4370 = vmatpush.bf16.msra.mxu0 %v8736_v31  ;;  %v4132_v31 = vpop.f32.mrf.mxu1  ;;  %v9169_v25 = vld [vmem:[#allocation4 + $0x1198] sm:$0xf0] }
 0x218   :  { %4383 = vmatpush.bf16.msra.mxu1 %v9120_v32  ;;  %v7444_v32 = vor.u32 %v10504_v16, %v7441_v17  ;;  %v10840_v16 = vld [vmem:[#allocation4 + $0xe6c] sm:$0xf]  ;;  %v8785_v17 = vld [vmem:[#allocation4 + $0xe98] sm:$0xf0] }
 0x219   :  { %4396 = vmatpush.bf16.msra.mxu2 %v7204_v33  ;;  %v10882_v33 = vld [vmem:[#allocation4 + $0xfb4] sm:$0xf0]  ;;  %v8788_v28 = vor.u32 %v10840_v16, %v8785_v17  ;;  %v10732_v31 = vld [vmem:[#allocation4 + $0xb0c] sm:$0xf]  ;;  %v7873_v14 = vld [vmem:[#allocation4 + $0x778] sm:$0xf0] }
 0x21a   :  { %4409 = vmatpush.bf16.msra.mxu3 %v7588_v39  ;;  %v7393_v39 = vld [vmem:[#allocation4 + $0x3b8] sm:$0xf0]  ;;  %v8928_v43 = vor.u32 %v10882_v33, %v8927_v30 }
 0x21b   :  { %4371 = vmatpush.bf16.msra.mxu0 %v8688_v46  ;;  %v8879_v46 = vld [vmem:[#allocation4 + $0xf28] sm:$0xf]  ;;  %v7396_v50 = vor.u32 %v10492_v37, %v7393_v39  ;;  %v7969_v30 = vld [vmem:[#allocation4 + $0x838] sm:$0xf0]  ;;  %v10924_v37 = vld [vmem:[#allocation4 + $0x110c] sm:$0xf] }
 0x21c   :  { %4384 = vmatpush.bf16.msra.mxu1 %v9072_v48  ;;  %v10384_v48 = vld [vmem:[#allocation4 + $0x2c] sm:$0xf]  ;;  %v4158_v54 = vpop.f32.mrf.mxu3  ;;  %v8353_v33 = vld [vmem:[#allocation4 + $0xb38] sm:$0xf0] }
 0x21d   :  { %4397 = vmatpush.bf16.msra.mxu2 %v7156_v7  ;;  %v4145_v7 = vpop.f32.mrf.mxu2  ;;  %v9121_v39 = vld [vmem:[#allocation4 + $0x1138] sm:$0xf0]  ;;  %v8356_v41 = vor.u32 %v10732_v31, %v8353_v33  ;;  %v10588_v33 = vld [vmem:[#allocation4 + $0x68c] sm:$0xf] }
 0x21e   :  { %4410 = vmatpush.bf16.msra.mxu3 %v7540_v55  ;;  %v10660_v55 = vld [vmem:[#allocation4 + $0x8cc] sm:$0xf]  ;;  %v8593_v16 = vld [vmem:[#allocation4 + $0xd18] sm:$0xf0] }
 0x21f   :  { %4372 = vmatpush.bf16.msra.mxu0 %v8640_v59  ;;  %v8880_v59 = vor.u32 %v10870_v47, %v8879_v46  ;;  %v8068_v24 = vor.u32 %v10660_v55, %v8065_v62  ;;  %v10720_v46 = vld [vmem:[#allocation4 + $0xaac] sm:$0xf]  ;;  %v9124_v47 = vor.u32 %v10924_v37, %v9121_v39 }
 0x220   :  { %4385 = vmatpush.bf16.msra.mxu1 %v9024_v60  ;;  %v6964_v60 = vor.u32 %v10384_v48, %v6961_v51  ;;  %v8305_v48 = vld [vmem:[#allocation4 + $0xad8] sm:$0xf0]  ;;  %v10816_v7 = vld [vmem:[#allocation4 + $0xdac] sm:$0xf] }
 0x221   :  { %4398 = vmatpush.bf16.msra.mxu2 %v7108_v61  ;;  %v10948_v61 = vld [vmem:[#allocation4 + $0x11cc] sm:$0xf] }
 0x222   :  { %4411 = vmatpush.bf16.msra.mxu3 %v7492_v10  ;;  %v8836_v10 = vor.u32 %v10852_v57, %v8833_v58  ;;  %v9220_v11 = vor.u32 %v10948_v61, %v9217_v63  ;;  %v10912_v51 = vld [vmem:[#allocation4 + $0x10ac] sm:$0xf]  ;;  %v8257_v58 = vld [vmem:[#allocation4 + $0xa78] sm:$0xf0] }
 0x223   :  { %4373 = vmatpush.bf16.msra.mxu0 %v8592_v21  ;;  %v10936_v21 = vld [vmem:[#allocation4 + $0x116c] sm:$0xf]  ;;  %v9076_v57 = vor.u32 %v10912_v51, %v9073_v52  ;;  %v9025_v63 = vld [vmem:[#allocation4 + $0x1078] sm:$0xf0] }
 0x224   :  { %4386 = vmatpush.bf16.msra.mxu1 %v8976_v26  ;;  %v8020_v26 = vor.u32 %v10648_v6, %v8017_v8  ;;  %v10612_v62 = vld [vmem:[#allocation4 + $0x74c] sm:$0xf]  ;;  %v7825_v6 = vld [vmem:[#allocation4 + $0x718] sm:$0xf0] }
 0x225   :  { %4399 = vmatpush.bf16.msra.mxu2 %v7060_v27  ;;  %v8404_v27 = vor.u32 %v10744_v9, %v8401_v12  ;;  %v10900_v61 = vld [vmem:[#allocation4 + $0x104c] sm:$0xf]  ;;  %v8113_v52 = vld [vmem:[#allocation4 + $0x958] sm:$0xf0] }
 0x226   :  { %4412 = vmatpush.bf16.msra.mxu3 %v7444_v32  ;;  %v9172_v32 = vor.u32 %v10936_v21, %v9169_v25  ;;  %v10696_v8 = vld [vmem:[#allocation4 + $0x9ec] sm:$0xf]  ;;  %v9028_v9 = vor.u32 %v10900_v61, %v9025_v63  ;;  %v8977_v25 = vld [vmem:[#allocation4 + $0x1018] sm:$0xf0]  ;;  %v11096_v61 = vld [vmem:[#allocation2 + $0x464] sm:$0xf0] }
 0x227   :  { %4374 = vmatpush.bf16.msra.mxu0 %v8544_v40  ;;  %v7972_v40 = vor.u32 %v10636_v29, %v7969_v30  ;;  %v10792_v12 = vld [vmem:[#allocation4 + $0xcec] sm:$0xf] }
 0x228   :  { %4387 = vmatpush.bf16.msra.mxu1 %v8928_v43  ;;  %v10624_v43 = vld [vmem:[#allocation4 + $0x7ac] sm:$0xf] }
 0x229   :  { %4400 = vmatpush.bf16.msra.mxu2 %v7012_v44  ;;  %v7921_v44 = vld [vmem:[#allocation4 + $0x7d8] sm:$0xf0]  ;;  %v10888_v21 = vld [vmem:[#allocation4 + $0xfec] sm:$0xf] }
 0x22a   :  { %4413 = vmatpush.bf16.msra.mxu3 %v7396_v50  ;;  %v8689_v50 = vld [vmem:[#allocation4 + $0xdd8] sm:$0xf0]  ;;  %v8980_v39 = vor.u32 %v10888_v21, %v8977_v25  ;;  %v10672_v51 = vld [vmem:[#allocation4 + $0x92c] sm:$0xf]  ;;  %v11042_v21 = vld [vmem:[#allocation2 + $0x2b4] sm:$0xf0] }
 0x22b   :  { %4375 = vmatpush.bf16.msra.mxu0 %v8496_v4  ;;  %v4169_v15 = vpop.f32.mrf.mxu0  ;;  %v8692_v55 = vor.u32 %v10816_v7, %v8689_v50  ;;  %v10708_v4 = vld [vmem:[#allocation4 + $0xa4c] sm:$0xf]  ;;  %v8116_v63 = vor.u32 %v10672_v51, %v8113_v52  ;;  %v9751_v25 = vld [vmem:[#allocation2 + $0x420] sm:$0xf]  ;;  %v11030_v51 = vld [vmem:[#allocation2 + $0x254] sm:$0xf0] }
 0x22c   :  { %4388 = vmatpush.bf16.msra.mxu1 %v8880_v59  ;;  %v4182_v54 = vpop.f32.mrf.mxu1  ;;  %v10804_v59 = vld [vmem:[#allocation4 + $0xd4c] sm:$0xf]  ;;  %v9703_v52 = vld [vmem:[#allocation2 + $0x3c0] sm:$0xf] }
 0x22d   :  { %4401 = vmatpush.bf16.msra.mxu2 %v6964_v60  ;;  %v4183_v56 = vadd.f32 %v4182_v54, %v4169_v15  ;;  %v8641_v60 = vld [vmem:[#allocation4 + $0xd78] sm:$0xf0]  ;;  %v10768_v15 = vld [vmem:[#allocation4 + $0xc2c] sm:$0xf] }
 0x22e   :  { %4414 = vmatpush.bf16.msra.mxu3 %v7348_v3  ;;  %4376 = vmatmul.bf16.vlgmr.msra.gmra.mxu0 %v11358_v35  ;;  %v7876_v3 = vor.u32 %v10612_v62, %v7873_v14  ;;  %v8497_v54 = vld [vmem:[#allocation4 + $0xc58] sm:$0xf0]  ;;  %v9391_v14 = vld [vmem:[#allocation2 + $0x150] sm:$0xf] }
 0x22f   :  { %4420 = vmatpush.bf16.msrb.mxu0 %v8068_v24  ;;  %4389 = vmatmul.bf16.vlgmr.msra.gmra.mxu1 %v11360_v38  ;;  %v8260_v24 = vor.u32 %v10708_v4, %v8257_v58  ;;  %v11000_v4 = vld [vmem:[#allocation2 + $0x164] sm:$0xf0] }
 0x230   :  { %4433 = vmatpush.bf16.msrb.mxu1 %v8452_v5  ;;  %4402 = vmatmul.bf16.vlgmr.msra.gmra.mxu2 %v11343_v18  ;;  %v7924_v18 = vor.u32 %v10624_v43, %v7921_v44  ;;  %v8644_v5 = vor.u32 %v10804_v59, %v8641_v60  ;;  %v10876_v43 = vld [vmem:[#allocation4 + $0xf8c] sm:$0xf]  ;;  %v8929_v44 = vld [vmem:[#allocation4 + $0xfb8] sm:$0xf0]  ;;  %v11048_v59 = vld [vmem:[#allocation2 + $0x2e4] sm:$0xf0] }
 0x231   :  { %4446 = vmatpush.bf16.msrb.mxu2 %v8836_v10  ;;  %4415 = vmatmul.bf16.vlgmr.msra.gmra.mxu3 %v11347_v20  ;;  %v8308_v20 = vor.u32 %v10720_v46, %v8305_v48  ;;  %v10600_v10 = vld [vmem:[#allocation4 + $0x6ec] sm:$0xf]  ;;  %v7780_v46 = vor.u32 %v10588_v33, %v7777_v34  ;;  %v7729_v48 = vld [vmem:[#allocation4 + $0x658] sm:$0xf0]  ;;  %v9775_v60 = vld [vmem:[#allocation2 + $0x450] sm:$0xf] }
 0x232   :  { %4459 = vmatpush.bf16.msrb.mxu3 %v9220_v11  ;;  %v8209_v11 = vld [vmem:[#allocation4 + $0xa18] sm:$0xf0]  ;;  %v7828_v29 = vor.u32 %v10600_v10, %v7825_v6  ;;  %v9392_v6 = vor.u32 %v11000_v4, %v9391_v14  ;;  %v10988_v33 = vld [vmem:[#allocation2 + $0x104] sm:$0xf0]  ;;  %v9535_v34 = vld [vmem:[#allocation2 + $0x270] sm:$0xf] }
 0x233   :  { %4421 = vmatpush.bf16.msrb.mxu0 %v8020_v26  ;;  %v4195_v17 = vpop.f32.mrf.mxu2  ;;  %v8212_v31 = vor.u32 %v10696_v8, %v8209_v11  ;;  %v9367_v11 = vld [vmem:[#allocation2 + $0x120] sm:$0xf]  ;;  %v9295_v14 = vld [vmem:[#allocation2 + $0x90] sm:$0xf]  ;;  %v10976_v4 = vld [vmem:[#allocation2 + $0xa4] sm:$0xf0] }
 0x234   :  { %4434 = vmatpush.bf16.msrb.mxu1 %v8404_v27  ;;  %v4196_v26 = vadd.f32 %v4195_v17, %v4183_v56  ;;  %v4171_v27 = vpop.f32.mrf.mxu0  ;;  %v4184_v30 = vpop.f32.mrf.mxu1  ;;  %v9583_v56 = vld [vmem:[#allocation2 + $0x2d0] sm:$0xf] }
 0x235   :  { %4447 = vmatpush.bf16.msrb.mxu2 %v8788_v28  ;;  %v4208_v28 = vpop.f32.mrf.mxu3  ;;  %v9584_v8 = vor.u32 %v11048_v59, %v9583_v56  ;;  %v9943_v27 = vld [vmem:[#allocation2 + $0x5a0] sm:$0xf]  ;;  %v9487_v56 = vld [vmem:[#allocation2 + $0x210] sm:$0xf] }
 0x236   :  { %4460 = vmatpush.bf16.msrb.mxu3 %v9172_v32  ;;  %v8596_v32 = vor.u32 %v10792_v12, %v8593_v16  ;;  %v11463_v37 = vadd.f32 %v4208_v28, %v4196_v26  ;;  %v10994_v12 = vld [vmem:[#allocation2 + $0x134] sm:$0xf0]  ;;  %v9559_v16 = vld [vmem:[#allocation2 + $0x2a0] sm:$0xf]  ;;  %v9679_v59 = vld [vmem:[#allocation2 + $0x390] sm:$0xf] }
 0x237   :  { %4422 = vmatpush.bf16.msrb.mxu0 %v7972_v40  ;;  %v8161_v40 = vld [vmem:[#allocation4 + $0x9b8] sm:$0xf0]  ;;  %v11090_v26 = vld [vmem:[#allocation2 + $0x434] sm:$0xf0]  ;;  %v9560_v30 = vor.u32 %v11042_v21, %v9559_v16  ;;  %v9847_v21 = vld [vmem:[#allocation2 + $0x4e0] sm:$0xf] }
 0x238   :  { %4435 = vmatpush.bf16.msrb.mxu1 %v8356_v41  ;;  %v10780_v41 = vld [vmem:[#allocation4 + $0xc8c] sm:$0xf]  ;;  %v8164_v7 = vor.u32 %v10684_v36, %v8161_v40  ;;  %v11138_v28 = vld [vmem:[#allocation2 + $0x5b4] sm:$0xf0]  ;;  %v9727_v40 = vld [vmem:[#allocation2 + $0x3f0] sm:$0xf] }
 0x239   :  { %4448 = vmatpush.bf16.msrb.mxu2 %v8740_v42  ;;  %v8545_v42 = vld [vmem:[#allocation4 + $0xcb8] sm:$0xf0]  ;;  %v9944_v36 = vor.u32 %v11138_v28, %v9943_v27  ;;  %v11066_v16 = vld [vmem:[#allocation2 + $0x374] sm:$0xf0] }
 0x23a   :  { %4461 = vmatpush.bf16.msrb.mxu3 %v9124_v47  ;;  %v10576_v47 = vld [vmem:[#allocation4 + $0x62c] sm:$0xf]  ;;  %v8548_v50 = vor.u32 %v10780_v41, %v8545_v42  ;;  %v11084_v41 = vld [vmem:[#allocation2 + $0x404] sm:$0xf0]  ;;  %v9919_v42 = vld [vmem:[#allocation2 + $0x570] sm:$0xf] }
 0x23b   :  { %4423 = vmatpush.bf16.msrb.mxu0 %v7924_v18  ;;  %v8932_v18 = vor.u32 %v10876_v43, %v8929_v44  ;;  %v4197_v62 = vpop.f32.mrf.mxu2  ;;  %v7732_v58 = vor.u32 %v10576_v47, %v7729_v48  ;;  %v11132_v43 = vld [vmem:[#allocation2 + $0x584] sm:$0xf0]  ;;  %v9728_v47 = vor.u32 %v11084_v41, %v9727_v40  ;;  %v9319_v48 = vld [vmem:[#allocation2 + $0xc0] sm:$0xf]  ;;  %v9631_v41 = vld [vmem:[#allocation2 + $0x330] sm:$0xf] }
 0x23c   :  { %4436 = vmatpush.bf16.msrb.mxu1 %v8308_v20  ;;  %v10864_v20 = vld [vmem:[#allocation4 + $0xf2c] sm:$0xf]  ;;  %v11012_v40 = vld [vmem:[#allocation2 + $0x1c4] sm:$0xf0] }
 0x23d   :  { %4449 = vmatpush.bf16.msrb.mxu2 %v8692_v55  ;;  %v8881_v55 = vld [vmem:[#allocation4 + $0xf58] sm:$0xf0] }
 0x23e   :  { %4462 = vmatpush.bf16.msrb.mxu3 %v9076_v57  ;;  %v4210_v57 = vpop.f32.mrf.mxu3  ;;  %v8884_v10 = vor.u32 %v10864_v20, %v8881_v55 }
 0x23f   :  { %4424 = vmatpush.bf16.msrb.mxu0 %v7876_v3  ;;  %v8500_v3 = vor.u32 %v10768_v15, %v8497_v54  ;;  %v9895_v15 = vld [vmem:[#allocation2 + $0x540] sm:$0xf] }
 0x240   :  { %4437 = vmatpush.bf16.msrb.mxu1 %v8260_v24  ;;  %v9967_v24 = vld [vmem:[#allocation2 + $0x5d0] sm:$0xf] }
 0x241   :  { %4450 = vmatpush.bf16.msrb.mxu2 %v8644_v5  ;;  %v11144_v5 = vld [vmem:[#allocation2 + $0x5e4] sm:$0xf0] }
 0x242   :  { %4463 = vmatpush.bf16.msrb.mxu3 %v9028_v9  ;;  %v9776_v9 = vor.u32 %v11096_v61, %v9775_v60  ;;  %v9968_v17 = vor.u32 %v11144_v5, %v9967_v24  ;;  %v11072_v60 = vld [vmem:[#allocation2 + $0x3a4] sm:$0xf0]  ;;  %v9296_v24 = vor.u32 %v10976_v4, %v9295_v14  ;;  %v10351_v14 = vld [vmem:[#allocation2 + $0x8d0] sm:$0xf] }
 0x243   :  { %4425 = vmatpush.bf16.msrb.mxu0 %v7828_v29  ;;  %v9368_v29 = vor.u32 %v10994_v12, %v9367_v11  ;;  %v9680_v5 = vor.u32 %v11072_v60, %v9679_v59  ;;  %v11018_v11 = vld [vmem:[#allocation2 + $0x1f4] sm:$0xf0]  ;;  %v9655_v12 = vld [vmem:[#allocation2 + $0x360] sm:$0xf]  ;;  %v9393_v59 = vld [vmem:[#allocation2 + $0x168] sm:$0xf0] }
 0x244   :  { %4438 = vmatpush.bf16.msrb.mxu1 %v8212_v31  ;;  %v9752_v31 = vor.u32 %v11090_v26, %v9751_v25  ;;  %v11114_v25 = vld [vmem:[#allocation2 + $0x4f4] sm:$0xf0] }
 0x245   :  { %4451 = vmatpush.bf16.msrb.mxu2 %v8596_v32  ;;  %v9343_v32 = vld [vmem:[#allocation2 + $0xf0] sm:$0xf] }
 0x246   :  { %4464 = vmatpush.bf16.msrb.mxu3 %v8980_v39  ;;  %v11036_v39 = vld [vmem:[#allocation2 + $0x284] sm:$0xf0]  ;;  %v9344_v44 = vor.u32 %v10988_v33, %v9343_v32  ;;  %v9656_v32 = vor.u32 %v11066_v16, %v9655_v12  ;;  %v9247_v33 = vld [vmem:[#allocation2 + $0x30] sm:$0xf]  ;;  %v10135_v16 = vld [vmem:[#allocation2 + $0x720] sm:$0xf] }
 0x247   :  { %4426 = vmatpush.bf16.msrb.mxu0 %v7780_v46  ;;  %v9536_v46 = vor.u32 %v11036_v39, %v9535_v34  ;;  %v10964_v34 = vld [vmem:[#allocation2 + $0x44] sm:$0xf0]  ;;  %v9848_v39 = vor.u32 %v11114_v25, %v9847_v21  ;;  %v10327_v21 = vld [vmem:[#allocation2 + $0x8a0] sm:$0xf] }
 0x248   :  { %4439 = vmatpush.bf16.msrb.mxu1 %v8164_v7  ;;  %v10982_v7 = vld [vmem:[#allocation2 + $0xd4] sm:$0xf0] }
 0x249   :  { %4452 = vmatpush.bf16.msrb.mxu2 %v8548_v50  ;;  %v9920_v50 = vor.u32 %v11132_v43, %v9919_v42  ;;  %v9320_v54 = vor.u32 %v10982_v7, %v9319_v48  ;;  %v11060_v42 = vld [vmem:[#allocation2 + $0x344] sm:$0xf0]  ;;  %v9823_v43 = vld [vmem:[#allocation2 + $0x4b0] sm:$0xf]  ;;  %v10958_v48 = vld [vmem:[#allocation2 + $0x14] sm:$0xf0] }
 0x24a   :  { %4465 = vmatpush.bf16.msrb.mxu3 %v8932_v18  ;;  %v9415_v7 = vld [vmem:[#allocation2 + $0x180] sm:$0xf] }
 0x24b   :  { %4427 = vmatpush.bf16.msrb.mxu0 %v7732_v58  ;;  %v4221_v18 = vpop.f32.mrf.mxu0  ;;  %v11024_v58 = vld [vmem:[#allocation2 + $0x224] sm:$0xf0] }
 0x24c   :  { %4440 = vmatpush.bf16.msrb.mxu1 %v8116_v63  ;;  %v4222_v20 = vadd.f32 %v4221_v18, %v11463_v37  ;;  %v9871_v63 = vld [vmem:[#allocation2 + $0x510] sm:$0xf]  ;;  %v9488_v37 = vor.u32 %v11024_v58, %v9487_v56  ;;  %v9799_v18 = vld [vmem:[#allocation2 + $0x480] sm:$0xf]  ;;  %v10997_v58 = vld [vmem:[#allocation2 + $0x154] sm:$0xf] }
 0x24d   :  { %4453 = vmatpush.bf16.msrb.mxu2 %v8500_v3  ;;  %v11120_v3 = vld [vmem:[#allocation2 + $0x524] sm:$0xf0]  ;;  %v9396_v12 = vor.u32 %v10997_v58, %v9393_v59  ;;  %v10063_v59 = vld [vmem:[#allocation2 + $0x690] sm:$0xf] }
 0x24e   :  { %4466 = vmatpush.bf16.msrb.mxu3 %v8884_v10  ;;  %4428 = vmatmul.bf16.vlgmr.msrb.gmra.mxu0 %v11345_v19  ;;  %v11078_v19 = vld [vmem:[#allocation2 + $0x3d4] sm:$0xf0]  ;;  %v9271_v10 = vld [vmem:[#allocation2 + $0x60] sm:$0xf] }
 0x24f   :  { %6221 = vmatpush.bf16.msra.mxu0 %v9392_v6  ;;  %4441 = vmatmul.bf16.vlgmr.msrb.gmra.mxu1 %v11349_v22  ;;  %v4234_v22 = vpop.f32.mrf.mxu1  ;;  %v9704_v62 = vor.u32 %v11078_v19, %v9703_v52  ;;  %v10970_v6 = vld [vmem:[#allocation2 + $0x74] sm:$0xf0]  ;;  %v9607_v52 = vld [vmem:[#allocation2 + $0x300] sm:$0xf] }
 0x250   :  { %6234 = vmatpush.bf16.msra.mxu1 %v9584_v8  ;;  %4454 = vmatmul.bf16.vlgmr.msrb.gmra.mxu2 %v11358_v35  ;;  %v9511_v35 = vld [vmem:[#allocation2 + $0x240] sm:$0xf]  ;;  %v11470_v61 = vadd.f32 %v4234_v22, %v4222_v20  ;;  %v9272_v28 = vor.u32 %v10970_v6, %v9271_v10  ;;  %v11054_v19 = vld [vmem:[#allocation2 + $0x314] sm:$0xf0]  ;;  %v57_v22 = vld [vmem:[%s11631_s0 + $0x8] sm:$0xff] }
 0x251   :  { %6247 = vmatpush.bf16.msra.mxu2 %v9776_v9  ;;  %4467 = vmatmul.bf16.vlgmr.msrb.gmra.mxu3 %v11360_v38  ;;  %v11126_v38 = vld [vmem:[#allocation2 + $0x554] sm:$0xf0]  ;;  %v9512_v55 = vor.u32 %v11030_v51, %v9511_v35  ;;  %v9463_v8 = vld [vmem:[#allocation2 + $0x1e0] sm:$0xf]  ;;  %v9872_v9 = vor.u32 %v11120_v3, %v9871_v63  ;;  %v9632_v51 = vor.u32 %v11060_v42, %v9631_v41  ;;  %v10111_v42 = vld [vmem:[#allocation2 + $0x6f0] sm:$0xf] }
 0x252   :  { %6260 = vmatpush.bf16.msra.mxu3 %v9968_v17  ;;  %v9896_v57 = vor.u32 %v11126_v38, %v9895_v15  ;;  %v11006_v35 = vld [vmem:[#allocation2 + $0x194] sm:$0xf0]  ;;  %v56_v15 = vld [vmem:[%s11631_s0] sm:$0xff]  ;;  %v9608_v3 = vor.u32 %v11054_v19, %v9607_v52 }
 0x253   :  { %6222 = vmatpush.bf16.msra.mxu0 %v9368_v29  ;;  %v4247_v17 = vpop.f32.mrf.mxu2  ;;  %v4223_v27 = vpop.f32.mrf.mxu0  ;;  %v4763_v60 = vunpack.c.l.b16 %v56_v15  ;;  %v9416_v63 = vor.u32 %v11006_v35, %v9415_v7  ;;  %v4764_v10 = vunpack.c.h.b16 %v56_v15  ;;  %v9345_v7 = vld [vmem:[#allocation2 + $0x108] sm:$0xf0]  ;;  %v11033_v35 = vld [vmem:[#allocation2 + $0x274] sm:$0xf]  ;;  %v10087_v15 = vld [vmem:[#allocation2 + $0x6c0] sm:$0xf] }
 0x254   :  { %6235 = vmatpush.bf16.msra.mxu1 %v9560_v30  ;;  %v4260_v26 = vpop.f32.mrf.mxu3  ;;  %v10991_v27 = vld [vmem:[#allocation2 + $0x124] sm:$0xf] }
 0x255   :  { %6248 = vmatpush.bf16.msra.mxu2 %v9752_v31  ;;  %v11472_v29 = vadd.f32 %v4260_v26, %v4247_v17  ;;  %v9464_v31 = vor.u32 %v11018_v11, %v9463_v8  ;;  %v11186_v17 = vld [vmem:[#allocation2 + $0x734] sm:$0xf0] }
 0x256   :  { %6261 = vmatpush.bf16.msra.mxu3 %v9944_v36  ;;  %v9439_v36 = vld [vmem:[#allocation2 + $0x1b0] sm:$0xf]  ;;  %v11234_v26 = vld [vmem:[#allocation2 + $0x8b4] sm:$0xf0] }
 0x257   :  { %6223 = vmatpush.bf16.msra.mxu0 %v9344_v44  ;;  %v4236_v30 = vpop.f32.mrf.mxu1  ;;  %v11108_v44 = vld [vmem:[#allocation2 + $0x4c4] sm:$0xf0] }
 0x258   :  { %6236 = vmatpush.bf16.msra.mxu1 %v9536_v46  ;;  %v9223_v46 = vld [vmem:[#allocation2] sm:$0xf]  ;;  %v9824_v38 = vor.u32 %v11108_v44, %v9823_v43  ;;  %v11480_v30 = vpack.c.b16 %v4763_v60, %v4763_v60  ;;  %v11180_v43 = vld [vmem:[#allocation2 + $0x704] sm:$0xf0]  ;;  %v10303_v44 = vld [vmem:[#allocation2 + $0x870] sm:$0xf] }
 0x259   :  { %6249 = vmatpush.bf16.msra.mxu2 %v9728_v47  ;;  %v9248_v47 = vor.u32 %v10964_v34, %v9247_v33  ;;  %v9224_v56 = vor.u32 %v10958_v48, %v9223_v46  ;;  %v11484_v34 = vpack.c.b16 %v4764_v10, %v4764_v10  ;;  %v10985_v48 = vld [vmem:[#allocation2 + $0xf4] sm:$0xf]  ;;  %v11168_v60 = vld [vmem:[#allocation2 + $0x6a4] sm:$0xf0] }
 0x25a   :  { %6262 = vmatpush.bf16.msra.mxu3 %v9920_v50  ;;  %v9440_v50 = vor.u32 %v11012_v40, %v9439_v36  ;;  %v10136_v36 = vor.u32 %v11186_v17, %v10135_v16  ;;  %v10328_v40 = vor.u32 %v11234_v26, %v10327_v21  ;;  %v9348_v19 = vor.u32 %v10985_v48, %v9345_v7  ;;  %v10973_v10 = vld [vmem:[#allocation2 + $0x94] sm:$0xf]  ;;  %v10039_v21 = vld [vmem:[#allocation2 + $0x660] sm:$0xf]  ;;  %v10015_v7 = vld [vmem:[#allocation2 + $0x630] sm:$0xf] }
 0x25b   :  { %6224 = vmatpush.bf16.msra.mxu0 %v9320_v54  ;;  %v11102_v54 = vld [vmem:[#allocation2 + $0x494] sm:$0xf0]  ;;  %v4249_v20 = vpop.f32.mrf.mxu2  ;;  %v10231_v26 = vld [vmem:[#allocation2 + $0x7e0] sm:$0xf] }
 0x25c   :  { %6237 = vmatpush.bf16.msra.mxu1 %v9512_v55  ;;  %v10159_v55 = vld [vmem:[#allocation2 + $0x750] sm:$0xf]  ;;  %v4262_v4 = vpop.f32.mrf.mxu3  ;;  %v9800_v6 = vor.u32 %v11102_v54, %v9799_v18  ;;  %v10279_v18 = vld [vmem:[#allocation2 + $0x840] sm:$0xf]  ;;  %v11222_v20 = vld [vmem:[#allocation2 + $0x854] sm:$0xf0] }
 0x25d   :  { %6250 = vmatpush.bf16.msra.mxu2 %v9704_v62  ;;  %v11192_v62 = vld [vmem:[#allocation2 + $0x764] sm:$0xf0] }
 0x25e   :  { %6263 = vmatpush.bf16.msra.mxu3 %v9896_v57  ;;  %v11240_v57 = vld [vmem:[#allocation2 + $0x8e4] sm:$0xf0]  ;;  %v10160_v8 = vor.u32 %v11192_v62, %v10159_v55  ;;  %v9321_v55 = vld [vmem:[#allocation2 + $0xd8] sm:$0xf0]  ;;  %v11027_v62 = vld [vmem:[#allocation2 + $0x244] sm:$0xf] }
 0x25f   :  { %6225 = vmatpush.bf16.msra.mxu0 %v9296_v24  ;;  %v11045_v24 = vld [vmem:[#allocation2 + $0x2d4] sm:$0xf]  ;;  %v10352_v11 = vor.u32 %v11240_v57, %v10351_v14  ;;  %v9513_v14 = vld [vmem:[#allocation2 + $0x258] sm:$0xf0]  ;;  %v10280_v57 = vor.u32 %v11222_v20, %v10279_v18 }
 0x260   :  { %6238 = vmatpush.bf16.msra.mxu1 %v9488_v37  ;;  %v9585_v37 = vld [vmem:[#allocation2 + $0x2e8] sm:$0xf0]  ;;  %v11009_v18 = vld [vmem:[#allocation2 + $0x1b4] sm:$0xf] }
 0x261   :  { %6251 = vmatpush.bf16.msra.mxu2 %v9680_v5  ;;  %v4765_v5 = vunpack.c.l.b16 %v57_v22  ;;  %v9588_v25 = vor.u32 %v11045_v24, %v9585_v37  ;;  %v9516_v37 = vor.u32 %v11027_v62, %v9513_v14  ;;  %v10183_v62 = vld [vmem:[#allocation2 + $0x780] sm:$0xf] }
 0x262   :  { %6264 = vmatpush.bf16.msra.mxu3 %v9872_v9  ;;  %v4766_v9 = vunpack.c.h.b16 %v57_v22  ;;  %v10979_v22 = vld [vmem:[#allocation2 + $0xc4] sm:$0xf] }
 0x263   :  { %6226 = vmatpush.bf16.msra.mxu0 %v9272_v28  ;;  %v9369_v28 = vld [vmem:[#allocation2 + $0x138] sm:$0xf0]  ;;  %v11482_v33 = vpack.c.b16 %v4765_v5, %v4765_v5  ;;  %v9324_v58 = vor.u32 %v10979_v22, %v9321_v55  ;;  %v11216_v5 = vld [vmem:[#allocation2 + $0x824] sm:$0xf0]  ;;  %v9991_v22 = vld [vmem:[#allocation2 + $0x600] sm:$0xf] }
 0x264   :  { %6239 = vmatpush.bf16.msra.mxu1 %v9464_v31  ;;  %v11039_v31 = vld [vmem:[#allocation2 + $0x2a4] sm:$0xf]  ;;  %v9372_v41 = vor.u32 %v10991_v27, %v9369_v28  ;;  %v11210_v28 = vld [vmem:[#allocation2 + $0x7f4] sm:$0xf0] }
 0x265   :  { %6252 = vmatpush.bf16.msra.mxu2 %v9656_v32  ;;  %v9561_v32 = vld [vmem:[#allocation2 + $0x2b8] sm:$0xf0]  ;;  %v11150_v55 = vld [vmem:[#allocation2 + $0x614] sm:$0xf0] }
 0x266   :  { %6265 = vmatpush.bf16.msra.mxu3 %v9848_v39  ;;  %v11486_v39 = vpack.c.b16 %v4766_v9, %v4766_v9  ;;  %v9564_v46 = vor.u32 %v11039_v31, %v9561_v32  ;;  %v9489_v9 = vld [vmem:[#allocation2 + $0x228] sm:$0xf0]  ;;  %v10967_v31 = vld [vmem:[#allocation2 + $0x64] sm:$0xf]  ;;  %v9273_v32 = vld [vmem:[#allocation2 + $0x78] sm:$0xf0] }
 0x267   :  { %6227 = vmatpush.bf16.msra.mxu0 %v9248_v47  ;;  %v11228_v47 = vld [vmem:[#allocation2 + $0x884] sm:$0xf0]  ;;  %v9276_v48 = vor.u32 %v10967_v31, %v9273_v32 }
 0x268   :  { %6240 = vmatpush.bf16.msra.mxu1 %v9440_v50  ;;  %v9537_v50 = vld [vmem:[#allocation2 + $0x288] sm:$0xf0]  ;;  %v10304_v52 = vor.u32 %v11228_v47, %v10303_v44  ;;  %v10232_v47 = vor.u32 %v11210_v28, %v10231_v26 }
 0x269   :  { %6253 = vmatpush.bf16.msra.mxu2 %v9632_v51  ;;  %v10112_v51 = vor.u32 %v11180_v43, %v10111_v42  ;;  %v9540_v54 = vor.u32 %v11033_v35, %v9537_v50  ;;  %v9465_v42 = vld [vmem:[#allocation2 + $0x1f8] sm:$0xf0]  ;;  %v11156_v35 = vld [vmem:[#allocation2 + $0x644] sm:$0xf0]  ;;  %v10207_v50 = vld [vmem:[#allocation2 + $0x7b0] sm:$0xf] }
 0x26a   :  { %6266 = vmatpush.bf16.msra.mxu3 %v9824_v38  ;;  %v11174_v38 = vld [vmem:[#allocation2 + $0x6d4] sm:$0xf0]  ;;  %v10016_v20 = vor.u32 %v11156_v35, %v10015_v7  ;;  %v10353_v26 = vld [vmem:[#allocation2 + $0x8e8] sm:$0xf0]  ;;  %v11231_v7 = vld [vmem:[#allocation2 + $0x8a4] sm:$0xf] }
 0x26b   :  { %6228 = vmatpush.bf16.msra.mxu0 %v9224_v56  ;;  %v10088_v4 = vor.u32 %v11174_v38, %v10087_v15  ;;  %v4273_v56 = vpop.f32.mrf.mxu0  ;;  %v10961_v15 = vld [vmem:[#allocation2 + $0x34] sm:$0xf]  ;;  %v9249_v38 = vld [vmem:[#allocation2 + $0x48] sm:$0xf0]  ;;  %v10329_v35 = vld [vmem:[#allocation2 + $0x8b8] sm:$0xf0] }
 0x26c   :  { %6241 = vmatpush.bf16.msra.mxu1 %v9416_v63  ;;  %v10255_v63 = vld [vmem:[#allocation2 + $0x810] sm:$0xf]  ;;  %v4286_v24 = vpop.f32.mrf.mxu1 }
 0x26d   :  { %6254 = vmatpush.bf16.msra.mxu2 %v9608_v3  ;;  %v4274_v3 = vadd.f32 %v4273_v56, %v11472_v29  ;;  %v10256_v16 = vor.u32 %v11216_v5, %v10255_v63  ;;  %v11198_v56 = vld [vmem:[#allocation2 + $0x794] sm:$0xf0]  ;;  %v9225_v63 = vld [vmem:[#allocation2 + $0x18] sm:$0xf0]  ;;  %v11093_v5 = vld [vmem:[#allocation2 + $0x454] sm:$0xf] }
 0x26e   :  { %6267 = vmatpush.bf16.msra.mxu3 %v9800_v6  ;;  %6229 = vmatmul.bf16.vlgmr.msra.gmra.mxu0 %v11480_v30  ;;  %v9297_v6 = vld [vmem:[#allocation2 + $0xa8] sm:$0xf0] }
 0x26f   :  { %6273 = vmatpush.bf16.msrb.mxu0 %v10160_v8  ;;  %6242 = vmatmul.bf16.vlgmr.msra.gmra.mxu1 %v11484_v34  ;;  %v11021_v8 = vld [vmem:[#allocation2 + $0x214] sm:$0xf]  ;;  %v9300_v17 = vor.u32 %v10973_v10, %v9297_v6  ;;  %v9777_v10 = vld [vmem:[#allocation2 + $0x468] sm:$0xf0] }
 0x270   :  { %6286 = vmatpush.bf16.msrb.mxu1 %v10352_v11  ;;  %6255 = vmatmul.bf16.vlgmr.msra.gmra.mxu2 %v11482_v33  ;;  %v4287_v11 = vadd.f32 %v4286_v24, %v4274_v3  ;;  %v9492_v29 = vor.u32 %v11021_v8, %v9489_v9  ;;  %v11003_v3 = vld [vmem:[#allocation2 + $0x184] sm:$0xf]  ;;  %v9417_v24 = vld [vmem:[#allocation2 + $0x198] sm:$0xf0]  ;;  %v11141_v6 = vld [vmem:[#allocation2 + $0x5d4] sm:$0xf]  ;;  %v9992_v8 = vor.u32 %v11150_v55, %v9991_v22 }
 0x271   :  { %6299 = vmatpush.bf16.msrb.mxu2 %v9396_v12  ;;  %6268 = vmatmul.bf16.vlgmr.msra.gmra.mxu3 %v11486_v39  ;;  %v10064_v12 = vor.u32 %v11168_v60, %v10063_v59  ;;  %v9969_v9 = vld [vmem:[#allocation2 + $0x5e8] sm:$0xf0]  ;;  %v9780_v28 = vor.u32 %v11093_v5, %v9777_v10  ;;  %v11177_v22 = vld [vmem:[#allocation2 + $0x6f4] sm:$0xf]  ;;  %v11219_v5 = vld [vmem:[#allocation2 + $0x844] sm:$0xf] }
 0x272   :  { %6312 = vmatpush.bf16.msrb.mxu3 %v9588_v25  ;;  %v11162_v25 = vld [vmem:[#allocation2 + $0x674] sm:$0xf0]  ;;  %v9972_v31 = vor.u32 %v11141_v6, %v9969_v9  ;;  %v10113_v55 = vld [vmem:[#allocation2 + $0x708] sm:$0xf0]  ;;  %v10281_v10 = vld [vmem:[#allocation2 + $0x858] sm:$0xf0] }
 0x273   :  { %6274 = vmatpush.bf16.msrb.mxu0 %v10136_v36  ;;  %v4299_v27 = vpop.f32.mrf.mxu2  ;;  %v10040_v43 = vor.u32 %v11162_v25, %v10039_v21  ;;  %v11237_v25 = vld [vmem:[#allocation2 + $0x8d4] sm:$0xf] }
 0x274   :  { %6287 = vmatpush.bf16.msrb.mxu1 %v10328_v40  ;;  %v4300_v36 = vadd.f32 %v4299_v27, %v4287_v11  ;;  %v4312_v40 = vpop.f32.mrf.mxu3  ;;  %v11189_v11 = vld [vmem:[#allocation2 + $0x754] sm:$0xf] }
 0x275   :  { %6300 = vmatpush.bf16.msrb.mxu2 %v9372_v41  ;;  %v11015_v41 = vld [vmem:[#allocation2 + $0x1e4] sm:$0xf] }
 0x276   :  { %6313 = vmatpush.bf16.msrb.mxu3 %v9564_v46  ;;  %v11493_v44 = vadd.f32 %v4312_v40, %v4300_v36  ;;  %v4275_v46 = vpop.f32.mrf.mxu0  ;;  %v11087_v36 = vld [vmem:[#allocation2 + $0x424] sm:$0xf]  ;;  %v9753_v40 = vld [vmem:[#allocation2 + $0x438] sm:$0xf0] }
 0x277   :  { %6275 = vmatpush.bf16.msrb.mxu0 %v10112_v51  ;;  %v4288_v51 = vpop.f32.mrf.mxu1  ;;  %v11183_v46 = vld [vmem:[#allocation2 + $0x724] sm:$0xf] }
 0x278   :  { %6288 = vmatpush.bf16.msrb.mxu1 %v10304_v52  ;;  %v9468_v52 = vor.u32 %v11015_v41, %v9465_v42  ;;  %v11135_v41 = vld [vmem:[#allocation2 + $0x5a4] sm:$0xf]  ;;  %v10356_v42 = vor.u32 %v11237_v25, %v10353_v26  ;;  %v9756_v51 = vor.u32 %v11087_v36, %v9753_v40  ;;  %v10284_v26 = vor.u32 %v11219_v5, %v10281_v10  ;;  %v9609_v10 = vld [vmem:[#allocation2 + $0x318] sm:$0xf0] }
 0x279   :  { %6301 = vmatpush.bf16.msrb.mxu2 %v9348_v19  ;;  %v11204_v19 = vld [vmem:[#allocation2 + $0x7c4] sm:$0xf0]  ;;  %v11051_v5 = vld [vmem:[#allocation2 + $0x304] sm:$0xf] }
 0x27a   :  { %6314 = vmatpush.bf16.msrb.mxu3 %v9540_v54  ;;  %v9441_v54 = vld [vmem:[#allocation2 + $0x1c8] sm:$0xf0]  ;;  %v10208_v14 = vor.u32 %v11204_v19, %v10207_v50 }
 0x27b   :  { %6276 = vmatpush.bf16.msrb.mxu0 %v10088_v4  ;;  %v9252_v4 = vor.u32 %v10961_v15, %v9249_v38  ;;  %v4301_v59 = vpop.f32.mrf.mxu2  ;;  %v9444_v60 = vor.u32 %v11009_v18, %v9441_v54  ;;  %v11081_v15 = vld [vmem:[#allocation2 + $0x3f4] sm:$0xf]  ;;  %v9729_v38 = vld [vmem:[#allocation2 + $0x408] sm:$0xf0]  ;;  %v10332_v54 = vor.u32 %v11231_v7, %v10329_v35  ;;  %v9849_v7 = vld [vmem:[#allocation2 + $0x4f8] sm:$0xf0] }
 0x27c   :  { %6289 = vmatpush.bf16.msrb.mxu1 %v10280_v57  ;;  %v10955_v57 = vld [vmem:[#allocation2 + $0x4] sm:$0xf]  ;;  %v11129_v18 = vld [vmem:[#allocation2 + $0x574] sm:$0xf]  ;;  %v9705_v59 = vld [vmem:[#allocation2 + $0x3d8] sm:$0xf0] }
 0x27d   :  { %6302 = vmatpush.bf16.msrb.mxu2 %v9324_v58  ;;  %v58_v58 = vld [vmem:[%s11631_s0 + $0x10] sm:$0xff]  ;;  %v9228_v21 = vor.u32 %v10955_v57, %v9225_v63  ;;  %v10116_v57 = vor.u32 %v11177_v22, %v10113_v55  ;;  %v11159_v35 = vld [vmem:[#allocation2 + $0x664] sm:$0xf] }
 0x27e   :  { %6315 = vmatpush.bf16.msrb.mxu3 %v9516_v37  ;;  %v4314_v37 = vpop.f32.mrf.mxu3  ;;  %v4768_v27 = vunpack.c.h.b16 %v58_v58 }
 0x27f   :  { %6277 = vmatpush.bf16.msrb.mxu0 %v10064_v12  ;;  %v10161_v12 = vld [vmem:[#allocation2 + $0x768] sm:$0xf0]  ;;  %v10089_v37 = vld [vmem:[#allocation2 + $0x6d8] sm:$0xf0] }
 0x280   :  { %6290 = vmatpush.bf16.msrb.mxu1 %v10256_v16  ;;  %v4767_v16 = vunpack.c.l.b16 %v58_v58  ;;  %v10164_v32 = vor.u32 %v11189_v11, %v10161_v12  ;;  %v11500_v50 = vpack.c.b16 %v4768_v27, %v4768_v27  ;;  %v11075_v58 = vld [vmem:[#allocation2 + $0x3c4] sm:$0xf]  ;;  %v9873_v27 = vld [vmem:[#allocation2 + $0x528] sm:$0xf0] }
 0x281   :  { %6303 = vmatpush.bf16.msrb.mxu2 %v9300_v17  ;;  %v10184_v17 = vor.u32 %v11198_v56, %v10183_v62  ;;  %v11225_v62 = vld [vmem:[#allocation2 + $0x874] sm:$0xf] }
 0x282   :  { %6316 = vmatpush.bf16.msrb.mxu3 %v9492_v29  ;;  %v9420_v29 = vor.u32 %v11003_v3, %v9417_v24  ;;  %v9897_v3 = vld [vmem:[#allocation2 + $0x558] sm:$0xf0]  ;;  %v11171_v24 = vld [vmem:[#allocation2 + $0x6c4] sm:$0xf] }
 0x283   :  { %6278 = vmatpush.bf16.msrb.mxu0 %v10040_v43  ;;  %v9945_v43 = vld [vmem:[#allocation2 + $0x5b8] sm:$0xf0]  ;;  %v10092_v12 = vor.u32 %v11171_v24, %v10089_v37  ;;  %v10209_v24 = vld [vmem:[#allocation2 + $0x7c8] sm:$0xf0] }
 0x284   :  { %6291 = vmatpush.bf16.msrb.mxu1 %v10232_v47  ;;  %v10137_v47 = vld [vmem:[#allocation2 + $0x738] sm:$0xf0] }
 0x285   :  { %6304 = vmatpush.bf16.msrb.mxu2 %v9276_v48  ;;  %v11498_v48 = vpack.c.b16 %v4767_v16, %v4767_v16  ;;  %v10140_v19 = vor.u32 %v11183_v46, %v10137_v47  ;;  %v11069_v16 = vld [vmem:[#allocation2 + $0x394] sm:$0xf]  ;;  %v11111_v46 = vld [vmem:[#allocation2 + $0x4e4] sm:$0xf] }
 0x286   :  { %6317 = vmatpush.bf16.msrb.mxu3 %v9468_v52  ;;  %v9948_v52 = vor.u32 %v11135_v41, %v9945_v43  ;;  %v9657_v43 = vld [vmem:[#allocation2 + $0x378] sm:$0xf0]  ;;  %v9852_v55 = vor.u32 %v11111_v46, %v9849_v7  ;;  %v9975_v46 = vld [vmem:[#allocation2 + $0x5d8] sm:$0xf] }
 0x287   :  { %6279 = vmatpush.bf16.msrb.mxu0 %v10016_v20  ;;  %v9921_v20 = vld [vmem:[#allocation2 + $0x588] sm:$0xf0] }
 0x288   :  { %6292 = vmatpush.bf16.msrb.mxu1 %v10208_v14  ;;  %v10305_v14 = vld [vmem:[#allocation2 + $0x888] sm:$0xf0]  ;;  %v9924_v56 = vor.u32 %v11129_v18, %v9921_v20 }
 0x289   :  { %6305 = vmatpush.bf16.msrb.mxu2 %v9252_v4  ;;  %v9732_v4 = vor.u32 %v11081_v15, %v9729_v38  ;;  %v10308_v63 = vor.u32 %v11225_v62, %v10305_v14  ;;  %v10233_v15 = vld [vmem:[#allocation2 + $0x7f8] sm:$0xf0]  ;;  %v11057_v14 = vld [vmem:[#allocation2 + $0x334] sm:$0xf] }
 0x28a   :  { %6318 = vmatpush.bf16.msrb.mxu3 %v9444_v60  ;;  %v11123_v60 = vld [vmem:[#allocation2 + $0x544] sm:$0xf] }
 0x28b   :  { %6280 = vmatpush.bf16.msrb.mxu0 %v9992_v8  ;;  %v4325_v6 = vpop.f32.mrf.mxu0  ;;  %v9708_v8 = vor.u32 %v11075_v58, %v9705_v59  ;;  %v9900_v11 = vor.u32 %v11123_v60, %v9897_v3  ;;  %v9825_v59 = vld [vmem:[#allocation2 + $0x4c8] sm:$0xf0]  ;;  %v11153_v60 = vld [vmem:[#allocation2 + $0x634] sm:$0xf] }
 0x28c   :  { %6293 = vmatpush.bf16.msrb.mxu1 %v10184_v17  ;;  %v4338_v9 = vpop.f32.mrf.mxu1  ;;  %v9681_v17 = vld [vmem:[#allocation2 + $0x3a8] sm:$0xf0]  ;;  %v11201_v3 = vld [vmem:[#allocation2 + $0x7b4] sm:$0xf] }
 0x28d   :  { %6306 = vmatpush.bf16.msrb.mxu2 %v9228_v21  ;;  %v11117_v21 = vld [vmem:[#allocation2 + $0x514] sm:$0xf]  ;;  %v4339_v25 = vadd.f32 %v4338_v9, %v4325_v6  ;;  %v9684_v36 = vor.u32 %v11069_v16, %v9681_v17  ;;  %v11099_v9 = vld [vmem:[#allocation2 + $0x484] sm:$0xf]  ;;  %v10212_v16 = vor.u32 %v11201_v3, %v10209_v24  ;;  %v9993_v17 = vld [vmem:[#allocation2 + $0x618] sm:$0xf0] }
 0x28e   :  { %6319 = vmatpush.bf16.msrb.mxu3 %v9420_v29  ;;  %6281 = vmatmul.bf16.vlgmr.msrb.gmra.mxu0 %v11498_v48  ;;  %v11165_v29 = vld [vmem:[#allocation2 + $0x694] sm:$0xf]  ;;  %v9876_v40 = vor.u32 %v11117_v21, %v9873_v27  ;;  %v11195_v21 = vld [vmem:[#allocation2 + $0x784] sm:$0xf]  ;;  %v9399_v27 = vld [vmem:[#allocation2 + $0x158] sm:$0xf] }
 0x28f   :  { %6325 = vmatpush.bf16.msra.mxu0 %v9780_v28  ;;  %6294 = vmatmul.bf16.vlgmr.msrb.gmra.mxu1 %v11500_v50  ;;  %v10065_v28 = vld [vmem:[#allocation2 + $0x6a8] sm:$0xf0]  ;;  %v11037_v3 = vld [vmem:[#allocation2 + $0x28c] sm:$0xf0]  ;;  %v9735_v24 = vld [vmem:[#allocation2 + $0x3f8] sm:$0xf] }
 0x290   :  { %6338 = vmatpush.bf16.msra.mxu1 %v9972_v31  ;;  %6307 = vmatmul.bf16.vlgmr.msrb.gmra.mxu2 %v11480_v30  ;;  %v11213_v31 = vld [vmem:[#allocation2 + $0x814] sm:$0xf]  ;;  %v10068_v41 = vor.u32 %v11165_v29, %v10065_v28  ;;  %v11001_v29 = vld [vmem:[#allocation2 + $0x16c] sm:$0xf0]  ;;  %v9591_v28 = vld [vmem:[#allocation2 + $0x2d8] sm:$0xf] }
 0x291   :  { %6351 = vmatpush.bf16.msra.mxu2 %v10164_v32  ;;  %6320 = vmatmul.bf16.vlgmr.msrb.gmra.mxu3 %v11484_v34  ;;  %v10257_v32 = vld [vmem:[#allocation2 + $0x828] sm:$0xf0] }
 0x292   :  { %6364 = vmatpush.bf16.msra.mxu3 %v10356_v42  ;;  %v11063_v42 = vld [vmem:[#allocation2 + $0x364] sm:$0xf]  ;;  %v10260_v47 = vor.u32 %v11213_v31, %v10257_v32  ;;  %v9612_v32 = vor.u32 %v11051_v5, %v9609_v10  ;;  %v9927_v5 = vld [vmem:[#allocation2 + $0x578] sm:$0xf]  ;;  %v11133_v10 = vld [vmem:[#allocation2 + $0x58c] sm:$0xf0] }
 0x293   :  { %6326 = vmatpush.bf16.msra.mxu0 %v9756_v51  ;;  %v10041_v51 = vld [vmem:[#allocation2 + $0x678] sm:$0xf0]  ;;  %v4327_v18 = vpop.f32.mrf.mxu0  ;;  %v9660_v20 = vor.u32 %v11063_v42, %v9657_v43 }
 0x294   :  { %6339 = vmatpush.bf16.msra.mxu1 %v9948_v52  ;;  %v4351_v52 = vpop.f32.mrf.mxu2  ;;  %v4340_v22 = vpop.f32.mrf.mxu1  ;;  %v10044_v62 = vor.u32 %v11159_v35, %v10041_v51  ;;  %v9400_v35 = vor.u32 %v11001_v29, %v9399_v27  ;;  %v9903_v27 = vld [vmem:[#allocation2 + $0x548] sm:$0xf]  ;;  %v11127_v29 = vld [vmem:[#allocation2 + $0x55c] sm:$0xf0] }
 0x295   :  { %6352 = vmatpush.bf16.msra.mxu2 %v10140_v19  ;;  %v11207_v19 = vld [vmem:[#allocation2 + $0x7e4] sm:$0xf]  ;;  %v4352_v38 = vadd.f32 %v4351_v52, %v4339_v25  ;;  %v10185_v25 = vld [vmem:[#allocation2 + $0x798] sm:$0xf0]  ;;  %v11091_v22 = vld [vmem:[#allocation2 + $0x43c] sm:$0xf0] }
 0x296   :  { %6365 = vmatpush.bf16.msra.mxu3 %v10332_v54  ;;  %v4364_v54 = vpop.f32.mrf.mxu3  ;;  %v10236_v58 = vor.u32 %v11207_v19, %v10233_v15  ;;  %v10188_v7 = vor.u32 %v11195_v21, %v10185_v25  ;;  %v9375_v19 = vld [vmem:[#allocation2 + $0x128] sm:$0xf]  ;;  %v10995_v15 = vld [vmem:[#allocation2 + $0x13c] sm:$0xf0] }
 0x297   :  { %6327 = vmatpush.bf16.msra.mxu0 %v9732_v4  ;;  %v9633_v4 = vld [vmem:[#allocation2 + $0x348] sm:$0xf0]  ;;  %v11031_v21 = vld [vmem:[#allocation2 + $0x25c] sm:$0xf0]  ;;  %v9711_v25 = vld [vmem:[#allocation2 + $0x3c8] sm:$0xf] }
 0x298   :  { %6340 = vmatpush.bf16.msra.mxu1 %v9924_v56  ;;  %v11105_v56 = vld [vmem:[#allocation2 + $0x4b4] sm:$0xf]  ;;  %v9636_v37 = vor.u32 %v11057_v14, %v9633_v4  ;;  %v9376_v14 = vor.u32 %v10995_v15, %v9375_v19  ;;  %v9879_v19 = vld [vmem:[#allocation2 + $0x518] sm:$0xf]  ;;  %v11121_v15 = vld [vmem:[#allocation2 + $0x52c] sm:$0xf0] }
 0x299   :  { %6353 = vmatpush.bf16.msra.mxu2 %v10116_v57  ;;  %v11506_v57 = vadd.f32 %v4364_v54, %v4352_v38  ;;  %v9828_v6 = vor.u32 %v11105_v56, %v9825_v59  ;;  %v9567_v38 = vld [vmem:[#allocation2 + $0x2a8] sm:$0xf]  ;;  %v11043_v54 = vld [vmem:[#allocation2 + $0x2bc] sm:$0xf0]  ;;  %v10989_v59 = vld [vmem:[#allocation2 + $0x10c] sm:$0xf0] }
 0x29a   :  { %6366 = vmatpush.bf16.msra.mxu3 %v10308_v63  ;;  %v10017_v63 = vld [vmem:[#allocation2 + $0x648] sm:$0xf0]  ;;  %v9568_v4 = vor.u32 %v11043_v54, %v9567_v38  ;;  %v9279_v54 = vld [vmem:[#allocation2 + $0x68] sm:$0xf] }
 0x29b   :  { %6328 = vmatpush.bf16.msra.mxu0 %v9708_v8  ;;  %v10020_v8 = vor.u32 %v11153_v60, %v10017_v63  ;;  %v9543_v60 = vld [vmem:[#allocation2 + $0x278] sm:$0xf] }
 0x29c   :  { %6341 = vmatpush.bf16.msra.mxu1 %v9900_v11  ;;  %v9801_v11 = vld [vmem:[#allocation2 + $0x498] sm:$0xf0] }
 0x29d   :  { %6354 = vmatpush.bf16.msra.mxu2 %v10092_v12  ;;  %v11147_v12 = vld [vmem:[#allocation2 + $0x604] sm:$0xf]  ;;  %v9804_v42 = vor.u32 %v11099_v9, %v9801_v11  ;;  %v9327_v11 = vld [vmem:[#allocation2 + $0xc8] sm:$0xf] }
 0x29e   :  { %6367 = vmatpush.bf16.msra.mxu3 %v10284_v26  ;;  %v4353_v26 = vpop.f32.mrf.mxu2  ;;  %v4366_v31 = vpop.f32.mrf.mxu3  ;;  %v9996_v43 = vor.u32 %v11147_v12, %v9993_v17  ;;  %v10983_v12 = vld [vmem:[#allocation2 + $0xdc] sm:$0xf0]  ;;  %v9928_v17 = vor.u32 %v11133_v10, %v9927_v5 }
 0x29f   :  { %6329 = vmatpush.bf16.msra.mxu0 %v9684_v36  ;;  %v11049_v36 = vld [vmem:[#allocation2 + $0x2ec] sm:$0xf0]  ;;  %v11079_v26 = vld [vmem:[#allocation2 + $0x3dc] sm:$0xf0]  ;;  %v9328_v31 = vor.u32 %v10983_v12, %v9327_v11 }
 0x2a0   :  { %6342 = vmatpush.bf16.msra.mxu1 %v9876_v40  ;;  %v9783_v40 = vld [vmem:[#allocation2 + $0x458] sm:$0xf]  ;;  %v9592_v51 = vor.u32 %v11049_v36, %v9591_v28  ;;  %v11013_v12 = vld [vmem:[#allocation2 + $0x1cc] sm:$0xf0] }
 0x2a1   :  { %6355 = vmatpush.bf16.msra.mxu2 %v10068_v41  ;;  %v11097_v41 = vld [vmem:[#allocation2 + $0x46c] sm:$0xf0] }
 0x2a2   :  { %6368 = vmatpush.bf16.msra.mxu3 %v10260_v47  ;;  %v11145_v47 = vld [vmem:[#allocation2 + $0x5ec] sm:$0xf0]  ;;  %v9784_v52 = vor.u32 %v11097_v41, %v9783_v40  ;;  %v9712_v41 = vor.u32 %v11079_v26, %v9711_v25 }
 0x2a3   :  { %6330 = vmatpush.bf16.msra.mxu0 %v9660_v20  ;;  %v9976_v18 = vor.u32 %v11145_v47, %v9975_v46  ;;  %v9759_v20 = vld [vmem:[#allocation2 + $0x428] sm:$0xf]  ;;  %v9495_v46 = vld [vmem:[#allocation2 + $0x218] sm:$0xf]  ;;  %v9904_v47 = vor.u32 %v11127_v29, %v9903_v27  ;;  %v11109_v25 = vld [vmem:[#allocation2 + $0x4cc] sm:$0xf0] }
 0x2a4   :  { %6343 = vmatpush.bf16.msra.mxu1 %v9852_v55  ;;  %v9951_v55 = vld [vmem:[#allocation2 + $0x5a8] sm:$0xf]  ;;  %v9760_v56 = vor.u32 %v11091_v22, %v9759_v20  ;;  %v10971_v20 = vld [vmem:[#allocation2 + $0x7c] sm:$0xf0] }
 0x2a5   :  { %6356 = vmatpush.bf16.msra.mxu2 %v10044_v62  ;;  %v11139_v62 = vld [vmem:[#allocation2 + $0x5bc] sm:$0xf0]  ;;  %v9471_v22 = vld [vmem:[#allocation2 + $0x1e8] sm:$0xf] }
 0x2a6   :  { %6369 = vmatpush.bf16.msra.mxu3 %v10236_v58  ;;  %v9351_v58 = vld [vmem:[#allocation2 + $0xf8] sm:$0xf]  ;;  %v9952_v63 = vor.u32 %v11139_v62, %v9951_v55  ;;  %v9880_v55 = vor.u32 %v11121_v15, %v9879_v19  ;;  %v11019_v62 = vld [vmem:[#allocation2 + $0x1fc] sm:$0xf0]  ;;  %v9231_v27 = vld [vmem:[#allocation2 + $0x8] sm:$0xf] }
 0x2a7   :  { %6331 = vmatpush.bf16.msra.mxu0 %v9636_v37  ;;  %v11085_v37 = vld [vmem:[#allocation2 + $0x40c] sm:$0xf0]  ;;  %v9472_v5 = vor.u32 %v11019_v62, %v9471_v22  ;;  %v10959_v29 = vld [vmem:[#allocation2 + $0x1c] sm:$0xf0]  ;;  %v11046_v22 = vld [vmem:[#allocation2 + $0x2dc] sm:$0xf] }
 0x2a8   :  { %6344 = vmatpush.bf16.msra.mxu1 %v9828_v6  ;;  %v9352_v6 = vor.u32 %v10989_v59, %v9351_v58  ;;  %v9736_v9 = vor.u32 %v11085_v37, %v9735_v24  ;;  %v9855_v58 = vld [vmem:[#allocation2 + $0x4e8] sm:$0xf]  ;;  %v11115_v59 = vld [vmem:[#allocation2 + $0x4fc] sm:$0xf0]  ;;  %v9232_v15 = vor.u32 %v10959_v29, %v9231_v27  ;;  %v9353_v27 = vld [vmem:[#allocation2 + $0x110] sm:$0xf0] }
 0x2a9   :  { %6357 = vmatpush.bf16.msra.mxu2 %v10020_v8  ;;  %v9544_v8 = vor.u32 %v11037_v3, %v9543_v60  ;;  %v9280_v3 = vor.u32 %v10971_v20, %v9279_v54  ;;  %v9856_v11 = vor.u32 %v11115_v59, %v9855_v58  ;;  %v10143_v58 = vld [vmem:[#allocation2 + $0x728] sm:$0xf]  ;;  %v11187_v59 = vld [vmem:[#allocation2 + $0x73c] sm:$0xf0]  ;;  %v11034_v29 = vld [vmem:[#allocation2 + $0x27c] sm:$0xf] }
 0x2aa   :  { %6370 = vmatpush.bf16.msra.mxu3 %v10212_v16  ;;  %v9519_v16 = vld [vmem:[#allocation2 + $0x248] sm:$0xf] }
 0x2ab   :  { %6332 = vmatpush.bf16.msra.mxu0 %v9612_v32  ;;  %v4377_v28 = vpop.f32.mrf.mxu0  ;;  %v9520_v40 = vor.u32 %v11031_v21, %v9519_v16  ;;  %v9639_v16 = vld [vmem:[#allocation2 + $0x338] sm:$0xf] }
 0x2ac   :  { %6345 = vmatpush.bf16.msra.mxu1 %v9804_v42  ;;  %v4378_v32 = vadd.f32 %v4377_v28, %v11506_v57  ;;  %v4390_v36 = vpop.f32.mrf.mxu1  ;;  %v9303_v42 = vld [vmem:[#allocation2 + $0x98] sm:$0xf] }
 0x2ad   :  { %6358 = vmatpush.bf16.msra.mxu2 %v9996_v43  ;;  %v10977_v43 = vld [vmem:[#allocation2 + $0xac] sm:$0xf0]  ;;  %v9831_v21 = vld [vmem:[#allocation2 + $0x4b8] sm:$0xf] }
 0x2ae   :  { %6371 = vmatpush.bf16.msra.mxu3 %v10188_v7  ;;  %6333 = vmatmul.bf16.vlgmr.msra.gmra.mxu0 %v11482_v33  ;;  %v11025_v7 = vld [vmem:[#allocation2 + $0x22c] sm:$0xf0]  ;;  %v9304_v38 = vor.u32 %v10977_v43, %v9303_v42  ;;  %v11055_v42 = vld [vmem:[#allocation2 + $0x31c] sm:$0xf0]  ;;  %v9807_v43 = vld [vmem:[#allocation2 + $0x488] sm:$0xf] }
 0x2af   :  { %6377 = vmatpush.bf16.msrb.mxu0 %v9400_v35  ;;  %6346 = vmatmul.bf16.vlgmr.msra.gmra.mxu1 %v11486_v39  ;;  %v9687_v35 = vld [vmem:[#allocation2 + $0x398] sm:$0xf]  ;;  %v9496_v57 = vor.u32 %v11025_v7, %v9495_v46  ;;  %v11103_v46 = vld [vmem:[#allocation2 + $0x49c] sm:$0xf0] }
 0x2b0   :  { %6390 = vmatpush.bf16.msrb.mxu1 %v9592_v51  ;;  %6359 = vmatmul.bf16.vlgmr.msra.gmra.mxu2 %v11498_v48  ;;  %v11073_v51 = vld [vmem:[#allocation2 + $0x3ac] sm:$0xf0]  ;;  %v10167_v7 = vld [vmem:[#allocation2 + $0x758] sm:$0xf]  ;;  %v9808_v62 = vor.u32 %v11103_v46, %v9807_v43  ;;  %v11223_v46 = vld [vmem:[#allocation2 + $0x85c] sm:$0xf0] }
 0x2b1   :  { %6403 = vmatpush.bf16.msrb.mxu2 %v9784_v52  ;;  %6372 = vmatmul.bf16.vlgmr.msra.gmra.mxu3 %v11500_v50  ;;  %v11513_v52 = vadd.f32 %v4390_v36, %v4378_v32  ;;  %v9423_v32 = vld [vmem:[#allocation2 + $0x188] sm:$0xf]  ;;  %v11007_v36 = vld [vmem:[#allocation2 + $0x19c] sm:$0xf0] }
 0x2b2   :  { %6416 = vmatpush.bf16.msrb.mxu3 %v9976_v18  ;;  %v9688_v18 = vor.u32 %v11073_v51, %v9687_v35  ;;  %v11193_v35 = vld [vmem:[#allocation2 + $0x76c] sm:$0xf0]  ;;  %v10359_v51 = vld [vmem:[#allocation2 + $0x8d8] sm:$0xf]  ;;  %v9424_v54 = vor.u32 %v11007_v36, %v9423_v32 }
 0x2b3   :  { %6378 = vmatpush.bf16.msrb.mxu0 %v9376_v14  ;;  %v9663_v14 = vld [vmem:[#allocation2 + $0x368] sm:$0xf] }
 0x2b4   :  { %6391 = vmatpush.bf16.msrb.mxu1 %v9568_v4  ;;  %v11067_v4 = vld [vmem:[#allocation2 + $0x37c] sm:$0xf0]  ;;  %v4416_v60 = vpop.f32.mrf.mxu3  ;;  %v4392_v37 = vpop.f32.mrf.mxu1 }
 0x2b5   :  { %6404 = vmatpush.bf16.msrb.mxu2 %v9760_v56  ;;  %v4403_v56 = vpop.f32.mrf.mxu2  ;;  %v9664_v10 = vor.u32 %v11067_v4, %v9663_v14  ;;  %v10168_v14 = vor.u32 %v11193_v35, %v10167_v7  ;;  %v10992_v37 = vld [vmem:[#allocation2 + $0x12c] sm:$0xf]  ;;  %v9329_v7 = vld [vmem:[#allocation2 + $0xe0] sm:$0xf0] }
 0x2b6   :  { %6417 = vmatpush.bf16.msrb.mxu3 %v9952_v63  ;;  %v4379_v63 = vpop.f32.mrf.mxu0  ;;  %v11515_v24 = vadd.f32 %v4416_v60, %v4403_v56  ;;  %v10335_v60 = vld [vmem:[#allocation2 + $0x8a8] sm:$0xf]  ;;  %v11028_v35 = vld [vmem:[#allocation2 + $0x24c] sm:$0xf] }
 0x2b7   :  { %6379 = vmatpush.bf16.msrb.mxu0 %v9352_v6  ;;  %v9255_v6 = vld [vmem:[#allocation2 + $0x38] sm:$0xf] }
 0x2b8   :  { %6392 = vmatpush.bf16.msrb.mxu1 %v9544_v8  ;;  %v10965_v8 = vld [vmem:[#allocation2 + $0x4c] sm:$0xf0] }
 0x2b9   :  { %6405 = vmatpush.bf16.msrb.mxu2 %v9736_v9  ;;  %v9447_v9 = vld [vmem:[#allocation2 + $0x1b8] sm:$0xf]  ;;  %v9256_v26 = vor.u32 %v10965_v8, %v9255_v6  ;;  %v9569_v6 = vld [vmem:[#allocation2 + $0x2c0] sm:$0xf0]  ;;  %v10144_v8 = vor.u32 %v11187_v59, %v10143_v58  ;;  %v11022_v58 = vld [vmem:[#allocation2 + $0x21c] sm:$0xf] }
 0x2ba   :  { %6418 = vmatpush.bf16.msrb.mxu3 %v9928_v17  ;;  %v11061_v17 = vld [vmem:[#allocation2 + $0x34c] sm:$0xf0]  ;;  %v9448_v28 = vor.u32 %v11013_v12, %v9447_v9  ;;  %v10119_v12 = vld [vmem:[#allocation2 + $0x6f8] sm:$0xf]  ;;  %v9497_v59 = vld [vmem:[#allocation2 + $0x230] sm:$0xf0] }
 0x2bb   :  { %6380 = vmatpush.bf16.msrb.mxu0 %v9328_v31  ;;  %v9640_v31 = vor.u32 %v11061_v17, %v9639_v16  ;;  %v11181_v16 = vld [vmem:[#allocation2 + $0x70c] sm:$0xf0]  ;;  %v10311_v17 = vld [vmem:[#allocation2 + $0x878] sm:$0xf] }
 0x2bc   :  { %6393 = vmatpush.bf16.msrb.mxu1 %v9520_v40  ;;  %v9615_v40 = vld [vmem:[#allocation2 + $0x308] sm:$0xf]  ;;  %v4418_v19 = vpop.f32.mrf.mxu3 }
 0x2bd   :  { %6406 = vmatpush.bf16.msrb.mxu2 %v9712_v41  ;;  %v9832_v41 = vor.u32 %v11109_v25, %v9831_v21  ;;  %v9616_v20 = vor.u32 %v11055_v42, %v9615_v40  ;;  %v11229_v25 = vld [vmem:[#allocation2 + $0x88c] sm:$0xf0]  ;;  %v10095_v40 = vld [vmem:[#allocation2 + $0x6c8] sm:$0xf] }
 0x2be   :  { %6419 = vmatpush.bf16.msrb.mxu3 %v9904_v47  ;;  %v4405_v47 = vpop.f32.mrf.mxu2  ;;  %v10312_v32 = vor.u32 %v11229_v25, %v10311_v17  ;;  %v10287_v42 = vld [vmem:[#allocation2 + $0x848] sm:$0xf]  ;;  %v9473_v25 = vld [vmem:[#allocation2 + $0x200] sm:$0xf0] }
 0x2bf   :  { %6381 = vmatpush.bf16.msrb.mxu0 %v9304_v38  ;;  %v11241_v38 = vld [vmem:[#allocation2 + $0x8ec] sm:$0xf0]  ;;  %v10980_v47 = vld [vmem:[#allocation2 + $0xcc] sm:$0xf] }
 0x2c0   :  { %6394 = vmatpush.bf16.msrb.mxu1 %v9496_v57  ;;  %v10998_v57 = vld [vmem:[#allocation2 + $0x15c] sm:$0xf]  ;;  %v10360_v4 = vor.u32 %v11241_v38, %v10359_v51  ;;  %v9521_v51 = vld [vmem:[#allocation2 + $0x260] sm:$0xf0]  ;;  %v10288_v38 = vor.u32 %v11223_v46, %v10287_v42 }
 0x2c1   :  { %6407 = vmatpush.bf16.msrb.mxu2 %v9688_v18  ;;  %v9401_v18 = vld [vmem:[#allocation2 + $0x170] sm:$0xf0]  ;;  %v10962_v46 = vld [vmem:[#allocation2 + $0x3c] sm:$0xf] }
 0x2c2   :  { %6420 = vmatpush.bf16.msrb.mxu3 %v9880_v55  ;;  %v9593_v55 = vld [vmem:[#allocation2 + $0x2f0] sm:$0xf0]  ;;  %v9404_v56 = vor.u32 %v10998_v57, %v9401_v18  ;;  %v9332_v57 = vor.u32 %v10980_v47, %v9329_v7  ;;  %v10071_v18 = vld [vmem:[#allocation2 + $0x698] sm:$0xf]  ;;  %v11010_v7 = vld [vmem:[#allocation2 + $0x1bc] sm:$0xf] }
 0x2c3   :  { %6382 = vmatpush.bf16.msrb.mxu0 %v9280_v3  ;;  %v9596_v63 = vor.u32 %v11046_v22, %v9593_v55  ;;  %v11235_v3 = vld [vmem:[#allocation2 + $0x8bc] sm:$0xf0]  ;;  %v9257_v47 = vld [vmem:[#allocation2 + $0x50] sm:$0xf0] }
 0x2c4   :  { %6395 = vmatpush.bf16.msrb.mxu1 %v9472_v5  ;;  %v9377_v5 = vld [vmem:[#allocation2 + $0x140] sm:$0xf0]  ;;  %v10336_v9 = vor.u32 %v11235_v3, %v10335_v60 }
 0x2c5   :  { %6408 = vmatpush.bf16.msrb.mxu2 %v9664_v10  ;;  %v11040_v10 = vld [vmem:[#allocation2 + $0x2ac] sm:$0xf] }
 0x2c6   :  { %6421 = vmatpush.bf16.msrb.mxu3 %v9856_v11  ;;  %v9380_v11 = vor.u32 %v10992_v37, %v9377_v5  ;;  %v9572_v21 = vor.u32 %v11040_v10, %v9569_v6  ;;  %v10047_v5 = vld [vmem:[#allocation2 + $0x668] sm:$0xf]  ;;  %v11163_v10 = vld [vmem:[#allocation2 + $0x67c] sm:$0xf0] }
 0x2c7   :  { %6383 = vmatpush.bf16.msrb.mxu0 %v9256_v26  ;;  %v10986_v26 = vld [vmem:[#allocation2 + $0xfc] sm:$0xf]  ;;  %v10239_v6 = vld [vmem:[#allocation2 + $0x7e8] sm:$0xf] }
 0x2c8   :  { %6396 = vmatpush.bf16.msrb.mxu1 %v9448_v28  ;;  %v9545_v28 = vld [vmem:[#allocation2 + $0x290] sm:$0xf0]  ;;  %v9356_v36 = vor.u32 %v10986_v26, %v9353_v27  ;;  %v10048_v26 = vor.u32 %v11163_v10, %v10047_v5 }
 0x2c9   :  { %6409 = vmatpush.bf16.msrb.mxu2 %v9640_v31  ;;  %v10120_v31 = vor.u32 %v11181_v16, %v10119_v12  ;;  %v9548_v43 = vor.u32 %v11034_v29, %v9545_v28  ;;  %v9281_v12 = vld [vmem:[#allocation2 + $0x80] sm:$0xf0]  ;;  %v10169_v5 = vld [vmem:[#allocation2 + $0x770] sm:$0xf0] }
 0x2ca   :  { %6422 = vmatpush.bf16.msrb.mxu3 %v9832_v41  ;;  %v11175_v41 = vld [vmem:[#allocation2 + $0x6dc] sm:$0xf0] }
 0x2cb   :  { %6384 = vmatpush.bf16.msrb.mxu0 %v9232_v15  ;;  %v10096_v19 = vor.u32 %v11175_v41, %v10095_v40  ;;  %v4429_v15 = vpop.f32.mrf.mxu0  ;;  %v10215_v40 = vld [vmem:[#allocation2 + $0x7b8] sm:$0xf] }
 0x2cc   :  { %6397 = vmatpush.bf16.msrb.mxu1 %v9424_v54  ;;  %v11169_v54 = vld [vmem:[#allocation2 + $0x6ac] sm:$0xf0]  ;;  %v4430_v22 = vadd.f32 %v4429_v15, %v11515_v24  ;;  %v4442_v55 = vpop.f32.mrf.mxu1  ;;  %v9500_v24 = vor.u32 %v11022_v58, %v9497_v59  ;;  %v11151_v15 = vld [vmem:[#allocation2 + $0x61c] sm:$0xf0]  ;;  %v11094_v58 = vld [vmem:[#allocation2 + $0x45c] sm:$0xf] }
 0x2cd   :  { %6410 = vmatpush.bf16.msrb.mxu2 %v9616_v20  ;;  %v10263_v20 = vld [vmem:[#allocation2 + $0x818] sm:$0xf]  ;;  %v9785_v59 = vld [vmem:[#allocation2 + $0x470] sm:$0xf0] }
 0x2ce   :  { %6423 = vmatpush.bf16.msrb.mxu3 %v9808_v62  ;;  %6385 = vmatmul.bf16.vlgmr.msrb.gmra.mxu0 %v11480_v30  ;;  %v9524_v62 = vor.u32 %v11028_v35, %v9521_v51  ;;  %v4443_v60 = vadd.f32 %v4442_v55, %v4430_v22  ;;  %v9449_v35 = vld [vmem:[#allocation2 + $0x1d0] sm:$0xf0] }
 0x2cf   :  { %6429 = vmatpush.bf16.msra.mxu0 %v10168_v14  ;;  %6398 = vmatmul.bf16.vlgmr.msrb.gmra.mxu1 %v11484_v34  ;;  %v11217_v14 = vld [vmem:[#allocation2 + $0x82c] sm:$0xf0]  ;;  %v9452_v55 = vor.u32 %v11010_v7, %v9449_v35  ;;  %v9929_v35 = vld [vmem:[#allocation2 + $0x590] sm:$0xf0] }
 0x2d0   :  { %6442 = vmatpush.bf16.msra.mxu1 %v10360_v4  ;;  %6411 = vmatmul.bf16.vlgmr.msrb.gmra.mxu2 %v11482_v33  ;;  %v10974_v4 = vld [vmem:[#allocation2 + $0x9c] sm:$0xf]  ;;  %v10264_v3 = vor.u32 %v11217_v14, %v10263_v20  ;;  %v10956_v20 = vld [vmem:[#allocation2 + $0xc] sm:$0xf] }
 0x2d1   :  { %6455 = vmatpush.bf16.msra.mxu2 %v9404_v56  ;;  %6424 = vmatmul.bf16.vlgmr.msrb.gmra.mxu3 %v11486_v39  ;;  %v9305_v56 = vld [vmem:[#allocation2 + $0xb0] sm:$0xf0]  ;;  %v11004_v14 = vld [vmem:[#allocation2 + $0x18c] sm:$0xf] }
 0x2d2   :  { %6468 = vmatpush.bf16.msra.mxu3 %v9596_v63  ;;  %v10072_v63 = vor.u32 %v11169_v54, %v10071_v18  ;;  %v9308_v37 = vor.u32 %v10974_v4, %v9305_v56  ;;  %v10191_v18 = vld [vmem:[#allocation2 + $0x788] sm:$0xf]  ;;  %v11199_v54 = vld [vmem:[#allocation2 + $0x79c] sm:$0xf0]  ;;  %v9425_v4 = vld [vmem:[#allocation2 + $0x1a0] sm:$0xf0] }
 0x2d3   :  { %6430 = vmatpush.bf16.msra.mxu0 %v10144_v8  ;;  %v4455_v8 = vpop.f32.mrf.mxu2  ;;  %v4431_v29 = vpop.f32.mrf.mxu0  ;;  %v10192_v10 = vor.u32 %v11199_v54, %v10191_v18 }
 0x2d4   :  { %6443 = vmatpush.bf16.msra.mxu1 %v10336_v9  ;;  %v11211_v9 = vld [vmem:[#allocation2 + $0x7fc] sm:$0xf0]  ;;  %v4456_v16 = vadd.f32 %v4455_v8, %v4443_v60  ;;  %v4468_v17 = vpop.f32.mrf.mxu3  ;;  %v4444_v41 = vpop.f32.mrf.mxu1  ;;  %v11142_v60 = vld [vmem:[#allocation2 + $0x5dc] sm:$0xf]  ;;  %v9953_v29 = vld [vmem:[#allocation2 + $0x5c0] sm:$0xf0] }
 0x2d5   :  { %6456 = vmatpush.bf16.msra.mxu2 %v9380_v11  ;;  %v10968_v11 = vld [vmem:[#allocation2 + $0x6c] sm:$0xf]  ;;  %v10240_v28 = vor.u32 %v11211_v9, %v10239_v6  ;;  %v11238_v8 = vld [vmem:[#allocation2 + $0x8dc] sm:$0xf]  ;;  %v9428_v9 = vor.u32 %v11004_v14, %v9425_v4  ;;  %v9905_v14 = vld [vmem:[#allocation2 + $0x560] sm:$0xf0] }
 0x2d6   :  { %6469 = vmatpush.bf16.msra.mxu3 %v9572_v21  ;;  %v11016_v21 = vld [vmem:[#allocation2 + $0x1ec] sm:$0xf]  ;;  %v11522_v27 = vadd.f32 %v4468_v17, %v4456_v16 }
 0x2d7   :  { %6431 = vmatpush.bf16.msra.mxu0 %v10120_v31  ;;  %v9284_v31 = vor.u32 %v10968_v11, %v9281_v12  ;;  %v9476_v42 = vor.u32 %v11016_v21, %v9473_v25  ;;  %v9788_v11 = vor.u32 %v11094_v58, %v9785_v59  ;;  %v11088_v17 = vld [vmem:[#allocation2 + $0x42c] sm:$0xf]  ;;  %v9761_v21 = vld [vmem:[#allocation2 + $0x440] sm:$0xf0] }
 0x2d8   :  { %6444 = vmatpush.bf16.msra.mxu1 %v10312_v32  ;;  %v10023_v32 = vld [vmem:[#allocation2 + $0x638] sm:$0xf]  ;;  %v11136_v25 = vld [vmem:[#allocation2 + $0x5ac] sm:$0xf]  ;;  %v10289_v59 = vld [vmem:[#allocation2 + $0x860] sm:$0xf0] }
 0x2d9   :  { %6457 = vmatpush.bf16.msra.mxu2 %v9356_v36  ;;  %v11157_v36 = vld [vmem:[#allocation2 + $0x64c] sm:$0xf0]  ;;  %v9956_v41 = vor.u32 %v11136_v25, %v9953_v29  ;;  %v11172_v4 = vld [vmem:[#allocation2 + $0x6cc] sm:$0xf] }
 0x2da   :  { %6470 = vmatpush.bf16.msra.mxu3 %v9548_v43  ;;  %v11205_v43 = vld [vmem:[#allocation2 + $0x7cc] sm:$0xf0]  ;;  %v10024_v51 = vor.u32 %v11157_v36, %v10023_v32  ;;  %v11232_v32 = vld [vmem:[#allocation2 + $0x8ac] sm:$0xf]  ;;  %v10337_v36 = vld [vmem:[#allocation2 + $0x8c0] sm:$0xf0] }
 0x2db   :  { %6432 = vmatpush.bf16.msra.mxu0 %v10096_v19  ;;  %v9999_v19 = vld [vmem:[#allocation2 + $0x608] sm:$0xf]  ;;  %v4457_v22 = vpop.f32.mrf.mxu2  ;;  %v10340_v7 = vor.u32 %v11232_v32, %v10337_v36  ;;  %v11220_v58 = vld [vmem:[#allocation2 + $0x84c] sm:$0xf] }
 0x2dc   :  { %6445 = vmatpush.bf16.msra.mxu1 %v10288_v38  ;;  %v10216_v38 = vor.u32 %v11205_v43, %v10215_v40  ;;  %v4470_v56 = vpop.f32.mrf.mxu3  ;;  %v9764_v40 = vor.u32 %v11088_v17, %v9761_v21  ;;  %v11082_v43 = vld [vmem:[#allocation2 + $0x3fc] sm:$0xf]  ;;  %v9713_v22 = vld [vmem:[#allocation2 + $0x3e0] sm:$0xf0]  ;;  %v10265_v21 = vld [vmem:[#allocation2 + $0x830] sm:$0xf0] }
 0x2dd   :  { %6458 = vmatpush.bf16.msra.mxu2 %v9332_v57  ;;  %v9260_v57 = vor.u32 %v10962_v46, %v9257_v47  ;;  %v9737_v46 = vld [vmem:[#allocation2 + $0x410] sm:$0xf0]  ;;  %v11130_v47 = vld [vmem:[#allocation2 + $0x57c] sm:$0xf]  ;;  %v10097_v56 = vld [vmem:[#allocation2 + $0x6e0] sm:$0xf0] }
 0x2de   :  { %6471 = vmatpush.bf16.msra.mxu3 %v9524_v62  ;;  %v9233_v62 = vld [vmem:[#allocation2 + $0x20] sm:$0xf0]  ;;  %v9932_v18 = vor.u32 %v11130_v47, %v9929_v35  ;;  %v11214_v17 = vld [vmem:[#allocation2 + $0x81c] sm:$0xf]  ;;  %v11112_v32 = vld [vmem:[#allocation2 + $0x4ec] sm:$0xf] }
 0x2df   :  { %6433 = vmatpush.bf16.msra.mxu0 %v10072_v63  ;;  %v10000_v63 = vor.u32 %v11151_v15, %v9999_v19  ;;  %v9236_v6 = vor.u32 %v10956_v20, %v9233_v62  ;;  %v10121_v19 = vld [vmem:[#allocation2 + $0x710] sm:$0xf0]  ;;  %v11226_v15 = vld [vmem:[#allocation2 + $0x87c] sm:$0xf]  ;;  %v11076_v20 = vld [vmem:[#allocation2 + $0x3cc] sm:$0xf]  ;;  %v10268_v36 = vor.u32 %v11214_v17, %v10265_v21 }
 0x2e0   :  { %6446 = vmatpush.bf16.msra.mxu1 %v10264_v3  ;;  %v9977_v3 = vld [vmem:[#allocation2 + $0x5f0] sm:$0xf0]  ;;  %v10241_v47 = vld [vmem:[#allocation2 + $0x800] sm:$0xf0]  ;;  %v11002_v17 = vld [vmem:[#allocation2 + $0x174] sm:$0xf0] }
 0x2e1   :  { %6459 = vmatpush.bf16.msra.mxu2 %v9308_v37  ;;  %v11190_v37 = vld [vmem:[#allocation2 + $0x75c] sm:$0xf]  ;;  %v9980_v12 = vor.u32 %v11142_v60, %v9977_v3  ;;  %v9599_v21 = vld [vmem:[#allocation2 + $0x2e0] sm:$0xf] }
 0x2e2   :  { %6472 = vmatpush.bf16.msra.mxu3 %v9500_v24  ;;  %v10361_v24 = vld [vmem:[#allocation2 + $0x8f0] sm:$0xf0]  ;;  %v10172_v16 = vor.u32 %v11190_v37, %v10169_v5  ;;  %v10100_v5 = vor.u32 %v11172_v4, %v10097_v56  ;;  %v11202_v56 = vld [vmem:[#allocation2 + $0x7bc] sm:$0xf] }
 0x2e3   :  { %6434 = vmatpush.bf16.msra.mxu0 %v10048_v26  ;;  %v10364_v26 = vor.u32 %v11238_v8, %v10361_v24  ;;  %v11118_v8 = vld [vmem:[#allocation2 + $0x51c] sm:$0xf]  ;;  %v10025_v4 = vld [vmem:[#allocation2 + $0x650] sm:$0xf0] }
 0x2e4   :  { %6447 = vmatpush.bf16.msra.mxu1 %v10240_v28  ;;  %v11184_v28 = vld [vmem:[#allocation2 + $0x72c] sm:$0xf] }
 0x2e5   :  { %6460 = vmatpush.bf16.msra.mxu2 %v9284_v31  ;;  %v10145_v31 = vld [vmem:[#allocation2 + $0x740] sm:$0xf0] }
 0x2e6   :  { %6473 = vmatpush.bf16.msra.mxu3 %v9476_v42  ;;  %v10148_v42 = vor.u32 %v11184_v28, %v10145_v31  ;;  %v11064_v28 = vld [vmem:[#allocation2 + $0x36c] sm:$0xf]  ;;  %v9665_v31 = vld [vmem:[#allocation2 + $0x380] sm:$0xf0] }
 0x2e7   :  { %6435 = vmatpush.bf16.msra.mxu0 %v10024_v51  ;;  %v11178_v51 = vld [vmem:[#allocation2 + $0x6fc] sm:$0xf] }
 0x2e8   :  { %6448 = vmatpush.bf16.msra.mxu1 %v10216_v38  ;;  %v10313_v38 = vld [vmem:[#allocation2 + $0x890] sm:$0xf0]  ;;  %v10124_v54 = vor.u32 %v11178_v51, %v10121_v19  ;;  %v9668_v19 = vor.u32 %v11064_v28, %v9665_v31  ;;  %v9791_v28 = vld [vmem:[#allocation2 + $0x460] sm:$0xf]  ;;  %v11098_v31 = vld [vmem:[#allocation2 + $0x474] sm:$0xf0] }
 0x2e9   :  { %6461 = vmatpush.bf16.msra.mxu2 %v9260_v57  ;;  %v9740_v57 = vor.u32 %v11082_v43, %v9737_v46  ;;  %v10316_v62 = vor.u32 %v11226_v15, %v10313_v38  ;;  %v11208_v46 = vld [vmem:[#allocation2 + $0x7ec] sm:$0xf] }
 0x2ea   :  { %6474 = vmatpush.bf16.msra.mxu3 %v9452_v55  ;;  %v11124_v55 = vld [vmem:[#allocation2 + $0x54c] sm:$0xf] }
 0x2eb   :  { %6436 = vmatpush.bf16.msra.mxu0 %v10000_v63  ;;  %v6230_v60 = vpop.f32.mrf.mxu0  ;;  %v9716_v63 = vor.u32 %v11076_v20, %v9713_v22  ;;  %v9908_v37 = vor.u32 %v11124_v55, %v9905_v14  ;;  %v11106_v20 = vld [vmem:[#allocation2 + $0x4bc] sm:$0xf]  ;;  %v10244_v55 = vor.u32 %v11208_v46, %v10241_v47  ;;  %v9792_v47 = vor.u32 %v11098_v31, %v9791_v28 }
 0x2ec   :  { %6449 = vmatpush.bf16.msra.mxu1 %v10192_v10  ;;  %v6243_v3 = vpop.f32.mrf.mxu1  ;;  %v11070_v10 = vld [vmem:[#allocation2 + $0x39c] sm:$0xf] }
 0x2ed   :  { %6462 = vmatpush.bf16.msra.mxu2 %v9236_v6  ;;  %v9689_v6 = vld [vmem:[#allocation2 + $0x3b0] sm:$0xf0]  ;;  %v6244_v24 = vadd.f32 %v6243_v3, %v6230_v60  ;;  %v11154_v14 = vld [vmem:[#allocation2 + $0x63c] sm:$0xf]  ;;  %v11052_v60 = vld [vmem:[#allocation2 + $0x30c] sm:$0xf] }
 0x2ee   :  { %6475 = vmatpush.bf16.msra.mxu3 %v9428_v9  ;;  %6437 = vmatmul.bf16.vlgmr.msra.gmra.mxu0 %v11498_v48  ;;  %v10292_v9 = vor.u32 %v11220_v58, %v10289_v59  ;;  %v9692_v25 = vor.u32 %v11070_v10, %v9689_v6  ;;  %v10217_v58 = vld [vmem:[#allocation2 + $0x7d0] sm:$0xf0]  ;;  %v9809_v10 = vld [vmem:[#allocation2 + $0x4a0] sm:$0xf0]  ;;  %v11148_v6 = vld [vmem:[#allocation2 + $0x60c] sm:$0xf] }
 0x2ef   :  { %6481 = vmatpush.bf16.msrb.mxu0 %v9788_v11  ;;  %6450 = vmatmul.bf16.vlgmr.msra.gmra.mxu1 %v11500_v50  ;;  %v9881_v11 = vld [vmem:[#allocation2 + $0x530] sm:$0xf0] }
 0x2f0   :  { %6494 = vmatpush.bf16.msrb.mxu1 %v9980_v12  ;;  %6463 = vmatmul.bf16.vlgmr.msra.gmra.mxu2 %v11480_v30  ;;  %v11166_v12 = vld [vmem:[#allocation2 + $0x69c] sm:$0xf] }
 0x2f1   :  { %6507 = vmatpush.bf16.msrb.mxu2 %v10172_v16  ;;  %6476 = vmatmul.bf16.vlgmr.msra.gmra.mxu3 %v11484_v34  ;;  %v10073_v16 = vld [vmem:[#allocation2 + $0x6b0] sm:$0xf0] }
 0x2f2   :  { %6520 = vmatpush.bf16.msrb.mxu3 %v10364_v26  ;;  %v9884_v26 = vor.u32 %v11118_v8, %v9881_v11  ;;  %v10076_v29 = vor.u32 %v11166_v12, %v10073_v16  ;;  %v10220_v8 = vor.u32 %v11202_v56, %v10217_v58  ;;  %v10193_v11 = vld [vmem:[#allocation2 + $0x7a0] sm:$0xf0]  ;;  %v9407_v16 = vld [vmem:[#allocation2 + $0x160] sm:$0xf] }
 0x2f3   :  { %6482 = vmatpush.bf16.msrb.mxu0 %v9764_v40  ;;  %v9857_v40 = vld [vmem:[#allocation2 + $0x500] sm:$0xf0]  ;;  %v6256_v43 = vpop.f32.mrf.mxu2  ;;  %v6232_v35 = vpop.f32.mrf.mxu0  ;;  %v9551_v56 = vld [vmem:[#allocation2 + $0x280] sm:$0xf] }
 0x2f4   :  { %6495 = vmatpush.bf16.msrb.mxu1 %v9956_v41  ;;  %v11160_v41 = vld [vmem:[#allocation2 + $0x66c] sm:$0xf]  ;;  %v6269_v51 = vpop.f32.mrf.mxu3  ;;  %v6245_v15 = vpop.f32.mrf.mxu1  ;;  %v9860_v38 = vor.u32 %v11112_v32, %v9857_v40  ;;  %v9983_v40 = vld [vmem:[#allocation2 + $0x5e0] sm:$0xf]  ;;  %v10996_v35 = vld [vmem:[#allocation2 + $0x144] sm:$0xf0] }
 0x2f5   :  { %6508 = vmatpush.bf16.msrb.mxu2 %v10148_v42  ;;  %v10049_v42 = vld [vmem:[#allocation2 + $0x680] sm:$0xf0]  ;;  %v11044_v15 = vld [vmem:[#allocation2 + $0x2c4] sm:$0xf0] }
 0x2f6   :  { %6521 = vmatpush.bf16.msrb.mxu3 %v10340_v7  ;;  %v6257_v7 = vadd.f32 %v6256_v43, %v6244_v24  ;;  %v10001_v24 = vld [vmem:[#allocation2 + $0x620] sm:$0xf0]  ;;  %v9408_v43 = vor.u32 %v11002_v17, %v9407_v16  ;;  %v9719_v16 = vld [vmem:[#allocation2 + $0x3d0] sm:$0xf]  ;;  %v11080_v17 = vld [vmem:[#allocation2 + $0x3e4] sm:$0xf0] }
 0x2f7   :  { %6483 = vmatpush.bf16.msrb.mxu0 %v9740_v57  ;;  %v10052_v57 = vor.u32 %v11160_v41, %v10049_v42  ;;  %v11146_v41 = vld [vmem:[#allocation2 + $0x5f4] sm:$0xf0] }
 0x2f8   :  { %6496 = vmatpush.bf16.msrb.mxu1 %v9932_v18  ;;  %v11058_v18 = vld [vmem:[#allocation2 + $0x33c] sm:$0xf]  ;;  %v11528_v22 = vadd.f32 %v6269_v51, %v6257_v7  ;;  %v9383_v7 = vld [vmem:[#allocation2 + $0x130] sm:$0xf] }
 0x2f9   :  { %6509 = vmatpush.bf16.msrb.mxu2 %v10124_v54  ;;  %v9641_v54 = vld [vmem:[#allocation2 + $0x350] sm:$0xf0]  ;;  %v9575_v51 = vld [vmem:[#allocation2 + $0x2b0] sm:$0xf] }
 0x2fa   :  { %6522 = vmatpush.bf16.msrb.mxu3 %v10316_v62  ;;  %v9833_v62 = vld [vmem:[#allocation2 + $0x4d0] sm:$0xf0]  ;;  %v9644_v59 = vor.u32 %v11058_v18, %v9641_v54  ;;  %v9959_v18 = vld [vmem:[#allocation2 + $0x5b0] sm:$0xf]  ;;  %v11140_v54 = vld [vmem:[#allocation2 + $0x5c4] sm:$0xf0] }
 0x2fb   :  { %6484 = vmatpush.bf16.msrb.mxu0 %v9716_v63  ;;  %v9617_v63 = vld [vmem:[#allocation2 + $0x320] sm:$0xf0]  ;;  %v9836_v3 = vor.u32 %v11106_v20, %v9833_v62  ;;  %v6258_v12 = vpop.f32.mrf.mxu2  ;;  %v9384_v20 = vor.u32 %v10996_v35, %v9383_v7  ;;  %v9960_v58 = vor.u32 %v11140_v54, %v9959_v18  ;;  %v11074_v7 = vld [vmem:[#allocation2 + $0x3b4] sm:$0xf0]  ;;  %v10972_v18 = vld [vmem:[#allocation2 + $0x84] sm:$0xf0] }
 0x2fc   :  { %6497 = vmatpush.bf16.msrb.mxu1 %v9908_v37  ;;  %v10028_v37 = vor.u32 %v11154_v14, %v10025_v4  ;;  %v9359_v14 = vld [vmem:[#allocation2 + $0x100] sm:$0xf]  ;;  %v10990_v4 = vld [vmem:[#allocation2 + $0x114] sm:$0xf0]  ;;  %v11032_v12 = vld [vmem:[#allocation2 + $0x264] sm:$0xf0] }
 0x2fd   :  { %6510 = vmatpush.bf16.msrb.mxu2 %v10100_v5  ;;  %v11100_v5 = vld [vmem:[#allocation2 + $0x48c] sm:$0xf]  ;;  %v9479_v54 = vld [vmem:[#allocation2 + $0x1f0] sm:$0xf] }
 0x2fe   :  { %6523 = vmatpush.bf16.msrb.mxu3 %v10292_v9  ;;  %v11196_v9 = vld [vmem:[#allocation2 + $0x78c] sm:$0xf]  ;;  %v9812_v32 = vor.u32 %v11100_v5, %v9809_v10  ;;  %v9360_v5 = vor.u32 %v10990_v4, %v9359_v14  ;;  %v11068_v14 = vld [vmem:[#allocation2 + $0x384] sm:$0xf0] }
 0x2ff   :  { %6485 = vmatpush.bf16.msrb.mxu0 %v9692_v25  ;;  %v6271_v25 = vpop.f32.mrf.mxu3  ;;  %v10196_v42 = vor.u32 %v11196_v9, %v10193_v11  ;;  %v9527_v9 = vld [vmem:[#allocation2 + $0x250] sm:$0xf] }
 0x300   :  { %6498 = vmatpush.bf16.msrb.mxu1 %v9884_v26  ;;  %v9620_v26 = vor.u32 %v11052_v60, %v9617_v63  ;;  %v9743_v60 = vld [vmem:[#allocation2 + $0x400] sm:$0xf]  ;;  %v11086_v63 = vld [vmem:[#allocation2 + $0x414] sm:$0xf0]  ;;  %v11128_v25 = vld [vmem:[#allocation2 + $0x564] sm:$0xf0] }
 0x301   :  { %6511 = vmatpush.bf16.msrb.mxu2 %v10076_v29  ;;  %v11050_v29 = vld [vmem:[#allocation2 + $0x2f4] sm:$0xf0] }
 0x302   :  { %6524 = vmatpush.bf16.msrb.mxu3 %v10268_v36  ;;  %v10004_v36 = vor.u32 %v11148_v6, %v10001_v24  ;;  %v9600_v46 = vor.u32 %v11050_v29, %v9599_v21  ;;  %v9744_v6 = vor.u32 %v11086_v63, %v9743_v60  ;;  %v10984_v24 = vld [vmem:[#allocation2 + $0xe4] sm:$0xf0]  ;;  %v9911_v21 = vld [vmem:[#allocation2 + $0x550] sm:$0xf] }
 0x303   :  { %6486 = vmatpush.bf16.msrb.mxu0 %v9668_v19  ;;  %v9984_v19 = vor.u32 %v11146_v41, %v9983_v40  ;;  %v9311_v40 = vld [vmem:[#allocation2 + $0xa0] sm:$0xf]  ;;  %v10978_v41 = vld [vmem:[#allocation2 + $0xb4] sm:$0xf0] }
 0x304   :  { %6499 = vmatpush.bf16.msrb.mxu1 %v9860_v38  ;;  %v9767_v38 = vld [vmem:[#allocation2 + $0x430] sm:$0xf] }
 0x305   :  { %6512 = vmatpush.bf16.msrb.mxu2 %v10052_v57  ;;  %v11092_v57 = vld [vmem:[#allocation2 + $0x444] sm:$0xf0] }
 0x306   :  { %6525 = vmatpush.bf16.msrb.mxu3 %v10244_v55  ;;  %v9576_v55 = vor.u32 %v11044_v15, %v9575_v51  ;;  %v9768_v62 = vor.u32 %v11092_v57, %v9767_v38  ;;  %v9887_v51 = vld [vmem:[#allocation2 + $0x520] sm:$0xf]  ;;  %v9312_v15 = vor.u32 %v10978_v41, %v9311_v40  ;;  %v9287_v57 = vld [vmem:[#allocation2 + $0x70] sm:$0xf] }
 0x307   :  { %6487 = vmatpush.bf16.msrb.mxu0 %v9644_v59  ;;  %v11038_v59 = vld [vmem:[#allocation2 + $0x294] sm:$0xf0]  ;;  %v9288_v63 = vor.u32 %v10972_v18, %v9287_v57  ;;  %v9623_v40 = vld [vmem:[#allocation2 + $0x310] sm:$0xf]  ;;  %v10999_v57 = vld [vmem:[#allocation2 + $0x164] sm:$0xf] }
 0x308   :  { %6500 = vmatpush.bf16.msrb.mxu1 %v9836_v3  ;;  %v9935_v3 = vld [vmem:[#allocation2 + $0x580] sm:$0xf]  ;;  %v9552_v10 = vor.u32 %v11038_v59, %v9551_v56  ;;  %v9863_v56 = vld [vmem:[#allocation2 + $0x4f0] sm:$0xf]  ;;  %v9409_v18 = vld [vmem:[#allocation2 + $0x178] sm:$0xf0] }
 0x309   :  { %6513 = vmatpush.bf16.msrb.mxu2 %v10028_v37  ;;  %v11134_v37 = vld [vmem:[#allocation2 + $0x594] sm:$0xf0] }
 0x30a   :  { %6526 = vmatpush.bf16.msrb.mxu3 %v10220_v8  ;;  %v9335_v8 = vld [vmem:[#allocation2 + $0xd0] sm:$0xf]  ;;  %v9936_v11 = vor.u32 %v11134_v37, %v9935_v3 }
 0x30b   :  { %6488 = vmatpush.bf16.msrb.mxu0 %v9620_v26  ;;  %v6282_v26 = vpop.f32.mrf.mxu0  ;;  %v9336_v29 = vor.u32 %v10984_v24, %v9335_v8  ;;  %v10966_v8 = vld [vmem:[#allocation2 + $0x54] sm:$0xf0]  ;;  %v9455_v24 = vld [vmem:[#allocation2 + $0x1c0] sm:$0xf] }
 0x30c   :  { %6501 = vmatpush.bf16.msrb.mxu1 %v9812_v32  ;;  %v6283_v28 = vadd.f32 %v6282_v26, %v11528_v22  ;;  %v6295_v31 = vpop.f32.mrf.mxu1  ;;  %v9528_v32 = vor.u32 %v11032_v12, %v9527_v9  ;;  %v9647_v12 = vld [vmem:[#allocation2 + $0x340] sm:$0xf]  ;;  %v9239_v26 = vld [vmem:[#allocation2 + $0x10] sm:$0xf] }
 0x30d   :  { %6514 = vmatpush.bf16.msrb.mxu2 %v10004_v36  ;;  %v9720_v36 = vor.u32 %v11080_v17, %v9719_v16  ;;  %v11062_v16 = vld [vmem:[#allocation2 + $0x354] sm:$0xf0]  ;;  %v9839_v17 = vld [vmem:[#allocation2 + $0x4c0] sm:$0xf] }
 0x30e   :  { %6527 = vmatpush.bf16.msrb.mxu3 %v10196_v42  ;;  %6489 = vmatmul.bf16.vlgmr.msrb.gmra.mxu0 %v11482_v33  ;;  %v9503_v42 = vld [vmem:[#allocation2 + $0x220] sm:$0xf]  ;;  %v11535_v35 = vadd.f32 %v6295_v31, %v6283_v28  ;;  %v9648_v31 = vor.u32 %v11062_v16, %v9647_v12 }
 0x30f   :  { %6533 = vmatpush.bf16.msra.mxu0 %v9408_v43  ;;  %6502 = vmatmul.bf16.vlgmr.msrb.gmra.mxu1 %v11486_v39  ;;  %v9912_v43 = vor.u32 %v11128_v25, %v9911_v21  ;;  %v11110_v21 = vld [vmem:[#allocation2 + $0x4d4] sm:$0xf0]  ;;  %v10127_v16 = vld [vmem:[#allocation2 + $0x700] sm:$0xf] }
 0x310   :  { %6546 = vmatpush.bf16.msra.mxu1 %v9600_v46  ;;  %6515 = vmatmul.bf16.vlgmr.msrb.gmra.mxu2 %v11498_v48  ;;  %v11026_v46 = vld [vmem:[#allocation2 + $0x234] sm:$0xf0]  ;;  %v9840_v41 = vor.u32 %v11110_v21, %v9839_v17  ;;  %v10319_v21 = vld [vmem:[#allocation2 + $0x880] sm:$0xf] }
 0x311   :  { %6559 = vmatpush.bf16.msra.mxu2 %v9792_v47  ;;  %6528 = vmatmul.bf16.vlgmr.msrb.gmra.mxu3 %v11500_v50  ;;  %v9695_v47 = vld [vmem:[#allocation2 + $0x3a0] sm:$0xf]  ;;  %v9504_v22 = vor.u32 %v11026_v46, %v9503_v42  ;;  %v11056_v42 = vld [vmem:[#allocation2 + $0x324] sm:$0xf0]  ;;  %v11182_v17 = vld [vmem:[#allocation2 + $0x714] sm:$0xf0] }
 0x312   :  { %6572 = vmatpush.bf16.msra.mxu3 %v9984_v19  ;;  %v11122_v19 = vld [vmem:[#allocation2 + $0x534] sm:$0xf0]  ;;  %v9696_v38 = vor.u32 %v11074_v7, %v9695_v47  ;;  %v11104_v46 = vld [vmem:[#allocation2 + $0x4a4] sm:$0xf0]  ;;  %v10175_v7 = vld [vmem:[#allocation2 + $0x760] sm:$0xf] }
 0x313   :  { %6534 = vmatpush.bf16.msra.mxu0 %v9384_v20  ;;  %v9888_v20 = vor.u32 %v11122_v19, %v9887_v51  ;;  %v6308_v4 = vpop.f32.mrf.mxu2  ;;  %v6284_v60 = vpop.f32.mrf.mxu0  ;;  %v11194_v51 = vld [vmem:[#allocation2 + $0x774] sm:$0xf0]  ;;  %v10367_v19 = vld [vmem:[#allocation2 + $0x8e0] sm:$0xf] }
 0x314   :  { %6547 = vmatpush.bf16.msra.mxu1 %v9576_v55  ;;  %v11020_v55 = vld [vmem:[#allocation2 + $0x204] sm:$0xf0]  ;;  %v6321_v59 = vpop.f32.mrf.mxu3  ;;  %v6297_v37 = vpop.f32.mrf.mxu1 }
 0x315   :  { %6560 = vmatpush.bf16.msra.mxu2 %v9768_v62  ;;  %v9671_v62 = vld [vmem:[#allocation2 + $0x370] sm:$0xf]  ;;  %v11537_v3 = vadd.f32 %v6321_v59, %v6308_v4  ;;  %v10176_v4 = vor.u32 %v11194_v51, %v10175_v7  ;;  %v11188_v60 = vld [vmem:[#allocation2 + $0x744] sm:$0xf0]  ;;  %v10981_v51 = vld [vmem:[#allocation2 + $0xd4] sm:$0xf] }
 0x316   :  { %6573 = vmatpush.bf16.msra.mxu3 %v9960_v58  ;;  %v11116_v58 = vld [vmem:[#allocation2 + $0x504] sm:$0xf0]  ;;  %v10151_v59 = vld [vmem:[#allocation2 + $0x730] sm:$0xf] }
 0x317   :  { %6535 = vmatpush.bf16.msra.mxu0 %v9360_v5  ;;  %v9480_v5 = vor.u32 %v11020_v55, %v9479_v54  ;;  %v9864_v9 = vor.u32 %v11116_v58, %v9863_v56  ;;  %v11047_v55 = vld [vmem:[#allocation2 + $0x2e4] sm:$0xf]  ;;  %v9412_v58 = vor.u32 %v10999_v57, %v9409_v18  ;;  %v11224_v7 = vld [vmem:[#allocation2 + $0x864] sm:$0xf0] }
 0x318   :  { %6548 = vmatpush.bf16.msra.mxu1 %v9552_v10  ;;  %v9672_v10 = vor.u32 %v11068_v14, %v9671_v62  ;;  %v9601_v62 = vld [vmem:[#allocation2 + $0x2f8] sm:$0xf0] }
 0x319   :  { %6561 = vmatpush.bf16.msra.mxu2 %v9744_v6  ;;  %v9263_v6 = vld [vmem:[#allocation2 + $0x40] sm:$0xf]  ;;  %v9604_v37 = vor.u32 %v11047_v55, %v9601_v62  ;;  %v11170_v55 = vld [vmem:[#allocation2 + $0x6b4] sm:$0xf0] }
 0x31a   :  { %6574 = vmatpush.bf16.msra.mxu3 %v9936_v11  ;;  %v11014_v11 = vld [vmem:[#allocation2 + $0x1d4] sm:$0xf0]  ;;  %v9264_v25 = vor.u32 %v10966_v8, %v9263_v6  ;;  %v9385_v6 = vld [vmem:[#allocation2 + $0x148] sm:$0xf0]  ;;  %v11041_v8 = vld [vmem:[#allocation2 + $0x2b4] sm:$0xf] }
 0x31b   :  { %6536 = vmatpush.bf16.msra.mxu0 %v9336_v29  ;;  %v10960_v29 = vld [vmem:[#allocation2 + $0x24] sm:$0xf0]  ;;  %v9456_v28 = vor.u32 %v11014_v11, %v9455_v24  ;;  %v6310_v47 = vpop.f32.mrf.mxu2  ;;  %v9577_v24 = vld [vmem:[#allocation2 + $0x2c8] sm:$0xf0]  ;;  %v10271_v62 = vld [vmem:[#allocation2 + $0x820] sm:$0xf] }
 0x31c   :  { %6549 = vmatpush.bf16.msra.mxu1 %v9528_v32  ;;  %v9431_v32 = vld [vmem:[#allocation2 + $0x190] sm:$0xf] }
 0x31d   :  { %6562 = vmatpush.bf16.msra.mxu2 %v9720_v36  ;;  %v11008_v36 = vld [vmem:[#allocation2 + $0x1a4] sm:$0xf0] }
 0x31e   :  { %6575 = vmatpush.bf16.msra.mxu3 %v9912_v43  ;;  %v9815_v43 = vld [vmem:[#allocation2 + $0x490] sm:$0xf]  ;;  %v9432_v54 = vor.u32 %v11008_v36, %v9431_v32  ;;  %v9553_v32 = vld [vmem:[#allocation2 + $0x298] sm:$0xf0]  ;;  %v10128_v36 = vor.u32 %v11182_v17, %v10127_v16  ;;  %v10969_v16 = vld [vmem:[#allocation2 + $0x74] sm:$0xf] }
 0x31f   :  { %6537 = vmatpush.bf16.msra.mxu0 %v9312_v15  ;;  %v6323_v15 = vpop.f32.mrf.mxu3  ;;  %v9816_v14 = vor.u32 %v11104_v46, %v9815_v43  ;;  %v11176_v43 = vld [vmem:[#allocation2 + $0x6e4] sm:$0xf0]  ;;  %v10295_v46 = vld [vmem:[#allocation2 + $0x850] sm:$0xf]  ;;  %v9289_v17 = vld [vmem:[#allocation2 + $0x88] sm:$0xf0] }
 0x320   :  { %6550 = vmatpush.bf16.msra.mxu1 %v9504_v22  ;;  %v9240_v22 = vor.u32 %v10960_v29, %v9239_v26  ;;  %v11230_v26 = vld [vmem:[#allocation2 + $0x894] sm:$0xf0]  ;;  %v10987_v29 = vld [vmem:[#allocation2 + $0x104] sm:$0xf]  ;;  %v11029_v15 = vld [vmem:[#allocation2 + $0x254] sm:$0xf]  ;;  %v10296_v18 = vor.u32 %v11224_v7, %v10295_v46 }
 0x321   :  { %6563 = vmatpush.bf16.msra.mxu2 %v9696_v38  ;;  %v11242_v38 = vld [vmem:[#allocation2 + $0x8f4] sm:$0xf0]  ;;  %v9265_v7 = vld [vmem:[#allocation2 + $0x58] sm:$0xf0] }
 0x322   :  { %6576 = vmatpush.bf16.msra.mxu3 %v9888_v20  ;;  %v9624_v20 = vor.u32 %v11056_v42, %v9623_v40  ;;  %v10368_v56 = vor.u32 %v11242_v38, %v10367_v19  ;;  %v10320_v40 = vor.u32 %v11230_v26, %v10319_v21  ;;  %v10103_v42 = vld [vmem:[#allocation2 + $0x6d0] sm:$0xf]  ;;  %v9337_v19 = vld [vmem:[#allocation2 + $0xe8] sm:$0xf0]  ;;  %v11206_v46 = vld [vmem:[#allocation2 + $0x7d4] sm:$0xf0] }
 0x323   :  { %6538 = vmatpush.bf16.msra.mxu0 %v9288_v63  ;;  %v10343_v63 = vld [vmem:[#allocation2 + $0x8b0] sm:$0xf]  ;;  %v10104_v38 = vor.u32 %v11176_v43, %v10103_v42  ;;  %v9481_v26 = vld [vmem:[#allocation2 + $0x208] sm:$0xf0] }
 0x324   :  { %6551 = vmatpush.bf16.msra.mxu1 %v9480_v5  ;;  %v11236_v5 = vld [vmem:[#allocation2 + $0x8c4] sm:$0xf0] }
 0x325   :  { %6564 = vmatpush.bf16.msra.mxu2 %v9672_v10  ;;  %v10993_v10 = vld [vmem:[#allocation2 + $0x134] sm:$0xf]  ;;  %v10344_v11 = vor.u32 %v11236_v5, %v10343_v63  ;;  %v9505_v63 = vld [vmem:[#allocation2 + $0x238] sm:$0xf0] }
 0x326   :  { %6577 = vmatpush.bf16.msra.mxu3 %v9864_v9  ;;  %v10152_v9 = vor.u32 %v11188_v60, %v10151_v59  ;;  %v9388_v12 = vor.u32 %v10993_v10, %v9385_v6  ;;  %v9313_v59 = vld [vmem:[#allocation2 + $0xb8] sm:$0xf0]  ;;  %v11023_v60 = vld [vmem:[#allocation2 + $0x224] sm:$0xf]  ;;  %v10055_v6 = vld [vmem:[#allocation2 + $0x670] sm:$0xf] }
 0x327   :  { %6539 = vmatpush.bf16.msra.mxu0 %v9264_v25  ;;  %v9580_v25 = vor.u32 %v11041_v8, %v9577_v24  ;;  %v11164_v8 = vld [vmem:[#allocation2 + $0x684] sm:$0xf0]  ;;  %v10247_v24 = vld [vmem:[#allocation2 + $0x7f0] sm:$0xf] }
 0x328   :  { %6552 = vmatpush.bf16.msra.mxu1 %v9456_v28  ;;  %v9361_v28 = vld [vmem:[#allocation2 + $0x118] sm:$0xf0] }
 0x329   :  { %6565 = vmatpush.bf16.msra.mxu2 %v9648_v31  ;;  %v11035_v31 = vld [vmem:[#allocation2 + $0x284] sm:$0xf] }
 0x32a   :  { %6578 = vmatpush.bf16.msra.mxu3 %v9840_v41  ;;  %v9364_v41 = vor.u32 %v10987_v29, %v9361_v28  ;;  %v9556_v47 = vor.u32 %v11035_v31, %v9553_v32  ;;  %v10056_v29 = vor.u32 %v11164_v8, %v10055_v6  ;;  %v9292_v32 = vor.u32 %v10969_v16, %v9289_v17  ;;  %v9985_v8 = vld [vmem:[#allocation2 + $0x5f8] sm:$0xf0]  ;;  %v11239_v17 = vld [vmem:[#allocation2 + $0x8e4] sm:$0xf] }
 0x32b   :  { %6540 = vmatpush.bf16.msra.mxu0 %v9240_v22  ;;  %v9529_v22 = vld [vmem:[#allocation2 + $0x268] sm:$0xf0]  ;;  %v11543_v57 = vpop.f32.mrf.mxu0 }
 0x32c   :  { %6553 = vmatpush.bf16.msra.mxu1 %v9432_v54  ;;  %v9340_v54 = vor.u32 %v10981_v51, %v9337_v19  ;;  %v11011_v51 = vld [vmem:[#allocation2 + $0x1c4] sm:$0xf]  ;;  %v9457_v19 = vld [vmem:[#allocation2 + $0x1d8] sm:$0xf0] }
 0x32d   :  { %6566 = vmatpush.bf16.msra.mxu2 %v9624_v20  ;;  %v10079_v20 = vld [vmem:[#allocation2 + $0x6a0] sm:$0xf] }
 0x32e   :  { %6579 = vmatpush.bf16.msra.mxu3 %v9816_v14  ;;  %6541 = vmatmul.bf16.vlgmr.msra.gmra.mxu0 %v11480_v30  ;;  %v11545_v14 = vpop.f32.mrf.mxu1 }
 0x32f   :  { %6585 = vmatpush.bf16.msrb.mxu0 %v10176_v4  ;;  %6554 = vmatmul.bf16.vlgmr.msra.gmra.mxu1 %v11484_v34  ;;  %v9532_v4 = vor.u32 %v11029_v15, %v9529_v22  ;;  %v10007_v22 = vld [vmem:[#allocation2 + $0x610] sm:$0xf] }
 0x330   :  { %6598 = vmatpush.bf16.msrb.mxu1 %v10368_v56  ;;  %6567 = vmatmul.bf16.vlgmr.msra.gmra.mxu2 %v11482_v33  ;;  %v11218_v56 = vld [vmem:[#allocation2 + $0x834] sm:$0xf0] }
 0x331   :  { %6611 = vmatpush.bf16.msrb.mxu2 %v9412_v58  ;;  %6580 = vmatmul.bf16.vlgmr.msra.gmra.mxu3 %v11486_v39  ;;  %v10975_v58 = vld [vmem:[#allocation2 + $0xa4] sm:$0xf]  ;;  %v10272_v5 = vor.u32 %v11218_v56, %v10271_v62  ;;  %v10957_v62 = vld [vmem:[#allocation2 + $0x14] sm:$0xf]  ;;  %v9460_v56 = vor.u32 %v11011_v51, %v9457_v19 }
 0x332   :  { %6624 = vmatpush.bf16.msrb.mxu3 %v9604_v37  ;;  %v10080_v37 = vor.u32 %v11170_v55, %v10079_v20  ;;  %v9316_v10 = vor.u32 %v10975_v58, %v9313_v59  ;;  %v10199_v20 = vld [vmem:[#allocation2 + $0x790] sm:$0xf]  ;;  %v11200_v55 = vld [vmem:[#allocation2 + $0x7a4] sm:$0xf0]  ;;  %v9241_v58 = vld [vmem:[#allocation2 + $0x28] sm:$0xf0] }
 0x333   :  { %6586 = vmatpush.bf16.msrb.mxu0 %v10152_v9  ;;  %v11547_v9 = vpop.f32.mrf.mxu2  ;;  %v6336_v28 = vpop.f32.mrf.mxu0  ;;  %v11005_v59 = vld [vmem:[#allocation2 + $0x194] sm:$0xf]  ;;  %v9244_v16 = vor.u32 %v10957_v62, %v9241_v58  ;;  %v10129_v62 = vld [vmem:[#allocation2 + $0x718] sm:$0xf0] }
 0x334   :  { %6599 = vmatpush.bf16.msrb.mxu1 %v10344_v11  ;;  %v9508_v11 = vor.u32 %v11023_v60, %v9505_v63  ;;  %v11549_v21 = vpop.f32.mrf.mxu3  ;;  %v9433_v60 = vld [vmem:[#allocation2 + $0x1a8] sm:$0xf0] }
 0x335   :  { %6612 = vmatpush.bf16.msrb.mxu2 %v9388_v12  ;;  %v11212_v12 = vld [vmem:[#allocation2 + $0x804] sm:$0xf0] }
 0x336   :  { %6625 = vmatpush.bf16.msrb.mxu3 %v9580_v25  ;;  %v11017_v25 = vld [vmem:[#allocation2 + $0x1f4] sm:$0xf]  ;;  %v10248_v31 = vor.u32 %v11212_v12, %v10247_v24  ;;  %v6349_v42 = vpop.f32.mrf.mxu1  ;;  %v11191_v24 = vld [vmem:[#allocation2 + $0x764] sm:$0xf]  ;;  %v10200_v12 = vor.u32 %v11200_v55, %v10199_v20  ;;  %v9937_v20 = vld [vmem:[#allocation2 + $0x598] sm:$0xf0] }
 0x337   :  { %6587 = vmatpush.bf16.msrb.mxu0 %v10128_v36  ;;  %v10031_v36 = vld [vmem:[#allocation2 + $0x640] sm:$0xf]  ;;  %v9484_v43 = vor.u32 %v11017_v25, %v9481_v26  ;;  %v10369_v25 = vld [vmem:[#allocation2 + $0x8f8] sm:$0xf0]  ;;  %v9436_v26 = vor.u32 %v11005_v59, %v9433_v60  ;;  %v9961_v42 = vld [vmem:[#allocation2 + $0x5c8] sm:$0xf0] }
 0x338   :  { %6600 = vmatpush.bf16.msrb.mxu1 %v10320_v40  ;;  %v11158_v40 = vld [vmem:[#allocation2 + $0x654] sm:$0xf0]  ;;  %v11179_v55 = vld [vmem:[#allocation2 + $0x704] sm:$0xf] }
 0x339   :  { %6613 = vmatpush.bf16.msrb.mxu2 %v9364_v41  ;;  %v10223_v41 = vld [vmem:[#allocation2 + $0x7c0] sm:$0xf]  ;;  %v10032_v15 = vor.u32 %v11158_v40, %v10031_v36  ;;  %v9769_v36 = vld [vmem:[#allocation2 + $0x448] sm:$0xf0]  ;;  %v11137_v40 = vld [vmem:[#allocation2 + $0x5b4] sm:$0xf]  ;;  %v10132_v60 = vor.u32 %v11179_v55, %v10129_v62 }
 0x33a   :  { %6626 = vmatpush.bf16.msrb.mxu3 %v9556_v47  ;;  %v10963_v47 = vld [vmem:[#allocation2 + $0x44] sm:$0xf]  ;;  %v9964_v19 = vor.u32 %v11137_v40, %v9961_v42  ;;  %v10081_v40 = vld [vmem:[#allocation2 + $0x6b8] sm:$0xf0]  ;;  %v10249_v55 = vld [vmem:[#allocation2 + $0x808] sm:$0xf0] }
 0x33b   :  { %6588 = vmatpush.bf16.msrb.mxu0 %v10104_v38  ;;  %v11152_v38 = vld [vmem:[#allocation2 + $0x624] sm:$0xf0]  ;;  %v10273_v42 = vld [vmem:[#allocation2 + $0x838] sm:$0xf0] }
 0x33c   :  { %6601 = vmatpush.bf16.msrb.mxu1 %v10296_v18  ;;  %v10224_v18 = vor.u32 %v11206_v46, %v10223_v41  ;;  %v6375_v63 = vpop.f32.mrf.mxu3  ;;  %v10008_v6 = vor.u32 %v11152_v38, %v10007_v22  ;;  %v10372_v41 = vor.u32 %v11239_v17, %v10369_v25  ;;  %v10153_v46 = vld [vmem:[#allocation2 + $0x748] sm:$0xf0]  ;;  %v11083_v22 = vld [vmem:[#allocation2 + $0x404] sm:$0xf]  ;;  %v9745_v38 = vld [vmem:[#allocation2 + $0x418] sm:$0xf0] }
 0x33d   :  { %6614 = vmatpush.bf16.msrb.mxu2 %v9340_v54  ;;  %v9268_v54 = vor.u32 %v10963_v47, %v9265_v7  ;;  %v11233_v47 = vld [vmem:[#allocation2 + $0x8b4] sm:$0xf]  ;;  %v10345_v7 = vld [vmem:[#allocation2 + $0x8c8] sm:$0xf0]  ;;  %v9748_v58 = vor.u32 %v11083_v22, %v9745_v38 }
 0x33e   :  { %6627 = vmatpush.bf16.msrb.mxu3 %v9532_v4  ;;  %v6362_v4 = vpop.f32.mrf.mxu2  ;;  %v11077_v63 = vld [vmem:[#allocation2 + $0x3d4] sm:$0xf]  ;;  %v9865_v22 = vld [vmem:[#allocation2 + $0x508] sm:$0xf0] }
 0x33f   :  { %6589 = vmatpush.bf16.msrb.mxu0 %v10080_v37  ;;  %v11095_v37 = vld [vmem:[#allocation2 + $0x464] sm:$0xf]  ;;  %v11161_v38 = vld [vmem:[#allocation2 + $0x674] sm:$0xf] }
 0x340   :  { %6602 = vmatpush.bf16.msrb.mxu1 %v10272_v5  ;;  %v9793_v5 = vld [vmem:[#allocation2 + $0x478] sm:$0xf0]  ;;  %v11227_v4 = vld [vmem:[#allocation2 + $0x884] sm:$0xf] }
 0x341   :  { %6615 = vmatpush.bf16.msrb.mxu2 %v9316_v10  ;;  %v11143_v10 = vld [vmem:[#allocation2 + $0x5e4] sm:$0xf] }
 0x342   :  { %6628 = vmatpush.bf16.msrb.mxu3 %v9508_v11  ;;  %v10177_v11 = vld [vmem:[#allocation2 + $0x778] sm:$0xf0]  ;;  %v9988_v28 = vor.u32 %v11143_v10, %v9985_v8  ;;  %v11173_v8 = vld [vmem:[#allocation2 + $0x6d4] sm:$0xf] }
 0x343   :  { %6590 = vmatpush.bf16.msrb.mxu0 %v10056_v29  ;;  %v9796_v29 = vor.u32 %v11095_v37, %v9793_v5  ;;  %v9721_v37 = vld [vmem:[#allocation2 + $0x3e8] sm:$0xf0]  ;;  %v11125_v5 = vld [vmem:[#allocation2 + $0x554] sm:$0xf] }
 0x344   :  { %6603 = vmatpush.bf16.msrb.mxu1 %v10248_v31  ;;  %v10180_v31 = vor.u32 %v11191_v24, %v10177_v11  ;;  %v10105_v24 = vld [vmem:[#allocation2 + $0x6e8] sm:$0xf0]  ;;  %v11221_v11 = vld [vmem:[#allocation2 + $0x854] sm:$0xf] }
 0x345   :  { %6616 = vmatpush.bf16.msrb.mxu2 %v9292_v32  ;;  %v11089_v32 = vld [vmem:[#allocation2 + $0x434] sm:$0xf]  ;;  %v10108_v25 = vor.u32 %v11173_v8, %v10105_v24  ;;  %v11155_v8 = vld [vmem:[#allocation2 + $0x644] sm:$0xf]  ;;  %v10033_v24 = vld [vmem:[#allocation2 + $0x658] sm:$0xf0] }
 0x346   :  { %6629 = vmatpush.bf16.msrb.mxu3 %v9484_v43  ;;  %v11185_v43 = vld [vmem:[#allocation2 + $0x734] sm:$0xf]  ;;  %v9772_v51 = vor.u32 %v11089_v32, %v9769_v36  ;;  %v9889_v32 = vld [vmem:[#allocation2 + $0x538] sm:$0xf0]  ;;  %v11167_v36 = vld [vmem:[#allocation2 + $0x6a4] sm:$0xf] }
 0x347   :  { %6591 = vmatpush.bf16.msrb.mxu0 %v10032_v15  ;;  %v10156_v15 = vor.u32 %v11185_v43, %v10153_v46 }
 0x348   :  { %6604 = vmatpush.bf16.msrb.mxu1 %v10224_v18  ;;  %v11131_v18 = vld [vmem:[#allocation2 + $0x584] sm:$0xf] }
 0x349   :  { %6617 = vmatpush.bf16.msrb.mxu2 %v9268_v54  ;;  %v10348_v54 = vor.u32 %v11233_v47, %v10345_v7  ;;  %v9940_v59 = vor.u32 %v11131_v18, %v9937_v20  ;;  %v10084_v47 = vor.u32 %v11167_v36, %v10081_v40  ;;  %v11065_v7 = vld [vmem:[#allocation2 + $0x374] sm:$0xf]  ;;  %v10057_v18 = vld [vmem:[#allocation2 + $0x688] sm:$0xf0] }
 0x34a   :  { %6630 = vmatpush.bf16.msrb.mxu3 %v9460_v56  ;;  %v10321_v56 = vld [vmem:[#allocation2 + $0x898] sm:$0xf0]  ;;  %v11209_v20 = vld [vmem:[#allocation2 + $0x7f4] sm:$0xf]  ;;  %v10009_v40 = vld [vmem:[#allocation2 + $0x628] sm:$0xf0] }
 0x34b   :  { %6592 = vmatpush.bf16.msrb.mxu0 %v10008_v6  ;;  %v10324_v10 = vor.u32 %v11227_v4, %v10321_v56  ;;  %v9913_v6 = vld [vmem:[#allocation2 + $0x568] sm:$0xf0]  ;;  %v11149_v36 = vld [vmem:[#allocation2 + $0x614] sm:$0xf] }
 0x34c   :  { %6605 = vmatpush.bf16.msrb.mxu1 %v10200_v12  ;;  %v11555_v12 = vpop.f32.mrf.mxu0  ;;  %v11557_v17 = vpop.f32.mrf.mxu1 }
 0x34d   :  { %6618 = vmatpush.bf16.msrb.mxu2 %v9244_v16  ;;  %v9724_v16 = vor.u32 %v11077_v63, %v9721_v37  ;;  %v11059_v63 = vld [vmem:[#allocation2 + $0x344] sm:$0xf]  ;;  %v9649_v37 = vld [vmem:[#allocation2 + $0x358] sm:$0xf0] }
 0x34e   :  { %6631 = vmatpush.bf16.msrb.mxu3 %v9436_v26  ;;  %6593 = vmatmul.bf16.vlgmr.msrb.gmra.mxu0 %v11498_v48  ;;  %v11071_v26 = vld [vmem:[#allocation2 + $0x3a4] sm:$0xf] }
 0x34f   :  { %6637 = vmatpush.bf16.msra.mxu0 %v9796_v29  ;;  %6606 = vmatmul.bf16.vlgmr.msrb.gmra.mxu1 %v11500_v50  ;;  %v9697_v29 = vld [vmem:[#allocation2 + $0x3b8] sm:$0xf0] }
 0x350   :  { %6650 = vmatpush.bf16.msra.mxu1 %v9988_v28  ;;  %6619 = vmatmul.bf16.vlgmr.msrb.gmra.mxu2 %v11480_v30  ;;  %v10297_v30 = vld [vmem:[#allocation2 + $0x868] sm:$0xf0]  ;;  %v11119_v28 = vld [vmem:[#allocation2 + $0x524] sm:$0xf]  ;;  %v9700_v43 = vor.u32 %v11071_v26, %v9697_v29  ;;  %v11053_v26 = vld [vmem:[#allocation2 + $0x314] sm:$0xf] }
 0x351   :  { %6663 = vmatpush.bf16.msra.mxu2 %v10180_v31  ;;  %6632 = vmatmul.bf16.vlgmr.msrb.gmra.mxu3 %v11484_v34  ;;  %v9916_v34 = vor.u32 %v11125_v5, %v9913_v6  ;;  %v10300_v31 = vor.u32 %v11221_v11, %v10297_v30  ;;  %v9892_v46 = vor.u32 %v11119_v28, %v9889_v32  ;;  %v11107_v5 = vld [vmem:[#allocation2 + $0x4c4] sm:$0xf]  ;;  %v9841_v6 = vld [vmem:[#allocation2 + $0x4d8] sm:$0xf0]  ;;  %v9625_v29 = vld [vmem:[#allocation2 + $0x328] sm:$0xf0] }
 0x352   :  { %6676 = vmatpush.bf16.msra.mxu3 %v10372_v41  ;;  %v11215_v41 = vld [vmem:[#allocation2 + $0x824] sm:$0xf]  ;;  %v10225_v30 = vld [vmem:[#allocation2 + $0x7d8] sm:$0xf0]  ;;  %v11101_v28 = vld [vmem:[#allocation2 + $0x494] sm:$0xf] }
 0x353   :  { %6638 = vmatpush.bf16.msra.mxu0 %v9772_v51  ;;  %v9673_v51 = vld [vmem:[#allocation2 + $0x388] sm:$0xf0]  ;;  %v11203_v11 = vld [vmem:[#allocation2 + $0x7c4] sm:$0xf] }
 0x354   :  { %6651 = vmatpush.bf16.msra.mxu1 %v9964_v19  ;;  %v11113_v19 = vld [vmem:[#allocation2 + $0x4f4] sm:$0xf]  ;;  %v6388_v62 = vpop.f32.mrf.mxu0  ;;  %v11559_v4 = vpop.f32.mrf.mxu3  ;;  %v9676_v56 = vor.u32 %v11065_v7, %v9673_v51  ;;  %v9817_v32 = vld [vmem:[#allocation2 + $0x4a8] sm:$0xf0]  ;;  %v10012_v51 = vor.u32 %v11149_v36, %v10009_v40 }
 0x355   :  { %6664 = vmatpush.bf16.msra.mxu2 %v10156_v15  ;;  %v10276_v15 = vor.u32 %v11215_v41, %v10273_v42  ;;  %v11197_v42 = vld [vmem:[#allocation2 + $0x794] sm:$0xf]  ;;  %v9820_v7 = vor.u32 %v11101_v28, %v9817_v32  ;;  %v6704_v62 = vpack.c.bf16 %v11493_v44, %v11493_v44 }
 0x356   :  { %6677 = vmatpush.bf16.msra.mxu3 %v10348_v54  ;;  %v6412_v54 = vpop.f32.mrf.mxu2 }
 0x357   :  { %6639 = vmatpush.bf16.msra.mxu0 %v9748_v58  ;;  %v6401_v58 = vpop.f32.mrf.mxu1 }
 0x358   :  { %6652 = vmatpush.bf16.msra.mxu1 %v9940_v59  ;;  %v9868_v59 = vor.u32 %v11113_v19, %v9865_v22  ;;  %v6400_v19 = vadd.f32 %v11557_v17, %v11555_v12  ;;  %v6695_v22 = vpack.c.bf16 %v11382_v1, %v11382_v1  ;;  %v6702_v1 = vpack.c.bf16 %v11457_v23, %v11457_v23 }
 0x359   :  { %6665 = vmatpush.bf16.msra.mxu2 %v10132_v60  ;;  %v10060_v60 = vor.u32 %v11161_v38, %v10057_v18  ;;  %v6696_v38 = vpack.c.bf16 %v11391_v13, %v11391_v13  ;;  %v6697_v18 = vpack.c.bf16 %v11404_v49, %v11404_v49  ;;  %v6335_v13 = vadd.f32 %v11543_v57, %v11537_v3 }
 0x35a   :  { %6678 = vmatpush.bf16.msra.mxu3 %v10324_v10  ;;  %v10252_v10 = vor.u32 %v11209_v20, %v10249_v55  ;;  %v6698_v20 = vpack.c.bf16 %v11413_v0, %v11413_v0  ;;  %v6701_v55 = vpack.c.bf16 %v11448_v53, %v11448_v53  ;;  %v6413_v12 = vadd.f32 %v6412_v54, %v6400_v19 }
 0x35b   :  { %6640 = vmatpush.bf16.msra.mxu0 %v9724_v16  ;;  %v9652_v16 = vor.u32 %v11059_v63, %v9649_v37  ;;  %v6699_v49 = vpack.c.bf16 %v11426_v45, %v11426_v45  ;;  %v6700_v0 = vpack.c.bf16 %v11435_v2, %v11435_v2  ;;  %v6811_v3 = vsel %vm6806_vm0, %v6702_v1, 0 }
 0x35c   :  { %6653 = vmatpush.bf16.msra.mxu1 %v9916_v34  ;;  %v9844_v34 = vor.u32 %v11107_v5, %v9841_v6  ;;  %v6808_v53 = vsel %vm6806_vm0, %v6701_v55, 0  ;;  %v6426_v23 = vadd.f32 %v11559_v4, %v6413_v12  ;;  %v6348_v45 = vadd.f32 %v11545_v14, %v6335_v13 }
 0x35d   :  { %6666 = vmatpush.bf16.msra.mxu2 %v10108_v25  ;;  %v10036_v25 = vor.u32 %v11155_v8, %v10033_v24  ;;  %v6705_v58 = vpack.c.bf16 %v11513_v52, %v11513_v52  ;;  %v6817_v63 = vsel %vm6806_vm0, %v6704_v62, 0 }
 0x35e   :  { %6679 = vmatpush.bf16.msra.mxu3 %v10300_v31  ;;  %v10228_v31 = vor.u32 %v11203_v11, %v10225_v30  ;;  %v6414_v41 = vpop.f32.mrf.mxu2  ;;  %v6706_v30 = vpack.c.bf16 %v11522_v27, %v11522_v27 }
 0x35f   :  { %6641 = vmatpush.bf16.msra.mxu0 %v9700_v43  ;;  %v10201_v43 = vld [vmem:[#allocation2 + $0x7a8] sm:$0xf0] }
 0x360   :  { %6654 = vmatpush.bf16.msra.mxu1 %v9892_v46  ;;  %v6427_v46 = vpop.f32.mrf.mxu3 }
 0x361   :  { %6667 = vmatpush.bf16.msra.mxu2 %v10084_v47  ;;  %v9628_v47 = vor.u32 %v11053_v26, %v9625_v29  ;;  %v6823_v29 = vsel %vm6806_vm0, %v6706_v30, 0 }
 0x362   :  { %6680 = vmatpush.bf16.msra.mxu3 %v10276_v15  ;;  %v10204_v15 = vor.u32 %v11197_v42, %v10201_v43 }
 0x363   :  { %6642 = vmatpush.bf16.msra.mxu0 %v9676_v56 }
 0x364   :  { %6655 = vmatpush.bf16.msra.mxu1 %v9868_v59  ;;  %v6689_v59 = vpack.c.bf16 %v11535_v35, %v11535_v35 }
 0x365   :  { %6668 = vmatpush.bf16.msra.mxu2 %v10060_v60 }
 0x366   :  { %6681 = vmatpush.bf16.msra.mxu3 %v10252_v10 }
 0x367   :  { %6643 = vmatpush.bf16.msra.mxu0 %v9652_v16 }
 0x368   :  { %6656 = vmatpush.bf16.msra.mxu1 %v9844_v34 }
 0x369   :  { %6669 = vmatpush.bf16.msra.mxu2 %v10036_v25 }
 0x36a   :  { %6682 = vmatpush.bf16.msra.mxu3 %v10228_v31 }
 0x36b   :  { %6644 = vmatpush.bf16.msra.mxu0 %v9628_v47 }
 0x36c   :  { %6657 = vmatpush.bf16.msra.mxu1 %v9820_v7  ;;  %v6451_v57 = vpop.f32.mrf.mxu1 }
 0x36d   :  { %6670 = vmatpush.bf16.msra.mxu2 %v10012_v51 }
 0x36e   :  { %6683 = vmatpush.bf16.msra.mxu3 %v10204_v15  ;;  %6645 = vmatmul.bf16.vlgmr.msra.gmra.mxu0 %v11482_v33  ;;  %v6438_v33 = vpop.f32.mrf.mxu0 }
 0x36f   :  { %6714 = vmatpush.bf16.xpose.msrb.mxu0 %v6695_v22  ;;  %6658 = vmatmul.bf16.vlgmr.msra.gmra.mxu1 %v11486_v39  ;;  %v6439_v2 = vadd.f32 %v6438_v33, %v6426_v23  ;;  %v6361_v39 = vadd.f32 %v11547_v9, %v6348_v45 }
 0x370   :  { %6727 = vmatpush.bf16.xpose.msrb.mxu1 %v6696_v38  ;;  %6671 = vmatmul.bf16.vlgmr.msra.gmra.mxu2 %v11498_v48 }
 0x371   :  { %6740 = vmatpush.bf16.xpose.msrb.mxu2 %v6697_v18  ;;  %6684 = vmatmul.bf16.vlgmr.msra.gmra.mxu3 %v11500_v50  ;;  %v6452_v48 = vadd.f32 %v6451_v57, %v6439_v2  ;;  %v6374_v17 = vadd.f32 %v11549_v21, %v6361_v39  ;;  %v6703_v50 = vpack.c.bf16 %v11470_v61, %v11470_v61  ;;  %v6820_v61 = vsel %vm6806_vm0, %v6705_v58, 0 }
 0x372   :  { %6753 = vmatpush.bf16.xpose.msrb.mxu3 %v6698_v20 }
 0x373   :  { %v6464_v54 = vpop.f32.mrf.mxu2  ;;  %v6691_v4 = vpack.c.bf16 %v6452_v48, %v6452_v48  ;;  %v6690_v60 = vpack.c.bf16 %v6374_v17, %v6374_v17  ;;  %v6814_v21 = vsel %vm6806_vm0, %v6703_v50, 0 }
 0x374   :  { %v6477_v14 = vpop.f32.mrf.mxu3  ;;  %v6453_v9 = vpop.f32.mrf.mxu1 }
 0x375   :  { %v6478_v52 = vadd.f32 %v6477_v14, %v6464_v54 }
 0x376   :  { %v6440_v56 = vpop.f32.mrf.mxu0 }
 0x377   :  { %6766 = vmatpush.bf16.xpose.msra.mxu0 %v6699_v49 }
 0x378   :  { %6779 = vmatpush.bf16.xpose.msra.mxu1 %v6700_v0 }
 0x379   :  { %6832 = vmatpush.bf16.msra.mxu2 %v6808_v53 }
 0x37a   :  { %6845 = vmatpush.bf16.msra.mxu3 %v6811_v3 }
 0x37b   :  { %v6466_v44 = vpop.f32.mrf.mxu2 }
 0x37c   :  { %v6479_v37 = vpop.f32.mrf.mxu3 }
 0x37e   :  { %6715 = vmatmul.bf16.vlgmr.msrb.gmra.mxu0 %v6689_v59 }
 0x37f   :  { %6728 = vmatmul.bf16.vlgmr.msrb.gmra.mxu1 %v6690_v60  ;;  %6858 = vmatpush.bf16.msrb.mxu0 %v6814_v21 }
 0x380   :  { %6741 = vmatmul.bf16.vlgmr.msrb.gmra.mxu2 %v6691_v4  ;;  %6871 = vmatpush.bf16.msrb.mxu1 %v6817_v63 }
 0x381   :  { %6884 = vmatpush.bf16.msrb.mxu2 %v6820_v61 }
 0x38b   :  { %v6490_v5 = vpop.f32.mrf.mxu0 }
 0x38c   :  { %v6491_v10 = vadd.f32 %v6490_v5, %v6478_v52  ;;  %v6503_v35 = vpop.f32.mrf.mxu1  ;;  %v6786_v5 = vlaneseq }
 0x38e   :  { %v6504_v6 = vadd.f32 %v6503_v35, %v6491_v10  ;;  %v6787_v10 = vand.u32 127, %v6786_v5 }
 0x390   :  { %vm6788_vm1 = vcmp.lt.s32.totalorder %v6787_v10, 2 }
 0x393   :  { %v6516_v8 = vpop.f32.mrf.mxu2  ;;  %v6492_v34 = vpop.f32.mrf.mxu0 }
 0x394   :  { %v6517_v24 = vadd.f32 %v6516_v8, %v6504_v6  ;;  %v6529_v11 = vpop.f32.mrf.mxu3  ;;  %v6505_v25 = vpop.f32.mrf.mxu1 }
 0x396   :  { %v6530_v16 = vadd.f32 %v6529_v11, %v6517_v24 }
 0x398   :  { %v6692_v26 = vpack.c.bf16 %v6530_v16, %v6530_v16 }
 0x39a   :  { %6754 = vmatmul.bf16.vlgmr.msrb.gmra.mxu3 %v6692_v26 }
 0x39b   :  { %6897 = vmatpush.bf16.msrb.mxu3 %v6823_v29  ;;  %v6518_v28 = vpop.f32.mrf.mxu2 }
 0x39c   :  { %v6531_v31 = vpop.f32.mrf.mxu3 }
 0x3ab   :  { %v6542_v32 = vpop.f32.mrf.mxu0 }
 0x3ac   :  { %v6555_v36 = vpop.f32.mrf.mxu1 }
 0x3ad   :  { %v6556_v7 = vadd.f32 %v6555_v36, %v6542_v32 }
 0x3b3   :  { %v6568_v40 = vpop.f32.mrf.mxu2  ;;  %v6544_v41 = vpop.f32.mrf.mxu0 }
 0x3b4   :  { %v6581_v42 = vpop.f32.mrf.mxu3  ;;  %v6557_v43 = vpop.f32.mrf.mxu1  ;;  %v6569_v27 = vadd.f32 %v6568_v40, %v6556_v7 }
 0x3b6   :  { %v6582_v51 = vadd.f32 %v6581_v42, %v6569_v27 }
 0x3bb   :  { %v6570_v46 = vpop.f32.mrf.mxu2 }
 0x3bc   :  { %v6583_v47 = vpop.f32.mrf.mxu3 }
 0x3cb   :  { %v6594_v19 = vpop.f32.mrf.mxu0 }
 0x3cc   :  { %v6595_v15 = vadd.f32 %v6594_v19, %v6582_v51  ;;  %v6607_v22 = vpop.f32.mrf.mxu1 }
 0x3ce   :  { %v6608_v38 = vadd.f32 %v6607_v22, %v6595_v15 }
 0x3d0   :  { %v6693_v18 = vpack.c.bf16 %v6608_v38, %v6608_v38 }
 0x3d2   :  { %6767 = vmatmul.bf16.vlgmr.msra.gmra.mxu0 %v6693_v18 }
 0x3d3   :  { %v6620_v20 = vpop.f32.mrf.mxu2  ;;  %v6596_v12 = vpop.f32.mrf.mxu0 }
 0x3d4   :  { %v6633_v55 = vpop.f32.mrf.mxu3  ;;  %v6609_v1 = vpop.f32.mrf.mxu1 }
 0x3d5   :  { %v6634_v0 = vadd.f32 %v6633_v55, %v6620_v20 }
 0x3db   :  { %v6622_v13 = vpop.f32.mrf.mxu2 }
 0x3dc   :  { %v6635_v49 = vpop.f32.mrf.mxu3 }
 0x3eb   :  { %v6646_v53 = vpop.f32.mrf.mxu0 }
 0x3ec   :  { %v6659_v23 = vpop.f32.mrf.mxu1  ;;  %v6647_v3 = vadd.f32 %v6646_v53, %v6634_v0 }
 0x3ee   :  { %v6660_v45 = vadd.f32 %v6659_v23, %v6647_v3 }
 0x3f3   :  { %v6672_v33 = vpop.f32.mrf.mxu2  ;;  %v6648_v39 = vpop.f32.mrf.mxu0 }
 0x3f4   :  { %v6673_v2 = vadd.f32 %v6672_v33, %v6660_v45  ;;  %v6685_v57 = vpop.f32.mrf.mxu3  ;;  %v6661_v48 = vpop.f32.mrf.mxu1 }
 0x3f6   :  { %v6686_v17 = vadd.f32 %v6685_v57, %v6673_v2 }
 0x3f8   :  { %v6694_v54 = vpack.c.bf16 %v6686_v17, %v6686_v17 }
 0x3fa   :  { %6780 = vmatmul.bf16.vlgmr.msra.gmra.mxu1 %v6694_v54 }
 0x3fb   :  { %v6674_v50 = vpop.f32.mrf.mxu2  ;;  %v6716_v4 = vpop.f32.mrf.mxu0 }
 0x3fc   :  { %v6687_v62 = vpop.f32.mrf.mxu3  ;;  %v6729_v14 = vpop.f32.mrf.mxu1 }
 0x3fd   :  { %v6730_v56 = vadd.f32 %v6729_v14, %v6716_v4 }
 0x403   :  { %v6742_v58 = vpop.f32.mrf.mxu2  ;;  %v6718_v9 = vpop.f32.mrf.mxu0 }
 0x404   :  { %v6743_v59 = vadd.f32 %v6742_v58, %v6730_v56  ;;  %v6731_v60 = vpop.f32.mrf.mxu1 }
 0x40b   :  { %v6744_v21 = vpop.f32.mrf.mxu2 }
 0x41d   :  { %v6755_v63 = vpop.f32.mrf.mxu3 }
 0x41e   :  { %v6756_v61 = vadd.f32 %v6755_v63, %v6743_v59 }
 0x425   :  { %v6757_v44 = vpop.f32.mrf.mxu3 }
 0x44f   :  { %v6768_v37 = vpop.f32.mrf.mxu0 }
 0x450   :  { %v6769_v35 = vadd.f32 %v6768_v37, %v6756_v61 }
 0x457   :  { %v6770_v52 = vpop.f32.mrf.mxu0 }
 0x477   :  { %v6781_v6 = vpop.f32.mrf.mxu1 }
 0x478   :  { %v6782_v8 = vadd.f32 %v6781_v6, %v6769_v35 }
 0x47a   :  { %v6785_v24 = vmul.f32 27.712812, %v6782_v8 }
 0x47c   :  { %v6789_v11 = vsel %vm6788_vm1, %v6785_v24, -1e+30 }
 0x47d   :  { %v6791_v30 = vsel %vm6790_vm2, %v6789_v11, -inf }
 0x47e   :  { %6792 = vmax.xlane.f32.xlu0 %v6791_v30 }
 0x47f   :  { %v6783_v16 = vpop.f32.mrf.mxu1 }
 0x4f1   :  { %v6793_v34 = vpop.xlane.xlu0 %6792 }
 0x4f2   :  { %v6794_v25 = vsub.f32 %v6789_v11, %v6793_v34 }
 0x4f4   :  { %v6795_v26 = vmul.f32 1.442695, %v6794_v25 }
 0x4f6   :  { %11249 = vpow2.f32 %v6795_v26 }
 0x4fc   :  { %v11250_v29 = vpop.eup %11249 }
 0x4fd   :  { %v6797_v28 = vsel %vm6790_vm2, %v11250_v29, 0.0 }
 0x4fe   :  { %6798 = vadd.xlane.f32.xlu0 %v6797_v28 }
 0x571   :  { %v6799_v31 = vpop.xlane.xlu0 %6798 }
 0x572   :  { %11251 = vrcp.f32 %v6799_v31 }
 0x578   :  { %v11252_v32 = vpop.eup %11251 }
 0x579   :  { %v6801_v36 = vmul.f32 %v11252_v32, %v11250_v29 }
 0x57b   :  { %v6802_v40 = vpack.c.bf16 %v6801_v36, %v6801_v36 }
 0x57d   :  { %10373 = vmatmul.msk.bf16.vlgmr.msra.gmra.mxu2 %vm6790_vm2, %v6802_v40  ;;  %10374 = vmatmul.msk.bf16.vlgmr.msra.gmra.mxu3 %vm6790_vm2, %v6802_v40 }
 0x57e   :  { %10375 = vmatmul.msk.bf16.vlgmr.msrb.gmra.mxu0 %vm6790_vm2, %v6802_v40  ;;  %10376 = vmatmul.msk.bf16.vlgmr.msrb.gmra.mxu1 %vm6790_vm2, %v6802_v40 }
 0x58d   :  { %10377 = vmatmul.msk.bf16.vlgmr.msrb.gmra.mxu2 %vm6790_vm2, %v6802_v40  ;;  %10378 = vmatmul.msk.bf16.vlgmr.msrb.gmra.mxu3 %vm6790_vm2, %v6802_v40 }
 0x5fb   :  { %v6860_v41 = vpop.f32.mrf.mxu0  ;;  %v6873_v42 = vpop.f32.mrf.mxu1 }
 0x5fc   :  { %6905 = vst [vmem:[%s11634_s3 + $0x10] sm:$0xff] %v6860_v41 }
 0x5fd   :  { %6906 = vst [vmem:[%s11634_s3 + $0x18] sm:$0xff] %v6873_v42 }
 0x600   :  { %v6834_v43 = vpop.f32.mrf.mxu2  ;;  %v6847_v46 = vpop.f32.mrf.mxu3 }
 0x601   :  { %6903 = vst [vmem:[%s11634_s3] sm:$0xff] %v6834_v43 }
 0x602   :  { %6904 = vst [vmem:[%s11634_s3 + $0x8] sm:$0xff] %v6847_v46 }
 0x603   :  { %v6862_v47 = vpop.f32.mrf.mxu0  ;;  %v6875_v7 = vpop.f32.mrf.mxu1 }
 0x608   :  { %v6836_v27 = vpop.f32.mrf.mxu2  ;;  %v6849_v51 = vpop.f32.mrf.mxu3 }
 0x610   :  { %v6886_v19 = vpop.f32.mrf.mxu2  ;;  %v6899_v15 = vpop.f32.mrf.mxu3 }
 0x611   :  { %6907 = vst [vmem:[%s11634_s3 + $0x20] sm:$0xff] %v6886_v19 }
 0x612   :  { %6908 = vst [vmem:[%s11634_s3 + $0x28] sm:$0xff] %v6899_v15 }
 0x618   :  { %v6888_v22 = vpop.f32.mrf.mxu2  ;;  %v6901_v38 = vpop.f32.mrf.mxu3 }
 0x619   :  { %6913 = vsyncpa [#allocation3], 1 }
 0x61a   :  { %6914 = vsyncpa [#allocation5], 1 }

</bundles_post_ra>
